<compile_context>
chip_gen: v7x
topology: tpu7x:2x2x1
jax: 0.10.0
libtpu: 0.0.40
codegen_flags: <defaults>
</compile_context>

<pallas_src>
import functools

import jax
import jax.numpy as jnp
from jax.experimental import pallas as pl
from jax.experimental.pallas import tpu as pltpu

_LRELU_SLOPE = 0.01           # nn.LeakyReLU() default (reference module passes no arg)
_IN_EPS = 1e-5                # nn.InstanceNorm2d default
_VMEM_LIMIT = 32 * 1024 * 1024
_FUSE_NORM_BYTES = 20 * 1024 * 1024   # working-set budget for the fused norm path


def _round_up(x, m):
    return (x + m - 1) // m * m


# ---------------------------------------------------------------------------
# Kernel 1: single-shot GEMM (patches @ weight) + bias + optional LeakyReLU
# ---------------------------------------------------------------------------
def _gemm_bias_act_kernel(x_ref, w_ref, b_ref, o_ref, *, has_bias, apply_lrelu, slope):
    # x_ref: (tp, Kpad) bf16 | w_ref: (Kpad, Cpad) bf16 (VMEM-resident)
    # b_ref: (1, Cpad) f32   | o_ref: (tp, Cpad) out dtype
    y = jnp.dot(x_ref[...], w_ref[...], preferred_element_type=jnp.float32)
    if has_bias:
        y = y + b_ref[...]
    if apply_lrelu:
        y = jnp.where(y > 0.0, y, slope * y)
    o_ref[...] = y.astype(o_ref.dtype)


# ---------------------------------------------------------------------------
# Kernel 2: fused GEMM + InstanceNorm2d + LeakyReLU, one sample per grid step
# ---------------------------------------------------------------------------
def _gemm_instnorm_lrelu_kernel(x_ref, w_ref, o_ref, *, inv_p, eps, slope):
    # x_ref: (1, Ppad, Kpad) bf16 | w_ref: (Kpad, Cpad) bf16 | o_ref: (1, Ppad, Cpad)
    y = jnp.dot(x_ref[0], w_ref[...], preferred_element_type=jnp.float32)
    # Rows >= P are exact zeros (zero-padded patches, bias-free conv), so the
    # sums over all Ppad rows equal the sums over the P real rows; inv_p = 1/P.
    s = jnp.sum(y, axis=0, keepdims=True)
    sq = jnp.sum(y * y, axis=0, keepdims=True)
    mean = s * inv_p
    var = jnp.maximum(sq * inv_p - mean * mean, 0.0)   # biased var (InstanceNorm2d)
    yn = (y - mean) * jax.lax.rsqrt(var + eps)
    yn = jnp.where(yn > 0.0, yn, slope * yn)
    o_ref[0] = yn.astype(o_ref.dtype)


# ---------------------------------------------------------------------------
# Kernel 3 (fallback): standalone InstanceNorm2d + LeakyReLU per channel tile
# ---------------------------------------------------------------------------
def _instnorm_lrelu_kernel(x_ref, o_ref, *, inv_p, eps, slope, apply_lrelu):
    # TODO(synk): for very large P (real-size images on v7x) tile P with a
    # running sum / sum-of-squares accumulator instead of a full (P, 128) block.
    x = x_ref[0].astype(jnp.float32)               # (P, 128)
    s = jnp.sum(x, axis=0, keepdims=True)
    sq = jnp.sum(x * x, axis=0, keepdims=True)     # one pass: sum & sum-of-sq
    mean = s * inv_p
    var = jnp.maximum(sq * inv_p - mean * mean, 0.0)
    y = (x - mean) * jax.lax.rsqrt(var + eps)
    if apply_lrelu:
        y = jnp.where(y > 0.0, y, slope * y)
    o_ref[0] = y.astype(o_ref.dtype)


# ---------------------------------------------------------------------------
# Wrapper-side layout glue (XLA ops only, no compute; all bf16)
# ---------------------------------------------------------------------------
def _im2col_general(xp, kh, kw, stride, Ho, Wo):
    """im2col, K ordered (ky, kx, cin)."""
    N, _, _, Cin = xp.shape
    cols = []
    for i in range(kh):
        for j in range(kw):
            cols.append(xp[:, i:i + stride * (Ho - 1) + 1:stride,
                           j:j + stride * (Wo - 1) + 1:stride, :])
    return jnp.concatenate(cols, axis=-1).reshape(N, Ho * Wo, kh * kw * Cin)


def _im2col_s2d(xp, w_oihw, Ho, Wo):
    """im2col for a 4x4 / stride-2 conv via 2x2 space-to-depth.

    The 4x4/s2 conv over xp equals a 2x2/s1 conv over the space-to-depth
    tensor, so the patch tensor is only 4x (not 16x) inflated.  K ordered
    (dy, dx, ry, rx, cin); returns the matching reordered weight (K, Cout).
    """
    N, Hp, Wp, Cin = xp.shape
    Cout = w_oihw.shape[0]
    xs = xp.reshape(N, Hp // 2, 2, Wp // 2, 2, Cin)
    xs = jnp.transpose(xs, (0, 1, 3, 2, 4, 5)).reshape(N, Hp // 2, Wp // 2, 4 * Cin)
    # TODO(synk): for real-size images, pass `xs` directly to the kernel and
    # form the four 2x2-shifted windows from the VMEM-resident block to avoid
    # materializing this 4x-inflated patch tensor in HBM.
    cols = [xs[:, dy:dy + Ho, dx:dx + Wo, :] for dy in range(2) for dx in range(2)]
    patches = jnp.concatenate(cols, axis=-1).reshape(N, Ho * Wo, 16 * Cin)
    w_r = w_oihw.reshape(Cout, Cin, 2, 2, 2, 2)              # (o, c, dy, ry, dx, rx)
    wmat = jnp.transpose(w_r, (2, 4, 3, 5, 1, 0)).reshape(16 * Cin, Cout)
    return patches, wmat


def conv_layer(x_nhwc, w_oihw, bias, *, stride, padding, apply_norm, apply_lrelu,
               out_dtype=jnp.bfloat16):
    """Conv2d + optional InstanceNorm2d + optional LeakyReLU (one layer)."""
    N, H, W, Cin = x_nhwc.shape
    Cout, _, kh, kw = w_oihw.shape
    pad = ((padding, padding), (padding, padding)) if isinstance(padding, int) else padding

    xp = jnp.pad(x_nhwc, ((0, 0), pad[0], pad[1], (0, 0)))
    Hp, Wp = xp.shape[1], xp.shape[2]
    Ho = (Hp - kh) // stride + 1
    Wo = (Wp - kw) // stride + 1
    P = Ho * Wo

    if stride == 2 and kh == 4 and kw == 4 and Hp % 2 == 0 and Wp % 2 == 0:
        patches, wmat = _im2col_s2d(xp, w_oihw, Ho, Wo)
    else:
        patches = _im2col_general(xp, kh, kw, stride, Ho, Wo)
        wmat = jnp.transpose(w_oihw, (2, 3, 1, 0)).reshape(kh * kw * Cin, Cout)

    K = patches.shape[-1]
    Cpad = _round_up(Cout, 128)         # lane-dense output stores
    Kpad = _round_up(K, 128)            # single resident contraction block
    w2d = jnp.pad(wmat.astype(jnp.bfloat16), ((0, Kpad - K), (0, Cpad - Cout)))

    params = pltpu.CompilerParams(dimension_semantics=("parallel",),
                                  vmem_limit_bytes=_VMEM_LIMIT)

    # ---- fused GEMM + InstanceNorm + LeakyReLU (one sample per grid step) ----
    if apply_norm:
        assert bias is None  # downsample() convs have bias=False
        Ppad = _round_up(P, 16)
        fused_bytes = (2 * Ppad * Kpad * 2      # double-buffered x block
                       + Kpad * Cpad * 2        # resident weight
                       + 2 * Ppad * Cpad * 2    # double-buffered out block
                       + 3 * Ppad * Cpad * 4)   # in-kernel f32 temporaries
        if fused_bytes <= _FUSE_NORM_BYTES:
            x3d = jnp.pad(patches.astype(jnp.bfloat16),
                          ((0, 0), (0, Ppad - P), (0, Kpad - K)))
            fused = functools.partial(_gemm_instnorm_lrelu_kernel,
                                      inv_p=1.0 / P, eps=_IN_EPS, slope=_LRELU_SLOPE)
            out3d = pl.pallas_call(
                fused,
                out_shape=jax.ShapeDtypeStruct((N, Ppad, Cpad), out_dtype),
                grid=(N,),
                in_specs=[
                    pl.BlockSpec((1, Ppad, Kpad), lambda n: (n, 0, 0)),
                    pl.BlockSpec((Kpad, Cpad), lambda n: (0, 0)),   # weight resident
                ],
                out_specs=pl.BlockSpec((1, Ppad, Cpad), lambda n: (n, 0, 0)),
                compiler_params=params,
            )(x3d, w2d)
            return out3d[:, :P, :Cout].reshape(N, Ho, Wo, Cout)

    # ---- plain GEMM (+ bias / LeakyReLU), then optional separate norm ----
    R = N * P
    tp = min(256, _round_up(R, 16))     # 16-row bf16 packing; >=2 tiles when R allows
    Rpad = _round_up(R, tp)
    n_row_tiles = Rpad // tp

    x2d = patches.reshape(R, K).astype(jnp.bfloat16)
    x2d = jnp.pad(x2d, ((0, Rpad - R), (0, Kpad - K)))
    if bias is None:
        b2d = jnp.zeros((1, Cpad), jnp.float32)
    else:
        b2d = jnp.pad(bias.astype(jnp.float32), (0, Cpad - Cout)).reshape(1, Cpad)

    x_spec_kwargs = {}
    if n_row_tiles >= 4:
        # v5e: hide x-tile DMA behind the MXU once the weight is resident.
        x_spec_kwargs["pipeline_mode"] = pl.Buffered(3)

    gemm = functools.partial(_gemm_bias_act_kernel,
                             has_bias=bias is not None,
                             apply_lrelu=apply_lrelu and not apply_norm,
                             slope=_LRELU_SLOPE)
    out2d = pl.pallas_call(
        gemm,
        out_shape=jax.ShapeDtypeStruct((Rpad, Cpad), out_dtype),
        grid=(n_row_tiles,),
        in_specs=[
            pl.BlockSpec((tp, Kpad), lambda r: (r, 0), **x_spec_kwargs),
            pl.BlockSpec((Kpad, Cpad), lambda r: (0, 0)),   # weight resident
            pl.BlockSpec((1, Cpad), lambda r: (0, 0)),
        ],
        out_specs=pl.BlockSpec((tp, Cpad), lambda r: (r, 0)),
        compiler_params=params,
    )(x2d, w2d, b2d)

    out = out2d[:R].reshape(N, P, Cpad)

    if apply_norm:   # fallback path (per-sample tile too large for VMEM)
        norm = functools.partial(_instnorm_lrelu_kernel,
                                 inv_p=1.0 / P, eps=_IN_EPS,
                                 slope=_LRELU_SLOPE, apply_lrelu=apply_lrelu)
        out = pl.pallas_call(
            norm,
            out_shape=jax.ShapeDtypeStruct((N, P, Cpad), out_dtype),
            grid=(N, Cpad // 128),
            in_specs=[pl.BlockSpec((1, P, 128), lambda n, c: (n, 0, c))],
            out_specs=pl.BlockSpec((1, P, 128), lambda n, c: (n, 0, c)),
            compiler_params=pltpu.CompilerParams(
                dimension_semantics=("parallel", "parallel"),
                vmem_limit_bytes=_VMEM_LIMIT),
        )(out)

    return out[:, :, :Cout].reshape(N, Ho, Wo, Cout)


# ---------------------------------------------------------------------------
# Parameters & forward pass (matches the PyTorch Discriminator)
# ---------------------------------------------------------------------------
def init_params(key):
    """PyTorch-default-style (kaiming-uniform-ish) deterministic init."""
    specs = [(3, 64), (64, 128), (128, 256), (256, 512)]
    keys = jax.random.split(key, len(specs) + 2)
    params = {}
    for idx, (cin, cout) in enumerate(specs):
        bound = 1.0 / float(cin * 4 * 4) ** 0.5
        params[f"w{idx}"] = jax.random.uniform(
            keys[idx], (cout, cin, 4, 4), jnp.float32, -bound, bound)
    bound = 1.0 / float(512 * 4 * 4) ** 0.5
    params["w_final"] = jax.random.uniform(
        keys[-2], (1, 512, 4, 4), jnp.float32, -bound, bound)
    params["b_final"] = jax.random.uniform(
        keys[-1], (1,), jnp.float32, -bound, bound)
    return params


def discriminator_forward(params, x_nchw):
    # Input is NCHW like PyTorch; run NHWC / bf16 internally.
    x = jnp.transpose(x_nchw, (0, 2, 3, 1)).astype(jnp.bfloat16)
    # downsample(3, 64, apply_instancenorm=False): conv(k4,s2,p1,bias=False)+LeakyReLU
    x = conv_layer(x, params["w0"], None, stride=2, padding=1,
                   apply_norm=False, apply_lrelu=True)
    # downsample(64, 128): conv + InstanceNorm + LeakyReLU
    x = conv_layer(x, params["w1"], None, stride=2, padding=1,
                   apply_norm=True, apply_lrelu=True)
    # downsample(128, 256)
    x = conv_layer(x, params["w2"], None, stride=2, padding=1,
                   apply_norm=True, apply_lrelu=True)
    # downsample(256, 512)
    x = conv_layer(x, params["w3"], None, stride=2, padding=1,
                   apply_norm=True, apply_lrelu=True)
    # ZeroPad2d((1,0,1,0)) + Conv2d(512, 1, 4, padding=1, bias=True)
    # => asymmetric padding (top,bot)=(2,1), (left,right)=(2,1), stride 1.
    x = conv_layer(x, params["w_final"], params["b_final"], stride=1,
                   padding=((2, 1), (2, 1)), apply_norm=False, apply_lrelu=False,
                   out_dtype=jnp.float32)
    # Back to NCHW: (N, 1, H//16, W//16)
    return jnp.transpose(x, (0, 3, 1, 2))


if __name__ == "__main__":
    key = jax.random.PRNGKey(0)
    k_param, k_x = jax.random.split(key)
    params = init_params(k_param)

    # Small shapes consistent with the module: batch=2, channels=3, spatial=32.
    x = jax.random.normal(k_x, (2, 3, 32, 32), dtype=jnp.float32)

    out = jax.jit(discriminator_forward)(params, x)
    out = jax.block_until_ready(out)

    # Discriminator.output_shape for (3, 32, 32) is (1, 2, 2).
    assert out.shape == (2, 1, 32 // 16, 32 // 16), out.shape
    assert bool(jnp.all(jnp.isfinite(out)))
    print("KERNEL_OK")
</pallas_src>

<mosaic_0001>
module attributes {stable_mosaic.version = 11 : i64} {
  func.func @_gemm_bias_act_kernel(%arg0: i32, %arg1: memref<256x128xbf16, #tpu.memory_space<vmem>>, %arg2: memref<128x128xbf16, #tpu.memory_space<vmem>>, %arg3: memref<1x128xf32, #tpu.memory_space<vmem>>, %arg4: memref<256x128xbf16, #tpu.memory_space<vmem>>) attributes {dimension_semantics = [#tpu.dimension_semantics<parallel>], iteration_bounds = array<i64: 2>, scalar_prefetch = 0 : i64, scratch_operands = 0 : i64, tpu.core_type = #tpu.core_type<tc>, window_params = [{transform_indices = @transform_0, window_bounds = array<i64: 256, 128>}, {pipeline_mode = #tpu.pipeline_mode<synchronous>, transform_indices = @transform_1, window_bounds = array<i64: 128, 128>}, {pipeline_mode = #tpu.pipeline_mode<synchronous>, transform_indices = @transform_2, window_bounds = array<i64: 1, 128>}, {transform_indices = @transform_3, window_bounds = array<i64: 256, 128>}]} {
    %c0 = arith.constant 0 : index
    %c0_0 = arith.constant 0 : index
    %0 = vector.load %arg1[%c0, %c0_0] : memref<256x128xbf16, #tpu.memory_space<vmem>>, vector<256x128xbf16>
    %c0_1 = arith.constant 0 : index
    %c0_2 = arith.constant 0 : index
    %1 = vector.load %arg2[%c0_1, %c0_2] : memref<128x128xbf16, #tpu.memory_space<vmem>>, vector<128x128xbf16>
    %cst = arith.constant dense<0.000000e+00> : vector<256x128xf32>
    %2 = tpu.matmul %0, %1, %cst {dimension_numbers = #tpu.dot_dimension_numbers<[1], [0], [0], [1], [0, 0, 1, 1], [], []>} : vector<256x128xbf16>, vector<128x128xbf16>, vector<256x128xf32> -> vector<256x128xf32>
    %cst_3 = arith.constant 0.000000e+00 : f32
    %3 = vector.broadcast %cst_3 : f32 to vector<256x128xf32>
    %4 = arith.cmpf ogt, %2, %3 : vector<256x128xf32>
    %cst_4 = arith.constant 0.00999999977 : f32
    %5 = vector.broadcast %cst_4 : f32 to vector<256x128xf32>
    %6 = arith.mulf %5, %2 : vector<256x128xf32>
    %7 = arith.select %4, %2, %6 : vector<256x128xi1>, vector<256x128xf32>
    %8 = arith.truncf %7 : vector<256x128xf32> to vector<256x128xbf16>
    %c0_5 = arith.constant 0 : index
    %c0_6 = arith.constant 0 : index
    %9 = vector.load %arg4[%c0_5, %c0_6] : memref<256x128xbf16, #tpu.memory_space<vmem>>, vector<256x128xbf16>
    tpu.vector_store %arg4[%c0_5, %c0_6], %8 {strides = array<i32>} : memref<256x128xbf16, #tpu.memory_space<vmem>>, vector<256x128xbf16>,
    return
  }
  func.func @transform_0(%arg0: i32) -> (i32, i32) {
    %c0_i32 = arith.constant 0 : i32
    %c0_i32_0 = arith.constant 0 : i32
    return %arg0, %c0_i32 : i32, i32
  }
  func.func @transform_1(%arg0: i32) -> (i32, i32) {
    %c0_i32 = arith.constant 0 : i32
    %c0_i32_0 = arith.constant 0 : i32
    %c0_i32_1 = arith.constant 0 : i32
    return %c0_i32, %c0_i32_0 : i32, i32
  }
  func.func @transform_2(%arg0: i32) -> (i32, i32) {
    %c0_i32 = arith.constant 0 : i32
    %c0_i32_0 = arith.constant 0 : i32
    %c0_i32_1 = arith.constant 0 : i32
    return %c0_i32, %c0_i32_0 : i32, i32
  }
  func.func @transform_3(%arg0: i32) -> (i32, i32) {
    %c0_i32 = arith.constant 0 : i32
    %c0_i32_0 = arith.constant 0 : i32
    return %arg0, %c0_i32 : i32, i32
  }
}

module attributes {stable_mosaic.version = 11 : i64} {
  func.func @_gemm_instnorm_lrelu_kernel(%arg0: i32, %arg1: memref<1x64x1024xbf16, #tpu.memory_space<vmem>>, %arg2: memref<1024x128xbf16, #tpu.memory_space<vmem>>, %arg3: memref<1x64x128xbf16, #tpu.memory_space<vmem>>) attributes {dimension_semantics = [#tpu.dimension_semantics<parallel>], iteration_bounds = array<i64: 2>, scalar_prefetch = 0 : i64, scratch_operands = 0 : i64, tpu.core_type = #tpu.core_type<tc>, window_params = [{transform_indices = @transform_0, window_bounds = array<i64: 1, 64, 1024>}, {pipeline_mode = #tpu.pipeline_mode<synchronous>, transform_indices = @transform_1, window_bounds = array<i64: 1024, 128>}, {transform_indices = @transform_2, window_bounds = array<i64: 1, 64, 128>}]} {
    %c0 = arith.constant 0 : index
    %c0_0 = arith.constant 0 : index
    %c0_1 = arith.constant 0 : index
    %0 = vector.load %arg1[%c0, %c0_0, %c0_1] : memref<1x64x1024xbf16, #tpu.memory_space<vmem>>, vector<1x64x1024xbf16>
    %1 = vector.shape_cast %0 : vector<1x64x1024xbf16> to vector<64x1024xbf16>
    %c0_2 = arith.constant 0 : index
    %c0_3 = arith.constant 0 : index
    %2 = vector.load %arg2[%c0_2, %c0_3] : memref<1024x128xbf16, #tpu.memory_space<vmem>>, vector<1024x128xbf16>
    %cst = arith.constant dense<0.000000e+00> : vector<64x128xf32>
    %3 = tpu.matmul %1, %2, %cst {dimension_numbers = #tpu.dot_dimension_numbers<[1], [0], [0], [1], [0, 0, 1, 1], [], []>} : vector<64x1024xbf16>, vector<1024x128xbf16>, vector<64x128xf32> -> vector<64x128xf32>
    %cst_4 = arith.constant dense<0.000000e+00> : vector<128xf32>
    %4 = vector.multi_reduction <add>, %3, %cst_4 [0] : vector<64x128xf32> to vector<128xf32>
    %5 = vector.shape_cast %4 : vector<128xf32> to vector<1x128xf32>
    %6 = arith.mulf %3, %3 : vector<64x128xf32>
    %cst_5 = arith.constant dense<0.000000e+00> : vector<128xf32>
    %7 = vector.multi_reduction <add>, %6, %cst_5 [0] : vector<64x128xf32> to vector<128xf32>
    %8 = vector.shape_cast %7 : vector<128xf32> to vector<1x128xf32>
    %cst_6 = arith.constant 1.562500e-02 : f32
    %9 = vector.broadcast %cst_6 : f32 to vector<1x128xf32>
    %10 = arith.mulf %5, %9 : vector<1x128xf32>
    %cst_7 = arith.constant 1.562500e-02 : f32
    %11 = vector.broadcast %cst_7 : f32 to vector<1x128xf32>
    %12 = arith.mulf %8, %11 : vector<1x128xf32>
    %13 = arith.mulf %10, %10 : vector<1x128xf32>
    %14 = arith.subf %12, %13 : vector<1x128xf32>
    %cst_8 = arith.constant 0.000000e+00 : f32
    %15 = vector.broadcast %cst_8 : f32 to vector<1x128xf32>
    %16 = arith.maximumf %14, %15 : vector<1x128xf32>
    %17 = vector.broadcast %10 : vector<1x128xf32> to vector<64x128xf32>
    %18 = arith.subf %3, %17 : vector<64x128xf32>
    %cst_9 = arith.constant 9.99999974E-6 : f32
    %19 = vector.broadcast %cst_9 : f32 to vector<1x128xf32>
    %20 = arith.addf %16, %19 : vector<1x128xf32>
    %21 = math.rsqrt %20 : vector<1x128xf32>
    %22 = vector.broadcast %21 : vector<1x128xf32> to vector<64x128xf32>
    %23 = arith.mulf %18, %22 : vector<64x128xf32>
    %cst_10 = arith.constant 0.000000e+00 : f32
    %24 = vector.broadcast %cst_10 : f32 to vector<64x128xf32>
    %25 = arith.cmpf ogt, %23, %24 : vector<64x128xf32>
    %cst_11 = arith.constant 0.00999999977 : f32
    %26 = vector.broadcast %cst_11 : f32 to vector<64x128xf32>
    %27 = arith.mulf %26, %23 : vector<64x128xf32>
    %28 = arith.select %25, %23, %27 : vector<64x128xi1>, vector<64x128xf32>
    %29 = arith.truncf %28 : vector<64x128xf32> to vector<64x128xbf16>
    %c0_12 = arith.constant 0 : index
    %c0_13 = arith.constant 0 : index
    %c0_14 = arith.constant 0 : index
    %30 = vector.load %arg3[%c0_12, %c0_13, %c0_14] : memref<1x64x128xbf16, #tpu.memory_space<vmem>>, vector<1x64x128xbf16>
    %31 = vector.shape_cast %30 : vector<1x64x128xbf16> to vector<64x128xbf16>
    %32 = vector.shape_cast %29 : vector<64x128xbf16> to vector<1x64x128xbf16>
    tpu.vector_store %arg3[%c0_12, %c0_13, %c0_14], %32 {strides = array<i32>} : memref<1x64x128xbf16, #tpu.memory_space<vmem>>, vector<1x64x128xbf16>,
    return
  }
  func.func @transform_0(%arg0: i32) -> (i32, i32, i32) {
    %c0_i32 = arith.constant 0 : i32
    %c0_i32_0 = arith.constant 0 : i32
    %c0_i32_1 = arith.constant 0 : i32
    return %arg0, %c0_i32, %c0_i32_0 : i32, i32, i32
  }
  func.func @transform_1(%arg0: i32) -> (i32, i32) {
    %c0_i32 = arith.constant 0 : i32
    %c0_i32_0 = arith.constant 0 : i32
    %c0_i32_1 = arith.constant 0 : i32
    return %c0_i32, %c0_i32_0 : i32, i32
  }
  func.func @transform_2(%arg0: i32) -> (i32, i32, i32) {
    %c0_i32 = arith.constant 0 : i32
    %c0_i32_0 = arith.constant 0 : i32
    %c0_i32_1 = arith.constant 0 : i32
    return %arg0, %c0_i32, %c0_i32_0 : i32, i32, i32
  }
}

module attributes {stable_mosaic.version = 11 : i64} {
  func.func @_gemm_instnorm_lrelu_kernel(%arg0: i32, %arg1: memref<1x16x2048xbf16, #tpu.memory_space<vmem>>, %arg2: memref<2048x256xbf16, #tpu.memory_space<vmem>>, %arg3: memref<1x16x256xbf16, #tpu.memory_space<vmem>>) attributes {dimension_semantics = [#tpu.dimension_semantics<parallel>], iteration_bounds = array<i64: 2>, scalar_prefetch = 0 : i64, scratch_operands = 0 : i64, tpu.core_type = #tpu.core_type<tc>, window_params = [{transform_indices = @transform_0, window_bounds = array<i64: 1, 16, 2048>}, {pipeline_mode = #tpu.pipeline_mode<synchronous>, transform_indices = @transform_1, window_bounds = array<i64: 2048, 256>}, {transform_indices = @transform_2, window_bounds = array<i64: 1, 16, 256>}]} {
    %c0 = arith.constant 0 : index
    %c0_0 = arith.constant 0 : index
    %c0_1 = arith.constant 0 : index
    %0 = vector.load %arg1[%c0, %c0_0, %c0_1] : memref<1x16x2048xbf16, #tpu.memory_space<vmem>>, vector<1x16x2048xbf16>
    %1 = vector.shape_cast %0 : vector<1x16x2048xbf16> to vector<16x2048xbf16>
    %c0_2 = arith.constant 0 : index
    %c0_3 = arith.constant 0 : index
    %2 = vector.load %arg2[%c0_2, %c0_3] : memref<2048x256xbf16, #tpu.memory_space<vmem>>, vector<2048x256xbf16>
    %cst = arith.constant dense<0.000000e+00> : vector<16x256xf32>
    %3 = tpu.matmul %1, %2, %cst {dimension_numbers = #tpu.dot_dimension_numbers<[1], [0], [0], [1], [0, 0, 1, 1], [], []>} : vector<16x2048xbf16>, vector<2048x256xbf16>, vector<16x256xf32> -> vector<16x256xf32>
    %cst_4 = arith.constant dense<0.000000e+00> : vector<256xf32>
    %4 = vector.multi_reduction <add>, %3, %cst_4 [0] : vector<16x256xf32> to vector<256xf32>
    %5 = vector.shape_cast %4 : vector<256xf32> to vector<1x256xf32>
    %6 = arith.mulf %3, %3 : vector<16x256xf32>
    %cst_5 = arith.constant dense<0.000000e+00> : vector<256xf32>
    %7 = vector.multi_reduction <add>, %6, %cst_5 [0] : vector<16x256xf32> to vector<256xf32>
    %8 = vector.shape_cast %7 : vector<256xf32> to vector<1x256xf32>
    %cst_6 = arith.constant 6.250000e-02 : f32
    %9 = vector.broadcast %cst_6 : f32 to vector<1x256xf32>
    %10 = arith.mulf %5, %9 : vector<1x256xf32>
    %cst_7 = arith.constant 6.250000e-02 : f32
    %11 = vector.broadcast %cst_7 : f32 to vector<1x256xf32>
    %12 = arith.mulf %8, %11 : vector<1x256xf32>
    %13 = arith.mulf %10, %10 : vector<1x256xf32>
    %14 = arith.subf %12, %13 : vector<1x256xf32>
    %cst_8 = arith.constant 0.000000e+00 : f32
    %15 = vector.broadcast %cst_8 : f32 to vector<1x256xf32>
    %16 = arith.maximumf %14, %15 : vector<1x256xf32>
    %17 = vector.broadcast %10 : vector<1x256xf32> to vector<16x256xf32>
    %18 = arith.subf %3, %17 : vector<16x256xf32>
    %cst_9 = arith.constant 9.99999974E-6 : f32
    %19 = vector.broadcast %cst_9 : f32 to vector<1x256xf32>
    %20 = arith.addf %16, %19 : vector<1x256xf32>
    %21 = math.rsqrt %20 : vector<1x256xf32>
    %22 = vector.broadcast %21 : vector<1x256xf32> to vector<16x256xf32>
    %23 = arith.mulf %18, %22 : vector<16x256xf32>
    %cst_10 = arith.constant 0.000000e+00 : f32
    %24 = vector.broadcast %cst_10 : f32 to vector<16x256xf32>
    %25 = arith.cmpf ogt, %23, %24 : vector<16x256xf32>
    %cst_11 = arith.constant 0.00999999977 : f32
    %26 = vector.broadcast %cst_11 : f32 to vector<16x256xf32>
    %27 = arith.mulf %26, %23 : vector<16x256xf32>
    %28 = arith.select %25, %23, %27 : vector<16x256xi1>, vector<16x256xf32>
    %29 = arith.truncf %28 : vector<16x256xf32> to vector<16x256xbf16>
    %c0_12 = arith.constant 0 : index
    %c0_13 = arith.constant 0 : index
    %c0_14 = arith.constant 0 : index
    %30 = vector.load %arg3[%c0_12, %c0_13, %c0_14] : memref<1x16x256xbf16, #tpu.memory_space<vmem>>, vector<1x16x256xbf16>
    %31 = vector.shape_cast %30 : vector<1x16x256xbf16> to vector<16x256xbf16>
    %32 = vector.shape_cast %29 : vector<16x256xbf16> to vector<1x16x256xbf16>
    tpu.vector_store %arg3[%c0_12, %c0_13, %c0_14], %32 {strides = array<i32>} : memref<1x16x256xbf16, #tpu.memory_space<vmem>>, vector<1x16x256xbf16>,
    return
  }
  func.func @transform_0(%arg0: i32) -> (i32, i32, i32) {
    %c0_i32 = arith.constant 0 : i32
    %c0_i32_0 = arith.constant 0 : i32
    %c0_i32_1 = arith.constant 0 : i32
    return %arg0, %c0_i32, %c0_i32_0 : i32, i32, i32
  }
  func.func @transform_1(%arg0: i32) -> (i32, i32) {
    %c0_i32 = arith.constant 0 : i32
    %c0_i32_0 = arith.constant 0 : i32
    %c0_i32_1 = arith.constant 0 : i32
    return %c0_i32, %c0_i32_0 : i32, i32
  }
  func.func @transform_2(%arg0: i32) -> (i32, i32, i32) {
    %c0_i32 = arith.constant 0 : i32
    %c0_i32_0 = arith.constant 0 : i32
    %c0_i32_1 = arith.constant 0 : i32
    return %arg0, %c0_i32, %c0_i32_0 : i32, i32, i32
  }
}

module attributes {stable_mosaic.version = 11 : i64} {
  func.func @_gemm_instnorm_lrelu_kernel(%arg0: i32, %arg1: memref<1x16x4096xbf16, #tpu.memory_space<vmem>>, %arg2: memref<4096x512xbf16, #tpu.memory_space<vmem>>, %arg3: memref<1x16x512xbf16, #tpu.memory_space<vmem>>) attributes {dimension_semantics = [#tpu.dimension_semantics<parallel>], iteration_bounds = array<i64: 2>, scalar_prefetch = 0 : i64, scratch_operands = 0 : i64, tpu.core_type = #tpu.core_type<tc>, window_params = [{transform_indices = @transform_0, window_bounds = array<i64: 1, 16, 4096>}, {pipeline_mode = #tpu.pipeline_mode<synchronous>, transform_indices = @transform_1, window_bounds = array<i64: 4096, 512>}, {transform_indices = @transform_2, window_bounds = array<i64: 1, 16, 512>}]} {
    %c0 = arith.constant 0 : index
    %c0_0 = arith.constant 0 : index
    %c0_1 = arith.constant 0 : index
    %0 = vector.load %arg1[%c0, %c0_0, %c0_1] : memref<1x16x4096xbf16, #tpu.memory_space<vmem>>, vector<1x16x4096xbf16>
    %1 = vector.shape_cast %0 : vector<1x16x4096xbf16> to vector<16x4096xbf16>
    %c0_2 = arith.constant 0 : index
    %c0_3 = arith.constant 0 : index
    %2 = vector.load %arg2[%c0_2, %c0_3] : memref<4096x512xbf16, #tpu.memory_space<vmem>>, vector<4096x512xbf16>
    %cst = arith.constant dense<0.000000e+00> : vector<16x512xf32>
    %3 = tpu.matmul %1, %2, %cst {dimension_numbers = #tpu.dot_dimension_numbers<[1], [0], [0], [1], [0, 0, 1, 1], [], []>} : vector<16x4096xbf16>, vector<4096x512xbf16>, vector<16x512xf32> -> vector<16x512xf32>
    %cst_4 = arith.constant dense<0.000000e+00> : vector<512xf32>
    %4 = vector.multi_reduction <add>, %3, %cst_4 [0] : vector<16x512xf32> to vector<512xf32>
    %5 = vector.shape_cast %4 : vector<512xf32> to vector<1x512xf32>
    %6 = arith.mulf %3, %3 : vector<16x512xf32>
    %cst_5 = arith.constant dense<0.000000e+00> : vector<512xf32>
    %7 = vector.multi_reduction <add>, %6, %cst_5 [0] : vector<16x512xf32> to vector<512xf32>
    %8 = vector.shape_cast %7 : vector<512xf32> to vector<1x512xf32>
    %cst_6 = arith.constant 2.500000e-01 : f32
    %9 = vector.broadcast %cst_6 : f32 to vector<1x512xf32>
    %10 = arith.mulf %5, %9 : vector<1x512xf32>
    %cst_7 = arith.constant 2.500000e-01 : f32
    %11 = vector.broadcast %cst_7 : f32 to vector<1x512xf32>
    %12 = arith.mulf %8, %11 : vector<1x512xf32>
    %13 = arith.mulf %10, %10 : vector<1x512xf32>
    %14 = arith.subf %12, %13 : vector<1x512xf32>
    %cst_8 = arith.constant 0.000000e+00 : f32
    %15 = vector.broadcast %cst_8 : f32 to vector<1x512xf32>
    %16 = arith.maximumf %14, %15 : vector<1x512xf32>
    %17 = vector.broadcast %10 : vector<1x512xf32> to vector<16x512xf32>
    %18 = arith.subf %3, %17 : vector<16x512xf32>
    %cst_9 = arith.constant 9.99999974E-6 : f32
    %19 = vector.broadcast %cst_9 : f32 to vector<1x512xf32>
    %20 = arith.addf %16, %19 : vector<1x512xf32>
    %21 = math.rsqrt %20 : vector<1x512xf32>
    %22 = vector.broadcast %21 : vector<1x512xf32> to vector<16x512xf32>
    %23 = arith.mulf %18, %22 : vector<16x512xf32>
    %cst_10 = arith.constant 0.000000e+00 : f32
    %24 = vector.broadcast %cst_10 : f32 to vector<16x512xf32>
    %25 = arith.cmpf ogt, %23, %24 : vector<16x512xf32>
    %cst_11 = arith.constant 0.00999999977 : f32
    %26 = vector.broadcast %cst_11 : f32 to vector<16x512xf32>
    %27 = arith.mulf %26, %23 : vector<16x512xf32>
    %28 = arith.select %25, %23, %27 : vector<16x512xi1>, vector<16x512xf32>
    %29 = arith.truncf %28 : vector<16x512xf32> to vector<16x512xbf16>
    %c0_12 = arith.constant 0 : index
    %c0_13 = arith.constant 0 : index
    %c0_14 = arith.constant 0 : index
    %30 = vector.load %arg3[%c0_12, %c0_13, %c0_14] : memref<1x16x512xbf16, #tpu.memory_space<vmem>>, vector<1x16x512xbf16>
    %31 = vector.shape_cast %30 : vector<1x16x512xbf16> to vector<16x512xbf16>
    %32 = vector.shape_cast %29 : vector<16x512xbf16> to vector<1x16x512xbf16>
    tpu.vector_store %arg3[%c0_12, %c0_13, %c0_14], %32 {strides = array<i32>} : memref<1x16x512xbf16, #tpu.memory_space<vmem>>, vector<1x16x512xbf16>,
    return
  }
  func.func @transform_0(%arg0: i32) -> (i32, i32, i32) {
    %c0_i32 = arith.constant 0 : i32
    %c0_i32_0 = arith.constant 0 : i32
    %c0_i32_1 = arith.constant 0 : i32
    return %arg0, %c0_i32, %c0_i32_0 : i32, i32, i32
  }
  func.func @transform_1(%arg0: i32) -> (i32, i32) {
    %c0_i32 = arith.constant 0 : i32
    %c0_i32_0 = arith.constant 0 : i32
    %c0_i32_1 = arith.constant 0 : i32
    return %c0_i32, %c0_i32_0 : i32, i32
  }
  func.func @transform_2(%arg0: i32) -> (i32, i32, i32) {
    %c0_i32 = arith.constant 0 : i32
    %c0_i32_0 = arith.constant 0 : i32
    %c0_i32_1 = arith.constant 0 : i32
    return %arg0, %c0_i32, %c0_i32_0 : i32, i32, i32
  }
}

module attributes {stable_mosaic.version = 11 : i64} {
  func.func @_gemm_bias_act_kernel(%arg0: i32, %arg1: memref<16x8192xbf16, #tpu.memory_space<vmem>>, %arg2: memref<8192x128xbf16, #tpu.memory_space<vmem>>, %arg3: memref<1x128xf32, #tpu.memory_space<vmem>>, %arg4: memref<16x128xf32, #tpu.memory_space<vmem>>) attributes {dimension_semantics = [#tpu.dimension_semantics<parallel>], iteration_bounds = array<i64: 1>, scalar_prefetch = 0 : i64, scratch_operands = 0 : i64, tpu.core_type = #tpu.core_type<tc>, window_params = [{transform_indices = @transform_0, window_bounds = array<i64: 16, 8192>}, {pipeline_mode = #tpu.pipeline_mode<synchronous>, transform_indices = @transform_1, window_bounds = array<i64: 8192, 128>}, {pipeline_mode = #tpu.pipeline_mode<synchronous>, transform_indices = @transform_2, window_bounds = array<i64: 1, 128>}, {transform_indices = @transform_3, window_bounds = array<i64: 16, 128>}]} {
    %c0 = arith.constant 0 : index
    %c0_0 = arith.constant 0 : index
    %0 = vector.load %arg1[%c0, %c0_0] : memref<16x8192xbf16, #tpu.memory_space<vmem>>, vector<16x8192xbf16>
    %c0_1 = arith.constant 0 : index
    %c0_2 = arith.constant 0 : index
    %1 = vector.load %arg2[%c0_1, %c0_2] : memref<8192x128xbf16, #tpu.memory_space<vmem>>, vector<8192x128xbf16>
    %cst = arith.constant dense<0.000000e+00> : vector<16x128xf32>
    %2 = tpu.matmul %0, %1, %cst {dimension_numbers = #tpu.dot_dimension_numbers<[1], [0], [0], [1], [0, 0, 1, 1], [], []>} : vector<16x8192xbf16>, vector<8192x128xbf16>, vector<16x128xf32> -> vector<16x128xf32>
    %c0_3 = arith.constant 0 : index
    %c0_4 = arith.constant 0 : index
    %3 = vector.load %arg3[%c0_3, %c0_4] : memref<1x128xf32, #tpu.memory_space<vmem>>, vector<1x128xf32>
    %4 = vector.broadcast %3 : vector<1x128xf32> to vector<16x128xf32>
    %5 = arith.addf %2, %4 : vector<16x128xf32>
    %c0_5 = arith.constant 0 : index
    %c0_6 = arith.constant 0 : index
    %6 = vector.load %arg4[%c0_5, %c0_6] : memref<16x128xf32, #tpu.memory_space<vmem>>, vector<16x128xf32>
    tpu.vector_store %arg4[%c0_5, %c0_6], %5 {strides = array<i32>} : memref<16x128xf32, #tpu.memory_space<vmem>>, vector<16x128xf32>,
    return
  }
  func.func @transform_0(%arg0: i32) -> (i32, i32) {
    %c0_i32 = arith.constant 0 : i32
    %c0_i32_0 = arith.constant 0 : i32
    return %arg0, %c0_i32 : i32, i32
  }
  func.func @transform_1(%arg0: i32) -> (i32, i32) {
    %c0_i32 = arith.constant 0 : i32
    %c0_i32_0 = arith.constant 0 : i32
    %c0_i32_1 = arith.constant 0 : i32
    return %c0_i32, %c0_i32_0 : i32, i32
  }
  func.func @transform_2(%arg0: i32) -> (i32, i32) {
    %c0_i32 = arith.constant 0 : i32
    %c0_i32_0 = arith.constant 0 : i32
    %c0_i32_1 = arith.constant 0 : i32
    return %c0_i32, %c0_i32_0 : i32, i32
  }
  func.func @transform_3(%arg0: i32) -> (i32, i32) {
    %c0_i32 = arith.constant 0 : i32
    %c0_i32_0 = arith.constant 0 : i32
    return %arg0, %c0_i32 : i32, i32
  }
}

</mosaic_0001>

<bundles_post_ra>
// kernel: discriminator_forward.5
= control target key start
LH: loop header
LB: loop body
LE: loop exit
PB: predicated region body
PF: predicated region fallthrough
CT: control target
= control target key end

     0   :  { %s1182_s12 = smov 0   ;;  %s1269_s0 = inlined_call_operand.vmem [shape: bf16[512,128], index: 0, kind: input, shape index: {}]   ;;  %s1270_s1 = inlined_call_operand.vmem [shape: bf16[128,128], index: 1, kind: input, shape index: {}]   ;;  %s1271_s2 = inlined_call_operand.vmem [shape: f32[1,128], index: 2, kind: input, shape index: {}]   ;;  %s1272_s3 = inlined_call_operand.vmem [shape: bf16[512,128], index: 3, kind: output, shape index: {}]  }
   0x1 LB: > { %s840_s13 = sadd.s32 4294967295, %s1160_s12   ;;  %p844_p0 = scmp.ge.s32.totalorder %s1160_s12, 1  ;;  %s1160_s12 = sphi %s1182_s12, %s13_s12  }
   0x2   : > { %p138_p1 = scmp.lt.s32.totalorder %s1160_s12, 3 }
   0x4   : > { %p139_p2 = pnand %p844_p0, %p138_p1 }
   0x5   : > { %v1130_v0 = vld [vmem:[%s1270_s1] sm:$0xff] (!%p139_p2)   ;;  %s845_s15 = sshll.u32 (!%p139_p2), %s840_s13, 5  ;;  %v1131_v1 = vld [vmem:[%s1270_s1 + $0x8] sm:$0xff] (!%p139_p2)   ;;  %v1132_v2 = vld [vmem:[%s1270_s1 + $0x10] sm:$0xff] (!%p139_p2)  }
   0x6   : > { %142 = sbr.rel (%p139_p2) target bundleno = 285 (0x11d), region = 32  ;;  %p163_p3 = scmp.lt.s32.totalorder (!%p139_p2), %s845_s15, 63  ;;  %1058 = vmatprep.subr.bf16.mxu0 (!%p139_p2), %v1130_v0  ;;  %1106 = vmatprep.subr.bf16.mxu1 (!%p139_p2), %v1130_v0  ;;  %v1133_v3 = vld [vmem:[%s1270_s1 + $0x18] sm:$0xff] (!%p139_p2)   ;;  %v1134_v6 = vld [vmem:[%s1270_s1 + $0x20] sm:$0xff] (!%p139_p2)   ;;  %v1135_v7 = vld [vmem:[%s1270_s1 + $0x28] sm:$0xff] (!%p139_p2)  }
   0x7   : > { %1059 = vmatpush3.bf16.msra.mxu0 (!%p139_p2), %v1130_v0  ;;  %1114 = vmatpush3.bf16.msra.mxu1 (!%p139_p2), %v1130_v0  ;;  %v1136_v8 = vld [vmem:[%s1270_s1 + $0x30] sm:$0xff] (!%p139_p2)   ;;  %v1137_v9 = vld [vmem:[%s1270_s1 + $0x38] sm:$0xff] (!%p139_p2)  }
   0x8   : > { %1060 = vmatprep.subr.bf16.mxu0 (!%p139_p2), %v1131_v1  ;;  %1107 = vmatprep.subr.bf16.mxu1 (!%p139_p2), %v1131_v1 }
   0xb   : > { %1061 = vmatpush3.bf16.msra.mxu0 (!%p139_p2), %v1131_v1  ;;  %1115 = vmatpush3.bf16.msra.mxu1 (!%p139_p2), %v1131_v1 }
   0xc   : > { %1062 = vmatprep.subr.bf16.mxu0 (!%p139_p2), %v1132_v2  ;;  %1108 = vmatprep.subr.bf16.mxu1 (!%p139_p2), %v1132_v2 }
   0xd   : > { %s1274_s15 = smov (!%p163_p3, %s845_s15), 63 }
   0xe   : > { %s846_s20 = sshll.u32 %s1274_s15, 2 }
   0xf   : > { %s1207_s23 = scalar_lea.vmem %s1269_s0, %s846_s20  ;;  %1063 = vmatpush3.bf16.msra.mxu0 %v1132_v2  ;;  %1116 = vmatpush3.bf16.msra.mxu1 %v1132_v2  ;;  %s1245_s9 = scalar_lea.vmem %s1272_s3, %s846_s20 }
  0x10   : > { %v1138_v4 = vld [vmem:[%s1207_s23] sm:$0xff]   ;;  %1064 = vmatprep.subr.bf16.mxu0 %v1133_v3  ;;  %1109 = vmatprep.subr.bf16.mxu1 %v1133_v3  ;;  %v1140_v10 = vld [vmem:[%s1207_s23 + $0x8] sm:$0xff]   ;;  %v1142_v12 = vld [vmem:[%s1207_s23 + $0x10] sm:$0xff]  }
  0x11   : > { %v1139_v5 = vld [vmem:[%s1207_s23 + $0x40] sm:$0xff]   ;;  %1074 = vmatprep.mubr.bf16.mxu0 %v1138_v4  ;;  %v1141_v11 = vld [vmem:[%s1207_s23 + $0x48] sm:$0xff]   ;;  %v1143_v13 = vld [vmem:[%s1207_s23 + $0x50] sm:$0xff]  }
  0x12   : > { %1090 = vmatprep.mubr.bf16.mxu1 %v1139_v5  ;;  %v1144_v14 = vld [vmem:[%s1207_s23 + $0x18] sm:$0xff]   ;;  %v1146_v16 = vld [vmem:[%s1207_s23 + $0x20] sm:$0xff]   ;;  %v1148_v18 = vld [vmem:[%s1207_s23 + $0x28] sm:$0xff]  }
  0x13   : > { %1065 = vmatpush3.bf16.msra.mxu0 %v1133_v3  ;;  %1117 = vmatpush3.bf16.msra.mxu1 %v1133_v3  ;;  %v1145_v15 = vld [vmem:[%s1207_s23 + $0x58] sm:$0xff]   ;;  %v1147_v17 = vld [vmem:[%s1207_s23 + $0x60] sm:$0xff]   ;;  %v1149_v19 = vld [vmem:[%s1207_s23 + $0x68] sm:$0xff]  }
  0x14   : > { %1066 = vmatprep.subr.bf16.mxu0 %v1134_v6  ;;  %1110 = vmatprep.subr.bf16.mxu1 %v1134_v6  ;;  %v1150_v20 = vld [vmem:[%s1207_s23 + $0x30] sm:$0xff]   ;;  %v1152_v22 = vld [vmem:[%s1207_s23 + $0x38] sm:$0xff]  }
  0x15   : > { %v1151_v21 = vld [vmem:[%s1207_s23 + $0x70] sm:$0xff]   ;;  %v1153_v23 = vld [vmem:[%s1207_s23 + $0x78] sm:$0xff]  }
  0x17   : > { %1067 = vmatpush3.bf16.msra.mxu0 %v1134_v6  ;;  %1118 = vmatpush3.bf16.msra.mxu1 %v1134_v6 }
  0x18   : > { %1068 = vmatprep.subr.bf16.mxu0 %v1135_v7  ;;  %1111 = vmatprep.subr.bf16.mxu1 %v1135_v7 }
  0x1b   : > { %1069 = vmatpush3.bf16.msra.mxu0 %v1135_v7  ;;  %1119 = vmatpush3.bf16.msra.mxu1 %v1135_v7 }
  0x1c   : > { %1070 = vmatprep.subr.bf16.mxu0 %v1136_v8  ;;  %1112 = vmatprep.subr.bf16.mxu1 %v1136_v8 }
  0x1f   : > { %1071 = vmatpush3.bf16.msra.mxu0 %v1136_v8  ;;  %1120 = vmatpush3.bf16.msra.mxu1 %v1136_v8 }
  0x20   : > { %1072 = vmatprep.subr.bf16.mxu0 %v1137_v9  ;;  %1113 = vmatprep.subr.bf16.mxu1 %v1137_v9 }
  0x23   : > { %1073 = vmatpush3.bf16.msra.mxu0 %v1137_v9  ;;  %1121 = vmatpush3.bf16.msra.mxu1 %v1137_v9 }
  0x26   : > { %1075 = vmatmul.mubr.bf16.vlgmr.msra.gmra.mrb[0].mxu0 %v1140_v10  ;;  %1091 = vmatmul.mubr.bf16.vlgmr.msra.gmra.mrb[0].mxu1 %v1141_v11 }
  0x27   : > { %1078 = vmatprep.mubr.bf16.mxu0 %v1142_v12  ;;  %1094 = vmatprep.mubr.bf16.mxu1 %v1143_v13 }
  0x2e   : > { %1079 = vmatmul.mubr.bf16.gmra.mrb[4].mxu0 %v1144_v14  ;;  %1095 = vmatmul.mubr.bf16.gmra.mrb[4].mxu1 %v1145_v15 }
  0x2f   : > { %1082 = vmatprep.mubr.bf16.mxu0 %v1146_v16  ;;  %1098 = vmatprep.mubr.bf16.mxu1 %v1147_v17 }
  0x36   : > { %1083 = vmatmul.mubr.bf16.gmra.mrb[8].mxu0 %v1148_v18  ;;  %1099 = vmatmul.mubr.bf16.gmra.mrb[8].mxu1 %v1149_v19 }
  0x37   : > { %1086 = vmatprep.mubr.bf16.mxu0 %v1150_v20  ;;  %1102 = vmatprep.mubr.bf16.mxu1 %v1151_v21 }
  0x3e   : > { %1087 = vmatmul.mubr.bf16.gmra.mrb[12].mxu0 %v1152_v22  ;;  %1103 = vmatmul.mubr.bf16.gmra.mrb[12].mxu1 %v1153_v23 }
  0xf9   : > { %v1076_v24 = vpop.f32.mrb[0].mxu0  ;;  %v1092_v25 = vpop.f32.mrb[0].mxu1 }
  0xfa   : > { %vm530_vm0 = vcmp.gt.f32.partialorder %v1076_v24, 0.0  ;;  %v562_v26 = vmul.f32 0.01, %v1076_v24  ;;  %v578_v27 = vmul.f32 0.01, %v1092_v25  ;;  %vm546_vm1 = vcmp.gt.f32.partialorder %v1092_v25, 0.0 }
  0xfb   : > { %v401_v28 = vpop.f32.mrb[1].mxu0  ;;  %v465_v29 = vpop.f32.mrb[1].mxu1 }
  0xfc   : > { %v560_v30 = vmul.f32 0.01, %v401_v28  ;;  %v1077_v31 = vpop.f32.mrb[2].mxu0  ;;  %v1093_v32 = vpop.f32.mrb[2].mxu1  ;;  %v594_v33 = vsel %vm530_vm0, %v1076_v24, %v562_v26  ;;  %v576_v34 = vmul.f32 0.01, %v465_v29  ;;  %v610_v36 = vsel %vm546_vm1, %v1092_v25, %v578_v27 }
  0xfd   : > { %vm531_vm2 = vcmp.gt.f32.partialorder %v1077_v31, 0.0  ;;  %v563_v35 = vmul.f32 0.01, %v1077_v31  ;;  %vm528_vm3 = vcmp.gt.f32.partialorder %v401_v28, 0.0  ;;  %vm547_vm4 = vcmp.gt.f32.partialorder %v1093_v32, 0.0  ;;  %v404_v38 = vpop.f32.mrb[3].mxu0 }
  0xfe   : > { %v579_v37 = vmul.f32 0.01, %v1093_v32  ;;  %v468_v39 = vpop.f32.mrb[3].mxu1  ;;  %vm544_vm5 = vcmp.gt.f32.partialorder %v465_v29, 0.0  ;;  %vm529_vm6 = vcmp.gt.f32.partialorder %v404_v38, 0.0  ;;  %v592_v45 = vsel %vm528_vm3, %v401_v28, %v560_v30 }
  0xff   : > { %v595_v40 = vsel %vm531_vm2, %v1077_v31, %v563_v35  ;;  %v561_v41 = vmul.f32 0.01, %v404_v38  ;;  %vm545_vm7 = vcmp.gt.f32.partialorder %v468_v39, 0.0  ;;  %v577_v44 = vmul.f32 0.01, %v468_v39 }
 0x100   : > { %v947_v42 = vpack.c.bf16 %v595_v40, %v594_v33  ;;  %v611_v43 = vsel %vm547_vm4, %v1093_v32, %v579_v37  ;;  %v608_v50 = vsel %vm544_vm5, %v465_v29, %v576_v34 }
 0x101   : > { %v987_v46 = vpack.c.bf16 %v611_v43, %v610_v36  ;;  %v593_v47 = vsel %vm529_vm6, %v404_v38, %v561_v41  ;;  %v1080_v48 = vpop.f32.mrb[4].mxu0  ;;  %v1096_v49 = vpop.f32.mrb[4].mxu1  ;;  %v609_v52 = vsel %vm545_vm7, %v468_v39, %v577_v44 }
 0x102   : > { %1019 = vst [vmem:[%s1245_s9 + $0x8] sm:$0xff] %v947_v42   ;;  %v942_v51 = vpack.c.bf16 %v593_v47, %v592_v45  ;;  %v566_v53 = vmul.f32 0.01, %v1080_v48  ;;  %v417_v54 = vpop.f32.mrb[5].mxu0  ;;  %v481_v55 = vpop.f32.mrb[5].mxu1  ;;  %v982_v56 = vpack.c.bf16 %v609_v52, %v608_v50  ;;  %vm534_vm8 = vcmp.gt.f32.partialorder %v1080_v48, 0.0 }
 0x103   : > { %1027 = vst [vmem:[%s1245_s9 + $0x48] sm:$0xff] %v987_v46   ;;  %v582_v57 = vmul.f32 0.01, %v1096_v49  ;;  %v1081_v58 = vpop.f32.mrb[6].mxu0  ;;  %v1097_v59 = vpop.f32.mrb[6].mxu1  ;;  %vm550_vm9 = vcmp.gt.f32.partialorder %v1096_v49, 0.0 }
 0x104   : > { %943 = vst [vmem:[%s1245_s9] sm:$0xff] %v942_v51   ;;  %v564_v60 = vmul.f32 0.01, %v417_v54  ;;  %v580_v61 = vmul.f32 0.01, %v481_v55  ;;  %v420_v62 = vpop.f32.mrb[7].mxu0  ;;  %1026 = vst [vmem:[%s1245_s9 + $0x40] sm:$0xff] %v982_v56   ;;  %v598_v1 = vsel %vm534_vm8, %v1080_v48, %v566_v53 }
 0x105   : > { %vm532_vm10 = vcmp.gt.f32.partialorder %v417_v54, 0.0  ;;  %vm535_vm11 = vcmp.gt.f32.partialorder %v1081_v58, 0.0  ;;  %v567_v63 = vmul.f32 0.01, %v1081_v58  ;;  %vm551_vm12 = vcmp.gt.f32.partialorder %v1097_v59, 0.0  ;;  %v484_v0 = vpop.f32.mrb[7].mxu1 }
 0x106   : > { %vm548_vm13 = vcmp.gt.f32.partialorder %v481_v55, 0.0  ;;  %v583_v2 = vmul.f32 0.01, %v1097_v59  ;;  %vm533_vm14 = vcmp.gt.f32.partialorder %v420_v62, 0.0  ;;  %v565_v4 = vmul.f32 0.01, %v420_v62 }
 0x107   : > { %v599_v3 = vsel %vm535_vm11, %v1081_v58, %v567_v63  ;;  %vm549_vm15 = vcmp.gt.f32.partialorder %v484_v0, 0.0  ;;  %v581_v5 = vmul.f32 0.01, %v484_v0  ;;  %v614_v6 = vsel %vm550_vm9, %v1096_v49, %v582_v57 }
 0x108   : > { %v596_v7 = vsel %vm532_vm10, %v417_v54, %v564_v60  ;;  %v957_v8 = vpack.c.bf16 %v599_v3, %v598_v1  ;;  %v615_v9 = vsel %vm551_vm12, %v1097_v59, %v583_v2  ;;  %v612_v10 = vsel %vm548_vm13, %v481_v55, %v580_v61 }
 0x109   : > { %v997_v11 = vpack.c.bf16 %v615_v9, %v614_v6  ;;  %v597_v12 = vsel %vm533_vm14, %v420_v62, %v565_v4  ;;  %v613_v13 = vsel %vm549_vm15, %v484_v0, %v581_v5  ;;  %v1084_v14 = vpop.f32.mrb[8].mxu0  ;;  %v1100_v15 = vpop.f32.mrb[8].mxu1 }
 0x10a   : > { %1021 = vst [vmem:[%s1245_s9 + $0x18] sm:$0xff] %v957_v8   ;;  %v952_v16 = vpack.c.bf16 %v597_v12, %v596_v7  ;;  %v992_v17 = vpack.c.bf16 %v613_v13, %v612_v10  ;;  %vm538_vm0 = vcmp.gt.f32.partialorder %v1084_v14, 0.0  ;;  %v570_v18 = vmul.f32 0.01, %v1084_v14  ;;  %v433_v19 = vpop.f32.mrb[9].mxu0  ;;  %v497_v20 = vpop.f32.mrb[9].mxu1 }
 0x10b   : > { %1029 = vst [vmem:[%s1245_s9 + $0x58] sm:$0xff] %v997_v11   ;;  %vm554_vm1 = vcmp.gt.f32.partialorder %v1100_v15, 0.0  ;;  %v586_v21 = vmul.f32 0.01, %v1100_v15  ;;  %v568_v22 = vmul.f32 0.01, %v433_v19 }
 0x10c   : > { %1020 = vst [vmem:[%s1245_s9 + $0x10] sm:$0xff] %v952_v16   ;;  %1028 = vst [vmem:[%s1245_s9 + $0x50] sm:$0xff] %v992_v17   ;;  %v584_v23 = vmul.f32 0.01, %v497_v20  ;;  %v1085_v24 = vpop.f32.mrb[10].mxu0  ;;  %v1101_v25 = vpop.f32.mrb[10].mxu1  ;;  %v602_v26 = vsel %vm538_vm0, %v1084_v14, %v570_v18 }
 0x10d   : > { %vm536_vm2 = vcmp.gt.f32.partialorder %v433_v19, 0.0  ;;  %vm539_vm3 = vcmp.gt.f32.partialorder %v1085_v24, 0.0  ;;  %v571_v27 = vmul.f32 0.01, %v1085_v24  ;;  %v436_v28 = vpop.f32.mrb[11].mxu0  ;;  %v500_v29 = vpop.f32.mrb[11].mxu1  ;;  %v618_v34 = vsel %vm554_vm1, %v1100_v15, %v586_v21 }
 0x10e   : > { %vm552_vm4 = vcmp.gt.f32.partialorder %v497_v20, 0.0  ;;  %vm555_vm5 = vcmp.gt.f32.partialorder %v1101_v25, 0.0  ;;  %v587_v30 = vmul.f32 0.01, %v1101_v25  ;;  %vm537_vm6 = vcmp.gt.f32.partialorder %v436_v28, 0.0 }
 0x10f   : > { %v603_v31 = vsel %vm539_vm3, %v1085_v24, %v571_v27  ;;  %v569_v32 = vmul.f32 0.01, %v436_v28  ;;  %vm553_vm7 = vcmp.gt.f32.partialorder %v500_v29, 0.0  ;;  %v585_v33 = vmul.f32 0.01, %v500_v29 }
 0x110   : > { %v600_v35 = vsel %vm536_vm2, %v433_v19, %v568_v22  ;;  %v967_v36 = vpack.c.bf16 %v603_v31, %v602_v26  ;;  %v619_v37 = vsel %vm555_vm5, %v1101_v25, %v587_v30  ;;  %v616_v38 = vsel %vm552_vm4, %v497_v20, %v584_v23 }
 0x111   : > { %v1007_v39 = vpack.c.bf16 %v619_v37, %v618_v34  ;;  %v601_v40 = vsel %vm537_vm6, %v436_v28, %v569_v32  ;;  %v617_v41 = vsel %vm553_vm7, %v500_v29, %v585_v33  ;;  %v1088_v42 = vpop.f32.mrb[12].mxu0  ;;  %v1104_v43 = vpop.f32.mrb[12].mxu1 }
 0x112   : > { %1023 = vst [vmem:[%s1245_s9 + $0x28] sm:$0xff] %v967_v36   ;;  %v962_v44 = vpack.c.bf16 %v601_v40, %v600_v35  ;;  %v1002_v45 = vpack.c.bf16 %v617_v41, %v616_v38  ;;  %vm542_vm8 = vcmp.gt.f32.partialorder %v1088_v42, 0.0  ;;  %v574_v46 = vmul.f32 0.01, %v1088_v42  ;;  %v449_v47 = vpop.f32.mrb[13].mxu0  ;;  %v513_v48 = vpop.f32.mrb[13].mxu1 }
 0x113   : > { %1031 = vst [vmem:[%s1245_s9 + $0x68] sm:$0xff] %v1007_v39   ;;  %vm558_vm9 = vcmp.gt.f32.partialorder %v1104_v43, 0.0  ;;  %v590_v49 = vmul.f32 0.01, %v1104_v43  ;;  %v572_v50 = vmul.f32 0.01, %v449_v47 }
 0x114   : > { %1022 = vst [vmem:[%s1245_s9 + $0x20] sm:$0xff] %v962_v44   ;;  %1030 = vst [vmem:[%s1245_s9 + $0x60] sm:$0xff] %v1002_v45   ;;  %v588_v51 = vmul.f32 0.01, %v513_v48  ;;  %v1089_v52 = vpop.f32.mrb[14].mxu0  ;;  %v1105_v53 = vpop.f32.mrb[14].mxu1  ;;  %v606_v54 = vsel %vm542_vm8, %v1088_v42, %v574_v46 }
 0x115   : > { %vm540_vm10 = vcmp.gt.f32.partialorder %v449_v47, 0.0  ;;  %vm543_vm11 = vcmp.gt.f32.partialorder %v1089_v52, 0.0  ;;  %v575_v55 = vmul.f32 0.01, %v1089_v52  ;;  %v452_v56 = vpop.f32.mrb[15].mxu0  ;;  %v516_v57 = vpop.f32.mrb[15].mxu1  ;;  %v622_v62 = vsel %vm558_vm9, %v1104_v43, %v590_v49 }
 0x116   : > { %vm556_vm12 = vcmp.gt.f32.partialorder %v513_v48, 0.0  ;;  %vm559_vm13 = vcmp.gt.f32.partialorder %v1105_v53, 0.0  ;;  %v591_v58 = vmul.f32 0.01, %v1105_v53  ;;  %vm541_vm14 = vcmp.gt.f32.partialorder %v452_v56, 0.0 }
 0x117   : > { %v607_v59 = vsel %vm543_vm11, %v1089_v52, %v575_v55  ;;  %v573_v60 = vmul.f32 0.01, %v452_v56  ;;  %vm557_vm15 = vcmp.gt.f32.partialorder %v516_v57, 0.0  ;;  %v589_v61 = vmul.f32 0.01, %v516_v57 }
 0x118   : > { %v604_v63 = vsel %vm540_vm10, %v449_v47, %v572_v50  ;;  %v977_v0 = vpack.c.bf16 %v607_v59, %v606_v54  ;;  %v623_v1 = vsel %vm559_vm13, %v1105_v53, %v591_v58  ;;  %v620_v2 = vsel %vm556_vm12, %v513_v48, %v588_v51 }
 0x119   : > { %v1017_v3 = vpack.c.bf16 %v623_v1, %v622_v62  ;;  %v605_v4 = vsel %vm541_vm14, %v452_v56, %v573_v60  ;;  %v621_v5 = vsel %vm557_vm15, %v516_v57, %v589_v61 }
 0x11a   : > { %1025 = vst [vmem:[%s1245_s9 + $0x38] sm:$0xff] %v977_v0   ;;  %v972_v6 = vpack.c.bf16 %v605_v4, %v604_v63  ;;  %v1012_v7 = vpack.c.bf16 %v621_v5, %v620_v2 }
 0x11b   : > { %1033 = vst [vmem:[%s1245_s9 + $0x78] sm:$0xff] %v1017_v3  }
 0x11c   : > { %1024 = vst [vmem:[%s1245_s9 + $0x30] sm:$0xff] %v972_v6   ;;  %1032 = vst [vmem:[%s1245_s9 + $0x70] sm:$0xff] %v1012_v7  }
 0x11d PF: > { %s13_s12 = sadd.s32 1, %s1160_s12  }
 0x11e   : > { %p10_p4 = scmp.ge.s32.totalorder %s13_s12, 4  }
 0x120   :  { %12 = sbr.rel (!%p10_p4) target bundleno = 1 (0x1), region = 62 }

// kernel: discriminator_forward.6
= control target key start
LH: loop header
LB: loop body
LE: loop exit
PB: predicated region body
PF: predicated region fallthrough
CT: control target
= control target key end

     0   :  { %s1690_s9 = smov 0   ;;  %s1994_s0 = inlined_call_operand.vmem [shape: bf16[2,64,1024], index: 0, kind: input, shape index: {}]   ;;  %s1995_s1 = inlined_call_operand.vmem [shape: bf16[1024,128], index: 1, kind: input, shape index: {}]   ;;  %s1996_s2 = inlined_call_operand.vmem [shape: bf16[2,64,128], index: 2, kind: output, shape index: {}]  }
   0x1 LB: > { %s1285_s10 = sadd.s32 4294967295, %s1673_s9   ;;  %p1289_p0 = scmp.ge.s32.totalorder %s1673_s9, 1  ;;  %s1673_s9 = sphi %s1690_s9, %s12_s9  }
   0x2   : > { %p112_p1 = scmp.lt.s32.totalorder %s1673_s9, 3 }
   0x4   : > { %p113_p2 = pnand %p1289_p0, %p112_p1 }
   0x5   : > { %v1601_v0 = vld [vmem:[%s1995_s1 + $0x40] sm:$0xff] (!%p113_p2)   ;;  %v1605_v4 = vld [vmem:[%s1995_s1 + $0x48] sm:$0xff] (!%p113_p2)   ;;  %v1609_v8 = vld [vmem:[%s1995_s1 + $0x50] sm:$0xff] (!%p113_p2)   ;;  %p134_p3 = scmp.lt.s32.totalorder (!%p113_p2), %s1285_s10, 1 }
   0x6   : > { %116 = sbr.rel (%p113_p2) target bundleno = 363 (0x16b), region = 28  ;;  %v1602_v1 = vld [vmem:[%s1995_s1 + $0xc0] sm:$0xff] (!%p113_p2)   ;;  %1433 = vmatprep.subr.bf16.mxu0 (!%p113_p2), %v1601_v0  ;;  %v1606_v5 = vld [vmem:[%s1995_s1 + $0xc8] sm:$0xff] (!%p113_p2)   ;;  %v1610_v9 = vld [vmem:[%s1995_s1 + $0xd0] sm:$0xff] (!%p113_p2)  }
   0x7   : > { %v1603_v2 = vld [vmem:[%s1995_s1] sm:$0xff] (!%p113_p2)   ;;  %1473 = vmatprep.subr.bf16.mxu1 (!%p113_p2), %v1602_v1  ;;  %v1607_v6 = vld [vmem:[%s1995_s1 + $0x8] sm:$0xff] (!%p113_p2)   ;;  %v1611_v10 = vld [vmem:[%s1995_s1 + $0x10] sm:$0xff] (!%p113_p2)  }
   0x8   : > { %v1604_v3 = vld [vmem:[%s1995_s1 + $0x80] sm:$0xff] (!%p113_p2)   ;;  %1434 = vmatpush3.bf16.msra.mxu0 (!%p113_p2), %v1603_v2  ;;  %v1608_v7 = vld [vmem:[%s1995_s1 + $0x88] sm:$0xff] (!%p113_p2)   ;;  %v1612_v11 = vld [vmem:[%s1995_s1 + $0x90] sm:$0xff] (!%p113_p2)  }
   0x9   : > { %1474 = vmatpush3.bf16.msra.mxu1 (!%p113_p2), %v1604_v3  ;;  %1435 = vmatprep.subr.bf16.mxu0 (!%p113_p2), %v1605_v4  ;;  %v1613_v12 = vld [vmem:[%s1995_s1 + $0x58] sm:$0xff] (!%p113_p2)   ;;  %v1617_v16 = vld [vmem:[%s1995_s1 + $0x60] sm:$0xff] (!%p113_p2)   ;;  %v1621_v20 = vld [vmem:[%s1995_s1 + $0x68] sm:$0xff] (!%p113_p2)  }
   0xa   : > { %1475 = vmatprep.subr.bf16.mxu1 (!%p113_p2), %v1606_v5  ;;  %v1614_v13 = vld [vmem:[%s1995_s1 + $0xd8] sm:$0xff] (!%p113_p2)   ;;  %v1618_v17 = vld [vmem:[%s1995_s1 + $0xe0] sm:$0xff] (!%p113_p2)   ;;  %v1622_v21 = vld [vmem:[%s1995_s1 + $0xe8] sm:$0xff] (!%p113_p2)  }
   0xb   : > { %v1615_v14 = vld [vmem:[%s1995_s1 + $0x18] sm:$0xff] (!%p113_p2)   ;;  %v1619_v18 = vld [vmem:[%s1995_s1 + $0x20] sm:$0xff] (!%p113_p2)   ;;  %v1623_v22 = vld [vmem:[%s1995_s1 + $0x28] sm:$0xff] (!%p113_p2)  }
   0xc   : > { %1436 = vmatpush3.bf16.msra.mxu0 (!%p113_p2), %v1607_v6  ;;  %v1616_v15 = vld [vmem:[%s1995_s1 + $0x98] sm:$0xff] (!%p113_p2)   ;;  %v1620_v19 = vld [vmem:[%s1995_s1 + $0xa0] sm:$0xff] (!%p113_p2)   ;;  %v1624_v23 = vld [vmem:[%s1995_s1 + $0xa8] sm:$0xff] (!%p113_p2)  }
   0xd   : > { %1476 = vmatpush3.bf16.msra.mxu1 %v1608_v7  ;;  %1437 = vmatprep.subr.bf16.mxu0 %v1609_v8  ;;  %s1998_s10 = smov (!%p134_p3, %s1285_s10), 1  ;;  %v1625_v24 = vld [vmem:[%s1995_s1 + $0x70] sm:$0xff]   ;;  %v1629_v28 = vld [vmem:[%s1995_s1 + $0x78] sm:$0xff]   ;;  %v1633_v40 = vld [vmem:[%s1995_s1 + $0x140] sm:$0xff]  }
   0xe   : > { %1477 = vmatprep.subr.bf16.mxu1 %v1610_v9  ;;  %v1626_v25 = vld [vmem:[%s1995_s1 + $0xf0] sm:$0xff]   ;;  %s1400_s13 = sshll.u32 %s1998_s10, 8  ;;  %v1630_v29 = vld [vmem:[%s1995_s1 + $0xf8] sm:$0xff]   ;;  %v1634_v41 = vld [vmem:[%s1995_s1 + $0x1c0] sm:$0xff]  }
   0xf   : > { %v1627_v26 = vld [vmem:[%s1995_s1 + $0x30] sm:$0xff]   ;;  %s1798_s22 = scalar_lea.vmem %s1994_s0, %s1400_s13  ;;  %v1631_v30 = vld [vmem:[%s1995_s1 + $0x38] sm:$0xff]   ;;  %v1635_v42 = vld [vmem:[%s1995_s1 + $0x100] sm:$0xff]  }
  0x10   : > { %1438 = vmatpush3.bf16.msra.mxu0 %v1611_v10  ;;  %v1628_v27 = vld [vmem:[%s1995_s1 + $0xb0] sm:$0xff]   ;;  %v1632_v31 = vld [vmem:[%s1995_s1 + $0xb8] sm:$0xff]   ;;  %v145_v32 = vld [vmem:[%s1798_s22] sm:$0xff] }
  0x11   : > { %1478 = vmatpush3.bf16.msra.mxu1 %v1612_v11  ;;  %1439 = vmatprep.subr.bf16.mxu0 %v1613_v12  ;;  %v149_v33 = vld [vmem:[%s1798_s22 + $0x20] sm:$0xff]  ;;  %v146_v34 = vld [vmem:[%s1798_s22 + $0x8] sm:$0xff]  ;;  %v1641_v56 = vld [vmem:[%s1995_s1 + $0x150] sm:$0xff]  }
  0x12   : > { %1479 = vmatprep.subr.bf16.mxu1 %v1614_v13  ;;  %v1294_v35 = vcombine.low %v145_v32, %v149_v33  ;;  %v1295_v36 = vcombine.high %v145_v32, %v149_v33  ;;  %v150_v37 = vld [vmem:[%s1798_s22 + $0x28] sm:$0xff]  ;;  %v1636_v43 = vld [vmem:[%s1995_s1 + $0x180] sm:$0xff]   ;;  %v1642_v57 = vld [vmem:[%s1995_s1 + $0x1d0] sm:$0xff]  }
  0x13   : > { %v1296_v38 = vcombine.low %v146_v34, %v150_v37  ;;  %v1297_v39 = vcombine.high %v146_v34, %v150_v37  ;;  %v1637_v44 = vld [vmem:[%s1995_s1 + $0x148] sm:$0xff]   ;;  %v153_v48 = vld [vmem:[%s1798_s22 + $0x40] sm:$0xff]  ;;  %v1643_v58 = vld [vmem:[%s1995_s1 + $0x110] sm:$0xff]  }
  0x14   : > { %1440 = vmatpush3.bf16.msra.mxu0 %v1615_v14  ;;  %881 = vmatprep.mubr.bf16.mxu0 %v1295_v36  ;;  %v1638_v45 = vld [vmem:[%s1995_s1 + $0x1c8] sm:$0xff]   ;;  %v157_v49 = vld [vmem:[%s1798_s22 + $0x60] sm:$0xff]  ;;  %v1644_v59 = vld [vmem:[%s1995_s1 + $0x190] sm:$0xff]  }
  0x15   : > { %1480 = vmatpush3.bf16.msra.mxu1 %v1616_v15  ;;  %1441 = vmatprep.subr.bf16.mxu0 %v1617_v16  ;;  %v1639_v46 = vld [vmem:[%s1995_s1 + $0x108] sm:$0xff]   ;;  %v1303_v50 = vcombine.high %v153_v48, %v157_v49  ;;  %v1302_v53 = vcombine.low %v153_v48, %v157_v49  ;;  %v1645_v60 = vld [vmem:[%s1995_s1 + $0x158] sm:$0xff]   ;;  %v161_v0 = vld [vmem:[%s1798_s22 + $0x80] sm:$0xff] }
  0x16   : > { %1481 = vmatprep.subr.bf16.mxu1 %v1618_v17  ;;  %946 = vmatprep.mubr.bf16.mxu1 %v1297_v39  ;;  %v1640_v47 = vld [vmem:[%s1995_s1 + $0x188] sm:$0xff]   ;;  %v1646_v61 = vld [vmem:[%s1995_s1 + $0x1d8] sm:$0xff]   ;;  %v165_v1 = vld [vmem:[%s1798_s22 + $0xa0] sm:$0xff] }
  0x17   : > { %v154_v51 = vld [vmem:[%s1798_s22 + $0x48] sm:$0xff]  ;;  %v1647_v62 = vld [vmem:[%s1995_s1 + $0x118] sm:$0xff]   ;;  %v1311_v4 = vcombine.high %v161_v0, %v165_v1  ;;  %v1310_v6 = vcombine.low %v161_v0, %v165_v1  ;;  %v1649_v8 = vld [vmem:[%s1995_s1 + $0x160] sm:$0xff]  }
  0x18   : > { %1442 = vmatpush3.bf16.msra.mxu0 %v1619_v18  ;;  %v158_v52 = vld [vmem:[%s1798_s22 + $0x68] sm:$0xff]  ;;  %v1648_v63 = vld [vmem:[%s1995_s1 + $0x198] sm:$0xff]   ;;  %v1650_v9 = vld [vmem:[%s1995_s1 + $0x1e0] sm:$0xff]  }
  0x19   : > { %1482 = vmatpush3.bf16.msra.mxu1 %v1620_v19  ;;  %1443 = vmatprep.subr.bf16.mxu0 %v1621_v20  ;;  %v1305_v54 = vcombine.high %v154_v51, %v158_v52  ;;  %v1304_v55 = vcombine.low %v154_v51, %v158_v52  ;;  %v162_v2 = vld [vmem:[%s1798_s22 + $0x88] sm:$0xff]  ;;  %v1651_v10 = vld [vmem:[%s1995_s1 + $0x120] sm:$0xff]   ;;  %v147_v32 = vld [vmem:[%s1798_s22 + $0x10] sm:$0xff] }
  0x1a   : > { %1483 = vmatprep.subr.bf16.mxu1 %v1622_v21  ;;  %v166_v3 = vld [vmem:[%s1798_s22 + $0xa8] sm:$0xff]  ;;  %v1652_v11 = vld [vmem:[%s1995_s1 + $0x1a0] sm:$0xff]   ;;  %v151_v33 = vld [vmem:[%s1798_s22 + $0x30] sm:$0xff] }
  0x1b   : > { %v1313_v5 = vcombine.high %v162_v2, %v166_v3  ;;  %v1312_v7 = vcombine.low %v162_v2, %v166_v3  ;;  %v1653_v12 = vld [vmem:[%s1995_s1 + $0x168] sm:$0xff]   ;;  %v169_v16 = vld [vmem:[%s1798_s22 + $0xc0] sm:$0xff]  ;;  %v1298_v34 = vcombine.low %v147_v32, %v151_v33  ;;  %v148_v36 = vld [vmem:[%s1798_s22 + $0x18] sm:$0xff] }
  0x1c   : > { %1444 = vmatpush3.bf16.msra.mxu0 %v1623_v22  ;;  %v1654_v13 = vld [vmem:[%s1995_s1 + $0x1e8] sm:$0xff]   ;;  %v173_v17 = vld [vmem:[%s1798_s22 + $0xe0] sm:$0xff]  ;;  %v152_v37 = vld [vmem:[%s1798_s22 + $0x38] sm:$0xff] }
  0x1d   : > { %1484 = vmatpush3.bf16.msra.mxu1 %v1624_v23  ;;  %1445 = vmatprep.subr.bf16.mxu0 %v1625_v24  ;;  %v1655_v14 = vld [vmem:[%s1995_s1 + $0x128] sm:$0xff]   ;;  %v1319_v19 = vcombine.high %v169_v16, %v173_v17  ;;  %v1318_v21 = vcombine.low %v169_v16, %v173_v17  ;;  %v1657_v24 = vld [vmem:[%s1995_s1 + $0x170] sm:$0xff]   ;;  %v1300_v39 = vcombine.low %v148_v36, %v152_v37  ;;  %v164_v48 = vld [vmem:[%s1798_s22 + $0x98] sm:$0xff] }
  0x1e   : > { %1485 = vmatprep.subr.bf16.mxu1 %v1626_v25  ;;  %v1656_v15 = vld [vmem:[%s1995_s1 + $0x1a8] sm:$0xff]   ;;  %v1658_v25 = vld [vmem:[%s1995_s1 + $0x1f0] sm:$0xff]   ;;  %v168_v49 = vld [vmem:[%s1798_s22 + $0xb8] sm:$0xff] }
  0x1f   : > { %v170_v18 = vld [vmem:[%s1798_s22 + $0xc8] sm:$0xff] }
  0x20   : > { %1446 = vmatpush3.bf16.msra.mxu0 %v1627_v26  ;;  %v174_v20 = vld [vmem:[%s1798_s22 + $0xe8] sm:$0xff]  ;;  %v1659_v26 = vld [vmem:[%s1995_s1 + $0x130] sm:$0xff]  }
  0x21   : > { %1486 = vmatpush3.bf16.msra.mxu1 %v1628_v27  ;;  %1447 = vmatprep.subr.bf16.mxu0 %v1629_v28  ;;  %v1321_v22 = vcombine.high %v170_v18, %v174_v20  ;;  %v1320_v23 = vcombine.low %v170_v18, %v174_v20  ;;  %v1660_v27 = vld [vmem:[%s1995_s1 + $0x1b0] sm:$0xff]   ;;  %v1661_v28 = vld [vmem:[%s1995_s1 + $0x178] sm:$0xff]  }
  0x22   : > { %1487 = vmatprep.subr.bf16.mxu1 %v1630_v29  ;;  %v1662_v29 = vld [vmem:[%s1995_s1 + $0x1f8] sm:$0xff]  }
  0x24   : > { %1448 = vmatpush3.bf16.msra.mxu0 %v1631_v30  ;;  %v1663_v30 = vld [vmem:[%s1995_s1 + $0x138] sm:$0xff]  }
  0x25   : > { %1488 = vmatpush3.bf16.msra.mxu1 %v1632_v31  ;;  %1513 = vmatprep.subr.bf16.mxu0 %v1633_v40  ;;  %v1664_v31 = vld [vmem:[%s1995_s1 + $0x1b8] sm:$0xff]   ;;  %v1301_v40 = vcombine.high %v148_v36, %v152_v37 }
  0x26   : > { %1553 = vmatprep.subr.bf16.mxu1 %v1634_v41  ;;  %v159_v41 = vld [vmem:[%s1798_s22 + $0x70] sm:$0xff] }
  0x27   : > { %882 = vmatmul.mubr.bf16.vlgmr.msra.gmra.mrb[0].mxu0 %v1294_v35  ;;  %v1299_v35 = vcombine.high %v147_v32, %v151_v33 }
  0x28   : > { %947 = vmatmul.mubr.bf16.vlgmr.msra.gmra.mrb[0].mxu1 %v1296_v38  ;;  %1514 = vmatpush3.bf16.msra.mxu0 %v1635_v42  ;;  %v155_v38 = vld [vmem:[%s1798_s22 + $0x50] sm:$0xff]  ;;  %v156_v42 = vld [vmem:[%s1798_s22 + $0x58] sm:$0xff] }
  0x29   : > { %1554 = vmatpush3.bf16.msra.mxu1 %v1636_v43  ;;  %1515 = vmatprep.subr.bf16.mxu0 %v1637_v44  ;;  %v160_v43 = vld [vmem:[%s1798_s22 + $0x78] sm:$0xff]  ;;  %v1307_v44 = vcombine.high %v155_v38, %v159_v41 }
  0x2a   : > { %1555 = vmatprep.subr.bf16.mxu1 %v1638_v45  ;;  %889 = vmatprep.mubr.bf16.mxu0 %v1303_v50  ;;  %v1309_v45 = vcombine.high %v156_v42, %v160_v43  ;;  %v1306_v50 = vcombine.low %v155_v38, %v159_v41  ;;  %v1308_v51 = vcombine.low %v156_v42, %v160_v43 }
  0x2b   : > { %954 = vmatprep.mubr.bf16.mxu1 %v1305_v54  ;;  %v171_v54 = vld [vmem:[%s1798_s22 + $0xd0] sm:$0xff] }
  0x2c   : > { %1516 = vmatpush3.bf16.msra.mxu0 %v1639_v46  ;;  %v163_v46 = vld [vmem:[%s1798_s22 + $0x90] sm:$0xff] }
  0x2d   : > { %1556 = vmatpush3.bf16.msra.mxu1 %v1640_v47  ;;  %1517 = vmatprep.subr.bf16.mxu0 %v1641_v56  ;;  %v167_v47 = vld [vmem:[%s1798_s22 + $0xb0] sm:$0xff]  ;;  %v172_v56 = vld [vmem:[%s1798_s22 + $0xd8] sm:$0xff] }
  0x2e   : > { %1557 = vmatprep.subr.bf16.mxu1 %v1642_v57  ;;  %v1315_v52 = vcombine.high %v163_v46, %v167_v47  ;;  %v176_v57 = vld [vmem:[%s1798_s22 + $0xf8] sm:$0xff] }
  0x2f   : > { %890 = vmatmul.mubr.bf16.gmra.mrb[4].mxu0 %v1302_v53  ;;  %v1317_v53 = vcombine.high %v164_v48, %v168_v49 }
  0x30   : > { %955 = vmatmul.mubr.bf16.gmra.mrb[4].mxu1 %v1304_v55  ;;  %1518 = vmatpush3.bf16.msra.mxu0 %v1643_v58  ;;  %v175_v55 = vld [vmem:[%s1798_s22 + $0xf0] sm:$0xff]  ;;  %v1314_v58 = vcombine.low %v163_v46, %v167_v47  ;;  %s1401_s22 = sshll.u32 %s1998_s10, 5 }
  0x31   : > { %1558 = vmatpush3.bf16.msra.mxu1 %v1644_v59  ;;  %1519 = vmatprep.subr.bf16.mxu0 %v1645_v60  ;;  %v1316_v59 = vcombine.low %v164_v48, %v168_v49  ;;  %v1323_v60 = vcombine.high %v171_v54, %v175_v55  ;;  %s143_s10 = scalar_lea.vmem %s1996_s2, %s1401_s22 }
  0x32   : > { %1559 = vmatprep.subr.bf16.mxu1 %v1646_v61  ;;  %897 = vmatprep.mubr.bf16.mxu0 %v1311_v4  ;;  %v1325_v61 = vcombine.high %v172_v56, %v176_v57 }
  0x33   : > { %962 = vmatprep.mubr.bf16.mxu1 %v1313_v5 }
  0x34   : > { %1520 = vmatpush3.bf16.msra.mxu0 %v1647_v62  ;;  %v1322_v62 = vcombine.low %v171_v54, %v175_v55 }
  0x35   : > { %1560 = vmatpush3.bf16.msra.mxu1 %v1648_v63  ;;  %1521 = vmatprep.subr.bf16.mxu0 %v1649_v8  ;;  %v1324_v63 = vcombine.low %v172_v56, %v176_v57 }
  0x36   : > { %1561 = vmatprep.subr.bf16.mxu1 %v1650_v9 }
  0x37   : > { %898 = vmatmul.mubr.bf16.gmra.mrb[8].mxu0 %v1310_v6 }
  0x38   : > { %963 = vmatmul.mubr.bf16.gmra.mrb[8].mxu1 %v1312_v7  ;;  %1522 = vmatpush3.bf16.msra.mxu0 %v1651_v10 }
  0x39   : > { %1562 = vmatpush3.bf16.msra.mxu1 %v1652_v11  ;;  %1523 = vmatprep.subr.bf16.mxu0 %v1653_v12 }
  0x3a   : > { %1563 = vmatprep.subr.bf16.mxu1 %v1654_v13  ;;  %905 = vmatprep.mubr.bf16.mxu0 %v1319_v19 }
  0x3b   : > { %970 = vmatprep.mubr.bf16.mxu1 %v1321_v22 }
  0x3c   : > { %1524 = vmatpush3.bf16.msra.mxu0 %v1655_v14 }
  0x3d   : > { %1564 = vmatpush3.bf16.msra.mxu1 %v1656_v15  ;;  %1525 = vmatprep.subr.bf16.mxu0 %v1657_v24 }
  0x3e   : > { %1565 = vmatprep.subr.bf16.mxu1 %v1658_v25 }
  0x3f   : > { %906 = vmatmul.mubr.bf16.gmra.mrb[12].mxu0 %v1318_v21 }
  0x40   : > { %971 = vmatmul.mubr.bf16.gmra.mrb[12].mxu1 %v1320_v23  ;;  %1526 = vmatpush3.bf16.msra.mxu0 %v1659_v26 }
  0x41   : > { %1566 = vmatpush3.bf16.msra.mxu1 %v1660_v27  ;;  %1527 = vmatprep.subr.bf16.mxu0 %v1661_v28 }
  0x42   : > { %1567 = vmatprep.subr.bf16.mxu1 %v1662_v29  ;;  %1011 = vmatprep.mubr.bf16.mxu0 %v1299_v35 }
  0x43   : > { %1076 = vmatprep.mubr.bf16.mxu1 %v1301_v40 }
  0x44   : > { %1528 = vmatpush3.bf16.msra.mxu0 %v1663_v30 }
  0x45   : > { %1568 = vmatpush3.bf16.msra.mxu1 %v1664_v31 }
  0x47   : > { %1012 = vmatmul.mubr.bf16.vlgmr.msra.gmra.mrb[16].mxu0 %v1298_v34 }
  0x48   : > { %1077 = vmatmul.mubr.bf16.vlgmr.msra.gmra.mrb[16].mxu1 %v1300_v39  ;;  %1019 = vmatprep.mubr.bf16.mxu0 %v1307_v44 }
  0x49   : > { %1084 = vmatprep.mubr.bf16.mxu1 %v1309_v45 }
  0x4f   : > { %1020 = vmatmul.mubr.bf16.gmra.mrb[20].mxu0 %v1306_v50 }
  0x50   : > { %1085 = vmatmul.mubr.bf16.gmra.mrb[20].mxu1 %v1308_v51  ;;  %1027 = vmatprep.mubr.bf16.mxu0 %v1315_v52 }
  0x51   : > { %1092 = vmatprep.mubr.bf16.mxu1 %v1317_v53 }
  0x57   : > { %1028 = vmatmul.mubr.bf16.gmra.mrb[24].mxu0 %v1314_v58 }
  0x58   : > { %1093 = vmatmul.mubr.bf16.gmra.mrb[24].mxu1 %v1316_v59  ;;  %1035 = vmatprep.mubr.bf16.mxu0 %v1323_v60 }
  0x59   : > { %1100 = vmatprep.mubr.bf16.mxu1 %v1325_v61 }
  0x5f   : > { %1036 = vmatmul.mubr.bf16.gmra.mrb[28].mxu0 %v1322_v62 }
  0x60   : > { %1101 = vmatmul.mubr.bf16.gmra.mrb[28].mxu1 %v1324_v63 }
  0xfa   : > { %v1449_v0 = vpop.f32.mrb[0].mxu0 }
  0xfb   : > { %v1489_v1 = vpop.f32.mrb[0].mxu1  ;;  %v1450_v2 = vpop.f32.mrb[1].mxu0 }
  0xfc   : > { %v1451_v3 = vadd.f32 %v1450_v2, %v1449_v0  ;;  %v1490_v4 = vpop.f32.mrb[1].mxu1  ;;  %v1452_v5 = vpop.f32.mrb[2].mxu0 }
  0xfd   : > { %v1491_v6 = vadd.f32 %v1490_v4, %v1489_v1  ;;  %v1492_v7 = vpop.f32.mrb[2].mxu1  ;;  %v1453_v8 = vpop.f32.mrb[3].mxu0 }
  0xfe   : > { %v1454_v9 = vadd.f32 %v1453_v8, %v1452_v5  ;;  %v1493_v10 = vpop.f32.mrb[3].mxu1 }
  0xff   : > { %v949_v11 = vadd.f32 %v1491_v6, %v1451_v3  ;;  %v1494_v12 = vadd.f32 %v1493_v10, %v1492_v7 }
 0x101   : > { %v952_v13 = vadd.f32 %v1494_v12, %v1454_v9 }
 0x102   : > { %v1455_v14 = vpop.f32.mrb[4].mxu0 }
 0x103   : > { %v1495_v15 = vpop.f32.mrb[4].mxu1  ;;  %v1456_v16 = vpop.f32.mrb[5].mxu0 }
 0x104   : > { %v1457_v17 = vadd.f32 %v1456_v16, %v1455_v14  ;;  %v1496_v18 = vpop.f32.mrb[5].mxu1  ;;  %v1458_v19 = vpop.f32.mrb[6].mxu0 }
 0x105   : > { %v1497_v20 = vadd.f32 %v1496_v18, %v1495_v15  ;;  %v1498_v21 = vpop.f32.mrb[6].mxu1  ;;  %v1459_v22 = vpop.f32.mrb[7].mxu0 }
 0x106   : > { %v1460_v23 = vadd.f32 %v1459_v22, %v1458_v19  ;;  %v1499_v24 = vpop.f32.mrb[7].mxu1 }
 0x107   : > { %v957_v25 = vadd.f32 %v1497_v20, %v1457_v17  ;;  %v1500_v26 = vadd.f32 %v1499_v24, %v1498_v21 }
 0x109   : > { %v1934_v27 = vadd.f32 %v1500_v26, %v1460_v23 }
 0x10a   : > { %v1461_v28 = vpop.f32.mrb[8].mxu0 }
 0x10b   : > { %v1501_v29 = vpop.f32.mrb[8].mxu1  ;;  %v1462_v30 = vpop.f32.mrb[9].mxu0 }
 0x10c   : > { %v1502_v31 = vpop.f32.mrb[9].mxu1  ;;  %v1463_v32 = vadd.f32 %v1462_v30, %v1461_v28  ;;  %v1464_v34 = vpop.f32.mrb[10].mxu0 }
 0x10d   : > { %v1503_v33 = vadd.f32 %v1502_v31, %v1501_v29  ;;  %v1504_v35 = vpop.f32.mrb[10].mxu1  ;;  %v1465_v36 = vpop.f32.mrb[11].mxu0 }
 0x10e   : > { %v1505_v37 = vpop.f32.mrb[11].mxu1  ;;  %v1466_v39 = vadd.f32 %v1465_v36, %v1464_v34 }
 0x10f   : > { %v1936_v38 = vadd.f32 %v1503_v33, %v1463_v32  ;;  %v1506_v40 = vadd.f32 %v1505_v37, %v1504_v35 }
 0x111   : > { %v1938_v41 = vadd.f32 %v1506_v40, %v1466_v39 }
 0x112   : > { %v1467_v42 = vpop.f32.mrb[12].mxu0 }
 0x113   : > { %v1507_v43 = vpop.f32.mrb[12].mxu1  ;;  %v1468_v44 = vpop.f32.mrb[13].mxu0 }
 0x114   : > { %v1469_v45 = vadd.f32 %v1468_v44, %v1467_v42  ;;  %v1508_v46 = vpop.f32.mrb[13].mxu1  ;;  %v1470_v47 = vpop.f32.mrb[14].mxu0 }
 0x115   : > { %v1509_v48 = vadd.f32 %v1508_v46, %v1507_v43  ;;  %v1510_v49 = vpop.f32.mrb[14].mxu1  ;;  %v1471_v50 = vpop.f32.mrb[15].mxu0 }
 0x116   : > { %v1472_v51 = vadd.f32 %v1471_v50, %v1470_v47  ;;  %v1511_v52 = vpop.f32.mrb[15].mxu1 }
 0x117   : > { %v1940_v53 = vadd.f32 %v1509_v48, %v1469_v45  ;;  %v1512_v54 = vadd.f32 %v1511_v52, %v1510_v49 }
 0x119   : > { %v1942_v55 = vadd.f32 %v1512_v54, %v1472_v51 }
 0x11a   : > { %v1529_v56 = vpop.f32.mrb[16].mxu0 }
 0x11b   : > { %v1569_v57 = vpop.f32.mrb[16].mxu1  ;;  %v1530_v58 = vpop.f32.mrb[17].mxu0 }
 0x11c   : > { %v1531_v59 = vadd.f32 %v1530_v58, %v1529_v56  ;;  %v1570_v60 = vpop.f32.mrb[17].mxu1  ;;  %v1532_v61 = vpop.f32.mrb[18].mxu0 }
 0x11d   : > { %v1571_v62 = vadd.f32 %v1570_v60, %v1569_v57  ;;  %v1572_v63 = vpop.f32.mrb[18].mxu1  ;;  %v1533_v0 = vpop.f32.mrb[19].mxu0 }
 0x11e   : > { %v1014_v1 = vadd.f32 %v1531_v59, %v949_v11  ;;  %v1534_v2 = vadd.f32 %v1533_v0, %v1532_v61  ;;  %v1573_v3 = vpop.f32.mrb[19].mxu1 }
 0x11f   : > { %v1574_v4 = vadd.f32 %v1573_v3, %v1572_v63 }
 0x120   : > { %v1944_v5 = vadd.f32 %v1571_v62, %v1014_v1  ;;  %v1017_v6 = vadd.f32 %v1534_v2, %v952_v13 }
 0x122   : > { %v1946_v7 = vadd.f32 %v1574_v4, %v1017_v6  ;;  %v1535_v8 = vpop.f32.mrb[20].mxu0  ;;  %v1122_v12 = vmul.f32 %v1944_v5, %v1944_v5 }
 0x123   : > { %v1575_v9 = vpop.f32.mrb[20].mxu1  ;;  %v1536_v10 = vpop.f32.mrb[21].mxu0 }
 0x124   : > { %v1109_v14 = vadd.f32 %v1946_v7, %v1944_v5  ;;  %v1123_v11 = vmul.f32 %v1946_v7, %v1946_v7  ;;  %v1537_v15 = vadd.f32 %v1536_v10, %v1535_v8  ;;  %v1576_v16 = vpop.f32.mrb[21].mxu1  ;;  %v1538_v17 = vpop.f32.mrb[22].mxu0 }
 0x125   : > { %v1577_v18 = vadd.f32 %v1576_v16, %v1575_v9  ;;  %v1578_v19 = vpop.f32.mrb[22].mxu1  ;;  %v1539_v13 = vpop.f32.mrb[23].mxu0 }
 0x126   : > { %v1130_v20 = vadd.f32 %v1123_v11, %v1122_v12  ;;  %v1022_v21 = vadd.f32 %v1537_v15, %v957_v25  ;;  %v1540_v22 = vadd.f32 %v1539_v13, %v1538_v17  ;;  %v1579_v23 = vpop.f32.mrb[23].mxu1 }
 0x127   : > { %v1580_v24 = vadd.f32 %v1579_v23, %v1578_v19 }
 0x128   : > { %v1954_v26 = vadd.f32 %v1577_v18, %v1022_v21  ;;  %v1025_v28 = vadd.f32 %v1540_v22, %v1934_v27 }
 0x12a   : > { %v1110_v29 = vadd.f32 %v1109_v14, %v1954_v26  ;;  %v1124_v30 = vmul.f32 %v1954_v26, %v1954_v26  ;;  %v1960_v31 = vadd.f32 %v1580_v24, %v1025_v28  ;;  %v1541_v32 = vpop.f32.mrb[24].mxu0 }
 0x12b   : > { %v1581_v33 = vpop.f32.mrb[24].mxu1  ;;  %v1542_v34 = vpop.f32.mrb[25].mxu0 }
 0x12c   : > { %v1131_v35 = vadd.f32 %v1130_v20, %v1124_v30  ;;  %v1111_v25 = vadd.f32 %v1110_v29, %v1960_v31  ;;  %v1125_v36 = vmul.f32 %v1960_v31, %v1960_v31  ;;  %v1543_v37 = vadd.f32 %v1542_v34, %v1541_v32  ;;  %v1582_v39 = vpop.f32.mrb[25].mxu1  ;;  %v1544_v40 = vpop.f32.mrb[26].mxu0 }
 0x12d   : > { %v1583_v27 = vadd.f32 %v1582_v39, %v1581_v33  ;;  %v1584_v42 = vpop.f32.mrb[26].mxu1  ;;  %v1545_v43 = vpop.f32.mrb[27].mxu0 }
 0x12e   : > { %v1132_v44 = vadd.f32 %v1131_v35, %v1125_v36  ;;  %v1030_v45 = vadd.f32 %v1543_v37, %v1936_v38  ;;  %v1546_v46 = vadd.f32 %v1545_v43, %v1544_v40  ;;  %v1585_v47 = vpop.f32.mrb[27].mxu1 }
 0x12f   : > { %v1586_v48 = vadd.f32 %v1585_v47, %v1584_v42 }
 0x130   : > { %v1966_v49 = vadd.f32 %v1583_v27, %v1030_v45  ;;  %v1033_v50 = vadd.f32 %v1546_v46, %v1938_v41 }
 0x132   : > { %v1112_v51 = vadd.f32 %v1111_v25, %v1966_v49  ;;  %v1126_v52 = vmul.f32 %v1966_v49, %v1966_v49  ;;  %v1098_v54 = vadd.f32 %v1586_v48, %v1033_v50  ;;  %v1547_v56 = vpop.f32.mrb[28].mxu0 }
 0x133   : > { %v1587_v57 = vpop.f32.mrb[28].mxu1  ;;  %v1548_v58 = vpop.f32.mrb[29].mxu0 }
 0x134   : > { %v1133_v59 = vadd.f32 %v1132_v44, %v1126_v52  ;;  %v1113_v60 = vadd.f32 %v1112_v51, %v1098_v54  ;;  %v1127_v61 = vmul.f32 %v1098_v54, %v1098_v54  ;;  %v1549_v38 = vadd.f32 %v1548_v58, %v1547_v56  ;;  %v1588_v62 = vpop.f32.mrb[29].mxu1  ;;  %v1550_v63 = vpop.f32.mrb[30].mxu0 }
 0x135   : > { %v1589_v0 = vadd.f32 %v1588_v62, %v1587_v57  ;;  %v1590_v1 = vpop.f32.mrb[30].mxu1  ;;  %v1551_v2 = vpop.f32.mrb[31].mxu0 }
 0x136   : > { %v1134_v3 = vadd.f32 %v1133_v59, %v1127_v61  ;;  %v1038_v41 = vadd.f32 %v1549_v38, %v1940_v53  ;;  %v1552_v4 = vadd.f32 %v1551_v2, %v1550_v63  ;;  %v1591_v6 = vpop.f32.mrb[31].mxu1 }
 0x137   : > { %v1592_v8 = vadd.f32 %v1591_v6, %v1590_v1 }
 0x138   : > { %v1103_v9 = vadd.f32 %v1589_v0, %v1038_v41  ;;  %v1041_v10 = vadd.f32 %v1552_v4, %v1942_v55 }
 0x13a   : > { %v1114_v12 = vadd.f32 %v1113_v60, %v1103_v9  ;;  %v1128_v14 = vmul.f32 %v1103_v9, %v1103_v9  ;;  %v1106_v11 = vadd.f32 %v1592_v8, %v1041_v10 }
 0x13c   : > { %v1135_v15 = vadd.f32 %v1134_v3, %v1128_v14  ;;  %v1115_v16 = vadd.f32 %v1114_v12, %v1106_v11  ;;  %v1129_v17 = vmul.f32 %v1106_v11, %v1106_v11 }
 0x13e   : > { %v1116_v18 = vrot.slane %v1115_v16, 4  ;;  %v1136_v19 = vadd.f32 %v1135_v15, %v1129_v17 }
 0x140   : > { %v1117_v13 = vadd.f32 %v1116_v18, %v1115_v16  ;;  %v1137_v20 = vrot.slane %v1136_v19, 4 }
 0x142   : > { %v1118_v21 = vrot.slane %v1117_v13, 2  ;;  %v1138_v22 = vadd.f32 %v1137_v20, %v1136_v19 }
 0x144   : > { %v1119_v23 = vadd.f32 %v1118_v21, %v1117_v13  ;;  %v1139_v53 = vrot.slane %v1138_v22, 2 }
 0x146   : > { %v1120_v24 = vrot.slane %v1119_v23, 1  ;;  %v1140_v28 = vadd.f32 %v1139_v53, %v1138_v22 }
 0x148   : > { %v1121_v29 = vadd.f32 %v1120_v24, %v1119_v23  ;;  %v1141_v30 = vrot.slane %v1140_v28, 1 }
 0x14a   : > { %v1142_v32 = vadd.f32 %v1141_v30, %v1140_v28  ;;  %v1143_v55 = vmul.f32 0.015625, %v1121_v29 }
 0x14c   : > { %v1144_v33 = vmul.f32 0.015625, %v1142_v32  ;;  %v1145_v34 = vmul.f32 %v1143_v55, %v1143_v55  ;;  %v1148_v35 = vsub.f32 %v1944_v5, %v1143_v55  ;;  %v1149_v25 = vsub.f32 %v1946_v7, %v1143_v55 }
 0x14d   : > { %v1150_v36 = vsub.f32 %v1954_v26, %v1143_v55  ;;  %v1151_v37 = vsub.f32 %v1960_v31, %v1143_v55  ;;  %v1152_v39 = vsub.f32 %v1966_v49, %v1143_v55  ;;  %v1153_v40 = vsub.f32 %v1098_v54, %v1143_v55 }
 0x14e   : > { %v1146_v27 = vsub.f32 %v1144_v33, %v1145_v34  ;;  %v1154_v42 = vsub.f32 %v1103_v9, %v1143_v55  ;;  %v1155_v43 = vsub.f32 %v1106_v11, %v1143_v55 }
 0x150   : > { %v1147_v44 = vmax.f32 %v1146_v27, 0.0 }
 0x152   : > { %v1156_v45 = vadd.f32 1e-05, %v1147_v44 }
 0x154   : > { %1665 = vrsqrt.f32 %v1156_v45 }
 0x15e   : > { %v1666_v46 = vpop.eup %1665 }
 0x15f   : > { %v1158_v47 = vmul.f32 %v1666_v46, %v1148_v35  ;;  %v1159_v48 = vmul.f32 %v1666_v46, %v1149_v25  ;;  %v1160_v5 = vmul.f32 %v1666_v46, %v1150_v36  ;;  %v1161_v50 = vmul.f32 %v1666_v46, %v1151_v37 }
 0x160   : > { %v1162_v7 = vmul.f32 %v1666_v46, %v1152_v39  ;;  %v1163_v51 = vmul.f32 %v1666_v46, %v1153_v40  ;;  %v1164_v26 = vmul.f32 %v1666_v46, %v1154_v42  ;;  %v1165_v52 = vmul.f32 %v1666_v46, %v1155_v43 }
 0x161   : > { %vm1166_vm0 = vcmp.gt.f32.partialorder %v1158_v47, 0.0  ;;  %vm1167_vm1 = vcmp.gt.f32.partialorder %v1159_v48, 0.0  ;;  %vm1168_vm2 = vcmp.gt.f32.partialorder %v1160_v5, 0.0  ;;  %vm1169_vm3 = vcmp.gt.f32.partialorder %v1161_v50, 0.0 }
 0x162   : > { %vm1170_vm4 = vcmp.gt.f32.partialorder %v1162_v7, 0.0  ;;  %vm1171_vm5 = vcmp.gt.f32.partialorder %v1163_v51, 0.0  ;;  %vm1172_vm6 = vcmp.gt.f32.partialorder %v1164_v26, 0.0  ;;  %vm1173_vm7 = vcmp.gt.f32.partialorder %v1165_v52, 0.0 }
 0x163   : > { %v1174_v31 = vmul.f32 0.01, %v1158_v47  ;;  %v1175_v49 = vmul.f32 0.01, %v1159_v48  ;;  %v1176_v54 = vmul.f32 0.01, %v1160_v5 }
 0x164   : > { %v1177_v56 = vmul.f32 0.01, %v1161_v50  ;;  %v1178_v57 = vmul.f32 0.01, %v1162_v7  ;;  %v1179_v58 = vmul.f32 0.01, %v1163_v51 }
 0x165   : > { %v1180_v59 = vmul.f32 0.01, %v1164_v26  ;;  %v1181_v60 = vmul.f32 0.01, %v1165_v52  ;;  %v1182_v61 = vsel %vm1166_vm0, %v1158_v47, %v1174_v31  ;;  %v1183_v38 = vsel %vm1167_vm1, %v1159_v48, %v1175_v49 }
 0x166   : > { %v1184_v62 = vsel %vm1168_vm2, %v1160_v5, %v1176_v54  ;;  %v1185_v63 = vsel %vm1169_vm3, %v1161_v50, %v1177_v56  ;;  %v1186_v0 = vsel %vm1170_vm4, %v1162_v7, %v1178_v57  ;;  %v1187_v1 = vsel %vm1171_vm5, %v1163_v51, %v1179_v58 }
 0x167   : > { %v1188_v2 = vsel %vm1172_vm6, %v1164_v26, %v1180_v59  ;;  %v1189_v3 = vsel %vm1173_vm7, %v1165_v52, %v1181_v60  ;;  %v1413_v41 = vpack.c.bf16 %v1183_v38, %v1182_v61  ;;  %v1418_v4 = vpack.c.bf16 %v1185_v63, %v1184_v62 }
 0x168   : > { %v1423_v6 = vpack.c.bf16 %v1187_v1, %v1186_v0  ;;  %v1428_v8 = vpack.c.bf16 %v1189_v3, %v1188_v2 }
 0x169   : > { %1414 = vst [vmem:[%s143_s10] sm:$0xff] %v1413_v41   ;;  %1430 = vst [vmem:[%s143_s10 + $0x8] sm:$0xff] %v1418_v4  }
 0x16a   : > { %1431 = vst [vmem:[%s143_s10 + $0x10] sm:$0xff] %v1423_v6   ;;  %1432 = vst [vmem:[%s143_s10 + $0x18] sm:$0xff] %v1428_v8  }
 0x16b PF: > { %s12_s9 = sadd.s32 1, %s1673_s9  }
 0x16c   : > { %p9_p4 = scmp.ge.s32.totalorder %s12_s9, 4  }
 0x16e   :  { %11 = sbr.rel (!%p9_p4) target bundleno = 1 (0x1), region = 58 }

// kernel: discriminator_forward.7
= control target key start
LH: loop header
LB: loop body
LE: loop exit
PB: predicated region body
PF: predicated region fallthrough
CT: control target
= control target key end

     0   :  { %s2991_s9 = smov 0   ;;  %s3862_s0 = inlined_call_operand.vmem [shape: bf16[2,16,2048], index: 0, kind: input, shape index: {}]   ;;  %s3863_s1 = inlined_call_operand.vmem [shape: bf16[2048,256], index: 1, kind: input, shape index: {}]   ;;  %s3864_s2 = inlined_call_operand.vmem [shape: bf16[2,16,256], index: 2, kind: output, shape index: {}]  }
   0x1 LB: > { %s2255_s10 = sadd.s32 4294967295, %s2974_s9   ;;  %p2259_p0 = scmp.ge.s32.totalorder %s2974_s9, 1  ;;  %s2974_s9 = sphi %s2991_s9, %s12_s9  }
   0x2   : > { %p112_p1 = scmp.lt.s32.totalorder %s2974_s9, 3 }
   0x4   : > { %p113_p2 = pnand %p2259_p0, %p112_p1 }
   0x5   : > { %v2580_v0 = vld [vmem:[%s3863_s1 + $0x4] ss:$8 sps:$4 sm:$0xff] (!%p113_p2)   ;;  %v2584_v2 = vld [vmem:[%s3863_s1] ss:$8 sps:$4 sm:$0xff] (!%p113_p2)   ;;  %v2586_v4 = vld [vmem:[%s3863_s1 + $0x14] ss:$8 sps:$4 sm:$0xff] (!%p113_p2)  }
   0x6   : > { %116 = sbr.rel (%p113_p2) target bundleno = 523 (0x20b), region = 28  ;;  %v2582_v1 = vld [vmem:[%s3863_s1 + $0x404] ss:$8 sps:$4 sm:$0xff] (!%p113_p2)   ;;  %1776 = vmatprep.subr.bf16.mxu1 (!%p113_p2), %v2580_v0  ;;  %v2585_v3 = vld [vmem:[%s3863_s1 + $0x400] ss:$8 sps:$4 sm:$0xff] (!%p113_p2)   ;;  %p134_p3 = scmp.lt.s32.totalorder (!%p113_p2), %s2255_s10, 1 }
   0x7   : > { %1948 = vmatprep.subr.bf16.mxu0 (!%p113_p2), %v2582_v1  ;;  %1777 = vmatpush1.bf16.msra.mxu1 (!%p113_p2), %v2584_v2  ;;  %v2588_v5 = vld [vmem:[%s3863_s1 + $0x414] ss:$8 sps:$4 sm:$0xff] (!%p113_p2)   ;;  %v2590_v6 = vld [vmem:[%s3863_s1 + $0x10] ss:$8 sps:$4 sm:$0xff] (!%p113_p2)   ;;  %v2592_v8 = vld [vmem:[%s3863_s1 + $0x24] ss:$8 sps:$4 sm:$0xff] (!%p113_p2)  }
   0x8   : > { %1949 = vmatpush1.bf16.msra.mxu0 (!%p113_p2), %v2585_v3  ;;  %1778 = vmatprep.subr.bf16.mxu1 (!%p113_p2), %v2586_v4  ;;  %v2591_v7 = vld [vmem:[%s3863_s1 + $0x410] ss:$8 sps:$4 sm:$0xff] (!%p113_p2)   ;;  %v2594_v9 = vld [vmem:[%s3863_s1 + $0x424] ss:$8 sps:$4 sm:$0xff] (!%p113_p2)   ;;  %v2596_v10 = vld [vmem:[%s3863_s1 + $0x20] ss:$8 sps:$4 sm:$0xff] (!%p113_p2)  }
   0x9   : > { %1950 = vmatprep.subr.bf16.mxu0 (!%p113_p2), %v2588_v5  ;;  %v2597_v11 = vld [vmem:[%s3863_s1 + $0x420] ss:$8 sps:$4 sm:$0xff] (!%p113_p2)   ;;  %v2598_v12 = vld [vmem:[%s3863_s1 + $0x34] ss:$8 sps:$4 sm:$0xff] (!%p113_p2)   ;;  %v2602_v14 = vld [vmem:[%s3863_s1 + $0x30] ss:$8 sps:$4 sm:$0xff] (!%p113_p2)  }
   0xa   : > { %v2600_v13 = vld [vmem:[%s3863_s1 + $0x434] ss:$8 sps:$4 sm:$0xff] (!%p113_p2)   ;;  %v2603_v15 = vld [vmem:[%s3863_s1 + $0x430] ss:$8 sps:$4 sm:$0xff] (!%p113_p2)   ;;  %v2604_v16 = vld [vmem:[%s3863_s1 + $0x44] ss:$8 sps:$4 sm:$0xff] (!%p113_p2)  }
   0xb   : > { %1779 = vmatpush1.bf16.msra.mxu1 (!%p113_p2), %v2590_v6  ;;  %v2606_v17 = vld [vmem:[%s3863_s1 + $0x444] ss:$8 sps:$4 sm:$0xff] (!%p113_p2)   ;;  %v2608_v18 = vld [vmem:[%s3863_s1 + $0x40] ss:$8 sps:$4 sm:$0xff] (!%p113_p2)   ;;  %v2610_v20 = vld [vmem:[%s3863_s1 + $0x54] ss:$8 sps:$4 sm:$0xff] (!%p113_p2)  }
   0xc   : > { %1951 = vmatpush1.bf16.msra.mxu0 (!%p113_p2), %v2591_v7  ;;  %1780 = vmatprep.subr.bf16.mxu1 (!%p113_p2), %v2592_v8  ;;  %v2609_v19 = vld [vmem:[%s3863_s1 + $0x440] ss:$8 sps:$4 sm:$0xff] (!%p113_p2)   ;;  %v2612_v21 = vld [vmem:[%s3863_s1 + $0x454] ss:$8 sps:$4 sm:$0xff] (!%p113_p2)   ;;  %v2614_v22 = vld [vmem:[%s3863_s1 + $0x50] ss:$8 sps:$4 sm:$0xff] (!%p113_p2)  }
   0xd   : > { %1952 = vmatprep.subr.bf16.mxu0 %v2594_v9  ;;  %v2615_v23 = vld [vmem:[%s3863_s1 + $0x450] ss:$8 sps:$4 sm:$0xff]   ;;  %v2616_v24 = vld [vmem:[%s3863_s1 + $0x64] ss:$8 sps:$4 sm:$0xff]   ;;  %v2620_v26 = vld [vmem:[%s3863_s1 + $0x60] ss:$8 sps:$4 sm:$0xff]  }
   0xe   : > { %v2618_v25 = vld [vmem:[%s3863_s1 + $0x464] ss:$8 sps:$4 sm:$0xff]   ;;  %v2621_v27 = vld [vmem:[%s3863_s1 + $0x460] ss:$8 sps:$4 sm:$0xff]   ;;  %v2622_v28 = vld [vmem:[%s3863_s1 + $0x74] ss:$8 sps:$4 sm:$0xff]  }
   0xf   : > { %1781 = vmatpush1.bf16.msra.mxu1 %v2596_v10  ;;  %v2624_v29 = vld [vmem:[%s3863_s1 + $0x474] ss:$8 sps:$4 sm:$0xff]   ;;  %v2626_v30 = vld [vmem:[%s3863_s1 + $0x70] ss:$8 sps:$4 sm:$0xff]   ;;  %v2628_v32 = vld [vmem:[%s3863_s1 + $0x84] ss:$8 sps:$4 sm:$0xff]  }
  0x10   : > { %1953 = vmatpush1.bf16.msra.mxu0 %v2597_v11  ;;  %1782 = vmatprep.subr.bf16.mxu1 %v2598_v12  ;;  %v2627_v31 = vld [vmem:[%s3863_s1 + $0x470] ss:$8 sps:$4 sm:$0xff]   ;;  %v2630_v33 = vld [vmem:[%s3863_s1 + $0x484] ss:$8 sps:$4 sm:$0xff]   ;;  %v2632_v34 = vld [vmem:[%s3863_s1 + $0x80] ss:$8 sps:$4 sm:$0xff]  }
  0x11   : > { %1954 = vmatprep.subr.bf16.mxu0 %v2600_v13  ;;  %v2633_v35 = vld [vmem:[%s3863_s1 + $0x480] ss:$8 sps:$4 sm:$0xff]   ;;  %v2634_v36 = vld [vmem:[%s3863_s1 + $0x94] ss:$8 sps:$4 sm:$0xff]   ;;  %s3866_s10 = smov (!%p134_p3, %s2255_s10), 1 }
  0x12   : > { %v2636_v37 = vld [vmem:[%s3863_s1 + $0x494] ss:$8 sps:$4 sm:$0xff]   ;;  %v2638_v38 = vld [vmem:[%s3863_s1 + $0x90] ss:$8 sps:$4 sm:$0xff]   ;;  %v2640_v40 = vld [vmem:[%s3863_s1 + $0xa4] ss:$8 sps:$4 sm:$0xff]  }
  0x13   : > { %1783 = vmatpush1.bf16.msra.mxu1 %v2602_v14  ;;  %v2639_v39 = vld [vmem:[%s3863_s1 + $0x490] ss:$8 sps:$4 sm:$0xff]   ;;  %s2540_s15 = sshll.u32 %s3866_s10, 7  ;;  %v2642_v41 = vld [vmem:[%s3863_s1 + $0x4a4] ss:$8 sps:$4 sm:$0xff]   ;;  %s2541_s18 = sshll.u32 %s3866_s10, 4 }
  0x14   : > { %1955 = vmatpush1.bf16.msra.mxu0 %v2603_v15  ;;  %1784 = vmatprep.subr.bf16.mxu1 %v2604_v16  ;;  %v2644_v42 = vld [vmem:[%s3863_s1 + $0xa0] ss:$8 sps:$4 sm:$0xff]   ;;  %s3141_s24 = scalar_lea.vmem %s3862_s0, %s2540_s15  ;;  %v2646_v44 = vld [vmem:[%s3863_s1 + $0xb4] ss:$8 sps:$4 sm:$0xff]   ;;  %v2650_v46 = vld [vmem:[%s3863_s1 + $0xb0] ss:$8 sps:$4 sm:$0xff]   ;;  %s143_s21 = scalar_lea.vmem %s3864_s2, %s2541_s18 }
  0x15   : > { %1956 = vmatprep.subr.bf16.mxu0 %v2606_v17  ;;  %v2645_v43 = vld [vmem:[%s3863_s1 + $0x4a0] ss:$8 sps:$4 sm:$0xff]   ;;  %v2648_v45 = vld [vmem:[%s3863_s1 + $0x4b4] ss:$8 sps:$4 sm:$0xff]   ;;  %v2651_v47 = vld [vmem:[%s3863_s1 + $0x4b0] ss:$8 sps:$4 sm:$0xff]  }
  0x16   : > { %v144_v48 = vld [vmem:[%s3141_s24] sm:$0xff]  ;;  %v2658_v58 = vld [vmem:[%s3863_s1 + $0xd4] ss:$8 sps:$4 sm:$0xff]   ;;  %v2662_v60 = vld [vmem:[%s3863_s1 + $0xd0] ss:$8 sps:$4 sm:$0xff]  }
  0x17   : > { %1785 = vmatpush1.bf16.msra.mxu1 %v2608_v18  ;;  %v152_v49 = vld [vmem:[%s3141_s24 + $0x40] sm:$0xff]  ;;  %v2660_v59 = vld [vmem:[%s3863_s1 + $0x4d4] ss:$8 sps:$4 sm:$0xff]   ;;  %v2663_v61 = vld [vmem:[%s3863_s1 + $0x4d0] ss:$8 sps:$4 sm:$0xff]  }
  0x18   : > { %1957 = vmatpush1.bf16.msra.mxu0 %v2609_v19  ;;  %1786 = vmatprep.subr.bf16.mxu1 %v2610_v20  ;;  %v2652_v50 = vld [vmem:[%s3863_s1 + $0xc4] ss:$8 sps:$4 sm:$0xff]   ;;  %v2265_v52 = vcombine.high %v144_v48, %v152_v49  ;;  %v2656_v56 = vld [vmem:[%s3863_s1 + $0xc0] ss:$8 sps:$4 sm:$0xff]   ;;  %v2670_v2 = vld [vmem:[%s3863_s1 + $0xf4] ss:$8 sps:$4 sm:$0xff]   ;;  %v2264_v8 = vcombine.low %v144_v48, %v152_v49 }
  0x19   : > { %1958 = vmatprep.subr.bf16.mxu0 %v2612_v21  ;;  %v2654_v51 = vld [vmem:[%s3863_s1 + $0x4c4] ss:$8 sps:$4 sm:$0xff]   ;;  %v2657_v57 = vld [vmem:[%s3863_s1 + $0x4c0] ss:$8 sps:$4 sm:$0xff]   ;;  %v2672_v3 = vld [vmem:[%s3863_s1 + $0x4f4] ss:$8 sps:$4 sm:$0xff]  }
  0x1a   : > { %v148_v53 = vld [vmem:[%s3141_s24 + $0x20] sm:$0xff]  ;;  %1808 = vmatprep.mubr.bf16.mxu1 %v2265_v52  ;;  %v2674_v4 = vld [vmem:[%s3863_s1 + $0xf0] ss:$8 sps:$4 sm:$0xff]   ;;  %v2684_v12 = vld [vmem:[%s3863_s1 + $0x114] ss:$8 sps:$4 sm:$0xff]  }
  0x1b   : > { %1787 = vmatpush1.bf16.msra.mxu1 %v2614_v22  ;;  %v156_v54 = vld [vmem:[%s3141_s24 + $0x60] sm:$0xff]  ;;  %v2675_v5 = vld [vmem:[%s3863_s1 + $0x4f0] ss:$8 sps:$4 sm:$0xff]   ;;  %v2687_v13 = vld [vmem:[%s3863_s1 + $0x514] ss:$8 sps:$4 sm:$0xff]  }
  0x1c   : > { %1959 = vmatpush1.bf16.msra.mxu0 %v2615_v23  ;;  %1788 = vmatprep.subr.bf16.mxu1 %v2616_v24  ;;  %v2273_v55 = vcombine.high %v148_v53, %v156_v54  ;;  %v2664_v62 = vld [vmem:[%s3863_s1 + $0xe4] ss:$8 sps:$4 sm:$0xff]   ;;  %v2668_v0 = vld [vmem:[%s3863_s1 + $0xe0] ss:$8 sps:$4 sm:$0xff]   ;;  %v2272_v10 = vcombine.low %v148_v53, %v156_v54  ;;  %v2682_v14 = vld [vmem:[%s3863_s1 + $0x110] ss:$8 sps:$4 sm:$0xff]  }
  0x1d   : > { %1960 = vmatprep.subr.bf16.mxu0 %v2618_v25  ;;  %v2666_v63 = vld [vmem:[%s3863_s1 + $0x4e4] ss:$8 sps:$4 sm:$0xff]   ;;  %v2669_v1 = vld [vmem:[%s3863_s1 + $0x4e0] ss:$8 sps:$4 sm:$0xff]   ;;  %v2685_v15 = vld [vmem:[%s3863_s1 + $0x510] ss:$8 sps:$4 sm:$0xff]  }
  0x1e   : > { %1980 = vmatprep.mubr.bf16.mxu0 %v2273_v55  ;;  %v2678_v6 = vld [vmem:[%s3863_s1 + $0x104] ss:$8 sps:$4 sm:$0xff]   ;;  %v2676_v9 = vld [vmem:[%s3863_s1 + $0x100] ss:$8 sps:$4 sm:$0xff]   ;;  %v2696_v20 = vld [vmem:[%s3863_s1 + $0x134] ss:$8 sps:$4 sm:$0xff]  }
  0x1f   : > { %1789 = vmatpush1.bf16.msra.mxu1 %v2620_v26  ;;  %v2681_v7 = vld [vmem:[%s3863_s1 + $0x504] ss:$8 sps:$4 sm:$0xff]   ;;  %v2679_v11 = vld [vmem:[%s3863_s1 + $0x500] ss:$8 sps:$4 sm:$0xff]   ;;  %v2699_v21 = vld [vmem:[%s3863_s1 + $0x534] ss:$8 sps:$4 sm:$0xff]  }
  0x20   : > { %1961 = vmatpush1.bf16.msra.mxu0 %v2621_v27  ;;  %1790 = vmatprep.subr.bf16.mxu1 %v2622_v28  ;;  %v2690_v16 = vld [vmem:[%s3863_s1 + $0x124] ss:$8 sps:$4 sm:$0xff]   ;;  %v2688_v18 = vld [vmem:[%s3863_s1 + $0x120] ss:$8 sps:$4 sm:$0xff]   ;;  %v2694_v22 = vld [vmem:[%s3863_s1 + $0x130] ss:$8 sps:$4 sm:$0xff]  }
  0x21   : > { %1962 = vmatprep.subr.bf16.mxu0 %v2624_v29  ;;  %v2693_v17 = vld [vmem:[%s3863_s1 + $0x524] ss:$8 sps:$4 sm:$0xff]   ;;  %v2691_v19 = vld [vmem:[%s3863_s1 + $0x520] ss:$8 sps:$4 sm:$0xff]   ;;  %v2697_v23 = vld [vmem:[%s3863_s1 + $0x530] ss:$8 sps:$4 sm:$0xff]  }
  0x22   : > { %v2702_v24 = vld [vmem:[%s3863_s1 + $0x144] ss:$8 sps:$4 sm:$0xff]   ;;  %v2700_v26 = vld [vmem:[%s3863_s1 + $0x140] ss:$8 sps:$4 sm:$0xff]   ;;  %v2708_v28 = vld [vmem:[%s3863_s1 + $0x154] ss:$8 sps:$4 sm:$0xff]  }
  0x23   : > { %1791 = vmatpush1.bf16.msra.mxu1 %v2626_v30  ;;  %v2705_v25 = vld [vmem:[%s3863_s1 + $0x544] ss:$8 sps:$4 sm:$0xff]   ;;  %v2703_v27 = vld [vmem:[%s3863_s1 + $0x540] ss:$8 sps:$4 sm:$0xff]   ;;  %v2711_v29 = vld [vmem:[%s3863_s1 + $0x554] ss:$8 sps:$4 sm:$0xff]  }
  0x24   : > { %1963 = vmatpush1.bf16.msra.mxu0 %v2627_v31  ;;  %1792 = vmatprep.subr.bf16.mxu1 %v2628_v32  ;;  %v2706_v30 = vld [vmem:[%s3863_s1 + $0x150] ss:$8 sps:$4 sm:$0xff]   ;;  %v2714_v32 = vld [vmem:[%s3863_s1 + $0x164] ss:$8 sps:$4 sm:$0xff]   ;;  %v2724_v48 = vld [vmem:[%s3863_s1 + $0x180] ss:$8 sps:$4 sm:$0xff]  }
  0x25   : > { %1964 = vmatprep.subr.bf16.mxu0 %v2630_v33  ;;  %v2709_v31 = vld [vmem:[%s3863_s1 + $0x550] ss:$8 sps:$4 sm:$0xff]   ;;  %v2717_v33 = vld [vmem:[%s3863_s1 + $0x564] ss:$8 sps:$4 sm:$0xff]   ;;  %v2727_v49 = vld [vmem:[%s3863_s1 + $0x580] ss:$8 sps:$4 sm:$0xff]  }
  0x26   : > { %v2730_v52 = vld [vmem:[%s3863_s1 + $0x190] ss:$8 sps:$4 sm:$0xff]   ;;  %v2738_v54 = vld [vmem:[%s3863_s1 + $0x1a4] ss:$8 sps:$4 sm:$0xff]  }
  0x27   : > { %1793 = vmatpush1.bf16.msra.mxu1 %v2632_v34  ;;  %v2712_v34 = vld [vmem:[%s3863_s1 + $0x160] ss:$8 sps:$4 sm:$0xff]   ;;  %v2733_v53 = vld [vmem:[%s3863_s1 + $0x590] ss:$8 sps:$4 sm:$0xff]   ;;  %v2741_v55 = vld [vmem:[%s3863_s1 + $0x5a4] ss:$8 sps:$4 sm:$0xff]  }
  0x28   : > { %1965 = vmatpush1.bf16.msra.mxu0 %v2633_v35  ;;  %1794 = vmatprep.subr.bf16.mxu1 %v2634_v36  ;;  %v2715_v35 = vld [vmem:[%s3863_s1 + $0x560] ss:$8 sps:$4 sm:$0xff]  }
  0x29   : > { %1966 = vmatprep.subr.bf16.mxu0 %v2636_v37  ;;  %v3292_v36 = vld [vmem:[%s3141_s24 + $0x8] sm:$0xff] }
  0x2a   : > { %v3295_v37 = vld [vmem:[%s3141_s24 + $0x48] sm:$0xff] }
  0x2b   : > { %1795 = vmatpush1.bf16.msra.mxu1 %v2638_v38  ;;  %v2720_v38 = vld [vmem:[%s3863_s1 + $0x174] ss:$8 sps:$4 sm:$0xff]  }
  0x2c   : > { %1967 = vmatpush1.bf16.msra.mxu0 %v2639_v39  ;;  %1796 = vmatprep.subr.bf16.mxu1 %v2640_v40  ;;  %v2723_v39 = vld [vmem:[%s3863_s1 + $0x574] ss:$8 sps:$4 sm:$0xff]   ;;  %v2267_v40 = vcombine.high %v3292_v36, %v3295_v37 }
  0x2d   : > { %1968 = vmatprep.subr.bf16.mxu0 %v2642_v41  ;;  %v3306_v41 = vld [vmem:[%s3141_s24 + $0x28] sm:$0xff] }
  0x2f   : > { %1797 = vmatpush1.bf16.msra.mxu1 %v2644_v42  ;;  %v3309_v42 = vld [vmem:[%s3141_s24 + $0x68] sm:$0xff] }
  0x30   : > { %1969 = vmatpush1.bf16.msra.mxu0 %v2645_v43  ;;  %1798 = vmatprep.subr.bf16.mxu1 %v2646_v44  ;;  %v2275_v43 = vcombine.high %v3306_v41, %v3309_v42  ;;  %v2718_v44 = vld [vmem:[%s3863_s1 + $0x170] ss:$8 sps:$4 sm:$0xff]  }
  0x31   : > { %1970 = vmatprep.subr.bf16.mxu0 %v2648_v45  ;;  %v2721_v45 = vld [vmem:[%s3863_s1 + $0x570] ss:$8 sps:$4 sm:$0xff]  }
  0x33   : > { %1799 = vmatpush1.bf16.msra.mxu1 %v2650_v46  ;;  %v2726_v46 = vld [vmem:[%s3863_s1 + $0x184] ss:$8 sps:$4 sm:$0xff]  }
  0x34   : > { %1971 = vmatpush1.bf16.msra.mxu0 %v2651_v47  ;;  %1800 = vmatprep.subr.bf16.mxu1 %v2652_v50  ;;  %v2729_v47 = vld [vmem:[%s3863_s1 + $0x584] ss:$8 sps:$4 sm:$0xff]   ;;  %v2732_v50 = vld [vmem:[%s3863_s1 + $0x194] ss:$8 sps:$4 sm:$0xff]  }
  0x35   : > { %1972 = vmatprep.subr.bf16.mxu0 %v2654_v51  ;;  %v2735_v51 = vld [vmem:[%s3863_s1 + $0x594] ss:$8 sps:$4 sm:$0xff]  }
  0x37   : > { %1801 = vmatpush1.bf16.msra.mxu1 %v2656_v56  ;;  %v2736_v56 = vld [vmem:[%s3863_s1 + $0x1a0] ss:$8 sps:$4 sm:$0xff]  }
  0x38   : > { %1973 = vmatpush1.bf16.msra.mxu0 %v2657_v57  ;;  %1802 = vmatprep.subr.bf16.mxu1 %v2658_v58  ;;  %v2739_v57 = vld [vmem:[%s3863_s1 + $0x5a0] ss:$8 sps:$4 sm:$0xff]   ;;  %v2744_v58 = vld [vmem:[%s3863_s1 + $0x1b4] ss:$8 sps:$4 sm:$0xff]  }
  0x39   : > { %1974 = vmatprep.subr.bf16.mxu0 %v2660_v59  ;;  %v2747_v59 = vld [vmem:[%s3863_s1 + $0x5b4] ss:$8 sps:$4 sm:$0xff]  }
  0x3b   : > { %1803 = vmatpush1.bf16.msra.mxu1 %v2662_v60  ;;  %v2742_v60 = vld [vmem:[%s3863_s1 + $0x1b0] ss:$8 sps:$4 sm:$0xff]  }
  0x3c   : > { %1975 = vmatpush1.bf16.msra.mxu0 %v2663_v61  ;;  %1804 = vmatprep.subr.bf16.mxu1 %v2664_v62  ;;  %v2745_v61 = vld [vmem:[%s3863_s1 + $0x5b0] ss:$8 sps:$4 sm:$0xff]   ;;  %v2750_v62 = vld [vmem:[%s3863_s1 + $0x1c4] ss:$8 sps:$4 sm:$0xff]  }
  0x3d   : > { %1976 = vmatprep.subr.bf16.mxu0 %v2666_v63  ;;  %v2753_v63 = vld [vmem:[%s3863_s1 + $0x5c4] ss:$8 sps:$4 sm:$0xff]  }
  0x3f   : > { %1805 = vmatpush1.bf16.msra.mxu1 %v2668_v0  ;;  %v2748_v0 = vld [vmem:[%s3863_s1 + $0x1c0] ss:$8 sps:$4 sm:$0xff]  }
  0x40   : > { %1977 = vmatpush1.bf16.msra.mxu0 %v2669_v1  ;;  %1806 = vmatprep.subr.bf16.mxu1 %v2670_v2  ;;  %v2751_v1 = vld [vmem:[%s3863_s1 + $0x5c0] ss:$8 sps:$4 sm:$0xff]   ;;  %v2756_v2 = vld [vmem:[%s3863_s1 + $0x1d4] ss:$8 sps:$4 sm:$0xff]  }
  0x41   : > { %1978 = vmatprep.subr.bf16.mxu0 %v2672_v3  ;;  %v2759_v3 = vld [vmem:[%s3863_s1 + $0x5d4] ss:$8 sps:$4 sm:$0xff]  }
  0x43   : > { %1807 = vmatpush1.bf16.msra.mxu1 %v2674_v4  ;;  %v2754_v4 = vld [vmem:[%s3863_s1 + $0x1d0] ss:$8 sps:$4 sm:$0xff]  }
  0x44   : > { %1979 = vmatpush1.bf16.msra.mxu0 %v2675_v5  ;;  %1819 = vmatprep.subr.bf16.mxu1 %v2678_v6  ;;  %v2757_v5 = vld [vmem:[%s3863_s1 + $0x5d0] ss:$8 sps:$4 sm:$0xff]   ;;  %v2762_v6 = vld [vmem:[%s3863_s1 + $0x1e4] ss:$8 sps:$4 sm:$0xff]  }
  0x45   : > { %1991 = vmatprep.subr.bf16.mxu0 %v2681_v7  ;;  %v2765_v7 = vld [vmem:[%s3863_s1 + $0x5e4] ss:$8 sps:$4 sm:$0xff]  }
  0x46   : > { %1809 = vmatmul.mubr.bf16.vlgmr.msra.gmra.mrb[0].mxu1 %v2264_v8  ;;  %v2760_v8 = vld [vmem:[%s3863_s1 + $0x1e0] ss:$8 sps:$4 sm:$0xff]  }
  0x47   : > { %1981 = vmatmul.mubr.bf16.vlgmr.msra.gmra.mrb[0].mxu0 %v2272_v10  ;;  %1820 = vmatpush1.bf16.msra.mxu1 %v2676_v9  ;;  %v2763_v9 = vld [vmem:[%s3863_s1 + $0x5e0] ss:$8 sps:$4 sm:$0xff]   ;;  %v2768_v10 = vld [vmem:[%s3863_s1 + $0x1f4] ss:$8 sps:$4 sm:$0xff]  }
  0x48   : > { %1992 = vmatpush1.bf16.msra.mxu0 %v2679_v11  ;;  %1821 = vmatprep.subr.bf16.mxu1 %v2684_v12  ;;  %v2771_v11 = vld [vmem:[%s3863_s1 + $0x5f4] ss:$8 sps:$4 sm:$0xff]   ;;  %v2766_v12 = vld [vmem:[%s3863_s1 + $0x1f0] ss:$8 sps:$4 sm:$0xff]  }
  0x49   : > { %1993 = vmatprep.subr.bf16.mxu0 %v2687_v13  ;;  %1851 = vmatprep.mubr.bf16.mxu1 %v2267_v40  ;;  %v2769_v13 = vld [vmem:[%s3863_s1 + $0x5f0] ss:$8 sps:$4 sm:$0xff]   ;;  %v2796_v40 = vld [vmem:[%s3863_s1 + $0x240] ss:$8 sps:$4 sm:$0xff]  }
  0x4a   : > { %2023 = vmatprep.mubr.bf16.mxu0 %v2275_v43  ;;  %v2807_v43 = vld [vmem:[%s3863_s1 + $0x654] ss:$8 sps:$4 sm:$0xff]  }
  0x4b   : > { %1822 = vmatpush1.bf16.msra.mxu1 %v2682_v14  ;;  %v2774_v14 = vld [vmem:[%s3863_s1 + $0x204] ss:$8 sps:$4 sm:$0xff]  }
  0x4c   : > { %1994 = vmatpush1.bf16.msra.mxu0 %v2685_v15  ;;  %1823 = vmatprep.subr.bf16.mxu1 %v2690_v16  ;;  %v2777_v15 = vld [vmem:[%s3863_s1 + $0x604] ss:$8 sps:$4 sm:$0xff]   ;;  %v2266_v16 = vcombine.low %v3292_v36, %v3295_v37  ;;  %v2790_v36 = vld [vmem:[%s3863_s1 + $0x230] ss:$8 sps:$4 sm:$0xff]  }
  0x4d   : > { %1995 = vmatprep.subr.bf16.mxu0 %v2693_v17  ;;  %v2772_v17 = vld [vmem:[%s3863_s1 + $0x200] ss:$8 sps:$4 sm:$0xff]   ;;  %v2793_v37 = vld [vmem:[%s3863_s1 + $0x630] ss:$8 sps:$4 sm:$0xff]  }
  0x4f   : > { %1824 = vmatpush1.bf16.msra.mxu1 %v2688_v18  ;;  %v2274_v18 = vcombine.low %v3306_v41, %v3309_v42  ;;  %v2799_v41 = vld [vmem:[%s3863_s1 + $0x640] ss:$8 sps:$4 sm:$0xff]   ;;  %v2804_v42 = vld [vmem:[%s3863_s1 + $0x254] ss:$8 sps:$4 sm:$0xff]  }
  0x50   : > { %1996 = vmatpush1.bf16.msra.mxu0 %v2691_v19  ;;  %1825 = vmatprep.subr.bf16.mxu1 %v2696_v20  ;;  %v2775_v19 = vld [vmem:[%s3863_s1 + $0x600] ss:$8 sps:$4 sm:$0xff]   ;;  %v2780_v20 = vld [vmem:[%s3863_s1 + $0x214] ss:$8 sps:$4 sm:$0xff]  }
  0x51   : > { %1997 = vmatprep.subr.bf16.mxu0 %v2699_v21  ;;  %v2783_v21 = vld [vmem:[%s3863_s1 + $0x614] ss:$8 sps:$4 sm:$0xff]  }
  0x53   : > { %1826 = vmatpush1.bf16.msra.mxu1 %v2694_v22  ;;  %v2778_v22 = vld [vmem:[%s3863_s1 + $0x210] ss:$8 sps:$4 sm:$0xff]  }
  0x54   : > { %1998 = vmatpush1.bf16.msra.mxu0 %v2697_v23  ;;  %1827 = vmatprep.subr.bf16.mxu1 %v2702_v24  ;;  %v2781_v23 = vld [vmem:[%s3863_s1 + $0x610] ss:$8 sps:$4 sm:$0xff]  }
  0x55   : > { %1999 = vmatprep.subr.bf16.mxu0 %v2705_v25  ;;  %v3444_v24 = vld [vmem:[%s3141_s24 + $0x10] sm:$0xff] }
  0x56   : > { %v3447_v25 = vld [vmem:[%s3141_s24 + $0x50] sm:$0xff] }
  0x57   : > { %1828 = vmatpush1.bf16.msra.mxu1 %v2700_v26  ;;  %v2786_v26 = vld [vmem:[%s3863_s1 + $0x224] ss:$8 sps:$4 sm:$0xff]  }
  0x58   : > { %2000 = vmatpush1.bf16.msra.mxu0 %v2703_v27  ;;  %1829 = vmatprep.subr.bf16.mxu1 %v2708_v28  ;;  %v2789_v27 = vld [vmem:[%s3863_s1 + $0x624] ss:$8 sps:$4 sm:$0xff]   ;;  %v2269_v28 = vcombine.high %v3444_v24, %v3447_v25 }
  0x59   : > { %2001 = vmatprep.subr.bf16.mxu0 %v2711_v29  ;;  %v3458_v29 = vld [vmem:[%s3141_s24 + $0x30] sm:$0xff] }
  0x5b   : > { %1830 = vmatpush1.bf16.msra.mxu1 %v2706_v30  ;;  %v3461_v30 = vld [vmem:[%s3141_s24 + $0x70] sm:$0xff] }
  0x5c   : > { %2002 = vmatpush1.bf16.msra.mxu0 %v2709_v31  ;;  %1831 = vmatprep.subr.bf16.mxu1 %v2714_v32  ;;  %v2277_v31 = vcombine.high %v3458_v29, %v3461_v30  ;;  %v2784_v32 = vld [vmem:[%s3863_s1 + $0x220] ss:$8 sps:$4 sm:$0xff]  }
  0x5d   : > { %2003 = vmatprep.subr.bf16.mxu0 %v2717_v33  ;;  %v2787_v33 = vld [vmem:[%s3863_s1 + $0x620] ss:$8 sps:$4 sm:$0xff]  }
  0x5f   : > { %1832 = vmatpush1.bf16.msra.mxu1 %v2712_v34  ;;  %v2792_v34 = vld [vmem:[%s3863_s1 + $0x234] ss:$8 sps:$4 sm:$0xff]  }
  0x60   : > { %2004 = vmatpush1.bf16.msra.mxu0 %v2715_v35  ;;  %1833 = vmatprep.subr.bf16.mxu1 %v2720_v38  ;;  %v2795_v35 = vld [vmem:[%s3863_s1 + $0x634] ss:$8 sps:$4 sm:$0xff]   ;;  %v2798_v38 = vld [vmem:[%s3863_s1 + $0x244] ss:$8 sps:$4 sm:$0xff]  }
  0x61   : > { %2005 = vmatprep.subr.bf16.mxu0 %v2723_v39  ;;  %v2801_v39 = vld [vmem:[%s3863_s1 + $0x644] ss:$8 sps:$4 sm:$0xff]  }
  0x63   : > { %1834 = vmatpush1.bf16.msra.mxu1 %v2718_v44  ;;  %v2802_v44 = vld [vmem:[%s3863_s1 + $0x250] ss:$8 sps:$4 sm:$0xff]  }
  0x64   : > { %2006 = vmatpush1.bf16.msra.mxu0 %v2721_v45  ;;  %1835 = vmatprep.subr.bf16.mxu1 %v2726_v46  ;;  %v2805_v45 = vld [vmem:[%s3863_s1 + $0x650] ss:$8 sps:$4 sm:$0xff]   ;;  %v2810_v46 = vld [vmem:[%s3863_s1 + $0x264] ss:$8 sps:$4 sm:$0xff]  }
  0x65   : > { %2007 = vmatprep.subr.bf16.mxu0 %v2729_v47  ;;  %v2813_v47 = vld [vmem:[%s3863_s1 + $0x664] ss:$8 sps:$4 sm:$0xff]  }
  0x67   : > { %1836 = vmatpush1.bf16.msra.mxu1 %v2724_v48  ;;  %v2808_v48 = vld [vmem:[%s3863_s1 + $0x260] ss:$8 sps:$4 sm:$0xff]  }
  0x68   : > { %2008 = vmatpush1.bf16.msra.mxu0 %v2727_v49  ;;  %1837 = vmatprep.subr.bf16.mxu1 %v2732_v50  ;;  %v2811_v49 = vld [vmem:[%s3863_s1 + $0x660] ss:$8 sps:$4 sm:$0xff]   ;;  %v2816_v50 = vld [vmem:[%s3863_s1 + $0x274] ss:$8 sps:$4 sm:$0xff]  }
  0x69   : > { %2009 = vmatprep.subr.bf16.mxu0 %v2735_v51  ;;  %v2819_v51 = vld [vmem:[%s3863_s1 + $0x674] ss:$8 sps:$4 sm:$0xff]  }
  0x6b   : > { %1838 = vmatpush1.bf16.msra.mxu1 %v2730_v52  ;;  %v2814_v52 = vld [vmem:[%s3863_s1 + $0x270] ss:$8 sps:$4 sm:$0xff]  }
  0x6c   : > { %2010 = vmatpush1.bf16.msra.mxu0 %v2733_v53  ;;  %1839 = vmatprep.subr.bf16.mxu1 %v2738_v54  ;;  %v2817_v53 = vld [vmem:[%s3863_s1 + $0x670] ss:$8 sps:$4 sm:$0xff]   ;;  %v2822_v54 = vld [vmem:[%s3863_s1 + $0x284] ss:$8 sps:$4 sm:$0xff]  }
  0x6d   : > { %2011 = vmatprep.subr.bf16.mxu0 %v2741_v55  ;;  %v2825_v55 = vld [vmem:[%s3863_s1 + $0x684] ss:$8 sps:$4 sm:$0xff]  }
  0x6f   : > { %1840 = vmatpush1.bf16.msra.mxu1 %v2736_v56  ;;  %v2820_v56 = vld [vmem:[%s3863_s1 + $0x280] ss:$8 sps:$4 sm:$0xff]  }
  0x70   : > { %2012 = vmatpush1.bf16.msra.mxu0 %v2739_v57  ;;  %1841 = vmatprep.subr.bf16.mxu1 %v2744_v58  ;;  %v2823_v57 = vld [vmem:[%s3863_s1 + $0x680] ss:$8 sps:$4 sm:$0xff]   ;;  %v2828_v58 = vld [vmem:[%s3863_s1 + $0x294] ss:$8 sps:$4 sm:$0xff]  }
  0x71   : > { %2013 = vmatprep.subr.bf16.mxu0 %v2747_v59  ;;  %v2831_v59 = vld [vmem:[%s3863_s1 + $0x694] ss:$8 sps:$4 sm:$0xff]  }
  0x73   : > { %1842 = vmatpush1.bf16.msra.mxu1 %v2742_v60  ;;  %v2826_v60 = vld [vmem:[%s3863_s1 + $0x290] ss:$8 sps:$4 sm:$0xff]  }
  0x74   : > { %2014 = vmatpush1.bf16.msra.mxu0 %v2745_v61  ;;  %1843 = vmatprep.subr.bf16.mxu1 %v2750_v62  ;;  %v2829_v61 = vld [vmem:[%s3863_s1 + $0x690] ss:$8 sps:$4 sm:$0xff]   ;;  %v2834_v62 = vld [vmem:[%s3863_s1 + $0x2a4] ss:$8 sps:$4 sm:$0xff]  }
  0x75   : > { %2015 = vmatprep.subr.bf16.mxu0 %v2753_v63  ;;  %v2837_v63 = vld [vmem:[%s3863_s1 + $0x6a4] ss:$8 sps:$4 sm:$0xff]  }
  0x77   : > { %1844 = vmatpush1.bf16.msra.mxu1 %v2748_v0  ;;  %v2832_v0 = vld [vmem:[%s3863_s1 + $0x2a0] ss:$8 sps:$4 sm:$0xff]  }
  0x78   : > { %2016 = vmatpush1.bf16.msra.mxu0 %v2751_v1  ;;  %1845 = vmatprep.subr.bf16.mxu1 %v2756_v2  ;;  %v2835_v1 = vld [vmem:[%s3863_s1 + $0x6a0] ss:$8 sps:$4 sm:$0xff]   ;;  %v2840_v2 = vld [vmem:[%s3863_s1 + $0x2b4] ss:$8 sps:$4 sm:$0xff]  }
  0x79   : > { %2017 = vmatprep.subr.bf16.mxu0 %v2759_v3  ;;  %v2843_v3 = vld [vmem:[%s3863_s1 + $0x6b4] ss:$8 sps:$4 sm:$0xff]  }
  0x7b   : > { %1846 = vmatpush1.bf16.msra.mxu1 %v2754_v4  ;;  %v2838_v4 = vld [vmem:[%s3863_s1 + $0x2b0] ss:$8 sps:$4 sm:$0xff]  }
  0x7c   : > { %2018 = vmatpush1.bf16.msra.mxu0 %v2757_v5  ;;  %1847 = vmatprep.subr.bf16.mxu1 %v2762_v6  ;;  %v2841_v5 = vld [vmem:[%s3863_s1 + $0x6b0] ss:$8 sps:$4 sm:$0xff]   ;;  %v2846_v6 = vld [vmem:[%s3863_s1 + $0x2c4] ss:$8 sps:$4 sm:$0xff]  }
  0x7d   : > { %2019 = vmatprep.subr.bf16.mxu0 %v2765_v7  ;;  %v2849_v7 = vld [vmem:[%s3863_s1 + $0x6c4] ss:$8 sps:$4 sm:$0xff]  }
  0x7f   : > { %1848 = vmatpush1.bf16.msra.mxu1 %v2760_v8  ;;  %v2844_v8 = vld [vmem:[%s3863_s1 + $0x2c0] ss:$8 sps:$4 sm:$0xff]  }
  0x80   : > { %2020 = vmatpush1.bf16.msra.mxu0 %v2763_v9  ;;  %1849 = vmatprep.subr.bf16.mxu1 %v2768_v10  ;;  %v2847_v9 = vld [vmem:[%s3863_s1 + $0x6c0] ss:$8 sps:$4 sm:$0xff]   ;;  %v2852_v10 = vld [vmem:[%s3863_s1 + $0x2d4] ss:$8 sps:$4 sm:$0xff]  }
  0x81   : > { %2021 = vmatprep.subr.bf16.mxu0 %v2771_v11  ;;  %v2855_v11 = vld [vmem:[%s3863_s1 + $0x6d4] ss:$8 sps:$4 sm:$0xff]  }
  0x83   : > { %1850 = vmatpush1.bf16.msra.mxu1 %v2766_v12  ;;  %v2850_v12 = vld [vmem:[%s3863_s1 + $0x2d0] ss:$8 sps:$4 sm:$0xff]  }
  0x84   : > { %2022 = vmatpush1.bf16.msra.mxu0 %v2769_v13  ;;  %1862 = vmatprep.subr.bf16.mxu1 %v2774_v14  ;;  %v2853_v13 = vld [vmem:[%s3863_s1 + $0x6d0] ss:$8 sps:$4 sm:$0xff]   ;;  %v2858_v14 = vld [vmem:[%s3863_s1 + $0x2e4] ss:$8 sps:$4 sm:$0xff]  }
  0x85   : > { %2034 = vmatprep.subr.bf16.mxu0 %v2777_v15  ;;  %v2861_v15 = vld [vmem:[%s3863_s1 + $0x6e4] ss:$8 sps:$4 sm:$0xff]  }
  0x86   : > { %1852 = vmatmul.mubr.bf16.vlgmr.msra.gmra.mrb[0].mxu1 %v2266_v16  ;;  %v2856_v16 = vld [vmem:[%s3863_s1 + $0x2e0] ss:$8 sps:$4 sm:$0xff]  }
  0x87   : > { %2024 = vmatmul.mubr.bf16.vlgmr.msra.gmra.mrb[0].mxu0 %v2274_v18  ;;  %1863 = vmatpush1.bf16.msra.mxu1 %v2772_v17  ;;  %v2859_v17 = vld [vmem:[%s3863_s1 + $0x6e0] ss:$8 sps:$4 sm:$0xff]   ;;  %v2864_v18 = vld [vmem:[%s3863_s1 + $0x2f4] ss:$8 sps:$4 sm:$0xff]  }
  0x88   : > { %2035 = vmatpush1.bf16.msra.mxu0 %v2775_v19  ;;  %1864 = vmatprep.subr.bf16.mxu1 %v2780_v20  ;;  %v2867_v19 = vld [vmem:[%s3863_s1 + $0x6f4] ss:$8 sps:$4 sm:$0xff]   ;;  %v2862_v20 = vld [vmem:[%s3863_s1 + $0x2f0] ss:$8 sps:$4 sm:$0xff]  }
  0x89   : > { %2036 = vmatprep.subr.bf16.mxu0 %v2783_v21  ;;  %1894 = vmatprep.mubr.bf16.mxu1 %v2269_v28  ;;  %v2865_v21 = vld [vmem:[%s3863_s1 + $0x6f0] ss:$8 sps:$4 sm:$0xff]   ;;  %v2276_v28 = vcombine.low %v3458_v29, %v3461_v30 }
  0x8a   : > { %2066 = vmatprep.mubr.bf16.mxu0 %v2277_v31  ;;  %v3641_v31 = vld [vmem:[%s3141_s24 + $0x58] sm:$0xff] }
  0x8b   : > { %1865 = vmatpush1.bf16.msra.mxu1 %v2778_v22  ;;  %v2870_v22 = vld [vmem:[%s3863_s1 + $0x304] ss:$8 sps:$4 sm:$0xff]  }
  0x8c   : > { %2037 = vmatpush1.bf16.msra.mxu0 %v2781_v23  ;;  %1866 = vmatprep.subr.bf16.mxu1 %v2786_v26  ;;  %v2873_v23 = vld [vmem:[%s3863_s1 + $0x704] ss:$8 sps:$4 sm:$0xff]   ;;  %v3634_v26 = vld [vmem:[%s3141_s24 + $0x18] sm:$0xff] }
  0x8d   : > { %2038 = vmatprep.subr.bf16.mxu0 %v2789_v27  ;;  %v2268_v27 = vcombine.low %v3444_v24, %v3447_v25  ;;  %v2876_v24 = vld [vmem:[%s3863_s1 + $0x314] ss:$8 sps:$4 sm:$0xff]   ;;  %v2271_v29 = vcombine.high %v3634_v26, %v3641_v31 }
  0x8e   : > { %v2879_v25 = vld [vmem:[%s3863_s1 + $0x714] ss:$8 sps:$4 sm:$0xff]  }
  0x8f   : > { %1867 = vmatpush1.bf16.msra.mxu1 %v2784_v32  ;;  %v3644_v32 = vld [vmem:[%s3141_s24 + $0x38] sm:$0xff] }
  0x90   : > { %2039 = vmatpush1.bf16.msra.mxu0 %v2787_v33  ;;  %1868 = vmatprep.subr.bf16.mxu1 %v2792_v34  ;;  %v3647_v33 = vld [vmem:[%s3141_s24 + $0x78] sm:$0xff]  ;;  %v2868_v34 = vld [vmem:[%s3863_s1 + $0x300] ss:$8 sps:$4 sm:$0xff]  }
  0x91   : > { %2040 = vmatprep.subr.bf16.mxu0 %v2795_v35  ;;  %v2871_v35 = vld [vmem:[%s3863_s1 + $0x700] ss:$8 sps:$4 sm:$0xff]   ;;  %v2279_v30 = vcombine.high %v3644_v32, %v3647_v33 }
  0x93   : > { %1869 = vmatpush1.bf16.msra.mxu1 %v2790_v36  ;;  %v2874_v36 = vld [vmem:[%s3863_s1 + $0x310] ss:$8 sps:$4 sm:$0xff]  }
  0x94   : > { %2041 = vmatpush1.bf16.msra.mxu0 %v2793_v37  ;;  %1870 = vmatprep.subr.bf16.mxu1 %v2798_v38  ;;  %v2877_v37 = vld [vmem:[%s3863_s1 + $0x710] ss:$8 sps:$4 sm:$0xff]   ;;  %v2882_v38 = vld [vmem:[%s3863_s1 + $0x324] ss:$8 sps:$4 sm:$0xff]  }
  0x95   : > { %2042 = vmatprep.subr.bf16.mxu0 %v2801_v39  ;;  %v2885_v39 = vld [vmem:[%s3863_s1 + $0x724] ss:$8 sps:$4 sm:$0xff]  }
  0x97   : > { %1871 = vmatpush1.bf16.msra.mxu1 %v2796_v40  ;;  %v2880_v40 = vld [vmem:[%s3863_s1 + $0x320] ss:$8 sps:$4 sm:$0xff]  }
  0x98   : > { %2043 = vmatpush1.bf16.msra.mxu0 %v2799_v41  ;;  %1872 = vmatprep.subr.bf16.mxu1 %v2804_v42  ;;  %v2883_v41 = vld [vmem:[%s3863_s1 + $0x720] ss:$8 sps:$4 sm:$0xff]   ;;  %v2888_v42 = vld [vmem:[%s3863_s1 + $0x334] ss:$8 sps:$4 sm:$0xff]  }
  0x99   : > { %2044 = vmatprep.subr.bf16.mxu0 %v2807_v43  ;;  %v2891_v43 = vld [vmem:[%s3863_s1 + $0x734] ss:$8 sps:$4 sm:$0xff]  }
  0x9b   : > { %1873 = vmatpush1.bf16.msra.mxu1 %v2802_v44  ;;  %v2886_v44 = vld [vmem:[%s3863_s1 + $0x330] ss:$8 sps:$4 sm:$0xff]  }
  0x9c   : > { %2045 = vmatpush1.bf16.msra.mxu0 %v2805_v45  ;;  %1874 = vmatprep.subr.bf16.mxu1 %v2810_v46  ;;  %v2889_v45 = vld [vmem:[%s3863_s1 + $0x730] ss:$8 sps:$4 sm:$0xff]   ;;  %v2894_v46 = vld [vmem:[%s3863_s1 + $0x344] ss:$8 sps:$4 sm:$0xff]  }
  0x9d   : > { %2046 = vmatprep.subr.bf16.mxu0 %v2813_v47  ;;  %v2897_v47 = vld [vmem:[%s3863_s1 + $0x744] ss:$8 sps:$4 sm:$0xff]  }
  0x9f   : > { %1875 = vmatpush1.bf16.msra.mxu1 %v2808_v48  ;;  %v2892_v48 = vld [vmem:[%s3863_s1 + $0x340] ss:$8 sps:$4 sm:$0xff]  }
  0xa0   : > { %2047 = vmatpush1.bf16.msra.mxu0 %v2811_v49  ;;  %1876 = vmatprep.subr.bf16.mxu1 %v2816_v50  ;;  %v2895_v49 = vld [vmem:[%s3863_s1 + $0x740] ss:$8 sps:$4 sm:$0xff]   ;;  %v2900_v50 = vld [vmem:[%s3863_s1 + $0x354] ss:$8 sps:$4 sm:$0xff]  }
  0xa1   : > { %2048 = vmatprep.subr.bf16.mxu0 %v2819_v51  ;;  %v2903_v51 = vld [vmem:[%s3863_s1 + $0x754] ss:$8 sps:$4 sm:$0xff]  }
  0xa3   : > { %1877 = vmatpush1.bf16.msra.mxu1 %v2814_v52  ;;  %v2898_v52 = vld [vmem:[%s3863_s1 + $0x350] ss:$8 sps:$4 sm:$0xff]  }
  0xa4   : > { %2049 = vmatpush1.bf16.msra.mxu0 %v2817_v53  ;;  %1878 = vmatprep.subr.bf16.mxu1 %v2822_v54  ;;  %v2901_v53 = vld [vmem:[%s3863_s1 + $0x750] ss:$8 sps:$4 sm:$0xff]   ;;  %v2906_v54 = vld [vmem:[%s3863_s1 + $0x364] ss:$8 sps:$4 sm:$0xff]  }
  0xa5   : > { %2050 = vmatprep.subr.bf16.mxu0 %v2825_v55  ;;  %v2909_v55 = vld [vmem:[%s3863_s1 + $0x764] ss:$8 sps:$4 sm:$0xff]  }
  0xa7   : > { %1879 = vmatpush1.bf16.msra.mxu1 %v2820_v56  ;;  %v2904_v56 = vld [vmem:[%s3863_s1 + $0x360] ss:$8 sps:$4 sm:$0xff]  }
  0xa8   : > { %2051 = vmatpush1.bf16.msra.mxu0 %v2823_v57  ;;  %1880 = vmatprep.subr.bf16.mxu1 %v2828_v58  ;;  %v2907_v57 = vld [vmem:[%s3863_s1 + $0x760] ss:$8 sps:$4 sm:$0xff]   ;;  %v2912_v58 = vld [vmem:[%s3863_s1 + $0x374] ss:$8 sps:$4 sm:$0xff]  }
  0xa9   : > { %2052 = vmatprep.subr.bf16.mxu0 %v2831_v59  ;;  %v2915_v59 = vld [vmem:[%s3863_s1 + $0x774] ss:$8 sps:$4 sm:$0xff]  }
  0xab   : > { %1881 = vmatpush1.bf16.msra.mxu1 %v2826_v60  ;;  %v2910_v60 = vld [vmem:[%s3863_s1 + $0x370] ss:$8 sps:$4 sm:$0xff]  }
  0xac   : > { %2053 = vmatpush1.bf16.msra.mxu0 %v2829_v61  ;;  %1882 = vmatprep.subr.bf16.mxu1 %v2834_v62  ;;  %v2913_v61 = vld [vmem:[%s3863_s1 + $0x770] ss:$8 sps:$4 sm:$0xff]   ;;  %v2918_v62 = vld [vmem:[%s3863_s1 + $0x384] ss:$8 sps:$4 sm:$0xff]  }
  0xad   : > { %2054 = vmatprep.subr.bf16.mxu0 %v2837_v63  ;;  %v2921_v63 = vld [vmem:[%s3863_s1 + $0x784] ss:$8 sps:$4 sm:$0xff]  }
  0xaf   : > { %1883 = vmatpush1.bf16.msra.mxu1 %v2832_v0  ;;  %v2916_v0 = vld [vmem:[%s3863_s1 + $0x380] ss:$8 sps:$4 sm:$0xff]  }
  0xb0   : > { %2055 = vmatpush1.bf16.msra.mxu0 %v2835_v1  ;;  %1884 = vmatprep.subr.bf16.mxu1 %v2840_v2  ;;  %v2919_v1 = vld [vmem:[%s3863_s1 + $0x780] ss:$8 sps:$4 sm:$0xff]   ;;  %v2924_v2 = vld [vmem:[%s3863_s1 + $0x394] ss:$8 sps:$4 sm:$0xff]  }
  0xb1   : > { %2056 = vmatprep.subr.bf16.mxu0 %v2843_v3  ;;  %v2927_v3 = vld [vmem:[%s3863_s1 + $0x794] ss:$8 sps:$4 sm:$0xff]  }
  0xb3   : > { %1885 = vmatpush1.bf16.msra.mxu1 %v2838_v4  ;;  %v2922_v4 = vld [vmem:[%s3863_s1 + $0x390] ss:$8 sps:$4 sm:$0xff]  }
  0xb4   : > { %2057 = vmatpush1.bf16.msra.mxu0 %v2841_v5  ;;  %1886 = vmatprep.subr.bf16.mxu1 %v2846_v6  ;;  %v2925_v5 = vld [vmem:[%s3863_s1 + $0x790] ss:$8 sps:$4 sm:$0xff]   ;;  %v2930_v6 = vld [vmem:[%s3863_s1 + $0x3a4] ss:$8 sps:$4 sm:$0xff]  }
  0xb5   : > { %2058 = vmatprep.subr.bf16.mxu0 %v2849_v7  ;;  %v2933_v7 = vld [vmem:[%s3863_s1 + $0x7a4] ss:$8 sps:$4 sm:$0xff]  }
  0xb7   : > { %1887 = vmatpush1.bf16.msra.mxu1 %v2844_v8  ;;  %v2928_v8 = vld [vmem:[%s3863_s1 + $0x3a0] ss:$8 sps:$4 sm:$0xff]  }
  0xb8   : > { %2059 = vmatpush1.bf16.msra.mxu0 %v2847_v9  ;;  %1888 = vmatprep.subr.bf16.mxu1 %v2852_v10  ;;  %v2931_v9 = vld [vmem:[%s3863_s1 + $0x7a0] ss:$8 sps:$4 sm:$0xff]   ;;  %v2936_v10 = vld [vmem:[%s3863_s1 + $0x3b4] ss:$8 sps:$4 sm:$0xff]  }
  0xb9   : > { %2060 = vmatprep.subr.bf16.mxu0 %v2855_v11  ;;  %v2939_v11 = vld [vmem:[%s3863_s1 + $0x7b4] ss:$8 sps:$4 sm:$0xff]  }
  0xbb   : > { %1889 = vmatpush1.bf16.msra.mxu1 %v2850_v12  ;;  %v2934_v12 = vld [vmem:[%s3863_s1 + $0x3b0] ss:$8 sps:$4 sm:$0xff]  }
  0xbc   : > { %2061 = vmatpush1.bf16.msra.mxu0 %v2853_v13  ;;  %1890 = vmatprep.subr.bf16.mxu1 %v2858_v14  ;;  %v2937_v13 = vld [vmem:[%s3863_s1 + $0x7b0] ss:$8 sps:$4 sm:$0xff]   ;;  %v2942_v14 = vld [vmem:[%s3863_s1 + $0x3c4] ss:$8 sps:$4 sm:$0xff]  }
  0xbd   : > { %2062 = vmatprep.subr.bf16.mxu0 %v2861_v15  ;;  %v2945_v15 = vld [vmem:[%s3863_s1 + $0x7c4] ss:$8 sps:$4 sm:$0xff]  }
  0xbf   : > { %1891 = vmatpush1.bf16.msra.mxu1 %v2856_v16  ;;  %v2940_v16 = vld [vmem:[%s3863_s1 + $0x3c0] ss:$8 sps:$4 sm:$0xff]  }
  0xc0   : > { %2063 = vmatpush1.bf16.msra.mxu0 %v2859_v17  ;;  %1892 = vmatprep.subr.bf16.mxu1 %v2864_v18  ;;  %v2943_v17 = vld [vmem:[%s3863_s1 + $0x7c0] ss:$8 sps:$4 sm:$0xff]   ;;  %v2948_v18 = vld [vmem:[%s3863_s1 + $0x3d4] ss:$8 sps:$4 sm:$0xff]  }
  0xc1   : > { %2064 = vmatprep.subr.bf16.mxu0 %v2867_v19  ;;  %v2951_v19 = vld [vmem:[%s3863_s1 + $0x7d4] ss:$8 sps:$4 sm:$0xff]  }
  0xc3   : > { %1893 = vmatpush1.bf16.msra.mxu1 %v2862_v20  ;;  %v2946_v20 = vld [vmem:[%s3863_s1 + $0x3d0] ss:$8 sps:$4 sm:$0xff]  }
  0xc4   : > { %2065 = vmatpush1.bf16.msra.mxu0 %v2865_v21  ;;  %1905 = vmatprep.subr.bf16.mxu1 %v2870_v22  ;;  %v2949_v21 = vld [vmem:[%s3863_s1 + $0x7d0] ss:$8 sps:$4 sm:$0xff]   ;;  %v2954_v22 = vld [vmem:[%s3863_s1 + $0x3e4] ss:$8 sps:$4 sm:$0xff]  }
  0xc5   : > { %2077 = vmatprep.subr.bf16.mxu0 %v2873_v23  ;;  %v2957_v23 = vld [vmem:[%s3863_s1 + $0x7e4] ss:$8 sps:$4 sm:$0xff]  }
  0xc6   : > { %1895 = vmatmul.mubr.bf16.vlgmr.msra.gmra.mrb[0].mxu1 %v2268_v27  ;;  %v2952_v27 = vld [vmem:[%s3863_s1 + $0x3e0] ss:$8 sps:$4 sm:$0xff]  }
  0xc7   : > { %2067 = vmatmul.mubr.bf16.vlgmr.msra.gmra.mrb[0].mxu0 %v2276_v28  ;;  %1906 = vmatpush1.bf16.msra.mxu1 %v2868_v34  ;;  %v2955_v28 = vld [vmem:[%s3863_s1 + $0x7e0] ss:$8 sps:$4 sm:$0xff]   ;;  %v2960_v34 = vld [vmem:[%s3863_s1 + $0x3f4] ss:$8 sps:$4 sm:$0xff]  }
  0xc8   : > { %2078 = vmatpush1.bf16.msra.mxu0 %v2871_v35  ;;  %1907 = vmatprep.subr.bf16.mxu1 %v2876_v24  ;;  %v2963_v35 = vld [vmem:[%s3863_s1 + $0x7f4] ss:$8 sps:$4 sm:$0xff]   ;;  %v2958_v24 = vld [vmem:[%s3863_s1 + $0x3f0] ss:$8 sps:$4 sm:$0xff]  }
  0xc9   : > { %2079 = vmatprep.subr.bf16.mxu0 %v2879_v25  ;;  %1937 = vmatprep.mubr.bf16.mxu1 %v2271_v29  ;;  %v2961_v25 = vld [vmem:[%s3863_s1 + $0x7f0] ss:$8 sps:$4 sm:$0xff]   ;;  %v2270_v29 = vcombine.low %v3634_v26, %v3641_v31 }
  0xca   : > { %2109 = vmatprep.mubr.bf16.mxu0 %v2279_v30  ;;  %v2278_v30 = vcombine.low %v3644_v32, %v3647_v33 }
  0xcb   : > { %1908 = vmatpush1.bf16.msra.mxu1 %v2874_v36 }
  0xcc   : > { %2080 = vmatpush1.bf16.msra.mxu0 %v2877_v37  ;;  %1909 = vmatprep.subr.bf16.mxu1 %v2882_v38 }
  0xcd   : > { %2081 = vmatprep.subr.bf16.mxu0 %v2885_v39 }
  0xcf   : > { %1910 = vmatpush1.bf16.msra.mxu1 %v2880_v40 }
  0xd0   : > { %2082 = vmatpush1.bf16.msra.mxu0 %v2883_v41  ;;  %1911 = vmatprep.subr.bf16.mxu1 %v2888_v42 }
  0xd1   : > { %2083 = vmatprep.subr.bf16.mxu0 %v2891_v43 }
  0xd3   : > { %1912 = vmatpush1.bf16.msra.mxu1 %v2886_v44 }
  0xd4   : > { %2084 = vmatpush1.bf16.msra.mxu0 %v2889_v45  ;;  %1913 = vmatprep.subr.bf16.mxu1 %v2894_v46 }
  0xd5   : > { %2085 = vmatprep.subr.bf16.mxu0 %v2897_v47 }
  0xd7   : > { %1914 = vmatpush1.bf16.msra.mxu1 %v2892_v48 }
  0xd8   : > { %2086 = vmatpush1.bf16.msra.mxu0 %v2895_v49  ;;  %1915 = vmatprep.subr.bf16.mxu1 %v2900_v50 }
  0xd9   : > { %2087 = vmatprep.subr.bf16.mxu0 %v2903_v51 }
  0xdb   : > { %1916 = vmatpush1.bf16.msra.mxu1 %v2898_v52 }
  0xdc   : > { %2088 = vmatpush1.bf16.msra.mxu0 %v2901_v53  ;;  %1917 = vmatprep.subr.bf16.mxu1 %v2906_v54 }
  0xdd   : > { %2089 = vmatprep.subr.bf16.mxu0 %v2909_v55 }
  0xdf   : > { %1918 = vmatpush1.bf16.msra.mxu1 %v2904_v56 }
  0xe0   : > { %2090 = vmatpush1.bf16.msra.mxu0 %v2907_v57  ;;  %1919 = vmatprep.subr.bf16.mxu1 %v2912_v58 }
  0xe1   : > { %2091 = vmatprep.subr.bf16.mxu0 %v2915_v59 }
  0xe3   : > { %1920 = vmatpush1.bf16.msra.mxu1 %v2910_v60 }
  0xe4   : > { %2092 = vmatpush1.bf16.msra.mxu0 %v2913_v61  ;;  %1921 = vmatprep.subr.bf16.mxu1 %v2918_v62 }
  0xe5   : > { %2093 = vmatprep.subr.bf16.mxu0 %v2921_v63 }
  0xe7   : > { %1922 = vmatpush1.bf16.msra.mxu1 %v2916_v0 }
  0xe8   : > { %2094 = vmatpush1.bf16.msra.mxu0 %v2919_v1  ;;  %1923 = vmatprep.subr.bf16.mxu1 %v2924_v2 }
  0xe9   : > { %2095 = vmatprep.subr.bf16.mxu0 %v2927_v3 }
  0xeb   : > { %1924 = vmatpush1.bf16.msra.mxu1 %v2922_v4 }
  0xec   : > { %2096 = vmatpush1.bf16.msra.mxu0 %v2925_v5  ;;  %1925 = vmatprep.subr.bf16.mxu1 %v2930_v6 }
  0xed   : > { %2097 = vmatprep.subr.bf16.mxu0 %v2933_v7 }
  0xef   : > { %1926 = vmatpush1.bf16.msra.mxu1 %v2928_v8 }
  0xf0   : > { %2098 = vmatpush1.bf16.msra.mxu0 %v2931_v9  ;;  %1927 = vmatprep.subr.bf16.mxu1 %v2936_v10 }
  0xf1   : > { %2099 = vmatprep.subr.bf16.mxu0 %v2939_v11 }
  0xf3   : > { %1928 = vmatpush1.bf16.msra.mxu1 %v2934_v12 }
  0xf4   : > { %2100 = vmatpush1.bf16.msra.mxu0 %v2937_v13  ;;  %1929 = vmatprep.subr.bf16.mxu1 %v2942_v14 }
  0xf5   : > { %2101 = vmatprep.subr.bf16.mxu0 %v2945_v15 }
  0xf7   : > { %1930 = vmatpush1.bf16.msra.mxu1 %v2940_v16 }
  0xf8   : > { %2102 = vmatpush1.bf16.msra.mxu0 %v2943_v17  ;;  %1931 = vmatprep.subr.bf16.mxu1 %v2948_v18 }
  0xf9   : > { %2103 = vmatprep.subr.bf16.mxu0 %v2951_v19 }
  0xfb   : > { %1932 = vmatpush1.bf16.msra.mxu1 %v2946_v20 }
  0xfc   : > { %2104 = vmatpush1.bf16.msra.mxu0 %v2949_v21  ;;  %1933 = vmatprep.subr.bf16.mxu1 %v2954_v22 }
  0xfd   : > { %2105 = vmatprep.subr.bf16.mxu0 %v2957_v23 }
  0xff   : > { %1934 = vmatpush1.bf16.msra.mxu1 %v2952_v27 }
 0x100   : > { %2106 = vmatpush1.bf16.msra.mxu0 %v2955_v28  ;;  %1935 = vmatprep.subr.bf16.mxu1 %v2960_v34 }
 0x101   : > { %2107 = vmatprep.subr.bf16.mxu0 %v2963_v35 }
 0x103   : > { %1936 = vmatpush1.bf16.msra.mxu1 %v2958_v24 }
 0x104   : > { %2108 = vmatpush1.bf16.msra.mxu0 %v2961_v25 }
 0x106   : > { %1938 = vmatmul.mubr.bf16.vlgmr.msra.gmra.mrb[0].mxu1 %v2270_v29 }
 0x107   : > { %2110 = vmatmul.mubr.bf16.vlgmr.msra.gmra.mrb[0].mxu0 %v2278_v30 }
 0x1d9   : > { %v1939_v36 = vpop.f32.mrb[0].mxu1 }
 0x1da   : > { %v2111_v37 = vpop.f32.mrb[0].mxu0  ;;  %v1941_v39 = vpop.f32.mrb[1].mxu1 }
 0x1db   : > { %v3843_v38 = vadd.f32 %v2111_v37, %v1939_v36  ;;  %v2113_v40 = vpop.f32.mrb[1].mxu0  ;;  %v1943_v42 = vpop.f32.mrb[2].mxu1 }
 0x1dc   : > { %v3845_v41 = vadd.f32 %v2113_v40, %v1941_v39  ;;  %v2115_v43 = vpop.f32.mrb[2].mxu0  ;;  %v1945_v45 = vpop.f32.mrb[3].mxu1 }
 0x1dd   : > { %v2546_v44 = vadd.f32 %v2115_v43, %v1943_v42  ;;  %v2117_v26 = vpop.f32.mrb[3].mxu0  ;;  %v2134_v32 = vmul.f32 %v3843_v38, %v3843_v38 }
 0x1de   : > { %v2547_v31 = vadd.f32 %v2117_v26, %v1945_v45  ;;  %v2135_v47 = vmul.f32 %v3845_v41, %v3845_v41 }
 0x1df   : > { %v2120_v33 = vadd.f32 %v2546_v44, %v3843_v38  ;;  %v2136_v46 = vmul.f32 %v2546_v44, %v2546_v44 }
 0x1e0   : > { %v2127_v48 = vadd.f32 %v2547_v31, %v3845_v41  ;;  %v2137_v49 = vmul.f32 %v2547_v31, %v2547_v31 }
 0x1e1   : > { %v2121_v50 = vrot.slane %v2120_v33, 4  ;;  %v2138_v51 = vadd.f32 %v2136_v46, %v2134_v32 }
 0x1e2   : > { %v2128_v52 = vrot.slane %v2127_v48, 4  ;;  %v2145_v53 = vadd.f32 %v2137_v49, %v2135_v47 }
 0x1e3   : > { %v2122_v54 = vadd.f32 %v2121_v50, %v2120_v33  ;;  %v2139_v55 = vrot.slane %v2138_v51, 4 }
 0x1e4   : > { %v2129_v56 = vadd.f32 %v2128_v52, %v2127_v48  ;;  %v2146_v57 = vrot.slane %v2145_v53, 4 }
 0x1e5   : > { %v2123_v58 = vrot.slane %v2122_v54, 2  ;;  %v2140_v59 = vadd.f32 %v2139_v55, %v2138_v51 }
 0x1e6   : > { %v2130_v60 = vrot.slane %v2129_v56, 2  ;;  %v2147_v61 = vadd.f32 %v2146_v57, %v2145_v53 }
 0x1e7   : > { %v2124_v62 = vadd.f32 %v2123_v58, %v2122_v54  ;;  %v2141_v63 = vrot.slane %v2140_v59, 2 }
 0x1e8   : > { %v2131_v0 = vadd.f32 %v2130_v60, %v2129_v56  ;;  %v2148_v1 = vrot.slane %v2147_v61, 2 }
 0x1e9   : > { %v2125_v2 = vrot.slane %v2124_v62, 1  ;;  %v2142_v3 = vadd.f32 %v2141_v63, %v2140_v59 }
 0x1ea   : > { %v2132_v4 = vrot.slane %v2131_v0, 1  ;;  %v2149_v5 = vadd.f32 %v2148_v1, %v2147_v61 }
 0x1eb   : > { %v2126_v6 = vadd.f32 %v2125_v2, %v2124_v62  ;;  %v2143_v7 = vrot.slane %v2142_v3, 1 }
 0x1ec   : > { %v2133_v8 = vadd.f32 %v2132_v4, %v2131_v0  ;;  %v2150_v9 = vrot.slane %v2149_v5, 1 }
 0x1ed   : > { %v2144_v10 = vadd.f32 %v2143_v7, %v2142_v3  ;;  %v2152_v11 = vmul.f32 0.0625, %v2126_v6 }
 0x1ee   : > { %v2151_v12 = vadd.f32 %v2150_v9, %v2149_v5  ;;  %v2153_v13 = vmul.f32 0.0625, %v2133_v8 }
 0x1ef   : > { %v2154_v14 = vmul.f32 0.0625, %v2144_v10  ;;  %v2156_v15 = vmul.f32 %v2152_v11, %v2152_v11  ;;  %v2162_v16 = vsub.f32 %v3843_v38, %v2152_v11  ;;  %v2164_v17 = vsub.f32 %v2546_v44, %v2152_v11 }
 0x1f0   : > { %v2155_v18 = vmul.f32 0.0625, %v2151_v12  ;;  %v2157_v19 = vmul.f32 %v2153_v13, %v2153_v13  ;;  %v2163_v20 = vsub.f32 %v3845_v41, %v2153_v13  ;;  %v2165_v21 = vsub.f32 %v2547_v31, %v2153_v13 }
 0x1f1   : > { %v2158_v22 = vsub.f32 %v2154_v14, %v2156_v15 }
 0x1f2   : > { %v2159_v23 = vsub.f32 %v2155_v18, %v2157_v19 }
 0x1f3   : > { %v2160_v27 = vmax.f32 %v2158_v22, 0.0 }
 0x1f4   : > { %v2161_v28 = vmax.f32 %v2159_v23, 0.0 }
 0x1f5   : > { %v2166_v34 = vadd.f32 1e-05, %v2160_v27 }
 0x1f6   : > { %v2167_v35 = vadd.f32 1e-05, %v2161_v28 }
 0x1f7   : > { %2964 = vrsqrt.f32 %v2166_v34 }
 0x1f8   : > { %2966 = vrsqrt.f32 %v2167_v35 }
 0x201   : > { %v2965_v24 = vpop.eup %2964 }
 0x202   : > { %v2967_v25 = vpop.eup %2966  ;;  %v2170_v29 = vmul.f32 %v2965_v24, %v2162_v16  ;;  %v2172_v30 = vmul.f32 %v2965_v24, %v2164_v17 }
 0x203   : > { %v2171_v36 = vmul.f32 %v2967_v25, %v2163_v20  ;;  %v2173_v37 = vmul.f32 %v2967_v25, %v2165_v21 }
 0x204   : > { %vm2174_vm0 = vcmp.gt.f32.partialorder %v2170_v29, 0.0  ;;  %vm2176_vm1 = vcmp.gt.f32.partialorder %v2172_v30, 0.0  ;;  %v2178_v38 = vmul.f32 0.01, %v2170_v29  ;;  %v2180_v39 = vmul.f32 0.01, %v2172_v30 }
 0x205   : > { %vm2175_vm2 = vcmp.gt.f32.partialorder %v2171_v36, 0.0  ;;  %vm2177_vm3 = vcmp.gt.f32.partialorder %v2173_v37, 0.0  ;;  %v2179_v40 = vmul.f32 0.01, %v2171_v36  ;;  %v2181_v41 = vmul.f32 0.01, %v2173_v37 }
 0x206   : > { %v2184_v42 = vsel %vm2176_vm1, %v2172_v30, %v2180_v39  ;;  %v2182_v43 = vsel %vm2174_vm0, %v2170_v29, %v2178_v38 }
 0x207   : > { %v2183_v44 = vsel %vm2175_vm2, %v2171_v36, %v2179_v40  ;;  %v2185_v45 = vsel %vm2177_vm3, %v2173_v37, %v2181_v41 }
 0x208   : > { %v2542_v26 = vpack.c.bf16 %v2183_v44, %v2182_v43  ;;  %v2543_v31 = vpack.c.bf16 %v2185_v45, %v2184_v42 }
 0x20a   : > { %2198 = vst [vmem:[%s143_s21] sm:$0xff] %v2542_v26  ;;  %2199 = vst [vmem:[%s143_s21 + $0x8] sm:$0xff] %v2543_v31 }
 0x20b PF: > { %s12_s9 = sadd.s32 1, %s2974_s9  }
 0x20c   : > { %p9_p4 = scmp.ge.s32.totalorder %s12_s9, 4  }
 0x20e   :  { %11 = sbr.rel (!%p9_p4) target bundleno = 1 (0x1), region = 58 }

// kernel: discriminator_forward.8
= control target key start
LH: loop header
LB: loop body
LE: loop exit
PB: predicated region body
PF: predicated region fallthrough
CT: control target
= control target key end

     0   :  { %s10843_s9 = smov 0   ;;  %s14142_s0 = inlined_call_operand.vmem [shape: bf16[2,16,4096], index: 0, kind: input, shape index: {}]   ;;  %s14143_s1 = inlined_call_operand.vmem [shape: bf16[4096,512], index: 1, kind: input, shape index: {}]   ;;  %s14144_s2 = inlined_call_operand.vmem [shape: bf16[2,16,512], index: 2, kind: output, shape index: {}]  }
   0x1 LB: > { %s8071_s10 = sadd.s32 4294967295, %s10826_s9   ;;  %p8075_p0 = scmp.ge.s32.totalorder %s10826_s9, 1  ;;  %s10826_s9 = sphi %s10843_s9, %s12_s9  }
   0x2   : > { %p112_p1 = scmp.lt.s32.totalorder %s10826_s9, 3 }
   0x4   : > { %p113_p2 = pnand %p8075_p0, %p112_p1 }
   0x5   : > { %v9276_v0 = vld [vmem:[%s14143_s1 + $0x4] ss:$16 sps:$4 sm:$0xff] (!%p113_p2)   ;;  %v9278_v1 = vld [vmem:[%s14143_s1 + $0xc] ss:$16 sps:$4 sm:$0xff] (!%p113_p2)   ;;  %v9280_v2 = vld [vmem:[%s14143_s1] ss:$16 sps:$4 sm:$0xff] (!%p113_p2)  }
   0x6   : > { %116 = sbr.rel (%p113_p2) target bundleno = 1292 (0x50c), region = 28  ;;  %6480 = vmatprep.subr.bf16.mxu0 (!%p113_p2), %v9276_v0  ;;  %v9281_v3 = vld [vmem:[%s14143_s1 + $0x8] ss:$16 sps:$4 sm:$0xff] (!%p113_p2)   ;;  %7168 = vmatprep.subr.bf16.mxu1 (!%p113_p2), %v9278_v1  ;;  %v9282_v4 = vld [vmem:[%s14143_s1 + $0x24] ss:$16 sps:$4 sm:$0xff] (!%p113_p2)   ;;  %p134_p3 = scmp.lt.s32.totalorder (!%p113_p2), %s8071_s10, 1 }
   0x7   : > { %6481 = vmatpush1.bf16.msra.mxu0 (!%p113_p2), %v9280_v2  ;;  %7169 = vmatpush1.bf16.msra.mxu1 (!%p113_p2), %v9281_v3  ;;  %v9284_v5 = vld [vmem:[%s14143_s1 + $0x2c] ss:$16 sps:$4 sm:$0xff] (!%p113_p2)   ;;  %v9286_v6 = vld [vmem:[%s14143_s1 + $0x20] ss:$16 sps:$4 sm:$0xff] (!%p113_p2)   ;;  %v9287_v7 = vld [vmem:[%s14143_s1 + $0x28] ss:$16 sps:$4 sm:$0xff] (!%p113_p2)  }
   0x8   : > { %6482 = vmatprep.subr.bf16.mxu0 (!%p113_p2), %v9282_v4  ;;  %7170 = vmatprep.subr.bf16.mxu1 (!%p113_p2), %v9284_v5  ;;  %v9288_v8 = vld [vmem:[%s14143_s1 + $0x44] ss:$16 sps:$4 sm:$0xff] (!%p113_p2)   ;;  %v9290_v9 = vld [vmem:[%s14143_s1 + $0x4c] ss:$16 sps:$4 sm:$0xff] (!%p113_p2)   ;;  %v9292_v10 = vld [vmem:[%s14143_s1 + $0x40] ss:$16 sps:$4 sm:$0xff] (!%p113_p2)  }
   0x9   : > { %v9293_v11 = vld [vmem:[%s14143_s1 + $0x48] ss:$16 sps:$4 sm:$0xff] (!%p113_p2)   ;;  %v9294_v12 = vld [vmem:[%s14143_s1 + $0x64] ss:$16 sps:$4 sm:$0xff] (!%p113_p2)   ;;  %v9296_v13 = vld [vmem:[%s14143_s1 + $0x6c] ss:$16 sps:$4 sm:$0xff] (!%p113_p2)  }
   0xa   : > { %v9298_v14 = vld [vmem:[%s14143_s1 + $0x60] ss:$16 sps:$4 sm:$0xff] (!%p113_p2)   ;;  %v9299_v15 = vld [vmem:[%s14143_s1 + $0x68] ss:$16 sps:$4 sm:$0xff] (!%p113_p2)   ;;  %v9300_v16 = vld [vmem:[%s14143_s1 + $0x84] ss:$16 sps:$4 sm:$0xff] (!%p113_p2)  }
   0xb   : > { %6483 = vmatpush1.bf16.msra.mxu0 (!%p113_p2), %v9286_v6  ;;  %7171 = vmatpush1.bf16.msra.mxu1 (!%p113_p2), %v9287_v7  ;;  %v9302_v17 = vld [vmem:[%s14143_s1 + $0x8c] ss:$16 sps:$4 sm:$0xff] (!%p113_p2)   ;;  %v9304_v18 = vld [vmem:[%s14143_s1 + $0x80] ss:$16 sps:$4 sm:$0xff] (!%p113_p2)   ;;  %v9305_v19 = vld [vmem:[%s14143_s1 + $0x88] ss:$16 sps:$4 sm:$0xff] (!%p113_p2)  }
   0xc   : > { %6484 = vmatprep.subr.bf16.mxu0 (!%p113_p2), %v9288_v8  ;;  %7172 = vmatprep.subr.bf16.mxu1 (!%p113_p2), %v9290_v9  ;;  %v9306_v20 = vld [vmem:[%s14143_s1 + $0xa4] ss:$16 sps:$4 sm:$0xff] (!%p113_p2)   ;;  %v9308_v21 = vld [vmem:[%s14143_s1 + $0xac] ss:$16 sps:$4 sm:$0xff] (!%p113_p2)   ;;  %v9310_v22 = vld [vmem:[%s14143_s1 + $0xa0] ss:$16 sps:$4 sm:$0xff] (!%p113_p2)  }
   0xd   : > { %v9311_v23 = vld [vmem:[%s14143_s1 + $0xa8] ss:$16 sps:$4 sm:$0xff]   ;;  %v9312_v24 = vld [vmem:[%s14143_s1 + $0xc4] ss:$16 sps:$4 sm:$0xff]   ;;  %v9314_v25 = vld [vmem:[%s14143_s1 + $0xcc] ss:$16 sps:$4 sm:$0xff]  }
   0xe   : > { %v9316_v26 = vld [vmem:[%s14143_s1 + $0xc0] ss:$16 sps:$4 sm:$0xff]   ;;  %v9317_v27 = vld [vmem:[%s14143_s1 + $0xc8] ss:$16 sps:$4 sm:$0xff]   ;;  %v9318_v28 = vld [vmem:[%s14143_s1 + $0xe4] ss:$16 sps:$4 sm:$0xff]  }
   0xf   : > { %6485 = vmatpush1.bf16.msra.mxu0 %v9292_v10  ;;  %7173 = vmatpush1.bf16.msra.mxu1 %v9293_v11  ;;  %v9320_v29 = vld [vmem:[%s14143_s1 + $0xec] ss:$16 sps:$4 sm:$0xff]   ;;  %v9322_v30 = vld [vmem:[%s14143_s1 + $0xe0] ss:$16 sps:$4 sm:$0xff]   ;;  %v9323_v31 = vld [vmem:[%s14143_s1 + $0xe8] ss:$16 sps:$4 sm:$0xff]  }
  0x10   : > { %6486 = vmatprep.subr.bf16.mxu0 %v9294_v12  ;;  %7174 = vmatprep.subr.bf16.mxu1 %v9296_v13  ;;  %v9324_v32 = vld [vmem:[%s14143_s1 + $0x104] ss:$16 sps:$4 sm:$0xff]   ;;  %v9326_v33 = vld [vmem:[%s14143_s1 + $0x10c] ss:$16 sps:$4 sm:$0xff]   ;;  %v9328_v34 = vld [vmem:[%s14143_s1 + $0x100] ss:$16 sps:$4 sm:$0xff]  }
  0x11   : > { %v9329_v35 = vld [vmem:[%s14143_s1 + $0x108] ss:$16 sps:$4 sm:$0xff]   ;;  %v9330_v36 = vld [vmem:[%s14143_s1 + $0x124] ss:$16 sps:$4 sm:$0xff]   ;;  %s14146_s10 = smov (!%p134_p3, %s8071_s10), 1 }
  0x12   : > { %v9332_v37 = vld [vmem:[%s14143_s1 + $0x12c] ss:$16 sps:$4 sm:$0xff]   ;;  %v9334_v38 = vld [vmem:[%s14143_s1 + $0x120] ss:$16 sps:$4 sm:$0xff]   ;;  %v9335_v39 = vld [vmem:[%s14143_s1 + $0x128] ss:$16 sps:$4 sm:$0xff]  }
  0x13   : > { %6487 = vmatpush1.bf16.msra.mxu0 %v9298_v14  ;;  %7175 = vmatpush1.bf16.msra.mxu1 %v9299_v15  ;;  %v9336_v40 = vld [vmem:[%s14143_s1 + $0x144] ss:$16 sps:$4 sm:$0xff]   ;;  %s9142_s15 = sshll.u32 %s14146_s10, 8  ;;  %v9338_v41 = vld [vmem:[%s14143_s1 + $0x14c] ss:$16 sps:$4 sm:$0xff]   ;;  %s9143_s30 = sshll.u32 %s14146_s10, 5 }
  0x14   : > { %6488 = vmatprep.subr.bf16.mxu0 %v9300_v16  ;;  %7176 = vmatprep.subr.bf16.mxu1 %v9302_v17  ;;  %v9340_v42 = vld [vmem:[%s14143_s1 + $0x140] ss:$16 sps:$4 sm:$0xff]   ;;  %v9341_v43 = vld [vmem:[%s14143_s1 + $0x148] ss:$16 sps:$4 sm:$0xff]   ;;  %s10993_s24 = scalar_lea.vmem %s14142_s0, %s9142_s15  ;;  %v9342_v44 = vld [vmem:[%s14143_s1 + $0x164] ss:$16 sps:$4 sm:$0xff]   ;;  %s143_s5 = scalar_lea.vmem %s14144_s2, %s9143_s30 }
  0x15   : > { %v9344_v45 = vld [vmem:[%s14143_s1 + $0x16c] ss:$16 sps:$4 sm:$0xff]   ;;  %v144_v46 = vld [vmem:[%s10993_s24] sm:$0xff]  ;;  %v9347_v49 = vld [vmem:[%s14143_s1 + $0x168] ss:$16 sps:$4 sm:$0xff]  }
  0x16   : > { %v160_v47 = vld [vmem:[%s10993_s24 + $0x80] sm:$0xff]  ;;  %v9350_v52 = vld [vmem:[%s14143_s1 + $0x18c] ss:$16 sps:$4 sm:$0xff]   ;;  %v9353_v54 = vld [vmem:[%s14143_s1 + $0x188] ss:$16 sps:$4 sm:$0xff]  }
  0x17   : > { %6489 = vmatpush1.bf16.msra.mxu0 %v9304_v18  ;;  %7177 = vmatpush1.bf16.msra.mxu1 %v9305_v19  ;;  %v9346_v48 = vld [vmem:[%s14143_s1 + $0x160] ss:$16 sps:$4 sm:$0xff]   ;;  %v8081_v50 = vcombine.high %v144_v46, %v160_v47  ;;  %v9348_v51 = vld [vmem:[%s14143_s1 + $0x184] ss:$16 sps:$4 sm:$0xff]   ;;  %v9356_v56 = vld [vmem:[%s14143_s1 + $0x1ac] ss:$16 sps:$4 sm:$0xff]   ;;  %v8080_v5 = vcombine.low %v144_v46, %v160_v47 }
  0x18   : > { %6490 = vmatprep.subr.bf16.mxu0 %v9306_v20  ;;  %7178 = vmatprep.subr.bf16.mxu1 %v9308_v21  ;;  %v9352_v53 = vld [vmem:[%s14143_s1 + $0x180] ss:$16 sps:$4 sm:$0xff]   ;;  %v9354_v55 = vld [vmem:[%s14143_s1 + $0x1a4] ss:$16 sps:$4 sm:$0xff]   ;;  %v9359_v58 = vld [vmem:[%s14143_s1 + $0x1a8] ss:$16 sps:$4 sm:$0xff]  }
  0x19   : > { %6512 = vmatprep.mubr.bf16.mxu0 %v8081_v50  ;;  %7200 = vmatprep.mubr.bf16.mxu1 %v8081_v50  ;;  %v9358_v57 = vld [vmem:[%s14143_s1 + $0x1a0] ss:$16 sps:$4 sm:$0xff]   ;;  %v9360_v59 = vld [vmem:[%s14143_s1 + $0x1c4] ss:$16 sps:$4 sm:$0xff]   ;;  %v9362_v60 = vld [vmem:[%s14143_s1 + $0x1cc] ss:$16 sps:$4 sm:$0xff]  }
  0x1a   : > { %v9364_v61 = vld [vmem:[%s14143_s1 + $0x1c0] ss:$16 sps:$4 sm:$0xff]   ;;  %v9365_v62 = vld [vmem:[%s14143_s1 + $0x1c8] ss:$16 sps:$4 sm:$0xff]   ;;  %v9366_v63 = vld [vmem:[%s14143_s1 + $0x1e4] ss:$16 sps:$4 sm:$0xff]  }
  0x1b   : > { %6491 = vmatpush1.bf16.msra.mxu0 %v9310_v22  ;;  %7179 = vmatpush1.bf16.msra.mxu1 %v9311_v23  ;;  %v9368_v0 = vld [vmem:[%s14143_s1 + $0x1ec] ss:$16 sps:$4 sm:$0xff]   ;;  %v9370_v1 = vld [vmem:[%s14143_s1 + $0x1e0] ss:$16 sps:$4 sm:$0xff]   ;;  %v9371_v2 = vld [vmem:[%s14143_s1 + $0x1e8] ss:$16 sps:$4 sm:$0xff]  }
  0x1c   : > { %6492 = vmatprep.subr.bf16.mxu0 %v9312_v24  ;;  %7180 = vmatprep.subr.bf16.mxu1 %v9314_v25  ;;  %v9374_v3 = vld [vmem:[%s14143_s1 + $0x204] ss:$16 sps:$4 sm:$0xff]   ;;  %v9377_v4 = vld [vmem:[%s14143_s1 + $0x20c] ss:$16 sps:$4 sm:$0xff]   ;;  %v9372_v6 = vld [vmem:[%s14143_s1 + $0x200] ss:$16 sps:$4 sm:$0xff]  }
  0x1d   : > { %v9375_v7 = vld [vmem:[%s14143_s1 + $0x208] ss:$16 sps:$4 sm:$0xff]   ;;  %v9380_v8 = vld [vmem:[%s14143_s1 + $0x224] ss:$16 sps:$4 sm:$0xff]   ;;  %v9383_v9 = vld [vmem:[%s14143_s1 + $0x22c] ss:$16 sps:$4 sm:$0xff]  }
  0x1e   : > { %v9378_v10 = vld [vmem:[%s14143_s1 + $0x220] ss:$16 sps:$4 sm:$0xff]   ;;  %v9381_v11 = vld [vmem:[%s14143_s1 + $0x228] ss:$16 sps:$4 sm:$0xff]   ;;  %v9386_v12 = vld [vmem:[%s14143_s1 + $0x244] ss:$16 sps:$4 sm:$0xff]  }
  0x1f   : > { %6493 = vmatpush1.bf16.msra.mxu0 %v9316_v26  ;;  %7181 = vmatpush1.bf16.msra.mxu1 %v9317_v27  ;;  %v9389_v13 = vld [vmem:[%s14143_s1 + $0x24c] ss:$16 sps:$4 sm:$0xff]   ;;  %v9384_v14 = vld [vmem:[%s14143_s1 + $0x240] ss:$16 sps:$4 sm:$0xff]   ;;  %v9387_v15 = vld [vmem:[%s14143_s1 + $0x248] ss:$16 sps:$4 sm:$0xff]  }
  0x20   : > { %6494 = vmatprep.subr.bf16.mxu0 %v9318_v28  ;;  %7182 = vmatprep.subr.bf16.mxu1 %v9320_v29  ;;  %v9392_v16 = vld [vmem:[%s14143_s1 + $0x264] ss:$16 sps:$4 sm:$0xff]   ;;  %v9395_v17 = vld [vmem:[%s14143_s1 + $0x26c] ss:$16 sps:$4 sm:$0xff]   ;;  %v9390_v18 = vld [vmem:[%s14143_s1 + $0x260] ss:$16 sps:$4 sm:$0xff]  }
  0x21   : > { %v9393_v19 = vld [vmem:[%s14143_s1 + $0x268] ss:$16 sps:$4 sm:$0xff]   ;;  %v9398_v20 = vld [vmem:[%s14143_s1 + $0x284] ss:$16 sps:$4 sm:$0xff]   ;;  %v9401_v21 = vld [vmem:[%s14143_s1 + $0x28c] ss:$16 sps:$4 sm:$0xff]  }
  0x22   : > { %v9396_v22 = vld [vmem:[%s14143_s1 + $0x280] ss:$16 sps:$4 sm:$0xff]   ;;  %v9399_v23 = vld [vmem:[%s14143_s1 + $0x288] ss:$16 sps:$4 sm:$0xff]   ;;  %v9404_v24 = vld [vmem:[%s14143_s1 + $0x2a4] ss:$16 sps:$4 sm:$0xff]  }
  0x23   : > { %6495 = vmatpush1.bf16.msra.mxu0 %v9322_v30  ;;  %7183 = vmatpush1.bf16.msra.mxu1 %v9323_v31  ;;  %v9407_v25 = vld [vmem:[%s14143_s1 + $0x2ac] ss:$16 sps:$4 sm:$0xff]   ;;  %v9402_v26 = vld [vmem:[%s14143_s1 + $0x2a0] ss:$16 sps:$4 sm:$0xff]   ;;  %v9405_v27 = vld [vmem:[%s14143_s1 + $0x2a8] ss:$16 sps:$4 sm:$0xff]  }
  0x24   : > { %6496 = vmatprep.subr.bf16.mxu0 %v9324_v32  ;;  %7184 = vmatprep.subr.bf16.mxu1 %v9326_v33  ;;  %v9410_v28 = vld [vmem:[%s14143_s1 + $0x2c4] ss:$16 sps:$4 sm:$0xff]   ;;  %v9413_v29 = vld [vmem:[%s14143_s1 + $0x2cc] ss:$16 sps:$4 sm:$0xff]   ;;  %v9408_v32 = vld [vmem:[%s14143_s1 + $0x2c0] ss:$16 sps:$4 sm:$0xff]  }
  0x25   : > { %v11136_v30 = vld [vmem:[%s10993_s24 + $0x8] sm:$0xff]  ;;  %v9434_v47 = vld [vmem:[%s14143_s1 + $0x344] ss:$16 sps:$4 sm:$0xff]  }
  0x26   : > { %v11139_v31 = vld [vmem:[%s10993_s24 + $0x88] sm:$0xff] }
  0x27   : > { %6497 = vmatpush1.bf16.msra.mxu0 %v9328_v34  ;;  %7185 = vmatpush1.bf16.msra.mxu1 %v9329_v35  ;;  %v9411_v33 = vld [vmem:[%s14143_s1 + $0x2c8] ss:$16 sps:$4 sm:$0xff]   ;;  %v8083_v34 = vcombine.high %v11136_v30, %v11139_v31  ;;  %v9416_v35 = vld [vmem:[%s14143_s1 + $0x2e4] ss:$16 sps:$4 sm:$0xff]  }
  0x28   : > { %6498 = vmatprep.subr.bf16.mxu0 %v9330_v36  ;;  %7186 = vmatprep.subr.bf16.mxu1 %v9332_v37  ;;  %v9419_v36 = vld [vmem:[%s14143_s1 + $0x2ec] ss:$16 sps:$4 sm:$0xff]   ;;  %v9414_v37 = vld [vmem:[%s14143_s1 + $0x2e0] ss:$16 sps:$4 sm:$0xff]   ;;  %v9429_v46 = vld [vmem:[%s14143_s1 + $0x328] ss:$16 sps:$4 sm:$0xff]  }
  0x29   : > { %v9435_v50 = vld [vmem:[%s14143_s1 + $0x348] ss:$16 sps:$4 sm:$0xff]  }
  0x2b   : > { %6499 = vmatpush1.bf16.msra.mxu0 %v9334_v38  ;;  %7187 = vmatpush1.bf16.msra.mxu1 %v9335_v39  ;;  %v9417_v38 = vld [vmem:[%s14143_s1 + $0x2e8] ss:$16 sps:$4 sm:$0xff]   ;;  %v9422_v39 = vld [vmem:[%s14143_s1 + $0x304] ss:$16 sps:$4 sm:$0xff]  }
  0x2c   : > { %6500 = vmatprep.subr.bf16.mxu0 %v9336_v40  ;;  %7188 = vmatprep.subr.bf16.mxu1 %v9338_v41  ;;  %v9425_v40 = vld [vmem:[%s14143_s1 + $0x30c] ss:$16 sps:$4 sm:$0xff]   ;;  %v9420_v41 = vld [vmem:[%s14143_s1 + $0x300] ss:$16 sps:$4 sm:$0xff]  }
  0x2f   : > { %6501 = vmatpush1.bf16.msra.mxu0 %v9340_v42  ;;  %7189 = vmatpush1.bf16.msra.mxu1 %v9341_v43  ;;  %v9423_v42 = vld [vmem:[%s14143_s1 + $0x308] ss:$16 sps:$4 sm:$0xff]   ;;  %v9428_v43 = vld [vmem:[%s14143_s1 + $0x324] ss:$16 sps:$4 sm:$0xff]  }
  0x30   : > { %6502 = vmatprep.subr.bf16.mxu0 %v9342_v44  ;;  %7190 = vmatprep.subr.bf16.mxu1 %v9344_v45  ;;  %v9431_v44 = vld [vmem:[%s14143_s1 + $0x32c] ss:$16 sps:$4 sm:$0xff]   ;;  %v9426_v45 = vld [vmem:[%s14143_s1 + $0x320] ss:$16 sps:$4 sm:$0xff]  }
  0x33   : > { %6503 = vmatpush1.bf16.msra.mxu0 %v9346_v48  ;;  %7191 = vmatpush1.bf16.msra.mxu1 %v9347_v49  ;;  %v9437_v48 = vld [vmem:[%s14143_s1 + $0x34c] ss:$16 sps:$4 sm:$0xff]   ;;  %v9432_v49 = vld [vmem:[%s14143_s1 + $0x340] ss:$16 sps:$4 sm:$0xff]  }
  0x34   : > { %6504 = vmatprep.subr.bf16.mxu0 %v9348_v51  ;;  %7192 = vmatprep.subr.bf16.mxu1 %v9350_v52  ;;  %v9440_v51 = vld [vmem:[%s14143_s1 + $0x364] ss:$16 sps:$4 sm:$0xff]   ;;  %v9443_v52 = vld [vmem:[%s14143_s1 + $0x36c] ss:$16 sps:$4 sm:$0xff]  }
  0x37   : > { %6505 = vmatpush1.bf16.msra.mxu0 %v9352_v53  ;;  %7193 = vmatpush1.bf16.msra.mxu1 %v9353_v54  ;;  %v9438_v53 = vld [vmem:[%s14143_s1 + $0x360] ss:$16 sps:$4 sm:$0xff]   ;;  %v9441_v54 = vld [vmem:[%s14143_s1 + $0x368] ss:$16 sps:$4 sm:$0xff]  }
  0x38   : > { %6506 = vmatprep.subr.bf16.mxu0 %v9354_v55  ;;  %7194 = vmatprep.subr.bf16.mxu1 %v9356_v56  ;;  %v9446_v55 = vld [vmem:[%s14143_s1 + $0x384] ss:$16 sps:$4 sm:$0xff]   ;;  %v9449_v56 = vld [vmem:[%s14143_s1 + $0x38c] ss:$16 sps:$4 sm:$0xff]  }
  0x3b   : > { %6507 = vmatpush1.bf16.msra.mxu0 %v9358_v57  ;;  %7195 = vmatpush1.bf16.msra.mxu1 %v9359_v58  ;;  %v9444_v57 = vld [vmem:[%s14143_s1 + $0x380] ss:$16 sps:$4 sm:$0xff]   ;;  %v9447_v58 = vld [vmem:[%s14143_s1 + $0x388] ss:$16 sps:$4 sm:$0xff]  }
  0x3c   : > { %6508 = vmatprep.subr.bf16.mxu0 %v9360_v59  ;;  %7196 = vmatprep.subr.bf16.mxu1 %v9362_v60  ;;  %v9452_v59 = vld [vmem:[%s14143_s1 + $0x3a4] ss:$16 sps:$4 sm:$0xff]   ;;  %v9455_v60 = vld [vmem:[%s14143_s1 + $0x3ac] ss:$16 sps:$4 sm:$0xff]  }
  0x3f   : > { %6509 = vmatpush1.bf16.msra.mxu0 %v9364_v61  ;;  %7197 = vmatpush1.bf16.msra.mxu1 %v9365_v62  ;;  %v9450_v61 = vld [vmem:[%s14143_s1 + $0x3a0] ss:$16 sps:$4 sm:$0xff]   ;;  %v9453_v62 = vld [vmem:[%s14143_s1 + $0x3a8] ss:$16 sps:$4 sm:$0xff]  }
  0x40   : > { %6510 = vmatprep.subr.bf16.mxu0 %v9366_v63  ;;  %7198 = vmatprep.subr.bf16.mxu1 %v9368_v0  ;;  %v9458_v63 = vld [vmem:[%s14143_s1 + $0x3c4] ss:$16 sps:$4 sm:$0xff]   ;;  %v9461_v0 = vld [vmem:[%s14143_s1 + $0x3cc] ss:$16 sps:$4 sm:$0xff]  }
  0x43   : > { %6511 = vmatpush1.bf16.msra.mxu0 %v9370_v1  ;;  %7199 = vmatpush1.bf16.msra.mxu1 %v9371_v2  ;;  %v9456_v1 = vld [vmem:[%s14143_s1 + $0x3c0] ss:$16 sps:$4 sm:$0xff]   ;;  %v9459_v2 = vld [vmem:[%s14143_s1 + $0x3c8] ss:$16 sps:$4 sm:$0xff]  }
  0x44   : > { %6523 = vmatprep.subr.bf16.mxu0 %v9374_v3  ;;  %7211 = vmatprep.subr.bf16.mxu1 %v9377_v4  ;;  %v9464_v3 = vld [vmem:[%s14143_s1 + $0x3e4] ss:$16 sps:$4 sm:$0xff]   ;;  %v9467_v4 = vld [vmem:[%s14143_s1 + $0x3ec] ss:$16 sps:$4 sm:$0xff]  }
  0x46   : > { %6513 = vmatmul.mubr.bf16.vlgmr.msra.gmra.mrb[0].mxu0 %v8080_v5  ;;  %7201 = vmatmul.mubr.bf16.vlgmr.msra.gmra.mrb[0].mxu1 %v8080_v5  ;;  %v9462_v5 = vld [vmem:[%s14143_s1 + $0x3e0] ss:$16 sps:$4 sm:$0xff]  }
  0x47   : > { %6524 = vmatpush1.bf16.msra.mxu0 %v9372_v6  ;;  %7212 = vmatpush1.bf16.msra.mxu1 %v9375_v7  ;;  %v9465_v6 = vld [vmem:[%s14143_s1 + $0x3e8] ss:$16 sps:$4 sm:$0xff]   ;;  %v9470_v7 = vld [vmem:[%s14143_s1 + $0x404] ss:$16 sps:$4 sm:$0xff]  }
  0x48   : > { %6525 = vmatprep.subr.bf16.mxu0 %v9380_v8  ;;  %7213 = vmatprep.subr.bf16.mxu1 %v9383_v9  ;;  %v9473_v8 = vld [vmem:[%s14143_s1 + $0x40c] ss:$16 sps:$4 sm:$0xff]   ;;  %v8082_v9 = vcombine.low %v11136_v30, %v11139_v31  ;;  %v9495_v30 = vld [vmem:[%s14143_s1 + $0x488] ss:$16 sps:$4 sm:$0xff]   ;;  %v9500_v31 = vld [vmem:[%s14143_s1 + $0x4a4] ss:$16 sps:$4 sm:$0xff]  }
  0x49   : > { %6555 = vmatprep.mubr.bf16.mxu0 %v8083_v34  ;;  %7243 = vmatprep.mubr.bf16.mxu1 %v8083_v34  ;;  %v9501_v34 = vld [vmem:[%s14143_s1 + $0x4a8] ss:$16 sps:$4 sm:$0xff]  }
  0x4b   : > { %6526 = vmatpush1.bf16.msra.mxu0 %v9378_v10  ;;  %7214 = vmatpush1.bf16.msra.mxu1 %v9381_v11  ;;  %v9468_v10 = vld [vmem:[%s14143_s1 + $0x400] ss:$16 sps:$4 sm:$0xff]   ;;  %v9471_v11 = vld [vmem:[%s14143_s1 + $0x408] ss:$16 sps:$4 sm:$0xff]  }
  0x4c   : > { %6527 = vmatprep.subr.bf16.mxu0 %v9386_v12  ;;  %7215 = vmatprep.subr.bf16.mxu1 %v9389_v13  ;;  %v9476_v12 = vld [vmem:[%s14143_s1 + $0x424] ss:$16 sps:$4 sm:$0xff]   ;;  %v9479_v13 = vld [vmem:[%s14143_s1 + $0x42c] ss:$16 sps:$4 sm:$0xff]  }
  0x4f   : > { %6528 = vmatpush1.bf16.msra.mxu0 %v9384_v14  ;;  %7216 = vmatpush1.bf16.msra.mxu1 %v9387_v15  ;;  %v11278_v14 = vld [vmem:[%s10993_s24 + $0x10] sm:$0xff] }
  0x50   : > { %6529 = vmatprep.subr.bf16.mxu0 %v9392_v16  ;;  %7217 = vmatprep.subr.bf16.mxu1 %v9395_v17  ;;  %v11281_v15 = vld [vmem:[%s10993_s24 + $0x90] sm:$0xff] }
  0x51   : > { %v8085_v16 = vcombine.high %v11278_v14, %v11281_v15  ;;  %v9474_v17 = vld [vmem:[%s14143_s1 + $0x420] ss:$16 sps:$4 sm:$0xff]  }
  0x53   : > { %6530 = vmatpush1.bf16.msra.mxu0 %v9390_v18  ;;  %7218 = vmatpush1.bf16.msra.mxu1 %v9393_v19  ;;  %v9477_v18 = vld [vmem:[%s14143_s1 + $0x428] ss:$16 sps:$4 sm:$0xff]   ;;  %v9482_v19 = vld [vmem:[%s14143_s1 + $0x444] ss:$16 sps:$4 sm:$0xff]  }
  0x54   : > { %6531 = vmatprep.subr.bf16.mxu0 %v9398_v20  ;;  %7219 = vmatprep.subr.bf16.mxu1 %v9401_v21  ;;  %v9485_v20 = vld [vmem:[%s14143_s1 + $0x44c] ss:$16 sps:$4 sm:$0xff]   ;;  %v9480_v21 = vld [vmem:[%s14143_s1 + $0x440] ss:$16 sps:$4 sm:$0xff]  }
  0x57   : > { %6532 = vmatpush1.bf16.msra.mxu0 %v9396_v22  ;;  %7220 = vmatpush1.bf16.msra.mxu1 %v9399_v23  ;;  %v9483_v22 = vld [vmem:[%s14143_s1 + $0x448] ss:$16 sps:$4 sm:$0xff]   ;;  %v9488_v23 = vld [vmem:[%s14143_s1 + $0x464] ss:$16 sps:$4 sm:$0xff]  }
  0x58   : > { %6533 = vmatprep.subr.bf16.mxu0 %v9404_v24  ;;  %7221 = vmatprep.subr.bf16.mxu1 %v9407_v25  ;;  %v9491_v24 = vld [vmem:[%s14143_s1 + $0x46c] ss:$16 sps:$4 sm:$0xff]   ;;  %v9486_v25 = vld [vmem:[%s14143_s1 + $0x460] ss:$16 sps:$4 sm:$0xff]  }
  0x5b   : > { %6534 = vmatpush1.bf16.msra.mxu0 %v9402_v26  ;;  %7222 = vmatpush1.bf16.msra.mxu1 %v9405_v27  ;;  %v9489_v26 = vld [vmem:[%s14143_s1 + $0x468] ss:$16 sps:$4 sm:$0xff]   ;;  %v9494_v27 = vld [vmem:[%s14143_s1 + $0x484] ss:$16 sps:$4 sm:$0xff]  }
  0x5c   : > { %6535 = vmatprep.subr.bf16.mxu0 %v9410_v28  ;;  %7223 = vmatprep.subr.bf16.mxu1 %v9413_v29  ;;  %v9497_v28 = vld [vmem:[%s14143_s1 + $0x48c] ss:$16 sps:$4 sm:$0xff]   ;;  %v9492_v29 = vld [vmem:[%s14143_s1 + $0x480] ss:$16 sps:$4 sm:$0xff]  }
  0x5f   : > { %6536 = vmatpush1.bf16.msra.mxu0 %v9408_v32  ;;  %7224 = vmatpush1.bf16.msra.mxu1 %v9411_v33  ;;  %v9503_v32 = vld [vmem:[%s14143_s1 + $0x4ac] ss:$16 sps:$4 sm:$0xff]   ;;  %v9498_v33 = vld [vmem:[%s14143_s1 + $0x4a0] ss:$16 sps:$4 sm:$0xff]  }
  0x60   : > { %6537 = vmatprep.subr.bf16.mxu0 %v9416_v35  ;;  %7225 = vmatprep.subr.bf16.mxu1 %v9419_v36  ;;  %v9506_v35 = vld [vmem:[%s14143_s1 + $0x4c4] ss:$16 sps:$4 sm:$0xff]   ;;  %v9509_v36 = vld [vmem:[%s14143_s1 + $0x4cc] ss:$16 sps:$4 sm:$0xff]  }
  0x63   : > { %6538 = vmatpush1.bf16.msra.mxu0 %v9414_v37  ;;  %7226 = vmatpush1.bf16.msra.mxu1 %v9417_v38  ;;  %v9504_v37 = vld [vmem:[%s14143_s1 + $0x4c0] ss:$16 sps:$4 sm:$0xff]   ;;  %v9507_v38 = vld [vmem:[%s14143_s1 + $0x4c8] ss:$16 sps:$4 sm:$0xff]  }
  0x64   : > { %6539 = vmatprep.subr.bf16.mxu0 %v9422_v39  ;;  %7227 = vmatprep.subr.bf16.mxu1 %v9425_v40  ;;  %v9512_v39 = vld [vmem:[%s14143_s1 + $0x4e4] ss:$16 sps:$4 sm:$0xff]   ;;  %v9515_v40 = vld [vmem:[%s14143_s1 + $0x4ec] ss:$16 sps:$4 sm:$0xff]  }
  0x67   : > { %6540 = vmatpush1.bf16.msra.mxu0 %v9420_v41  ;;  %7228 = vmatpush1.bf16.msra.mxu1 %v9423_v42  ;;  %v9510_v41 = vld [vmem:[%s14143_s1 + $0x4e0] ss:$16 sps:$4 sm:$0xff]   ;;  %v9513_v42 = vld [vmem:[%s14143_s1 + $0x4e8] ss:$16 sps:$4 sm:$0xff]  }
  0x68   : > { %6541 = vmatprep.subr.bf16.mxu0 %v9428_v43  ;;  %7229 = vmatprep.subr.bf16.mxu1 %v9431_v44  ;;  %v9518_v43 = vld [vmem:[%s14143_s1 + $0x504] ss:$16 sps:$4 sm:$0xff]   ;;  %v9521_v44 = vld [vmem:[%s14143_s1 + $0x50c] ss:$16 sps:$4 sm:$0xff]  }
  0x6b   : > { %6542 = vmatpush1.bf16.msra.mxu0 %v9426_v45  ;;  %7230 = vmatpush1.bf16.msra.mxu1 %v9429_v46  ;;  %v9516_v45 = vld [vmem:[%s14143_s1 + $0x500] ss:$16 sps:$4 sm:$0xff]   ;;  %v9519_v46 = vld [vmem:[%s14143_s1 + $0x508] ss:$16 sps:$4 sm:$0xff]  }
  0x6c   : > { %6543 = vmatprep.subr.bf16.mxu0 %v9434_v47  ;;  %7231 = vmatprep.subr.bf16.mxu1 %v9437_v48  ;;  %v9524_v47 = vld [vmem:[%s14143_s1 + $0x524] ss:$16 sps:$4 sm:$0xff]   ;;  %v9527_v48 = vld [vmem:[%s14143_s1 + $0x52c] ss:$16 sps:$4 sm:$0xff]  }
  0x6f   : > { %6544 = vmatpush1.bf16.msra.mxu0 %v9432_v49  ;;  %7232 = vmatpush1.bf16.msra.mxu1 %v9435_v50  ;;  %v9522_v49 = vld [vmem:[%s14143_s1 + $0x520] ss:$16 sps:$4 sm:$0xff]   ;;  %v9525_v50 = vld [vmem:[%s14143_s1 + $0x528] ss:$16 sps:$4 sm:$0xff]  }
  0x70   : > { %6545 = vmatprep.subr.bf16.mxu0 %v9440_v51  ;;  %7233 = vmatprep.subr.bf16.mxu1 %v9443_v52  ;;  %v9530_v51 = vld [vmem:[%s14143_s1 + $0x544] ss:$16 sps:$4 sm:$0xff]   ;;  %v9533_v52 = vld [vmem:[%s14143_s1 + $0x54c] ss:$16 sps:$4 sm:$0xff]  }
  0x73   : > { %6546 = vmatpush1.bf16.msra.mxu0 %v9438_v53  ;;  %7234 = vmatpush1.bf16.msra.mxu1 %v9441_v54  ;;  %v9528_v53 = vld [vmem:[%s14143_s1 + $0x540] ss:$16 sps:$4 sm:$0xff]   ;;  %v9531_v54 = vld [vmem:[%s14143_s1 + $0x548] ss:$16 sps:$4 sm:$0xff]  }
  0x74   : > { %6547 = vmatprep.subr.bf16.mxu0 %v9446_v55  ;;  %7235 = vmatprep.subr.bf16.mxu1 %v9449_v56  ;;  %v9536_v55 = vld [vmem:[%s14143_s1 + $0x564] ss:$16 sps:$4 sm:$0xff]   ;;  %v9539_v56 = vld [vmem:[%s14143_s1 + $0x56c] ss:$16 sps:$4 sm:$0xff]  }
  0x77   : > { %6548 = vmatpush1.bf16.msra.mxu0 %v9444_v57  ;;  %7236 = vmatpush1.bf16.msra.mxu1 %v9447_v58  ;;  %v9534_v57 = vld [vmem:[%s14143_s1 + $0x560] ss:$16 sps:$4 sm:$0xff]   ;;  %v9537_v58 = vld [vmem:[%s14143_s1 + $0x568] ss:$16 sps:$4 sm:$0xff]  }
  0x78   : > { %6549 = vmatprep.subr.bf16.mxu0 %v9452_v59  ;;  %7237 = vmatprep.subr.bf16.mxu1 %v9455_v60  ;;  %v9542_v59 = vld [vmem:[%s14143_s1 + $0x584] ss:$16 sps:$4 sm:$0xff]   ;;  %v9545_v60 = vld [vmem:[%s14143_s1 + $0x58c] ss:$16 sps:$4 sm:$0xff]  }
  0x7b   : > { %6550 = vmatpush1.bf16.msra.mxu0 %v9450_v61  ;;  %7238 = vmatpush1.bf16.msra.mxu1 %v9453_v62  ;;  %v9540_v61 = vld [vmem:[%s14143_s1 + $0x580] ss:$16 sps:$4 sm:$0xff]   ;;  %v9543_v62 = vld [vmem:[%s14143_s1 + $0x588] ss:$16 sps:$4 sm:$0xff]  }
  0x7c   : > { %6551 = vmatprep.subr.bf16.mxu0 %v9458_v63  ;;  %7239 = vmatprep.subr.bf16.mxu1 %v9461_v0  ;;  %v9548_v63 = vld [vmem:[%s14143_s1 + $0x5a4] ss:$16 sps:$4 sm:$0xff]   ;;  %v9551_v0 = vld [vmem:[%s14143_s1 + $0x5ac] ss:$16 sps:$4 sm:$0xff]  }
  0x7f   : > { %6552 = vmatpush1.bf16.msra.mxu0 %v9456_v1  ;;  %7240 = vmatpush1.bf16.msra.mxu1 %v9459_v2  ;;  %v9546_v1 = vld [vmem:[%s14143_s1 + $0x5a0] ss:$16 sps:$4 sm:$0xff]   ;;  %v9549_v2 = vld [vmem:[%s14143_s1 + $0x5a8] ss:$16 sps:$4 sm:$0xff]  }
  0x80   : > { %6553 = vmatprep.subr.bf16.mxu0 %v9464_v3  ;;  %7241 = vmatprep.subr.bf16.mxu1 %v9467_v4  ;;  %v9554_v3 = vld [vmem:[%s14143_s1 + $0x5c4] ss:$16 sps:$4 sm:$0xff]   ;;  %v9557_v4 = vld [vmem:[%s14143_s1 + $0x5cc] ss:$16 sps:$4 sm:$0xff]  }
  0x83   : > { %6554 = vmatpush1.bf16.msra.mxu0 %v9462_v5  ;;  %7242 = vmatpush1.bf16.msra.mxu1 %v9465_v6  ;;  %v9552_v5 = vld [vmem:[%s14143_s1 + $0x5c0] ss:$16 sps:$4 sm:$0xff]   ;;  %v9555_v6 = vld [vmem:[%s14143_s1 + $0x5c8] ss:$16 sps:$4 sm:$0xff]  }
  0x84   : > { %6566 = vmatprep.subr.bf16.mxu0 %v9470_v7  ;;  %7254 = vmatprep.subr.bf16.mxu1 %v9473_v8  ;;  %v9560_v7 = vld [vmem:[%s14143_s1 + $0x5e4] ss:$16 sps:$4 sm:$0xff]   ;;  %v9563_v8 = vld [vmem:[%s14143_s1 + $0x5ec] ss:$16 sps:$4 sm:$0xff]  }
  0x86   : > { %6556 = vmatmul.mubr.bf16.vlgmr.msra.gmra.mrb[0].mxu0 %v8082_v9  ;;  %7244 = vmatmul.mubr.bf16.vlgmr.msra.gmra.mrb[0].mxu1 %v8082_v9  ;;  %v9558_v9 = vld [vmem:[%s14143_s1 + $0x5e0] ss:$16 sps:$4 sm:$0xff]  }
  0x87   : > { %6567 = vmatpush1.bf16.msra.mxu0 %v9468_v10  ;;  %7255 = vmatpush1.bf16.msra.mxu1 %v9471_v11  ;;  %v9561_v10 = vld [vmem:[%s14143_s1 + $0x5e8] ss:$16 sps:$4 sm:$0xff]   ;;  %v9566_v11 = vld [vmem:[%s14143_s1 + $0x604] ss:$16 sps:$4 sm:$0xff]  }
  0x88   : > { %6568 = vmatprep.subr.bf16.mxu0 %v9476_v12  ;;  %7256 = vmatprep.subr.bf16.mxu1 %v9479_v13  ;;  %v9569_v12 = vld [vmem:[%s14143_s1 + $0x60c] ss:$16 sps:$4 sm:$0xff]   ;;  %v9564_v13 = vld [vmem:[%s14143_s1 + $0x600] ss:$16 sps:$4 sm:$0xff]  }
  0x89   : > { %6598 = vmatprep.mubr.bf16.mxu0 %v8085_v16  ;;  %7286 = vmatprep.mubr.bf16.mxu1 %v8085_v16  ;;  %v9567_v16 = vld [vmem:[%s14143_s1 + $0x608] ss:$16 sps:$4 sm:$0xff]  }
  0x8b   : > { %6569 = vmatpush1.bf16.msra.mxu0 %v9474_v17  ;;  %7257 = vmatpush1.bf16.msra.mxu1 %v9477_v18  ;;  %v8084_v17 = vcombine.low %v11278_v14, %v11281_v15  ;;  %v11474_v18 = vld [vmem:[%s10993_s24 + $0x18] sm:$0xff]  ;;  %v9570_v14 = vld [vmem:[%s14143_s1 + $0x620] ss:$16 sps:$4 sm:$0xff]  }
  0x8c   : > { %6570 = vmatprep.subr.bf16.mxu0 %v9482_v19  ;;  %7258 = vmatprep.subr.bf16.mxu1 %v9485_v20  ;;  %v11477_v19 = vld [vmem:[%s10993_s24 + $0x98] sm:$0xff]  ;;  %v9572_v20 = vld [vmem:[%s14143_s1 + $0x624] ss:$16 sps:$4 sm:$0xff]  }
  0x8d   : > { %v9573_v15 = vld [vmem:[%s14143_s1 + $0x628] ss:$16 sps:$4 sm:$0xff]  }
  0x8f   : > { %6571 = vmatpush1.bf16.msra.mxu0 %v9480_v21  ;;  %7259 = vmatpush1.bf16.msra.mxu1 %v9483_v22  ;;  %v9575_v21 = vld [vmem:[%s14143_s1 + $0x62c] ss:$16 sps:$4 sm:$0xff]   ;;  %v8087_v22 = vcombine.high %v11474_v18, %v11477_v19 }
  0x90   : > { %6572 = vmatprep.subr.bf16.mxu0 %v9488_v23  ;;  %7260 = vmatprep.subr.bf16.mxu1 %v9491_v24  ;;  %v9578_v23 = vld [vmem:[%s14143_s1 + $0x644] ss:$16 sps:$4 sm:$0xff]   ;;  %v9581_v24 = vld [vmem:[%s14143_s1 + $0x64c] ss:$16 sps:$4 sm:$0xff]  }
  0x93   : > { %6573 = vmatpush1.bf16.msra.mxu0 %v9486_v25  ;;  %7261 = vmatpush1.bf16.msra.mxu1 %v9489_v26  ;;  %v9576_v25 = vld [vmem:[%s14143_s1 + $0x640] ss:$16 sps:$4 sm:$0xff]   ;;  %v9579_v26 = vld [vmem:[%s14143_s1 + $0x648] ss:$16 sps:$4 sm:$0xff]  }
  0x94   : > { %6574 = vmatprep.subr.bf16.mxu0 %v9494_v27  ;;  %7262 = vmatprep.subr.bf16.mxu1 %v9497_v28  ;;  %v9584_v27 = vld [vmem:[%s14143_s1 + $0x664] ss:$16 sps:$4 sm:$0xff]   ;;  %v9587_v28 = vld [vmem:[%s14143_s1 + $0x66c] ss:$16 sps:$4 sm:$0xff]  }
  0x97   : > { %6575 = vmatpush1.bf16.msra.mxu0 %v9492_v29  ;;  %7263 = vmatpush1.bf16.msra.mxu1 %v9495_v30  ;;  %v9582_v29 = vld [vmem:[%s14143_s1 + $0x660] ss:$16 sps:$4 sm:$0xff]   ;;  %v9585_v30 = vld [vmem:[%s14143_s1 + $0x668] ss:$16 sps:$4 sm:$0xff]  }
  0x98   : > { %6576 = vmatprep.subr.bf16.mxu0 %v9500_v31  ;;  %7264 = vmatprep.subr.bf16.mxu1 %v9503_v32  ;;  %v9590_v31 = vld [vmem:[%s14143_s1 + $0x684] ss:$16 sps:$4 sm:$0xff]   ;;  %v9593_v32 = vld [vmem:[%s14143_s1 + $0x68c] ss:$16 sps:$4 sm:$0xff]  }
  0x9b   : > { %6577 = vmatpush1.bf16.msra.mxu0 %v9498_v33  ;;  %7265 = vmatpush1.bf16.msra.mxu1 %v9501_v34  ;;  %v9588_v33 = vld [vmem:[%s14143_s1 + $0x680] ss:$16 sps:$4 sm:$0xff]   ;;  %v9591_v34 = vld [vmem:[%s14143_s1 + $0x688] ss:$16 sps:$4 sm:$0xff]  }
  0x9c   : > { %6578 = vmatprep.subr.bf16.mxu0 %v9506_v35  ;;  %7266 = vmatprep.subr.bf16.mxu1 %v9509_v36  ;;  %v9596_v35 = vld [vmem:[%s14143_s1 + $0x6a4] ss:$16 sps:$4 sm:$0xff]   ;;  %v9599_v36 = vld [vmem:[%s14143_s1 + $0x6ac] ss:$16 sps:$4 sm:$0xff]  }
  0x9f   : > { %6579 = vmatpush1.bf16.msra.mxu0 %v9504_v37  ;;  %7267 = vmatpush1.bf16.msra.mxu1 %v9507_v38  ;;  %v9594_v37 = vld [vmem:[%s14143_s1 + $0x6a0] ss:$16 sps:$4 sm:$0xff]   ;;  %v9597_v38 = vld [vmem:[%s14143_s1 + $0x6a8] ss:$16 sps:$4 sm:$0xff]  }
  0xa0   : > { %6580 = vmatprep.subr.bf16.mxu0 %v9512_v39  ;;  %7268 = vmatprep.subr.bf16.mxu1 %v9515_v40  ;;  %v9602_v39 = vld [vmem:[%s14143_s1 + $0x6c4] ss:$16 sps:$4 sm:$0xff]   ;;  %v9605_v40 = vld [vmem:[%s14143_s1 + $0x6cc] ss:$16 sps:$4 sm:$0xff]  }
  0xa3   : > { %6581 = vmatpush1.bf16.msra.mxu0 %v9510_v41  ;;  %7269 = vmatpush1.bf16.msra.mxu1 %v9513_v42  ;;  %v9600_v41 = vld [vmem:[%s14143_s1 + $0x6c0] ss:$16 sps:$4 sm:$0xff]   ;;  %v9603_v42 = vld [vmem:[%s14143_s1 + $0x6c8] ss:$16 sps:$4 sm:$0xff]  }
  0xa4   : > { %6582 = vmatprep.subr.bf16.mxu0 %v9518_v43  ;;  %7270 = vmatprep.subr.bf16.mxu1 %v9521_v44  ;;  %v9608_v43 = vld [vmem:[%s14143_s1 + $0x6e4] ss:$16 sps:$4 sm:$0xff]   ;;  %v9611_v44 = vld [vmem:[%s14143_s1 + $0x6ec] ss:$16 sps:$4 sm:$0xff]  }
  0xa7   : > { %6583 = vmatpush1.bf16.msra.mxu0 %v9516_v45  ;;  %7271 = vmatpush1.bf16.msra.mxu1 %v9519_v46  ;;  %v9606_v45 = vld [vmem:[%s14143_s1 + $0x6e0] ss:$16 sps:$4 sm:$0xff]   ;;  %v9609_v46 = vld [vmem:[%s14143_s1 + $0x6e8] ss:$16 sps:$4 sm:$0xff]  }
  0xa8   : > { %6584 = vmatprep.subr.bf16.mxu0 %v9524_v47  ;;  %7272 = vmatprep.subr.bf16.mxu1 %v9527_v48  ;;  %v9614_v47 = vld [vmem:[%s14143_s1 + $0x704] ss:$16 sps:$4 sm:$0xff]   ;;  %v9617_v48 = vld [vmem:[%s14143_s1 + $0x70c] ss:$16 sps:$4 sm:$0xff]  }
  0xab   : > { %6585 = vmatpush1.bf16.msra.mxu0 %v9522_v49  ;;  %7273 = vmatpush1.bf16.msra.mxu1 %v9525_v50  ;;  %v9612_v49 = vld [vmem:[%s14143_s1 + $0x700] ss:$16 sps:$4 sm:$0xff]   ;;  %v9615_v50 = vld [vmem:[%s14143_s1 + $0x708] ss:$16 sps:$4 sm:$0xff]  }
  0xac   : > { %6586 = vmatprep.subr.bf16.mxu0 %v9530_v51  ;;  %7274 = vmatprep.subr.bf16.mxu1 %v9533_v52  ;;  %v9620_v51 = vld [vmem:[%s14143_s1 + $0x724] ss:$16 sps:$4 sm:$0xff]   ;;  %v9623_v52 = vld [vmem:[%s14143_s1 + $0x72c] ss:$16 sps:$4 sm:$0xff]  }
  0xaf   : > { %6587 = vmatpush1.bf16.msra.mxu0 %v9528_v53  ;;  %7275 = vmatpush1.bf16.msra.mxu1 %v9531_v54  ;;  %v9618_v53 = vld [vmem:[%s14143_s1 + $0x720] ss:$16 sps:$4 sm:$0xff]   ;;  %v9621_v54 = vld [vmem:[%s14143_s1 + $0x728] ss:$16 sps:$4 sm:$0xff]  }
  0xb0   : > { %6588 = vmatprep.subr.bf16.mxu0 %v9536_v55  ;;  %7276 = vmatprep.subr.bf16.mxu1 %v9539_v56  ;;  %v9626_v55 = vld [vmem:[%s14143_s1 + $0x744] ss:$16 sps:$4 sm:$0xff]   ;;  %v9629_v56 = vld [vmem:[%s14143_s1 + $0x74c] ss:$16 sps:$4 sm:$0xff]  }
  0xb3   : > { %6589 = vmatpush1.bf16.msra.mxu0 %v9534_v57  ;;  %7277 = vmatpush1.bf16.msra.mxu1 %v9537_v58  ;;  %v9624_v57 = vld [vmem:[%s14143_s1 + $0x740] ss:$16 sps:$4 sm:$0xff]   ;;  %v9627_v58 = vld [vmem:[%s14143_s1 + $0x748] ss:$16 sps:$4 sm:$0xff]  }
  0xb4   : > { %6590 = vmatprep.subr.bf16.mxu0 %v9542_v59  ;;  %7278 = vmatprep.subr.bf16.mxu1 %v9545_v60  ;;  %v9632_v59 = vld [vmem:[%s14143_s1 + $0x764] ss:$16 sps:$4 sm:$0xff]   ;;  %v9635_v60 = vld [vmem:[%s14143_s1 + $0x76c] ss:$16 sps:$4 sm:$0xff]  }
  0xb7   : > { %6591 = vmatpush1.bf16.msra.mxu0 %v9540_v61  ;;  %7279 = vmatpush1.bf16.msra.mxu1 %v9543_v62  ;;  %v9630_v61 = vld [vmem:[%s14143_s1 + $0x760] ss:$16 sps:$4 sm:$0xff]   ;;  %v9633_v62 = vld [vmem:[%s14143_s1 + $0x768] ss:$16 sps:$4 sm:$0xff]  }
  0xb8   : > { %6592 = vmatprep.subr.bf16.mxu0 %v9548_v63  ;;  %7280 = vmatprep.subr.bf16.mxu1 %v9551_v0  ;;  %v9638_v63 = vld [vmem:[%s14143_s1 + $0x784] ss:$16 sps:$4 sm:$0xff]   ;;  %v9641_v0 = vld [vmem:[%s14143_s1 + $0x78c] ss:$16 sps:$4 sm:$0xff]  }
  0xbb   : > { %6593 = vmatpush1.bf16.msra.mxu0 %v9546_v1  ;;  %7281 = vmatpush1.bf16.msra.mxu1 %v9549_v2  ;;  %v9636_v1 = vld [vmem:[%s14143_s1 + $0x780] ss:$16 sps:$4 sm:$0xff]   ;;  %v9639_v2 = vld [vmem:[%s14143_s1 + $0x788] ss:$16 sps:$4 sm:$0xff]  }
  0xbc   : > { %6594 = vmatprep.subr.bf16.mxu0 %v9554_v3  ;;  %7282 = vmatprep.subr.bf16.mxu1 %v9557_v4  ;;  %v9644_v3 = vld [vmem:[%s14143_s1 + $0x7a4] ss:$16 sps:$4 sm:$0xff]   ;;  %v9647_v4 = vld [vmem:[%s14143_s1 + $0x7ac] ss:$16 sps:$4 sm:$0xff]  }
  0xbf   : > { %6595 = vmatpush1.bf16.msra.mxu0 %v9552_v5  ;;  %7283 = vmatpush1.bf16.msra.mxu1 %v9555_v6  ;;  %v9642_v5 = vld [vmem:[%s14143_s1 + $0x7a0] ss:$16 sps:$4 sm:$0xff]   ;;  %v9645_v6 = vld [vmem:[%s14143_s1 + $0x7a8] ss:$16 sps:$4 sm:$0xff]  }
  0xc0   : > { %6596 = vmatprep.subr.bf16.mxu0 %v9560_v7  ;;  %7284 = vmatprep.subr.bf16.mxu1 %v9563_v8  ;;  %v9650_v7 = vld [vmem:[%s14143_s1 + $0x7c4] ss:$16 sps:$4 sm:$0xff]   ;;  %v9653_v8 = vld [vmem:[%s14143_s1 + $0x7cc] ss:$16 sps:$4 sm:$0xff]  }
  0xc3   : > { %6597 = vmatpush1.bf16.msra.mxu0 %v9558_v9  ;;  %7285 = vmatpush1.bf16.msra.mxu1 %v9561_v10  ;;  %v9648_v9 = vld [vmem:[%s14143_s1 + $0x7c0] ss:$16 sps:$4 sm:$0xff]   ;;  %v9651_v10 = vld [vmem:[%s14143_s1 + $0x7c8] ss:$16 sps:$4 sm:$0xff]  }
  0xc4   : > { %6609 = vmatprep.subr.bf16.mxu0 %v9566_v11  ;;  %7297 = vmatprep.subr.bf16.mxu1 %v9569_v12  ;;  %v9656_v11 = vld [vmem:[%s14143_s1 + $0x7e4] ss:$16 sps:$4 sm:$0xff]   ;;  %v9659_v12 = vld [vmem:[%s14143_s1 + $0x7ec] ss:$16 sps:$4 sm:$0xff]  }
  0xc6   : > { %6599 = vmatmul.mubr.bf16.vlgmr.msra.gmra.mrb[0].mxu0 %v8084_v17  ;;  %7287 = vmatmul.mubr.bf16.vlgmr.msra.gmra.mrb[0].mxu1 %v8084_v17  ;;  %v9662_v17 = vld [vmem:[%s14143_s1 + $0x804] ss:$16 sps:$4 sm:$0xff]  }
  0xc7   : > { %6610 = vmatpush1.bf16.msra.mxu0 %v9564_v13  ;;  %7298 = vmatpush1.bf16.msra.mxu1 %v9567_v16  ;;  %v9654_v13 = vld [vmem:[%s14143_s1 + $0x7e0] ss:$16 sps:$4 sm:$0xff]   ;;  %v9657_v16 = vld [vmem:[%s14143_s1 + $0x7e8] ss:$16 sps:$4 sm:$0xff]  }
  0xc8   : > { %6611 = vmatprep.subr.bf16.mxu0 %v9572_v20  ;;  %7299 = vmatprep.subr.bf16.mxu1 %v9575_v21  ;;  %v9665_v20 = vld [vmem:[%s14143_s1 + $0x80c] ss:$16 sps:$4 sm:$0xff]   ;;  %v11668_v21 = vld [vmem:[%s10993_s24 + $0x20] sm:$0xff] }
  0xc9   : > { %6641 = vmatprep.mubr.bf16.mxu0 %v8087_v22  ;;  %7329 = vmatprep.mubr.bf16.mxu1 %v8087_v22  ;;  %v8086_v22 = vcombine.low %v11474_v18, %v11477_v19  ;;  %v9671_v18 = vld [vmem:[%s14143_s1 + $0x82c] ss:$16 sps:$4 sm:$0xff]  }
  0xcb   : > { %6612 = vmatpush1.bf16.msra.mxu0 %v9570_v14  ;;  %7300 = vmatpush1.bf16.msra.mxu1 %v9573_v15  ;;  %v11673_v14 = vld [vmem:[%s10993_s24 + $0xa0] sm:$0xff] }
  0xcc   : > { %6613 = vmatprep.subr.bf16.mxu0 %v9578_v23  ;;  %7301 = vmatprep.subr.bf16.mxu1 %v9581_v24  ;;  %v9660_v15 = vld [vmem:[%s14143_s1 + $0x800] ss:$16 sps:$4 sm:$0xff]   ;;  %v9663_v23 = vld [vmem:[%s14143_s1 + $0x808] ss:$16 sps:$4 sm:$0xff]   ;;  %v9668_v24 = vld [vmem:[%s14143_s1 + $0x824] ss:$16 sps:$4 sm:$0xff]   ;;  %v8089_v19 = vcombine.high %v11668_v21, %v11673_v14 }
  0xcf   : > { %6614 = vmatpush1.bf16.msra.mxu0 %v9576_v25  ;;  %7302 = vmatpush1.bf16.msra.mxu1 %v9579_v26  ;;  %v9666_v25 = vld [vmem:[%s14143_s1 + $0x820] ss:$16 sps:$4 sm:$0xff]   ;;  %v9669_v26 = vld [vmem:[%s14143_s1 + $0x828] ss:$16 sps:$4 sm:$0xff]  }
  0xd0   : > { %6615 = vmatprep.subr.bf16.mxu0 %v9584_v27  ;;  %7303 = vmatprep.subr.bf16.mxu1 %v9587_v28  ;;  %v9674_v27 = vld [vmem:[%s14143_s1 + $0x844] ss:$16 sps:$4 sm:$0xff]   ;;  %v9677_v28 = vld [vmem:[%s14143_s1 + $0x84c] ss:$16 sps:$4 sm:$0xff]  }
  0xd3   : > { %6616 = vmatpush1.bf16.msra.mxu0 %v9582_v29  ;;  %7304 = vmatpush1.bf16.msra.mxu1 %v9585_v30  ;;  %v9672_v29 = vld [vmem:[%s14143_s1 + $0x840] ss:$16 sps:$4 sm:$0xff]   ;;  %v9675_v30 = vld [vmem:[%s14143_s1 + $0x848] ss:$16 sps:$4 sm:$0xff]  }
  0xd4   : > { %6617 = vmatprep.subr.bf16.mxu0 %v9590_v31  ;;  %7305 = vmatprep.subr.bf16.mxu1 %v9593_v32  ;;  %v9680_v31 = vld [vmem:[%s14143_s1 + $0x864] ss:$16 sps:$4 sm:$0xff]   ;;  %v9683_v32 = vld [vmem:[%s14143_s1 + $0x86c] ss:$16 sps:$4 sm:$0xff]  }
  0xd7   : > { %6618 = vmatpush1.bf16.msra.mxu0 %v9588_v33  ;;  %7306 = vmatpush1.bf16.msra.mxu1 %v9591_v34  ;;  %v9678_v33 = vld [vmem:[%s14143_s1 + $0x860] ss:$16 sps:$4 sm:$0xff]   ;;  %v9681_v34 = vld [vmem:[%s14143_s1 + $0x868] ss:$16 sps:$4 sm:$0xff]  }
  0xd8   : > { %6619 = vmatprep.subr.bf16.mxu0 %v9596_v35  ;;  %7307 = vmatprep.subr.bf16.mxu1 %v9599_v36  ;;  %v9686_v35 = vld [vmem:[%s14143_s1 + $0x884] ss:$16 sps:$4 sm:$0xff]   ;;  %v9689_v36 = vld [vmem:[%s14143_s1 + $0x88c] ss:$16 sps:$4 sm:$0xff]  }
  0xdb   : > { %6620 = vmatpush1.bf16.msra.mxu0 %v9594_v37  ;;  %7308 = vmatpush1.bf16.msra.mxu1 %v9597_v38  ;;  %v9684_v37 = vld [vmem:[%s14143_s1 + $0x880] ss:$16 sps:$4 sm:$0xff]   ;;  %v9687_v38 = vld [vmem:[%s14143_s1 + $0x888] ss:$16 sps:$4 sm:$0xff]  }
  0xdc   : > { %6621 = vmatprep.subr.bf16.mxu0 %v9602_v39  ;;  %7309 = vmatprep.subr.bf16.mxu1 %v9605_v40  ;;  %v9692_v39 = vld [vmem:[%s14143_s1 + $0x8a4] ss:$16 sps:$4 sm:$0xff]   ;;  %v9695_v40 = vld [vmem:[%s14143_s1 + $0x8ac] ss:$16 sps:$4 sm:$0xff]  }
  0xdf   : > { %6622 = vmatpush1.bf16.msra.mxu0 %v9600_v41  ;;  %7310 = vmatpush1.bf16.msra.mxu1 %v9603_v42  ;;  %v9690_v41 = vld [vmem:[%s14143_s1 + $0x8a0] ss:$16 sps:$4 sm:$0xff]   ;;  %v9693_v42 = vld [vmem:[%s14143_s1 + $0x8a8] ss:$16 sps:$4 sm:$0xff]  }
  0xe0   : > { %6623 = vmatprep.subr.bf16.mxu0 %v9608_v43  ;;  %7311 = vmatprep.subr.bf16.mxu1 %v9611_v44  ;;  %v9698_v43 = vld [vmem:[%s14143_s1 + $0x8c4] ss:$16 sps:$4 sm:$0xff]   ;;  %v9701_v44 = vld [vmem:[%s14143_s1 + $0x8cc] ss:$16 sps:$4 sm:$0xff]  }
  0xe3   : > { %6624 = vmatpush1.bf16.msra.mxu0 %v9606_v45  ;;  %7312 = vmatpush1.bf16.msra.mxu1 %v9609_v46  ;;  %v9696_v45 = vld [vmem:[%s14143_s1 + $0x8c0] ss:$16 sps:$4 sm:$0xff]   ;;  %v9699_v46 = vld [vmem:[%s14143_s1 + $0x8c8] ss:$16 sps:$4 sm:$0xff]  }
  0xe4   : > { %6625 = vmatprep.subr.bf16.mxu0 %v9614_v47  ;;  %7313 = vmatprep.subr.bf16.mxu1 %v9617_v48  ;;  %v9704_v47 = vld [vmem:[%s14143_s1 + $0x8e4] ss:$16 sps:$4 sm:$0xff]   ;;  %v9707_v48 = vld [vmem:[%s14143_s1 + $0x8ec] ss:$16 sps:$4 sm:$0xff]  }
  0xe7   : > { %6626 = vmatpush1.bf16.msra.mxu0 %v9612_v49  ;;  %7314 = vmatpush1.bf16.msra.mxu1 %v9615_v50  ;;  %v9702_v49 = vld [vmem:[%s14143_s1 + $0x8e0] ss:$16 sps:$4 sm:$0xff]   ;;  %v9705_v50 = vld [vmem:[%s14143_s1 + $0x8e8] ss:$16 sps:$4 sm:$0xff]  }
  0xe8   : > { %6627 = vmatprep.subr.bf16.mxu0 %v9620_v51  ;;  %7315 = vmatprep.subr.bf16.mxu1 %v9623_v52  ;;  %v9710_v51 = vld [vmem:[%s14143_s1 + $0x904] ss:$16 sps:$4 sm:$0xff]   ;;  %v9713_v52 = vld [vmem:[%s14143_s1 + $0x90c] ss:$16 sps:$4 sm:$0xff]  }
  0xeb   : > { %6628 = vmatpush1.bf16.msra.mxu0 %v9618_v53  ;;  %7316 = vmatpush1.bf16.msra.mxu1 %v9621_v54  ;;  %v9708_v53 = vld [vmem:[%s14143_s1 + $0x900] ss:$16 sps:$4 sm:$0xff]   ;;  %v9711_v54 = vld [vmem:[%s14143_s1 + $0x908] ss:$16 sps:$4 sm:$0xff]  }
  0xec   : > { %6629 = vmatprep.subr.bf16.mxu0 %v9626_v55  ;;  %7317 = vmatprep.subr.bf16.mxu1 %v9629_v56  ;;  %v9716_v55 = vld [vmem:[%s14143_s1 + $0x924] ss:$16 sps:$4 sm:$0xff]   ;;  %v9719_v56 = vld [vmem:[%s14143_s1 + $0x92c] ss:$16 sps:$4 sm:$0xff]  }
  0xef   : > { %6630 = vmatpush1.bf16.msra.mxu0 %v9624_v57  ;;  %7318 = vmatpush1.bf16.msra.mxu1 %v9627_v58  ;;  %v9714_v57 = vld [vmem:[%s14143_s1 + $0x920] ss:$16 sps:$4 sm:$0xff]   ;;  %v9717_v58 = vld [vmem:[%s14143_s1 + $0x928] ss:$16 sps:$4 sm:$0xff]  }
  0xf0   : > { %6631 = vmatprep.subr.bf16.mxu0 %v9632_v59  ;;  %7319 = vmatprep.subr.bf16.mxu1 %v9635_v60  ;;  %v9722_v59 = vld [vmem:[%s14143_s1 + $0x944] ss:$16 sps:$4 sm:$0xff]   ;;  %v9725_v60 = vld [vmem:[%s14143_s1 + $0x94c] ss:$16 sps:$4 sm:$0xff]  }
  0xf3   : > { %6632 = vmatpush1.bf16.msra.mxu0 %v9630_v61  ;;  %7320 = vmatpush1.bf16.msra.mxu1 %v9633_v62  ;;  %v9720_v61 = vld [vmem:[%s14143_s1 + $0x940] ss:$16 sps:$4 sm:$0xff]   ;;  %v9723_v62 = vld [vmem:[%s14143_s1 + $0x948] ss:$16 sps:$4 sm:$0xff]  }
  0xf4   : > { %6633 = vmatprep.subr.bf16.mxu0 %v9638_v63  ;;  %7321 = vmatprep.subr.bf16.mxu1 %v9641_v0  ;;  %v9728_v63 = vld [vmem:[%s14143_s1 + $0x964] ss:$16 sps:$4 sm:$0xff]   ;;  %v9731_v0 = vld [vmem:[%s14143_s1 + $0x96c] ss:$16 sps:$4 sm:$0xff]  }
  0xf7   : > { %6634 = vmatpush1.bf16.msra.mxu0 %v9636_v1  ;;  %7322 = vmatpush1.bf16.msra.mxu1 %v9639_v2  ;;  %v9726_v1 = vld [vmem:[%s14143_s1 + $0x960] ss:$16 sps:$4 sm:$0xff]   ;;  %v9729_v2 = vld [vmem:[%s14143_s1 + $0x968] ss:$16 sps:$4 sm:$0xff]  }
  0xf8   : > { %6635 = vmatprep.subr.bf16.mxu0 %v9644_v3  ;;  %7323 = vmatprep.subr.bf16.mxu1 %v9647_v4  ;;  %v9734_v3 = vld [vmem:[%s14143_s1 + $0x984] ss:$16 sps:$4 sm:$0xff]   ;;  %v9737_v4 = vld [vmem:[%s14143_s1 + $0x98c] ss:$16 sps:$4 sm:$0xff]  }
  0xfb   : > { %6636 = vmatpush1.bf16.msra.mxu0 %v9642_v5  ;;  %7324 = vmatpush1.bf16.msra.mxu1 %v9645_v6  ;;  %v9732_v5 = vld [vmem:[%s14143_s1 + $0x980] ss:$16 sps:$4 sm:$0xff]   ;;  %v9735_v6 = vld [vmem:[%s14143_s1 + $0x988] ss:$16 sps:$4 sm:$0xff]  }
  0xfc   : > { %6637 = vmatprep.subr.bf16.mxu0 %v9650_v7  ;;  %7325 = vmatprep.subr.bf16.mxu1 %v9653_v8  ;;  %v9740_v7 = vld [vmem:[%s14143_s1 + $0x9a4] ss:$16 sps:$4 sm:$0xff]   ;;  %v9743_v8 = vld [vmem:[%s14143_s1 + $0x9ac] ss:$16 sps:$4 sm:$0xff]  }
  0xff   : > { %6638 = vmatpush1.bf16.msra.mxu0 %v9648_v9  ;;  %7326 = vmatpush1.bf16.msra.mxu1 %v9651_v10  ;;  %v9738_v9 = vld [vmem:[%s14143_s1 + $0x9a0] ss:$16 sps:$4 sm:$0xff]   ;;  %v9741_v10 = vld [vmem:[%s14143_s1 + $0x9a8] ss:$16 sps:$4 sm:$0xff]  }
 0x100   : > { %6639 = vmatprep.subr.bf16.mxu0 %v9656_v11  ;;  %7327 = vmatprep.subr.bf16.mxu1 %v9659_v12  ;;  %v9746_v11 = vld [vmem:[%s14143_s1 + $0x9c4] ss:$16 sps:$4 sm:$0xff]   ;;  %v9749_v12 = vld [vmem:[%s14143_s1 + $0x9cc] ss:$16 sps:$4 sm:$0xff]  }
 0x103   : > { %6640 = vmatpush1.bf16.msra.mxu0 %v9654_v13  ;;  %7328 = vmatpush1.bf16.msra.mxu1 %v9657_v16  ;;  %v9744_v13 = vld [vmem:[%s14143_s1 + $0x9c0] ss:$16 sps:$4 sm:$0xff]   ;;  %v9747_v16 = vld [vmem:[%s14143_s1 + $0x9c8] ss:$16 sps:$4 sm:$0xff]  }
 0x104   : > { %6652 = vmatprep.subr.bf16.mxu0 %v9662_v17  ;;  %7340 = vmatprep.subr.bf16.mxu1 %v9665_v20  ;;  %v9752_v17 = vld [vmem:[%s14143_s1 + $0x9e4] ss:$16 sps:$4 sm:$0xff]   ;;  %v9755_v20 = vld [vmem:[%s14143_s1 + $0x9ec] ss:$16 sps:$4 sm:$0xff]  }
 0x106   : > { %6642 = vmatmul.mubr.bf16.vlgmr.msra.gmra.mrb[0].mxu0 %v8086_v22  ;;  %7330 = vmatmul.mubr.bf16.vlgmr.msra.gmra.mrb[0].mxu1 %v8086_v22  ;;  %v9750_v22 = vld [vmem:[%s14143_s1 + $0x9e0] ss:$16 sps:$4 sm:$0xff]  }
 0x107   : > { %6653 = vmatpush1.bf16.msra.mxu0 %v9660_v15  ;;  %7341 = vmatpush1.bf16.msra.mxu1 %v9663_v23  ;;  %v9753_v15 = vld [vmem:[%s14143_s1 + $0x9e8] ss:$16 sps:$4 sm:$0xff]   ;;  %v9758_v23 = vld [vmem:[%s14143_s1 + $0xa04] ss:$16 sps:$4 sm:$0xff]  }
 0x108   : > { %6654 = vmatprep.subr.bf16.mxu0 %v9668_v24  ;;  %7342 = vmatprep.subr.bf16.mxu1 %v9671_v18  ;;  %v9761_v24 = vld [vmem:[%s14143_s1 + $0xa0c] ss:$16 sps:$4 sm:$0xff]  }
 0x109   : > { %6684 = vmatprep.mubr.bf16.mxu0 %v8089_v19  ;;  %7372 = vmatprep.mubr.bf16.mxu1 %v8089_v19  ;;  %v11870_v18 = vld [vmem:[%s10993_s24 + $0x28] sm:$0xff] }
 0x10a   : > { %v11873_v19 = vld [vmem:[%s10993_s24 + $0xa8] sm:$0xff] }
 0x10b   : > { %6655 = vmatpush1.bf16.msra.mxu0 %v9666_v25  ;;  %7343 = vmatpush1.bf16.msra.mxu1 %v9669_v26  ;;  %v8088_v25 = vcombine.low %v11668_v21, %v11673_v14  ;;  %v9756_v26 = vld [vmem:[%s14143_s1 + $0xa00] ss:$16 sps:$4 sm:$0xff]   ;;  %v9767_v21 = vld [vmem:[%s14143_s1 + $0xa2c] ss:$16 sps:$4 sm:$0xff]   ;;  %v8091_v14 = vcombine.high %v11870_v18, %v11873_v19 }
 0x10c   : > { %6656 = vmatprep.subr.bf16.mxu0 %v9674_v27  ;;  %7344 = vmatprep.subr.bf16.mxu1 %v9677_v28  ;;  %v9759_v27 = vld [vmem:[%s14143_s1 + $0xa08] ss:$16 sps:$4 sm:$0xff]   ;;  %v9764_v28 = vld [vmem:[%s14143_s1 + $0xa24] ss:$16 sps:$4 sm:$0xff]  }
 0x10f   : > { %6657 = vmatpush1.bf16.msra.mxu0 %v9672_v29  ;;  %7345 = vmatpush1.bf16.msra.mxu1 %v9675_v30  ;;  %v9762_v29 = vld [vmem:[%s14143_s1 + $0xa20] ss:$16 sps:$4 sm:$0xff]   ;;  %v9765_v30 = vld [vmem:[%s14143_s1 + $0xa28] ss:$16 sps:$4 sm:$0xff]  }
 0x110   : > { %6658 = vmatprep.subr.bf16.mxu0 %v9680_v31  ;;  %7346 = vmatprep.subr.bf16.mxu1 %v9683_v32  ;;  %v9770_v31 = vld [vmem:[%s14143_s1 + $0xa44] ss:$16 sps:$4 sm:$0xff]   ;;  %v9773_v32 = vld [vmem:[%s14143_s1 + $0xa4c] ss:$16 sps:$4 sm:$0xff]  }
 0x113   : > { %6659 = vmatpush1.bf16.msra.mxu0 %v9678_v33  ;;  %7347 = vmatpush1.bf16.msra.mxu1 %v9681_v34  ;;  %v9768_v33 = vld [vmem:[%s14143_s1 + $0xa40] ss:$16 sps:$4 sm:$0xff]   ;;  %v9771_v34 = vld [vmem:[%s14143_s1 + $0xa48] ss:$16 sps:$4 sm:$0xff]  }
 0x114   : > { %6660 = vmatprep.subr.bf16.mxu0 %v9686_v35  ;;  %7348 = vmatprep.subr.bf16.mxu1 %v9689_v36  ;;  %v9776_v35 = vld [vmem:[%s14143_s1 + $0xa64] ss:$16 sps:$4 sm:$0xff]   ;;  %v9779_v36 = vld [vmem:[%s14143_s1 + $0xa6c] ss:$16 sps:$4 sm:$0xff]  }
 0x117   : > { %6661 = vmatpush1.bf16.msra.mxu0 %v9684_v37  ;;  %7349 = vmatpush1.bf16.msra.mxu1 %v9687_v38  ;;  %v9774_v37 = vld [vmem:[%s14143_s1 + $0xa60] ss:$16 sps:$4 sm:$0xff]   ;;  %v9777_v38 = vld [vmem:[%s14143_s1 + $0xa68] ss:$16 sps:$4 sm:$0xff]  }
 0x118   : > { %6662 = vmatprep.subr.bf16.mxu0 %v9692_v39  ;;  %7350 = vmatprep.subr.bf16.mxu1 %v9695_v40  ;;  %v9782_v39 = vld [vmem:[%s14143_s1 + $0xa84] ss:$16 sps:$4 sm:$0xff]   ;;  %v9785_v40 = vld [vmem:[%s14143_s1 + $0xa8c] ss:$16 sps:$4 sm:$0xff]  }
 0x11b   : > { %6663 = vmatpush1.bf16.msra.mxu0 %v9690_v41  ;;  %7351 = vmatpush1.bf16.msra.mxu1 %v9693_v42  ;;  %v9780_v41 = vld [vmem:[%s14143_s1 + $0xa80] ss:$16 sps:$4 sm:$0xff]   ;;  %v9783_v42 = vld [vmem:[%s14143_s1 + $0xa88] ss:$16 sps:$4 sm:$0xff]  }
 0x11c   : > { %6664 = vmatprep.subr.bf16.mxu0 %v9698_v43  ;;  %7352 = vmatprep.subr.bf16.mxu1 %v9701_v44  ;;  %v9788_v43 = vld [vmem:[%s14143_s1 + $0xaa4] ss:$16 sps:$4 sm:$0xff]   ;;  %v9791_v44 = vld [vmem:[%s14143_s1 + $0xaac] ss:$16 sps:$4 sm:$0xff]  }
 0x11f   : > { %6665 = vmatpush1.bf16.msra.mxu0 %v9696_v45  ;;  %7353 = vmatpush1.bf16.msra.mxu1 %v9699_v46  ;;  %v9786_v45 = vld [vmem:[%s14143_s1 + $0xaa0] ss:$16 sps:$4 sm:$0xff]   ;;  %v9789_v46 = vld [vmem:[%s14143_s1 + $0xaa8] ss:$16 sps:$4 sm:$0xff]  }
 0x120   : > { %6666 = vmatprep.subr.bf16.mxu0 %v9704_v47  ;;  %7354 = vmatprep.subr.bf16.mxu1 %v9707_v48  ;;  %v9794_v47 = vld [vmem:[%s14143_s1 + $0xac4] ss:$16 sps:$4 sm:$0xff]   ;;  %v9797_v48 = vld [vmem:[%s14143_s1 + $0xacc] ss:$16 sps:$4 sm:$0xff]  }
 0x123   : > { %6667 = vmatpush1.bf16.msra.mxu0 %v9702_v49  ;;  %7355 = vmatpush1.bf16.msra.mxu1 %v9705_v50  ;;  %v9792_v49 = vld [vmem:[%s14143_s1 + $0xac0] ss:$16 sps:$4 sm:$0xff]   ;;  %v9795_v50 = vld [vmem:[%s14143_s1 + $0xac8] ss:$16 sps:$4 sm:$0xff]  }
 0x124   : > { %6668 = vmatprep.subr.bf16.mxu0 %v9710_v51  ;;  %7356 = vmatprep.subr.bf16.mxu1 %v9713_v52  ;;  %v9800_v51 = vld [vmem:[%s14143_s1 + $0xae4] ss:$16 sps:$4 sm:$0xff]   ;;  %v9803_v52 = vld [vmem:[%s14143_s1 + $0xaec] ss:$16 sps:$4 sm:$0xff]  }
 0x127   : > { %6669 = vmatpush1.bf16.msra.mxu0 %v9708_v53  ;;  %7357 = vmatpush1.bf16.msra.mxu1 %v9711_v54  ;;  %v9798_v53 = vld [vmem:[%s14143_s1 + $0xae0] ss:$16 sps:$4 sm:$0xff]   ;;  %v9801_v54 = vld [vmem:[%s14143_s1 + $0xae8] ss:$16 sps:$4 sm:$0xff]  }
 0x128   : > { %6670 = vmatprep.subr.bf16.mxu0 %v9716_v55  ;;  %7358 = vmatprep.subr.bf16.mxu1 %v9719_v56  ;;  %v9806_v55 = vld [vmem:[%s14143_s1 + $0xb04] ss:$16 sps:$4 sm:$0xff]   ;;  %v9809_v56 = vld [vmem:[%s14143_s1 + $0xb0c] ss:$16 sps:$4 sm:$0xff]  }
 0x12b   : > { %6671 = vmatpush1.bf16.msra.mxu0 %v9714_v57  ;;  %7359 = vmatpush1.bf16.msra.mxu1 %v9717_v58  ;;  %v9804_v57 = vld [vmem:[%s14143_s1 + $0xb00] ss:$16 sps:$4 sm:$0xff]   ;;  %v9807_v58 = vld [vmem:[%s14143_s1 + $0xb08] ss:$16 sps:$4 sm:$0xff]  }
 0x12c   : > { %6672 = vmatprep.subr.bf16.mxu0 %v9722_v59  ;;  %7360 = vmatprep.subr.bf16.mxu1 %v9725_v60  ;;  %v9812_v59 = vld [vmem:[%s14143_s1 + $0xb24] ss:$16 sps:$4 sm:$0xff]   ;;  %v9815_v60 = vld [vmem:[%s14143_s1 + $0xb2c] ss:$16 sps:$4 sm:$0xff]  }
 0x12f   : > { %6673 = vmatpush1.bf16.msra.mxu0 %v9720_v61  ;;  %7361 = vmatpush1.bf16.msra.mxu1 %v9723_v62  ;;  %v9810_v61 = vld [vmem:[%s14143_s1 + $0xb20] ss:$16 sps:$4 sm:$0xff]   ;;  %v9813_v62 = vld [vmem:[%s14143_s1 + $0xb28] ss:$16 sps:$4 sm:$0xff]  }
 0x130   : > { %6674 = vmatprep.subr.bf16.mxu0 %v9728_v63  ;;  %7362 = vmatprep.subr.bf16.mxu1 %v9731_v0  ;;  %v9818_v63 = vld [vmem:[%s14143_s1 + $0xb44] ss:$16 sps:$4 sm:$0xff]   ;;  %v9821_v0 = vld [vmem:[%s14143_s1 + $0xb4c] ss:$16 sps:$4 sm:$0xff]  }
 0x133   : > { %6675 = vmatpush1.bf16.msra.mxu0 %v9726_v1  ;;  %7363 = vmatpush1.bf16.msra.mxu1 %v9729_v2  ;;  %v9816_v1 = vld [vmem:[%s14143_s1 + $0xb40] ss:$16 sps:$4 sm:$0xff]   ;;  %v9819_v2 = vld [vmem:[%s14143_s1 + $0xb48] ss:$16 sps:$4 sm:$0xff]  }
 0x134   : > { %6676 = vmatprep.subr.bf16.mxu0 %v9734_v3  ;;  %7364 = vmatprep.subr.bf16.mxu1 %v9737_v4  ;;  %v9824_v3 = vld [vmem:[%s14143_s1 + $0xb64] ss:$16 sps:$4 sm:$0xff]   ;;  %v9827_v4 = vld [vmem:[%s14143_s1 + $0xb6c] ss:$16 sps:$4 sm:$0xff]  }
 0x137   : > { %6677 = vmatpush1.bf16.msra.mxu0 %v9732_v5  ;;  %7365 = vmatpush1.bf16.msra.mxu1 %v9735_v6  ;;  %v9822_v5 = vld [vmem:[%s14143_s1 + $0xb60] ss:$16 sps:$4 sm:$0xff]   ;;  %v9825_v6 = vld [vmem:[%s14143_s1 + $0xb68] ss:$16 sps:$4 sm:$0xff]  }
 0x138   : > { %6678 = vmatprep.subr.bf16.mxu0 %v9740_v7  ;;  %7366 = vmatprep.subr.bf16.mxu1 %v9743_v8  ;;  %v9830_v7 = vld [vmem:[%s14143_s1 + $0xb84] ss:$16 sps:$4 sm:$0xff]   ;;  %v9833_v8 = vld [vmem:[%s14143_s1 + $0xb8c] ss:$16 sps:$4 sm:$0xff]  }
 0x13b   : > { %6679 = vmatpush1.bf16.msra.mxu0 %v9738_v9  ;;  %7367 = vmatpush1.bf16.msra.mxu1 %v9741_v10  ;;  %v9828_v9 = vld [vmem:[%s14143_s1 + $0xb80] ss:$16 sps:$4 sm:$0xff]   ;;  %v9831_v10 = vld [vmem:[%s14143_s1 + $0xb88] ss:$16 sps:$4 sm:$0xff]  }
 0x13c   : > { %6680 = vmatprep.subr.bf16.mxu0 %v9746_v11  ;;  %7368 = vmatprep.subr.bf16.mxu1 %v9749_v12  ;;  %v9836_v11 = vld [vmem:[%s14143_s1 + $0xba4] ss:$16 sps:$4 sm:$0xff]   ;;  %v9839_v12 = vld [vmem:[%s14143_s1 + $0xbac] ss:$16 sps:$4 sm:$0xff]  }
 0x13f   : > { %6681 = vmatpush1.bf16.msra.mxu0 %v9744_v13  ;;  %7369 = vmatpush1.bf16.msra.mxu1 %v9747_v16  ;;  %v9834_v13 = vld [vmem:[%s14143_s1 + $0xba0] ss:$16 sps:$4 sm:$0xff]   ;;  %v9837_v16 = vld [vmem:[%s14143_s1 + $0xba8] ss:$16 sps:$4 sm:$0xff]  }
 0x140   : > { %6682 = vmatprep.subr.bf16.mxu0 %v9752_v17  ;;  %7370 = vmatprep.subr.bf16.mxu1 %v9755_v20  ;;  %v9842_v17 = vld [vmem:[%s14143_s1 + $0xbc4] ss:$16 sps:$4 sm:$0xff]   ;;  %v9845_v20 = vld [vmem:[%s14143_s1 + $0xbcc] ss:$16 sps:$4 sm:$0xff]  }
 0x143   : > { %6683 = vmatpush1.bf16.msra.mxu0 %v9750_v22  ;;  %7371 = vmatpush1.bf16.msra.mxu1 %v9753_v15  ;;  %v9840_v22 = vld [vmem:[%s14143_s1 + $0xbc0] ss:$16 sps:$4 sm:$0xff]   ;;  %v9843_v15 = vld [vmem:[%s14143_s1 + $0xbc8] ss:$16 sps:$4 sm:$0xff]  }
 0x144   : > { %6695 = vmatprep.subr.bf16.mxu0 %v9758_v23  ;;  %7383 = vmatprep.subr.bf16.mxu1 %v9761_v24  ;;  %v9848_v23 = vld [vmem:[%s14143_s1 + $0xbe4] ss:$16 sps:$4 sm:$0xff]   ;;  %v9851_v24 = vld [vmem:[%s14143_s1 + $0xbec] ss:$16 sps:$4 sm:$0xff]  }
 0x146   : > { %6685 = vmatmul.mubr.bf16.vlgmr.msra.gmra.mrb[0].mxu0 %v8088_v25  ;;  %7373 = vmatmul.mubr.bf16.vlgmr.msra.gmra.mrb[0].mxu1 %v8088_v25  ;;  %v9846_v25 = vld [vmem:[%s14143_s1 + $0xbe0] ss:$16 sps:$4 sm:$0xff]  }
 0x147   : > { %6696 = vmatpush1.bf16.msra.mxu0 %v9756_v26  ;;  %7384 = vmatpush1.bf16.msra.mxu1 %v9759_v27  ;;  %v9849_v26 = vld [vmem:[%s14143_s1 + $0xbe8] ss:$16 sps:$4 sm:$0xff]   ;;  %v9854_v27 = vld [vmem:[%s14143_s1 + $0xc04] ss:$16 sps:$4 sm:$0xff]  }
 0x148   : > { %6697 = vmatprep.subr.bf16.mxu0 %v9764_v28  ;;  %7385 = vmatprep.subr.bf16.mxu1 %v9767_v21  ;;  %v9857_v28 = vld [vmem:[%s14143_s1 + $0xc0c] ss:$16 sps:$4 sm:$0xff]   ;;  %v12072_v21 = vld [vmem:[%s10993_s24 + $0x30] sm:$0xff] }
 0x149   : > { %6727 = vmatprep.mubr.bf16.mxu0 %v8091_v14  ;;  %7415 = vmatprep.mubr.bf16.mxu1 %v8091_v14  ;;  %v12075_v14 = vld [vmem:[%s10993_s24 + $0xb0] sm:$0xff] }
 0x14b   : > { %6698 = vmatpush1.bf16.msra.mxu0 %v9762_v29  ;;  %7386 = vmatpush1.bf16.msra.mxu1 %v9765_v30  ;;  %v8090_v29 = vcombine.low %v11870_v18, %v11873_v19  ;;  %v9852_v30 = vld [vmem:[%s14143_s1 + $0xc00] ss:$16 sps:$4 sm:$0xff]   ;;  %v9863_v18 = vld [vmem:[%s14143_s1 + $0xc2c] ss:$16 sps:$4 sm:$0xff]   ;;  %v8093_v19 = vcombine.high %v12072_v21, %v12075_v14 }
 0x14c   : > { %6699 = vmatprep.subr.bf16.mxu0 %v9770_v31  ;;  %7387 = vmatprep.subr.bf16.mxu1 %v9773_v32  ;;  %v9855_v31 = vld [vmem:[%s14143_s1 + $0xc08] ss:$16 sps:$4 sm:$0xff]   ;;  %v9860_v32 = vld [vmem:[%s14143_s1 + $0xc24] ss:$16 sps:$4 sm:$0xff]  }
 0x14f   : > { %6700 = vmatpush1.bf16.msra.mxu0 %v9768_v33  ;;  %7388 = vmatpush1.bf16.msra.mxu1 %v9771_v34  ;;  %v9858_v33 = vld [vmem:[%s14143_s1 + $0xc20] ss:$16 sps:$4 sm:$0xff]   ;;  %v9861_v34 = vld [vmem:[%s14143_s1 + $0xc28] ss:$16 sps:$4 sm:$0xff]  }
 0x150   : > { %6701 = vmatprep.subr.bf16.mxu0 %v9776_v35  ;;  %7389 = vmatprep.subr.bf16.mxu1 %v9779_v36  ;;  %v9866_v35 = vld [vmem:[%s14143_s1 + $0xc44] ss:$16 sps:$4 sm:$0xff]   ;;  %v9869_v36 = vld [vmem:[%s14143_s1 + $0xc4c] ss:$16 sps:$4 sm:$0xff]  }
 0x153   : > { %6702 = vmatpush1.bf16.msra.mxu0 %v9774_v37  ;;  %7390 = vmatpush1.bf16.msra.mxu1 %v9777_v38  ;;  %v9864_v37 = vld [vmem:[%s14143_s1 + $0xc40] ss:$16 sps:$4 sm:$0xff]   ;;  %v9867_v38 = vld [vmem:[%s14143_s1 + $0xc48] ss:$16 sps:$4 sm:$0xff]  }
 0x154   : > { %6703 = vmatprep.subr.bf16.mxu0 %v9782_v39  ;;  %7391 = vmatprep.subr.bf16.mxu1 %v9785_v40  ;;  %v9872_v39 = vld [vmem:[%s14143_s1 + $0xc64] ss:$16 sps:$4 sm:$0xff]   ;;  %v9875_v40 = vld [vmem:[%s14143_s1 + $0xc6c] ss:$16 sps:$4 sm:$0xff]  }
 0x157   : > { %6704 = vmatpush1.bf16.msra.mxu0 %v9780_v41  ;;  %7392 = vmatpush1.bf16.msra.mxu1 %v9783_v42  ;;  %v9870_v41 = vld [vmem:[%s14143_s1 + $0xc60] ss:$16 sps:$4 sm:$0xff]   ;;  %v9873_v42 = vld [vmem:[%s14143_s1 + $0xc68] ss:$16 sps:$4 sm:$0xff]  }
 0x158   : > { %6705 = vmatprep.subr.bf16.mxu0 %v9788_v43  ;;  %7393 = vmatprep.subr.bf16.mxu1 %v9791_v44  ;;  %v9878_v43 = vld [vmem:[%s14143_s1 + $0xc84] ss:$16 sps:$4 sm:$0xff]   ;;  %v9881_v44 = vld [vmem:[%s14143_s1 + $0xc8c] ss:$16 sps:$4 sm:$0xff]  }
 0x15b   : > { %6706 = vmatpush1.bf16.msra.mxu0 %v9786_v45  ;;  %7394 = vmatpush1.bf16.msra.mxu1 %v9789_v46  ;;  %v9876_v45 = vld [vmem:[%s14143_s1 + $0xc80] ss:$16 sps:$4 sm:$0xff]   ;;  %v9879_v46 = vld [vmem:[%s14143_s1 + $0xc88] ss:$16 sps:$4 sm:$0xff]  }
 0x15c   : > { %6707 = vmatprep.subr.bf16.mxu0 %v9794_v47  ;;  %7395 = vmatprep.subr.bf16.mxu1 %v9797_v48  ;;  %v9884_v47 = vld [vmem:[%s14143_s1 + $0xca4] ss:$16 sps:$4 sm:$0xff]   ;;  %v9887_v48 = vld [vmem:[%s14143_s1 + $0xcac] ss:$16 sps:$4 sm:$0xff]  }
 0x15f   : > { %6708 = vmatpush1.bf16.msra.mxu0 %v9792_v49  ;;  %7396 = vmatpush1.bf16.msra.mxu1 %v9795_v50  ;;  %v9882_v49 = vld [vmem:[%s14143_s1 + $0xca0] ss:$16 sps:$4 sm:$0xff]   ;;  %v9885_v50 = vld [vmem:[%s14143_s1 + $0xca8] ss:$16 sps:$4 sm:$0xff]  }
 0x160   : > { %6709 = vmatprep.subr.bf16.mxu0 %v9800_v51  ;;  %7397 = vmatprep.subr.bf16.mxu1 %v9803_v52  ;;  %v9890_v51 = vld [vmem:[%s14143_s1 + $0xcc4] ss:$16 sps:$4 sm:$0xff]   ;;  %v9893_v52 = vld [vmem:[%s14143_s1 + $0xccc] ss:$16 sps:$4 sm:$0xff]  }
 0x163   : > { %6710 = vmatpush1.bf16.msra.mxu0 %v9798_v53  ;;  %7398 = vmatpush1.bf16.msra.mxu1 %v9801_v54  ;;  %v9888_v53 = vld [vmem:[%s14143_s1 + $0xcc0] ss:$16 sps:$4 sm:$0xff]   ;;  %v9891_v54 = vld [vmem:[%s14143_s1 + $0xcc8] ss:$16 sps:$4 sm:$0xff]  }
 0x164   : > { %6711 = vmatprep.subr.bf16.mxu0 %v9806_v55  ;;  %7399 = vmatprep.subr.bf16.mxu1 %v9809_v56  ;;  %v9896_v55 = vld [vmem:[%s14143_s1 + $0xce4] ss:$16 sps:$4 sm:$0xff]   ;;  %v9899_v56 = vld [vmem:[%s14143_s1 + $0xcec] ss:$16 sps:$4 sm:$0xff]  }
 0x167   : > { %6712 = vmatpush1.bf16.msra.mxu0 %v9804_v57  ;;  %7400 = vmatpush1.bf16.msra.mxu1 %v9807_v58  ;;  %v9894_v57 = vld [vmem:[%s14143_s1 + $0xce0] ss:$16 sps:$4 sm:$0xff]   ;;  %v9897_v58 = vld [vmem:[%s14143_s1 + $0xce8] ss:$16 sps:$4 sm:$0xff]  }
 0x168   : > { %6713 = vmatprep.subr.bf16.mxu0 %v9812_v59  ;;  %7401 = vmatprep.subr.bf16.mxu1 %v9815_v60  ;;  %v9902_v59 = vld [vmem:[%s14143_s1 + $0xd04] ss:$16 sps:$4 sm:$0xff]   ;;  %v9905_v60 = vld [vmem:[%s14143_s1 + $0xd0c] ss:$16 sps:$4 sm:$0xff]  }
 0x16b   : > { %6714 = vmatpush1.bf16.msra.mxu0 %v9810_v61  ;;  %7402 = vmatpush1.bf16.msra.mxu1 %v9813_v62  ;;  %v9900_v61 = vld [vmem:[%s14143_s1 + $0xd00] ss:$16 sps:$4 sm:$0xff]   ;;  %v9903_v62 = vld [vmem:[%s14143_s1 + $0xd08] ss:$16 sps:$4 sm:$0xff]  }
 0x16c   : > { %6715 = vmatprep.subr.bf16.mxu0 %v9818_v63  ;;  %7403 = vmatprep.subr.bf16.mxu1 %v9821_v0  ;;  %v9908_v63 = vld [vmem:[%s14143_s1 + $0xd24] ss:$16 sps:$4 sm:$0xff]   ;;  %v9911_v0 = vld [vmem:[%s14143_s1 + $0xd2c] ss:$16 sps:$4 sm:$0xff]  }
 0x16f   : > { %6716 = vmatpush1.bf16.msra.mxu0 %v9816_v1  ;;  %7404 = vmatpush1.bf16.msra.mxu1 %v9819_v2  ;;  %v9906_v1 = vld [vmem:[%s14143_s1 + $0xd20] ss:$16 sps:$4 sm:$0xff]   ;;  %v9909_v2 = vld [vmem:[%s14143_s1 + $0xd28] ss:$16 sps:$4 sm:$0xff]  }
 0x170   : > { %6717 = vmatprep.subr.bf16.mxu0 %v9824_v3  ;;  %7405 = vmatprep.subr.bf16.mxu1 %v9827_v4  ;;  %v9914_v3 = vld [vmem:[%s14143_s1 + $0xd44] ss:$16 sps:$4 sm:$0xff]   ;;  %v9917_v4 = vld [vmem:[%s14143_s1 + $0xd4c] ss:$16 sps:$4 sm:$0xff]  }
 0x173   : > { %6718 = vmatpush1.bf16.msra.mxu0 %v9822_v5  ;;  %7406 = vmatpush1.bf16.msra.mxu1 %v9825_v6  ;;  %v9912_v5 = vld [vmem:[%s14143_s1 + $0xd40] ss:$16 sps:$4 sm:$0xff]   ;;  %v9915_v6 = vld [vmem:[%s14143_s1 + $0xd48] ss:$16 sps:$4 sm:$0xff]  }
 0x174   : > { %6719 = vmatprep.subr.bf16.mxu0 %v9830_v7  ;;  %7407 = vmatprep.subr.bf16.mxu1 %v9833_v8  ;;  %v9920_v7 = vld [vmem:[%s14143_s1 + $0xd64] ss:$16 sps:$4 sm:$0xff]   ;;  %v9923_v8 = vld [vmem:[%s14143_s1 + $0xd6c] ss:$16 sps:$4 sm:$0xff]  }
 0x177   : > { %6720 = vmatpush1.bf16.msra.mxu0 %v9828_v9  ;;  %7408 = vmatpush1.bf16.msra.mxu1 %v9831_v10  ;;  %v9918_v9 = vld [vmem:[%s14143_s1 + $0xd60] ss:$16 sps:$4 sm:$0xff]   ;;  %v9921_v10 = vld [vmem:[%s14143_s1 + $0xd68] ss:$16 sps:$4 sm:$0xff]  }
 0x178   : > { %6721 = vmatprep.subr.bf16.mxu0 %v9836_v11  ;;  %7409 = vmatprep.subr.bf16.mxu1 %v9839_v12  ;;  %v9926_v11 = vld [vmem:[%s14143_s1 + $0xd84] ss:$16 sps:$4 sm:$0xff]   ;;  %v9929_v12 = vld [vmem:[%s14143_s1 + $0xd8c] ss:$16 sps:$4 sm:$0xff]  }
 0x17b   : > { %6722 = vmatpush1.bf16.msra.mxu0 %v9834_v13  ;;  %7410 = vmatpush1.bf16.msra.mxu1 %v9837_v16  ;;  %v9924_v13 = vld [vmem:[%s14143_s1 + $0xd80] ss:$16 sps:$4 sm:$0xff]   ;;  %v9927_v16 = vld [vmem:[%s14143_s1 + $0xd88] ss:$16 sps:$4 sm:$0xff]  }
 0x17c   : > { %6723 = vmatprep.subr.bf16.mxu0 %v9842_v17  ;;  %7411 = vmatprep.subr.bf16.mxu1 %v9845_v20  ;;  %v9932_v17 = vld [vmem:[%s14143_s1 + $0xda4] ss:$16 sps:$4 sm:$0xff]   ;;  %v9935_v20 = vld [vmem:[%s14143_s1 + $0xdac] ss:$16 sps:$4 sm:$0xff]  }
 0x17f   : > { %6724 = vmatpush1.bf16.msra.mxu0 %v9840_v22  ;;  %7412 = vmatpush1.bf16.msra.mxu1 %v9843_v15  ;;  %v9930_v22 = vld [vmem:[%s14143_s1 + $0xda0] ss:$16 sps:$4 sm:$0xff]   ;;  %v9933_v15 = vld [vmem:[%s14143_s1 + $0xda8] ss:$16 sps:$4 sm:$0xff]  }
 0x180   : > { %6725 = vmatprep.subr.bf16.mxu0 %v9848_v23  ;;  %7413 = vmatprep.subr.bf16.mxu1 %v9851_v24  ;;  %v9938_v23 = vld [vmem:[%s14143_s1 + $0xdc4] ss:$16 sps:$4 sm:$0xff]   ;;  %v9941_v24 = vld [vmem:[%s14143_s1 + $0xdcc] ss:$16 sps:$4 sm:$0xff]  }
 0x183   : > { %6726 = vmatpush1.bf16.msra.mxu0 %v9846_v25  ;;  %7414 = vmatpush1.bf16.msra.mxu1 %v9849_v26  ;;  %v9936_v25 = vld [vmem:[%s14143_s1 + $0xdc0] ss:$16 sps:$4 sm:$0xff]   ;;  %v9939_v26 = vld [vmem:[%s14143_s1 + $0xdc8] ss:$16 sps:$4 sm:$0xff]  }
 0x184   : > { %6738 = vmatprep.subr.bf16.mxu0 %v9854_v27  ;;  %7426 = vmatprep.subr.bf16.mxu1 %v9857_v28  ;;  %v9944_v27 = vld [vmem:[%s14143_s1 + $0xde4] ss:$16 sps:$4 sm:$0xff]   ;;  %v9947_v28 = vld [vmem:[%s14143_s1 + $0xdec] ss:$16 sps:$4 sm:$0xff]  }
 0x186   : > { %6728 = vmatmul.mubr.bf16.vlgmr.msra.gmra.mrb[0].mxu0 %v8090_v29  ;;  %7416 = vmatmul.mubr.bf16.vlgmr.msra.gmra.mrb[0].mxu1 %v8090_v29  ;;  %v9942_v29 = vld [vmem:[%s14143_s1 + $0xde0] ss:$16 sps:$4 sm:$0xff]  }
 0x187   : > { %6739 = vmatpush1.bf16.msra.mxu0 %v9852_v30  ;;  %7427 = vmatpush1.bf16.msra.mxu1 %v9855_v31  ;;  %v9945_v30 = vld [vmem:[%s14143_s1 + $0xde8] ss:$16 sps:$4 sm:$0xff]   ;;  %v9950_v31 = vld [vmem:[%s14143_s1 + $0xe04] ss:$16 sps:$4 sm:$0xff]  }
 0x188   : > { %6740 = vmatprep.subr.bf16.mxu0 %v9860_v32  ;;  %7428 = vmatprep.subr.bf16.mxu1 %v9863_v18  ;;  %v9953_v32 = vld [vmem:[%s14143_s1 + $0xe0c] ss:$16 sps:$4 sm:$0xff]  }
 0x189   : > { %6770 = vmatprep.mubr.bf16.mxu0 %v8093_v19  ;;  %7458 = vmatprep.mubr.bf16.mxu1 %v8093_v19  ;;  %v12274_v18 = vld [vmem:[%s10993_s24 + $0x38] sm:$0xff] }
 0x18a   : > { %v12277_v19 = vld [vmem:[%s10993_s24 + $0xb8] sm:$0xff] }
 0x18b   : > { %6741 = vmatpush1.bf16.msra.mxu0 %v9858_v33  ;;  %7429 = vmatpush1.bf16.msra.mxu1 %v9861_v34  ;;  %v8092_v33 = vcombine.low %v12072_v21, %v12075_v14  ;;  %v9948_v34 = vld [vmem:[%s14143_s1 + $0xe00] ss:$16 sps:$4 sm:$0xff]   ;;  %v9959_v21 = vld [vmem:[%s14143_s1 + $0xe2c] ss:$16 sps:$4 sm:$0xff]   ;;  %v8095_v14 = vcombine.high %v12274_v18, %v12277_v19 }
 0x18c   : > { %6742 = vmatprep.subr.bf16.mxu0 %v9866_v35  ;;  %7430 = vmatprep.subr.bf16.mxu1 %v9869_v36  ;;  %v9951_v35 = vld [vmem:[%s14143_s1 + $0xe08] ss:$16 sps:$4 sm:$0xff]   ;;  %v9956_v36 = vld [vmem:[%s14143_s1 + $0xe24] ss:$16 sps:$4 sm:$0xff]  }
 0x18f   : > { %6743 = vmatpush1.bf16.msra.mxu0 %v9864_v37  ;;  %7431 = vmatpush1.bf16.msra.mxu1 %v9867_v38  ;;  %v9954_v37 = vld [vmem:[%s14143_s1 + $0xe20] ss:$16 sps:$4 sm:$0xff]   ;;  %v9957_v38 = vld [vmem:[%s14143_s1 + $0xe28] ss:$16 sps:$4 sm:$0xff]  }
 0x190   : > { %6744 = vmatprep.subr.bf16.mxu0 %v9872_v39  ;;  %7432 = vmatprep.subr.bf16.mxu1 %v9875_v40  ;;  %v9962_v39 = vld [vmem:[%s14143_s1 + $0xe44] ss:$16 sps:$4 sm:$0xff]   ;;  %v9965_v40 = vld [vmem:[%s14143_s1 + $0xe4c] ss:$16 sps:$4 sm:$0xff]  }
 0x193   : > { %6745 = vmatpush1.bf16.msra.mxu0 %v9870_v41  ;;  %7433 = vmatpush1.bf16.msra.mxu1 %v9873_v42  ;;  %v9960_v41 = vld [vmem:[%s14143_s1 + $0xe40] ss:$16 sps:$4 sm:$0xff]   ;;  %v9963_v42 = vld [vmem:[%s14143_s1 + $0xe48] ss:$16 sps:$4 sm:$0xff]  }
 0x194   : > { %6746 = vmatprep.subr.bf16.mxu0 %v9878_v43  ;;  %7434 = vmatprep.subr.bf16.mxu1 %v9881_v44  ;;  %v9968_v43 = vld [vmem:[%s14143_s1 + $0xe64] ss:$16 sps:$4 sm:$0xff]   ;;  %v9971_v44 = vld [vmem:[%s14143_s1 + $0xe6c] ss:$16 sps:$4 sm:$0xff]  }
 0x197   : > { %6747 = vmatpush1.bf16.msra.mxu0 %v9876_v45  ;;  %7435 = vmatpush1.bf16.msra.mxu1 %v9879_v46  ;;  %v9966_v45 = vld [vmem:[%s14143_s1 + $0xe60] ss:$16 sps:$4 sm:$0xff]   ;;  %v9969_v46 = vld [vmem:[%s14143_s1 + $0xe68] ss:$16 sps:$4 sm:$0xff]  }
 0x198   : > { %6748 = vmatprep.subr.bf16.mxu0 %v9884_v47  ;;  %7436 = vmatprep.subr.bf16.mxu1 %v9887_v48  ;;  %v9974_v47 = vld [vmem:[%s14143_s1 + $0xe84] ss:$16 sps:$4 sm:$0xff]   ;;  %v9977_v48 = vld [vmem:[%s14143_s1 + $0xe8c] ss:$16 sps:$4 sm:$0xff]  }
 0x19b   : > { %6749 = vmatpush1.bf16.msra.mxu0 %v9882_v49  ;;  %7437 = vmatpush1.bf16.msra.mxu1 %v9885_v50  ;;  %v9972_v49 = vld [vmem:[%s14143_s1 + $0xe80] ss:$16 sps:$4 sm:$0xff]   ;;  %v9975_v50 = vld [vmem:[%s14143_s1 + $0xe88] ss:$16 sps:$4 sm:$0xff]  }
 0x19c   : > { %6750 = vmatprep.subr.bf16.mxu0 %v9890_v51  ;;  %7438 = vmatprep.subr.bf16.mxu1 %v9893_v52  ;;  %v9980_v51 = vld [vmem:[%s14143_s1 + $0xea4] ss:$16 sps:$4 sm:$0xff]   ;;  %v9983_v52 = vld [vmem:[%s14143_s1 + $0xeac] ss:$16 sps:$4 sm:$0xff]  }
 0x19f   : > { %6751 = vmatpush1.bf16.msra.mxu0 %v9888_v53  ;;  %7439 = vmatpush1.bf16.msra.mxu1 %v9891_v54  ;;  %v9978_v53 = vld [vmem:[%s14143_s1 + $0xea0] ss:$16 sps:$4 sm:$0xff]   ;;  %v9981_v54 = vld [vmem:[%s14143_s1 + $0xea8] ss:$16 sps:$4 sm:$0xff]  }
 0x1a0   : > { %6752 = vmatprep.subr.bf16.mxu0 %v9896_v55  ;;  %7440 = vmatprep.subr.bf16.mxu1 %v9899_v56  ;;  %v9986_v55 = vld [vmem:[%s14143_s1 + $0xec4] ss:$16 sps:$4 sm:$0xff]   ;;  %v9989_v56 = vld [vmem:[%s14143_s1 + $0xecc] ss:$16 sps:$4 sm:$0xff]  }
 0x1a3   : > { %6753 = vmatpush1.bf16.msra.mxu0 %v9894_v57  ;;  %7441 = vmatpush1.bf16.msra.mxu1 %v9897_v58  ;;  %v9984_v57 = vld [vmem:[%s14143_s1 + $0xec0] ss:$16 sps:$4 sm:$0xff]   ;;  %v9987_v58 = vld [vmem:[%s14143_s1 + $0xec8] ss:$16 sps:$4 sm:$0xff]  }
 0x1a4   : > { %6754 = vmatprep.subr.bf16.mxu0 %v9902_v59  ;;  %7442 = vmatprep.subr.bf16.mxu1 %v9905_v60  ;;  %v9992_v59 = vld [vmem:[%s14143_s1 + $0xee4] ss:$16 sps:$4 sm:$0xff]   ;;  %v9995_v60 = vld [vmem:[%s14143_s1 + $0xeec] ss:$16 sps:$4 sm:$0xff]  }
 0x1a7   : > { %6755 = vmatpush1.bf16.msra.mxu0 %v9900_v61  ;;  %7443 = vmatpush1.bf16.msra.mxu1 %v9903_v62  ;;  %v9990_v61 = vld [vmem:[%s14143_s1 + $0xee0] ss:$16 sps:$4 sm:$0xff]   ;;  %v9993_v62 = vld [vmem:[%s14143_s1 + $0xee8] ss:$16 sps:$4 sm:$0xff]  }
 0x1a8   : > { %6756 = vmatprep.subr.bf16.mxu0 %v9908_v63  ;;  %7444 = vmatprep.subr.bf16.mxu1 %v9911_v0  ;;  %v9998_v63 = vld [vmem:[%s14143_s1 + $0xf04] ss:$16 sps:$4 sm:$0xff]   ;;  %v10001_v0 = vld [vmem:[%s14143_s1 + $0xf0c] ss:$16 sps:$4 sm:$0xff]  }
 0x1ab   : > { %6757 = vmatpush1.bf16.msra.mxu0 %v9906_v1  ;;  %7445 = vmatpush1.bf16.msra.mxu1 %v9909_v2  ;;  %v9996_v1 = vld [vmem:[%s14143_s1 + $0xf00] ss:$16 sps:$4 sm:$0xff]   ;;  %v9999_v2 = vld [vmem:[%s14143_s1 + $0xf08] ss:$16 sps:$4 sm:$0xff]  }
 0x1ac   : > { %6758 = vmatprep.subr.bf16.mxu0 %v9914_v3  ;;  %7446 = vmatprep.subr.bf16.mxu1 %v9917_v4  ;;  %v10004_v3 = vld [vmem:[%s14143_s1 + $0xf24] ss:$16 sps:$4 sm:$0xff]   ;;  %v10007_v4 = vld [vmem:[%s14143_s1 + $0xf2c] ss:$16 sps:$4 sm:$0xff]  }
 0x1af   : > { %6759 = vmatpush1.bf16.msra.mxu0 %v9912_v5  ;;  %7447 = vmatpush1.bf16.msra.mxu1 %v9915_v6  ;;  %v10002_v5 = vld [vmem:[%s14143_s1 + $0xf20] ss:$16 sps:$4 sm:$0xff]   ;;  %v10005_v6 = vld [vmem:[%s14143_s1 + $0xf28] ss:$16 sps:$4 sm:$0xff]  }
 0x1b0   : > { %6760 = vmatprep.subr.bf16.mxu0 %v9920_v7  ;;  %7448 = vmatprep.subr.bf16.mxu1 %v9923_v8  ;;  %v10010_v7 = vld [vmem:[%s14143_s1 + $0xf44] ss:$16 sps:$4 sm:$0xff]   ;;  %v10013_v8 = vld [vmem:[%s14143_s1 + $0xf4c] ss:$16 sps:$4 sm:$0xff]  }
 0x1b3   : > { %6761 = vmatpush1.bf16.msra.mxu0 %v9918_v9  ;;  %7449 = vmatpush1.bf16.msra.mxu1 %v9921_v10  ;;  %v10008_v9 = vld [vmem:[%s14143_s1 + $0xf40] ss:$16 sps:$4 sm:$0xff]   ;;  %v10011_v10 = vld [vmem:[%s14143_s1 + $0xf48] ss:$16 sps:$4 sm:$0xff]  }
 0x1b4   : > { %6762 = vmatprep.subr.bf16.mxu0 %v9926_v11  ;;  %7450 = vmatprep.subr.bf16.mxu1 %v9929_v12  ;;  %v10016_v11 = vld [vmem:[%s14143_s1 + $0xf64] ss:$16 sps:$4 sm:$0xff]   ;;  %v10019_v12 = vld [vmem:[%s14143_s1 + $0xf6c] ss:$16 sps:$4 sm:$0xff]  }
 0x1b7   : > { %6763 = vmatpush1.bf16.msra.mxu0 %v9924_v13  ;;  %7451 = vmatpush1.bf16.msra.mxu1 %v9927_v16  ;;  %v10014_v13 = vld [vmem:[%s14143_s1 + $0xf60] ss:$16 sps:$4 sm:$0xff]   ;;  %v10017_v16 = vld [vmem:[%s14143_s1 + $0xf68] ss:$16 sps:$4 sm:$0xff]  }
 0x1b8   : > { %6764 = vmatprep.subr.bf16.mxu0 %v9932_v17  ;;  %7452 = vmatprep.subr.bf16.mxu1 %v9935_v20  ;;  %v10022_v17 = vld [vmem:[%s14143_s1 + $0xf84] ss:$16 sps:$4 sm:$0xff]   ;;  %v10025_v20 = vld [vmem:[%s14143_s1 + $0xf8c] ss:$16 sps:$4 sm:$0xff]  }
 0x1bb   : > { %6765 = vmatpush1.bf16.msra.mxu0 %v9930_v22  ;;  %7453 = vmatpush1.bf16.msra.mxu1 %v9933_v15  ;;  %v10020_v22 = vld [vmem:[%s14143_s1 + $0xf80] ss:$16 sps:$4 sm:$0xff]   ;;  %v10023_v15 = vld [vmem:[%s14143_s1 + $0xf88] ss:$16 sps:$4 sm:$0xff]  }
 0x1bc   : > { %6766 = vmatprep.subr.bf16.mxu0 %v9938_v23  ;;  %7454 = vmatprep.subr.bf16.mxu1 %v9941_v24  ;;  %v10028_v23 = vld [vmem:[%s14143_s1 + $0xfa4] ss:$16 sps:$4 sm:$0xff]   ;;  %v10031_v24 = vld [vmem:[%s14143_s1 + $0xfac] ss:$16 sps:$4 sm:$0xff]  }
 0x1bf   : > { %6767 = vmatpush1.bf16.msra.mxu0 %v9936_v25  ;;  %7455 = vmatpush1.bf16.msra.mxu1 %v9939_v26  ;;  %v10026_v25 = vld [vmem:[%s14143_s1 + $0xfa0] ss:$16 sps:$4 sm:$0xff]   ;;  %v10029_v26 = vld [vmem:[%s14143_s1 + $0xfa8] ss:$16 sps:$4 sm:$0xff]  }
 0x1c0   : > { %6768 = vmatprep.subr.bf16.mxu0 %v9944_v27  ;;  %7456 = vmatprep.subr.bf16.mxu1 %v9947_v28  ;;  %v10034_v27 = vld [vmem:[%s14143_s1 + $0xfc4] ss:$16 sps:$4 sm:$0xff]   ;;  %v10037_v28 = vld [vmem:[%s14143_s1 + $0xfcc] ss:$16 sps:$4 sm:$0xff]  }
 0x1c3   : > { %6769 = vmatpush1.bf16.msra.mxu0 %v9942_v29  ;;  %7457 = vmatpush1.bf16.msra.mxu1 %v9945_v30  ;;  %v10032_v29 = vld [vmem:[%s14143_s1 + $0xfc0] ss:$16 sps:$4 sm:$0xff]   ;;  %v10035_v30 = vld [vmem:[%s14143_s1 + $0xfc8] ss:$16 sps:$4 sm:$0xff]  }
 0x1c4   : > { %6781 = vmatprep.subr.bf16.mxu0 %v9950_v31  ;;  %7469 = vmatprep.subr.bf16.mxu1 %v9953_v32  ;;  %v10040_v31 = vld [vmem:[%s14143_s1 + $0xfe4] ss:$16 sps:$4 sm:$0xff]   ;;  %v10043_v32 = vld [vmem:[%s14143_s1 + $0xfec] ss:$16 sps:$4 sm:$0xff]  }
 0x1c6   : > { %6771 = vmatmul.mubr.bf16.vlgmr.msra.gmra.mrb[0].mxu0 %v8092_v33  ;;  %7459 = vmatmul.mubr.bf16.vlgmr.msra.gmra.mrb[0].mxu1 %v8092_v33  ;;  %v10038_v33 = vld [vmem:[%s14143_s1 + $0xfe0] ss:$16 sps:$4 sm:$0xff]  }
 0x1c7   : > { %6782 = vmatpush1.bf16.msra.mxu0 %v9948_v34  ;;  %7470 = vmatpush1.bf16.msra.mxu1 %v9951_v35  ;;  %v10041_v34 = vld [vmem:[%s14143_s1 + $0xfe8] ss:$16 sps:$4 sm:$0xff]   ;;  %v10046_v35 = vld [vmem:[%s14143_s1 + $0x1004] ss:$16 sps:$4 sm:$0xff]  }
 0x1c8   : > { %6783 = vmatprep.subr.bf16.mxu0 %v9956_v36  ;;  %7471 = vmatprep.subr.bf16.mxu1 %v9959_v21  ;;  %v10049_v36 = vld [vmem:[%s14143_s1 + $0x100c] ss:$16 sps:$4 sm:$0xff]   ;;  %v12476_v21 = vld [vmem:[%s10993_s24 + $0x40] sm:$0xff] }
 0x1c9   : > { %6813 = vmatprep.mubr.bf16.mxu0 %v8095_v14  ;;  %7501 = vmatprep.mubr.bf16.mxu1 %v8095_v14  ;;  %v12479_v14 = vld [vmem:[%s10993_s24 + $0xc0] sm:$0xff] }
 0x1cb   : > { %6784 = vmatpush1.bf16.msra.mxu0 %v9954_v37  ;;  %7472 = vmatpush1.bf16.msra.mxu1 %v9957_v38  ;;  %v8094_v37 = vcombine.low %v12274_v18, %v12277_v19  ;;  %v10044_v38 = vld [vmem:[%s14143_s1 + $0x1000] ss:$16 sps:$4 sm:$0xff]   ;;  %v10055_v18 = vld [vmem:[%s14143_s1 + $0x102c] ss:$16 sps:$4 sm:$0xff]   ;;  %v8097_v19 = vcombine.high %v12476_v21, %v12479_v14 }
 0x1cc   : > { %6785 = vmatprep.subr.bf16.mxu0 %v9962_v39  ;;  %7473 = vmatprep.subr.bf16.mxu1 %v9965_v40  ;;  %v10047_v39 = vld [vmem:[%s14143_s1 + $0x1008] ss:$16 sps:$4 sm:$0xff]   ;;  %v10052_v40 = vld [vmem:[%s14143_s1 + $0x1024] ss:$16 sps:$4 sm:$0xff]  }
 0x1cf   : > { %6786 = vmatpush1.bf16.msra.mxu0 %v9960_v41  ;;  %7474 = vmatpush1.bf16.msra.mxu1 %v9963_v42  ;;  %v10050_v41 = vld [vmem:[%s14143_s1 + $0x1020] ss:$16 sps:$4 sm:$0xff]   ;;  %v10053_v42 = vld [vmem:[%s14143_s1 + $0x1028] ss:$16 sps:$4 sm:$0xff]  }
 0x1d0   : > { %6787 = vmatprep.subr.bf16.mxu0 %v9968_v43  ;;  %7475 = vmatprep.subr.bf16.mxu1 %v9971_v44  ;;  %v10058_v43 = vld [vmem:[%s14143_s1 + $0x1044] ss:$16 sps:$4 sm:$0xff]   ;;  %v10061_v44 = vld [vmem:[%s14143_s1 + $0x104c] ss:$16 sps:$4 sm:$0xff]  }
 0x1d3   : > { %6788 = vmatpush1.bf16.msra.mxu0 %v9966_v45  ;;  %7476 = vmatpush1.bf16.msra.mxu1 %v9969_v46  ;;  %v10056_v45 = vld [vmem:[%s14143_s1 + $0x1040] ss:$16 sps:$4 sm:$0xff]   ;;  %v10059_v46 = vld [vmem:[%s14143_s1 + $0x1048] ss:$16 sps:$4 sm:$0xff]  }
 0x1d4   : > { %6789 = vmatprep.subr.bf16.mxu0 %v9974_v47  ;;  %7477 = vmatprep.subr.bf16.mxu1 %v9977_v48  ;;  %v10064_v47 = vld [vmem:[%s14143_s1 + $0x1064] ss:$16 sps:$4 sm:$0xff]   ;;  %v10067_v48 = vld [vmem:[%s14143_s1 + $0x106c] ss:$16 sps:$4 sm:$0xff]  }
 0x1d7   : > { %6790 = vmatpush1.bf16.msra.mxu0 %v9972_v49  ;;  %7478 = vmatpush1.bf16.msra.mxu1 %v9975_v50  ;;  %v10062_v49 = vld [vmem:[%s14143_s1 + $0x1060] ss:$16 sps:$4 sm:$0xff]   ;;  %v10065_v50 = vld [vmem:[%s14143_s1 + $0x1068] ss:$16 sps:$4 sm:$0xff]  }
 0x1d8   : > { %6791 = vmatprep.subr.bf16.mxu0 %v9980_v51  ;;  %7479 = vmatprep.subr.bf16.mxu1 %v9983_v52  ;;  %v10070_v51 = vld [vmem:[%s14143_s1 + $0x1084] ss:$16 sps:$4 sm:$0xff]   ;;  %v10073_v52 = vld [vmem:[%s14143_s1 + $0x108c] ss:$16 sps:$4 sm:$0xff]  }
 0x1db   : > { %6792 = vmatpush1.bf16.msra.mxu0 %v9978_v53  ;;  %7480 = vmatpush1.bf16.msra.mxu1 %v9981_v54  ;;  %v10068_v53 = vld [vmem:[%s14143_s1 + $0x1080] ss:$16 sps:$4 sm:$0xff]   ;;  %v10071_v54 = vld [vmem:[%s14143_s1 + $0x1088] ss:$16 sps:$4 sm:$0xff]  }
 0x1dc   : > { %6793 = vmatprep.subr.bf16.mxu0 %v9986_v55  ;;  %7481 = vmatprep.subr.bf16.mxu1 %v9989_v56  ;;  %v10076_v55 = vld [vmem:[%s14143_s1 + $0x10a4] ss:$16 sps:$4 sm:$0xff]   ;;  %v10079_v56 = vld [vmem:[%s14143_s1 + $0x10ac] ss:$16 sps:$4 sm:$0xff]  }
 0x1df   : > { %6794 = vmatpush1.bf16.msra.mxu0 %v9984_v57  ;;  %7482 = vmatpush1.bf16.msra.mxu1 %v9987_v58  ;;  %v10074_v57 = vld [vmem:[%s14143_s1 + $0x10a0] ss:$16 sps:$4 sm:$0xff]   ;;  %v10077_v58 = vld [vmem:[%s14143_s1 + $0x10a8] ss:$16 sps:$4 sm:$0xff]  }
 0x1e0   : > { %6795 = vmatprep.subr.bf16.mxu0 %v9992_v59  ;;  %7483 = vmatprep.subr.bf16.mxu1 %v9995_v60  ;;  %v10082_v59 = vld [vmem:[%s14143_s1 + $0x10c4] ss:$16 sps:$4 sm:$0xff]   ;;  %v10085_v60 = vld [vmem:[%s14143_s1 + $0x10cc] ss:$16 sps:$4 sm:$0xff]  }
 0x1e3   : > { %6796 = vmatpush1.bf16.msra.mxu0 %v9990_v61  ;;  %7484 = vmatpush1.bf16.msra.mxu1 %v9993_v62  ;;  %v10080_v61 = vld [vmem:[%s14143_s1 + $0x10c0] ss:$16 sps:$4 sm:$0xff]   ;;  %v10083_v62 = vld [vmem:[%s14143_s1 + $0x10c8] ss:$16 sps:$4 sm:$0xff]  }
 0x1e4   : > { %6797 = vmatprep.subr.bf16.mxu0 %v9998_v63  ;;  %7485 = vmatprep.subr.bf16.mxu1 %v10001_v0  ;;  %v10088_v63 = vld [vmem:[%s14143_s1 + $0x10e4] ss:$16 sps:$4 sm:$0xff]   ;;  %v10091_v0 = vld [vmem:[%s14143_s1 + $0x10ec] ss:$16 sps:$4 sm:$0xff]  }
 0x1e7   : > { %6798 = vmatpush1.bf16.msra.mxu0 %v9996_v1  ;;  %7486 = vmatpush1.bf16.msra.mxu1 %v9999_v2  ;;  %v10086_v1 = vld [vmem:[%s14143_s1 + $0x10e0] ss:$16 sps:$4 sm:$0xff]   ;;  %v10089_v2 = vld [vmem:[%s14143_s1 + $0x10e8] ss:$16 sps:$4 sm:$0xff]  }
 0x1e8   : > { %6799 = vmatprep.subr.bf16.mxu0 %v10004_v3  ;;  %7487 = vmatprep.subr.bf16.mxu1 %v10007_v4  ;;  %v10094_v3 = vld [vmem:[%s14143_s1 + $0x1104] ss:$16 sps:$4 sm:$0xff]   ;;  %v10097_v4 = vld [vmem:[%s14143_s1 + $0x110c] ss:$16 sps:$4 sm:$0xff]  }
 0x1eb   : > { %6800 = vmatpush1.bf16.msra.mxu0 %v10002_v5  ;;  %7488 = vmatpush1.bf16.msra.mxu1 %v10005_v6  ;;  %v10092_v5 = vld [vmem:[%s14143_s1 + $0x1100] ss:$16 sps:$4 sm:$0xff]   ;;  %v10095_v6 = vld [vmem:[%s14143_s1 + $0x1108] ss:$16 sps:$4 sm:$0xff]  }
 0x1ec   : > { %6801 = vmatprep.subr.bf16.mxu0 %v10010_v7  ;;  %7489 = vmatprep.subr.bf16.mxu1 %v10013_v8  ;;  %v10100_v7 = vld [vmem:[%s14143_s1 + $0x1124] ss:$16 sps:$4 sm:$0xff]   ;;  %v10103_v8 = vld [vmem:[%s14143_s1 + $0x112c] ss:$16 sps:$4 sm:$0xff]  }
 0x1ef   : > { %6802 = vmatpush1.bf16.msra.mxu0 %v10008_v9  ;;  %7490 = vmatpush1.bf16.msra.mxu1 %v10011_v10  ;;  %v10098_v9 = vld [vmem:[%s14143_s1 + $0x1120] ss:$16 sps:$4 sm:$0xff]   ;;  %v10101_v10 = vld [vmem:[%s14143_s1 + $0x1128] ss:$16 sps:$4 sm:$0xff]  }
 0x1f0   : > { %6803 = vmatprep.subr.bf16.mxu0 %v10016_v11  ;;  %7491 = vmatprep.subr.bf16.mxu1 %v10019_v12  ;;  %v10106_v11 = vld [vmem:[%s14143_s1 + $0x1144] ss:$16 sps:$4 sm:$0xff]   ;;  %v10109_v12 = vld [vmem:[%s14143_s1 + $0x114c] ss:$16 sps:$4 sm:$0xff]  }
 0x1f3   : > { %6804 = vmatpush1.bf16.msra.mxu0 %v10014_v13  ;;  %7492 = vmatpush1.bf16.msra.mxu1 %v10017_v16  ;;  %v10104_v13 = vld [vmem:[%s14143_s1 + $0x1140] ss:$16 sps:$4 sm:$0xff]   ;;  %v10107_v16 = vld [vmem:[%s14143_s1 + $0x1148] ss:$16 sps:$4 sm:$0xff]  }
 0x1f4   : > { %6805 = vmatprep.subr.bf16.mxu0 %v10022_v17  ;;  %7493 = vmatprep.subr.bf16.mxu1 %v10025_v20  ;;  %v10112_v17 = vld [vmem:[%s14143_s1 + $0x1164] ss:$16 sps:$4 sm:$0xff]   ;;  %v10115_v20 = vld [vmem:[%s14143_s1 + $0x116c] ss:$16 sps:$4 sm:$0xff]  }
 0x1f7   : > { %6806 = vmatpush1.bf16.msra.mxu0 %v10020_v22  ;;  %7494 = vmatpush1.bf16.msra.mxu1 %v10023_v15  ;;  %v10110_v22 = vld [vmem:[%s14143_s1 + $0x1160] ss:$16 sps:$4 sm:$0xff]   ;;  %v10113_v15 = vld [vmem:[%s14143_s1 + $0x1168] ss:$16 sps:$4 sm:$0xff]  }
 0x1f8   : > { %6807 = vmatprep.subr.bf16.mxu0 %v10028_v23  ;;  %7495 = vmatprep.subr.bf16.mxu1 %v10031_v24  ;;  %v10118_v23 = vld [vmem:[%s14143_s1 + $0x1184] ss:$16 sps:$4 sm:$0xff]   ;;  %v10121_v24 = vld [vmem:[%s14143_s1 + $0x118c] ss:$16 sps:$4 sm:$0xff]  }
 0x1fb   : > { %6808 = vmatpush1.bf16.msra.mxu0 %v10026_v25  ;;  %7496 = vmatpush1.bf16.msra.mxu1 %v10029_v26  ;;  %v10116_v25 = vld [vmem:[%s14143_s1 + $0x1180] ss:$16 sps:$4 sm:$0xff]   ;;  %v10119_v26 = vld [vmem:[%s14143_s1 + $0x1188] ss:$16 sps:$4 sm:$0xff]  }
 0x1fc   : > { %6809 = vmatprep.subr.bf16.mxu0 %v10034_v27  ;;  %7497 = vmatprep.subr.bf16.mxu1 %v10037_v28  ;;  %v10124_v27 = vld [vmem:[%s14143_s1 + $0x11a4] ss:$16 sps:$4 sm:$0xff]   ;;  %v10127_v28 = vld [vmem:[%s14143_s1 + $0x11ac] ss:$16 sps:$4 sm:$0xff]  }
 0x1ff   : > { %6810 = vmatpush1.bf16.msra.mxu0 %v10032_v29  ;;  %7498 = vmatpush1.bf16.msra.mxu1 %v10035_v30  ;;  %v10122_v29 = vld [vmem:[%s14143_s1 + $0x11a0] ss:$16 sps:$4 sm:$0xff]   ;;  %v10125_v30 = vld [vmem:[%s14143_s1 + $0x11a8] ss:$16 sps:$4 sm:$0xff]  }
 0x200   : > { %6811 = vmatprep.subr.bf16.mxu0 %v10040_v31  ;;  %7499 = vmatprep.subr.bf16.mxu1 %v10043_v32  ;;  %v10130_v31 = vld [vmem:[%s14143_s1 + $0x11c4] ss:$16 sps:$4 sm:$0xff]   ;;  %v10133_v32 = vld [vmem:[%s14143_s1 + $0x11cc] ss:$16 sps:$4 sm:$0xff]  }
 0x203   : > { %6812 = vmatpush1.bf16.msra.mxu0 %v10038_v33  ;;  %7500 = vmatpush1.bf16.msra.mxu1 %v10041_v34  ;;  %v10128_v33 = vld [vmem:[%s14143_s1 + $0x11c0] ss:$16 sps:$4 sm:$0xff]   ;;  %v10131_v34 = vld [vmem:[%s14143_s1 + $0x11c8] ss:$16 sps:$4 sm:$0xff]  }
 0x204   : > { %6824 = vmatprep.subr.bf16.mxu0 %v10046_v35  ;;  %7512 = vmatprep.subr.bf16.mxu1 %v10049_v36  ;;  %v10136_v35 = vld [vmem:[%s14143_s1 + $0x11e4] ss:$16 sps:$4 sm:$0xff]   ;;  %v10139_v36 = vld [vmem:[%s14143_s1 + $0x11ec] ss:$16 sps:$4 sm:$0xff]  }
 0x206   : > { %6814 = vmatmul.mubr.bf16.vlgmr.msra.gmra.mrb[0].mxu0 %v8094_v37  ;;  %7502 = vmatmul.mubr.bf16.vlgmr.msra.gmra.mrb[0].mxu1 %v8094_v37  ;;  %v10134_v37 = vld [vmem:[%s14143_s1 + $0x11e0] ss:$16 sps:$4 sm:$0xff]  }
 0x207   : > { %6825 = vmatpush1.bf16.msra.mxu0 %v10044_v38  ;;  %7513 = vmatpush1.bf16.msra.mxu1 %v10047_v39  ;;  %v10137_v38 = vld [vmem:[%s14143_s1 + $0x11e8] ss:$16 sps:$4 sm:$0xff]   ;;  %v10142_v39 = vld [vmem:[%s14143_s1 + $0x1204] ss:$16 sps:$4 sm:$0xff]  }
 0x208   : > { %6826 = vmatprep.subr.bf16.mxu0 %v10052_v40  ;;  %7514 = vmatprep.subr.bf16.mxu1 %v10055_v18  ;;  %v10145_v40 = vld [vmem:[%s14143_s1 + $0x120c] ss:$16 sps:$4 sm:$0xff]  }
 0x209   : > { %6856 = vmatprep.mubr.bf16.mxu0 %v8097_v19  ;;  %7544 = vmatprep.mubr.bf16.mxu1 %v8097_v19  ;;  %v12678_v18 = vld [vmem:[%s10993_s24 + $0x48] sm:$0xff] }
 0x20a   : > { %v12681_v19 = vld [vmem:[%s10993_s24 + $0xc8] sm:$0xff] }
 0x20b   : > { %6827 = vmatpush1.bf16.msra.mxu0 %v10050_v41  ;;  %7515 = vmatpush1.bf16.msra.mxu1 %v10053_v42  ;;  %v8096_v41 = vcombine.low %v12476_v21, %v12479_v14  ;;  %v10140_v42 = vld [vmem:[%s14143_s1 + $0x1200] ss:$16 sps:$4 sm:$0xff]   ;;  %v10151_v21 = vld [vmem:[%s14143_s1 + $0x122c] ss:$16 sps:$4 sm:$0xff]   ;;  %v8099_v14 = vcombine.high %v12678_v18, %v12681_v19 }
 0x20c   : > { %6828 = vmatprep.subr.bf16.mxu0 %v10058_v43  ;;  %7516 = vmatprep.subr.bf16.mxu1 %v10061_v44  ;;  %v10143_v43 = vld [vmem:[%s14143_s1 + $0x1208] ss:$16 sps:$4 sm:$0xff]   ;;  %v10148_v44 = vld [vmem:[%s14143_s1 + $0x1224] ss:$16 sps:$4 sm:$0xff]  }
 0x20f   : > { %6829 = vmatpush1.bf16.msra.mxu0 %v10056_v45  ;;  %7517 = vmatpush1.bf16.msra.mxu1 %v10059_v46  ;;  %v10146_v45 = vld [vmem:[%s14143_s1 + $0x1220] ss:$16 sps:$4 sm:$0xff]   ;;  %v10149_v46 = vld [vmem:[%s14143_s1 + $0x1228] ss:$16 sps:$4 sm:$0xff]  }
 0x210   : > { %6830 = vmatprep.subr.bf16.mxu0 %v10064_v47  ;;  %7518 = vmatprep.subr.bf16.mxu1 %v10067_v48  ;;  %v10154_v47 = vld [vmem:[%s14143_s1 + $0x1244] ss:$16 sps:$4 sm:$0xff]   ;;  %v10157_v48 = vld [vmem:[%s14143_s1 + $0x124c] ss:$16 sps:$4 sm:$0xff]  }
 0x213   : > { %6831 = vmatpush1.bf16.msra.mxu0 %v10062_v49  ;;  %7519 = vmatpush1.bf16.msra.mxu1 %v10065_v50  ;;  %v10152_v49 = vld [vmem:[%s14143_s1 + $0x1240] ss:$16 sps:$4 sm:$0xff]   ;;  %v10155_v50 = vld [vmem:[%s14143_s1 + $0x1248] ss:$16 sps:$4 sm:$0xff]  }
 0x214   : > { %6832 = vmatprep.subr.bf16.mxu0 %v10070_v51  ;;  %7520 = vmatprep.subr.bf16.mxu1 %v10073_v52  ;;  %v10160_v51 = vld [vmem:[%s14143_s1 + $0x1264] ss:$16 sps:$4 sm:$0xff]   ;;  %v10163_v52 = vld [vmem:[%s14143_s1 + $0x126c] ss:$16 sps:$4 sm:$0xff]  }
 0x217   : > { %6833 = vmatpush1.bf16.msra.mxu0 %v10068_v53  ;;  %7521 = vmatpush1.bf16.msra.mxu1 %v10071_v54  ;;  %v10158_v53 = vld [vmem:[%s14143_s1 + $0x1260] ss:$16 sps:$4 sm:$0xff]   ;;  %v10161_v54 = vld [vmem:[%s14143_s1 + $0x1268] ss:$16 sps:$4 sm:$0xff]  }
 0x218   : > { %6834 = vmatprep.subr.bf16.mxu0 %v10076_v55  ;;  %7522 = vmatprep.subr.bf16.mxu1 %v10079_v56  ;;  %v10166_v55 = vld [vmem:[%s14143_s1 + $0x1284] ss:$16 sps:$4 sm:$0xff]   ;;  %v10169_v56 = vld [vmem:[%s14143_s1 + $0x128c] ss:$16 sps:$4 sm:$0xff]  }
 0x21b   : > { %6835 = vmatpush1.bf16.msra.mxu0 %v10074_v57  ;;  %7523 = vmatpush1.bf16.msra.mxu1 %v10077_v58  ;;  %v10164_v57 = vld [vmem:[%s14143_s1 + $0x1280] ss:$16 sps:$4 sm:$0xff]   ;;  %v10167_v58 = vld [vmem:[%s14143_s1 + $0x1288] ss:$16 sps:$4 sm:$0xff]  }
 0x21c   : > { %6836 = vmatprep.subr.bf16.mxu0 %v10082_v59  ;;  %7524 = vmatprep.subr.bf16.mxu1 %v10085_v60  ;;  %v10172_v59 = vld [vmem:[%s14143_s1 + $0x12a4] ss:$16 sps:$4 sm:$0xff]   ;;  %v10175_v60 = vld [vmem:[%s14143_s1 + $0x12ac] ss:$16 sps:$4 sm:$0xff]  }
 0x21f   : > { %6837 = vmatpush1.bf16.msra.mxu0 %v10080_v61  ;;  %7525 = vmatpush1.bf16.msra.mxu1 %v10083_v62  ;;  %v10170_v61 = vld [vmem:[%s14143_s1 + $0x12a0] ss:$16 sps:$4 sm:$0xff]   ;;  %v10173_v62 = vld [vmem:[%s14143_s1 + $0x12a8] ss:$16 sps:$4 sm:$0xff]  }
 0x220   : > { %6838 = vmatprep.subr.bf16.mxu0 %v10088_v63  ;;  %7526 = vmatprep.subr.bf16.mxu1 %v10091_v0  ;;  %v10178_v63 = vld [vmem:[%s14143_s1 + $0x12c4] ss:$16 sps:$4 sm:$0xff]   ;;  %v10181_v0 = vld [vmem:[%s14143_s1 + $0x12cc] ss:$16 sps:$4 sm:$0xff]  }
 0x223   : > { %6839 = vmatpush1.bf16.msra.mxu0 %v10086_v1  ;;  %7527 = vmatpush1.bf16.msra.mxu1 %v10089_v2  ;;  %v10176_v1 = vld [vmem:[%s14143_s1 + $0x12c0] ss:$16 sps:$4 sm:$0xff]   ;;  %v10179_v2 = vld [vmem:[%s14143_s1 + $0x12c8] ss:$16 sps:$4 sm:$0xff]  }
 0x224   : > { %6840 = vmatprep.subr.bf16.mxu0 %v10094_v3  ;;  %7528 = vmatprep.subr.bf16.mxu1 %v10097_v4  ;;  %v10184_v3 = vld [vmem:[%s14143_s1 + $0x12e4] ss:$16 sps:$4 sm:$0xff]   ;;  %v10187_v4 = vld [vmem:[%s14143_s1 + $0x12ec] ss:$16 sps:$4 sm:$0xff]  }
 0x227   : > { %6841 = vmatpush1.bf16.msra.mxu0 %v10092_v5  ;;  %7529 = vmatpush1.bf16.msra.mxu1 %v10095_v6  ;;  %v10182_v5 = vld [vmem:[%s14143_s1 + $0x12e0] ss:$16 sps:$4 sm:$0xff]   ;;  %v10185_v6 = vld [vmem:[%s14143_s1 + $0x12e8] ss:$16 sps:$4 sm:$0xff]  }
 0x228   : > { %6842 = vmatprep.subr.bf16.mxu0 %v10100_v7  ;;  %7530 = vmatprep.subr.bf16.mxu1 %v10103_v8  ;;  %v10190_v7 = vld [vmem:[%s14143_s1 + $0x1304] ss:$16 sps:$4 sm:$0xff]   ;;  %v10193_v8 = vld [vmem:[%s14143_s1 + $0x130c] ss:$16 sps:$4 sm:$0xff]  }
 0x22b   : > { %6843 = vmatpush1.bf16.msra.mxu0 %v10098_v9  ;;  %7531 = vmatpush1.bf16.msra.mxu1 %v10101_v10  ;;  %v10188_v9 = vld [vmem:[%s14143_s1 + $0x1300] ss:$16 sps:$4 sm:$0xff]   ;;  %v10191_v10 = vld [vmem:[%s14143_s1 + $0x1308] ss:$16 sps:$4 sm:$0xff]  }
 0x22c   : > { %6844 = vmatprep.subr.bf16.mxu0 %v10106_v11  ;;  %7532 = vmatprep.subr.bf16.mxu1 %v10109_v12  ;;  %v10196_v11 = vld [vmem:[%s14143_s1 + $0x1324] ss:$16 sps:$4 sm:$0xff]   ;;  %v10199_v12 = vld [vmem:[%s14143_s1 + $0x132c] ss:$16 sps:$4 sm:$0xff]  }
 0x22f   : > { %6845 = vmatpush1.bf16.msra.mxu0 %v10104_v13  ;;  %7533 = vmatpush1.bf16.msra.mxu1 %v10107_v16  ;;  %v10194_v13 = vld [vmem:[%s14143_s1 + $0x1320] ss:$16 sps:$4 sm:$0xff]   ;;  %v10197_v16 = vld [vmem:[%s14143_s1 + $0x1328] ss:$16 sps:$4 sm:$0xff]  }
 0x230   : > { %6846 = vmatprep.subr.bf16.mxu0 %v10112_v17  ;;  %7534 = vmatprep.subr.bf16.mxu1 %v10115_v20  ;;  %v10202_v17 = vld [vmem:[%s14143_s1 + $0x1344] ss:$16 sps:$4 sm:$0xff]   ;;  %v10205_v20 = vld [vmem:[%s14143_s1 + $0x134c] ss:$16 sps:$4 sm:$0xff]  }
 0x233   : > { %6847 = vmatpush1.bf16.msra.mxu0 %v10110_v22  ;;  %7535 = vmatpush1.bf16.msra.mxu1 %v10113_v15  ;;  %v10200_v22 = vld [vmem:[%s14143_s1 + $0x1340] ss:$16 sps:$4 sm:$0xff]   ;;  %v10203_v15 = vld [vmem:[%s14143_s1 + $0x1348] ss:$16 sps:$4 sm:$0xff]  }
 0x234   : > { %6848 = vmatprep.subr.bf16.mxu0 %v10118_v23  ;;  %7536 = vmatprep.subr.bf16.mxu1 %v10121_v24  ;;  %v10208_v23 = vld [vmem:[%s14143_s1 + $0x1364] ss:$16 sps:$4 sm:$0xff]   ;;  %v10211_v24 = vld [vmem:[%s14143_s1 + $0x136c] ss:$16 sps:$4 sm:$0xff]  }
 0x237   : > { %6849 = vmatpush1.bf16.msra.mxu0 %v10116_v25  ;;  %7537 = vmatpush1.bf16.msra.mxu1 %v10119_v26  ;;  %v10206_v25 = vld [vmem:[%s14143_s1 + $0x1360] ss:$16 sps:$4 sm:$0xff]   ;;  %v10209_v26 = vld [vmem:[%s14143_s1 + $0x1368] ss:$16 sps:$4 sm:$0xff]  }
 0x238   : > { %6850 = vmatprep.subr.bf16.mxu0 %v10124_v27  ;;  %7538 = vmatprep.subr.bf16.mxu1 %v10127_v28  ;;  %v10214_v27 = vld [vmem:[%s14143_s1 + $0x1384] ss:$16 sps:$4 sm:$0xff]   ;;  %v10217_v28 = vld [vmem:[%s14143_s1 + $0x138c] ss:$16 sps:$4 sm:$0xff]  }
 0x23b   : > { %6851 = vmatpush1.bf16.msra.mxu0 %v10122_v29  ;;  %7539 = vmatpush1.bf16.msra.mxu1 %v10125_v30  ;;  %v10212_v29 = vld [vmem:[%s14143_s1 + $0x1380] ss:$16 sps:$4 sm:$0xff]   ;;  %v10215_v30 = vld [vmem:[%s14143_s1 + $0x1388] ss:$16 sps:$4 sm:$0xff]  }
 0x23c   : > { %6852 = vmatprep.subr.bf16.mxu0 %v10130_v31  ;;  %7540 = vmatprep.subr.bf16.mxu1 %v10133_v32  ;;  %v10220_v31 = vld [vmem:[%s14143_s1 + $0x13a4] ss:$16 sps:$4 sm:$0xff]   ;;  %v10223_v32 = vld [vmem:[%s14143_s1 + $0x13ac] ss:$16 sps:$4 sm:$0xff]  }
 0x23f   : > { %6853 = vmatpush1.bf16.msra.mxu0 %v10128_v33  ;;  %7541 = vmatpush1.bf16.msra.mxu1 %v10131_v34  ;;  %v10218_v33 = vld [vmem:[%s14143_s1 + $0x13a0] ss:$16 sps:$4 sm:$0xff]   ;;  %v10221_v34 = vld [vmem:[%s14143_s1 + $0x13a8] ss:$16 sps:$4 sm:$0xff]  }
 0x240   : > { %6854 = vmatprep.subr.bf16.mxu0 %v10136_v35  ;;  %7542 = vmatprep.subr.bf16.mxu1 %v10139_v36  ;;  %v10226_v35 = vld [vmem:[%s14143_s1 + $0x13c4] ss:$16 sps:$4 sm:$0xff]   ;;  %v10229_v36 = vld [vmem:[%s14143_s1 + $0x13cc] ss:$16 sps:$4 sm:$0xff]  }
 0x243   : > { %6855 = vmatpush1.bf16.msra.mxu0 %v10134_v37  ;;  %7543 = vmatpush1.bf16.msra.mxu1 %v10137_v38  ;;  %v10224_v37 = vld [vmem:[%s14143_s1 + $0x13c0] ss:$16 sps:$4 sm:$0xff]   ;;  %v10227_v38 = vld [vmem:[%s14143_s1 + $0x13c8] ss:$16 sps:$4 sm:$0xff]  }
 0x244   : > { %6867 = vmatprep.subr.bf16.mxu0 %v10142_v39  ;;  %7555 = vmatprep.subr.bf16.mxu1 %v10145_v40  ;;  %v10232_v39 = vld [vmem:[%s14143_s1 + $0x13e4] ss:$16 sps:$4 sm:$0xff]   ;;  %v10235_v40 = vld [vmem:[%s14143_s1 + $0x13ec] ss:$16 sps:$4 sm:$0xff]  }
 0x246   : > { %6857 = vmatmul.mubr.bf16.vlgmr.msra.gmra.mrb[0].mxu0 %v8096_v41  ;;  %7545 = vmatmul.mubr.bf16.vlgmr.msra.gmra.mrb[0].mxu1 %v8096_v41  ;;  %v10230_v41 = vld [vmem:[%s14143_s1 + $0x13e0] ss:$16 sps:$4 sm:$0xff]  }
 0x247   : > { %6868 = vmatpush1.bf16.msra.mxu0 %v10140_v42  ;;  %7556 = vmatpush1.bf16.msra.mxu1 %v10143_v43  ;;  %v10233_v42 = vld [vmem:[%s14143_s1 + $0x13e8] ss:$16 sps:$4 sm:$0xff]   ;;  %v10238_v43 = vld [vmem:[%s14143_s1 + $0x1404] ss:$16 sps:$4 sm:$0xff]  }
 0x248   : > { %6869 = vmatprep.subr.bf16.mxu0 %v10148_v44  ;;  %7557 = vmatprep.subr.bf16.mxu1 %v10151_v21  ;;  %v10241_v44 = vld [vmem:[%s14143_s1 + $0x140c] ss:$16 sps:$4 sm:$0xff]   ;;  %v8098_v21 = vcombine.low %v12678_v18, %v12681_v19  ;;  %v10244_v18 = vld [vmem:[%s14143_s1 + $0x1424] ss:$16 sps:$4 sm:$0xff]  }
 0x249   : > { %6899 = vmatprep.mubr.bf16.mxu0 %v8099_v14  ;;  %7587 = vmatprep.mubr.bf16.mxu1 %v8099_v14  ;;  %v12882_v14 = vld [vmem:[%s10993_s24 + $0x50] sm:$0xff]  ;;  %v10247_v19 = vld [vmem:[%s14143_s1 + $0x142c] ss:$16 sps:$4 sm:$0xff]  }
 0x24b   : > { %6870 = vmatpush1.bf16.msra.mxu0 %v10146_v45  ;;  %7558 = vmatpush1.bf16.msra.mxu1 %v10149_v46  ;;  %v12885_v45 = vld [vmem:[%s10993_s24 + $0xd0] sm:$0xff] }
 0x24c   : > { %6871 = vmatprep.subr.bf16.mxu0 %v10154_v47  ;;  %7559 = vmatprep.subr.bf16.mxu1 %v10157_v48  ;;  %v10236_v46 = vld [vmem:[%s14143_s1 + $0x1400] ss:$16 sps:$4 sm:$0xff]   ;;  %v10239_v47 = vld [vmem:[%s14143_s1 + $0x1408] ss:$16 sps:$4 sm:$0xff]   ;;  %v8101_v48 = vcombine.high %v12882_v14, %v12885_v45 }
 0x24f   : > { %6872 = vmatpush1.bf16.msra.mxu0 %v10152_v49  ;;  %7560 = vmatpush1.bf16.msra.mxu1 %v10155_v50  ;;  %v10242_v49 = vld [vmem:[%s14143_s1 + $0x1420] ss:$16 sps:$4 sm:$0xff]   ;;  %v10245_v50 = vld [vmem:[%s14143_s1 + $0x1428] ss:$16 sps:$4 sm:$0xff]  }
 0x250   : > { %6873 = vmatprep.subr.bf16.mxu0 %v10160_v51  ;;  %7561 = vmatprep.subr.bf16.mxu1 %v10163_v52  ;;  %v10250_v51 = vld [vmem:[%s14143_s1 + $0x1444] ss:$16 sps:$4 sm:$0xff]   ;;  %v10253_v52 = vld [vmem:[%s14143_s1 + $0x144c] ss:$16 sps:$4 sm:$0xff]  }
 0x253   : > { %6874 = vmatpush1.bf16.msra.mxu0 %v10158_v53  ;;  %7562 = vmatpush1.bf16.msra.mxu1 %v10161_v54  ;;  %v10248_v53 = vld [vmem:[%s14143_s1 + $0x1440] ss:$16 sps:$4 sm:$0xff]   ;;  %v10251_v54 = vld [vmem:[%s14143_s1 + $0x1448] ss:$16 sps:$4 sm:$0xff]  }
 0x254   : > { %6875 = vmatprep.subr.bf16.mxu0 %v10166_v55  ;;  %7563 = vmatprep.subr.bf16.mxu1 %v10169_v56  ;;  %v10256_v55 = vld [vmem:[%s14143_s1 + $0x1464] ss:$16 sps:$4 sm:$0xff]   ;;  %v10259_v56 = vld [vmem:[%s14143_s1 + $0x146c] ss:$16 sps:$4 sm:$0xff]  }
 0x257   : > { %6876 = vmatpush1.bf16.msra.mxu0 %v10164_v57  ;;  %7564 = vmatpush1.bf16.msra.mxu1 %v10167_v58  ;;  %v10254_v57 = vld [vmem:[%s14143_s1 + $0x1460] ss:$16 sps:$4 sm:$0xff]   ;;  %v10257_v58 = vld [vmem:[%s14143_s1 + $0x1468] ss:$16 sps:$4 sm:$0xff]  }
 0x258   : > { %6877 = vmatprep.subr.bf16.mxu0 %v10172_v59  ;;  %7565 = vmatprep.subr.bf16.mxu1 %v10175_v60  ;;  %v10262_v59 = vld [vmem:[%s14143_s1 + $0x1484] ss:$16 sps:$4 sm:$0xff]   ;;  %v10265_v60 = vld [vmem:[%s14143_s1 + $0x148c] ss:$16 sps:$4 sm:$0xff]  }
 0x25b   : > { %6878 = vmatpush1.bf16.msra.mxu0 %v10170_v61  ;;  %7566 = vmatpush1.bf16.msra.mxu1 %v10173_v62  ;;  %v10260_v61 = vld [vmem:[%s14143_s1 + $0x1480] ss:$16 sps:$4 sm:$0xff]   ;;  %v10263_v62 = vld [vmem:[%s14143_s1 + $0x1488] ss:$16 sps:$4 sm:$0xff]  }
 0x25c   : > { %6879 = vmatprep.subr.bf16.mxu0 %v10178_v63  ;;  %7567 = vmatprep.subr.bf16.mxu1 %v10181_v0  ;;  %v10268_v63 = vld [vmem:[%s14143_s1 + $0x14a4] ss:$16 sps:$4 sm:$0xff]   ;;  %v10271_v0 = vld [vmem:[%s14143_s1 + $0x14ac] ss:$16 sps:$4 sm:$0xff]  }
 0x25f   : > { %6880 = vmatpush1.bf16.msra.mxu0 %v10176_v1  ;;  %7568 = vmatpush1.bf16.msra.mxu1 %v10179_v2  ;;  %v10266_v1 = vld [vmem:[%s14143_s1 + $0x14a0] ss:$16 sps:$4 sm:$0xff]   ;;  %v10269_v2 = vld [vmem:[%s14143_s1 + $0x14a8] ss:$16 sps:$4 sm:$0xff]  }
 0x260   : > { %6881 = vmatprep.subr.bf16.mxu0 %v10184_v3  ;;  %7569 = vmatprep.subr.bf16.mxu1 %v10187_v4  ;;  %v10274_v3 = vld [vmem:[%s14143_s1 + $0x14c4] ss:$16 sps:$4 sm:$0xff]   ;;  %v10277_v4 = vld [vmem:[%s14143_s1 + $0x14cc] ss:$16 sps:$4 sm:$0xff]  }
 0x263   : > { %6882 = vmatpush1.bf16.msra.mxu0 %v10182_v5  ;;  %7570 = vmatpush1.bf16.msra.mxu1 %v10185_v6  ;;  %v10272_v5 = vld [vmem:[%s14143_s1 + $0x14c0] ss:$16 sps:$4 sm:$0xff]   ;;  %v10275_v6 = vld [vmem:[%s14143_s1 + $0x14c8] ss:$16 sps:$4 sm:$0xff]  }
 0x264   : > { %6883 = vmatprep.subr.bf16.mxu0 %v10190_v7  ;;  %7571 = vmatprep.subr.bf16.mxu1 %v10193_v8  ;;  %v10280_v7 = vld [vmem:[%s14143_s1 + $0x14e4] ss:$16 sps:$4 sm:$0xff]   ;;  %v10283_v8 = vld [vmem:[%s14143_s1 + $0x14ec] ss:$16 sps:$4 sm:$0xff]  }
 0x267   : > { %6884 = vmatpush1.bf16.msra.mxu0 %v10188_v9  ;;  %7572 = vmatpush1.bf16.msra.mxu1 %v10191_v10  ;;  %v10278_v9 = vld [vmem:[%s14143_s1 + $0x14e0] ss:$16 sps:$4 sm:$0xff]   ;;  %v10281_v10 = vld [vmem:[%s14143_s1 + $0x14e8] ss:$16 sps:$4 sm:$0xff]  }
 0x268   : > { %6885 = vmatprep.subr.bf16.mxu0 %v10196_v11  ;;  %7573 = vmatprep.subr.bf16.mxu1 %v10199_v12  ;;  %v10286_v11 = vld [vmem:[%s14143_s1 + $0x1504] ss:$16 sps:$4 sm:$0xff]   ;;  %v10289_v12 = vld [vmem:[%s14143_s1 + $0x150c] ss:$16 sps:$4 sm:$0xff]  }
 0x26b   : > { %6886 = vmatpush1.bf16.msra.mxu0 %v10194_v13  ;;  %7574 = vmatpush1.bf16.msra.mxu1 %v10197_v16  ;;  %v10284_v13 = vld [vmem:[%s14143_s1 + $0x1500] ss:$16 sps:$4 sm:$0xff]   ;;  %v10287_v16 = vld [vmem:[%s14143_s1 + $0x1508] ss:$16 sps:$4 sm:$0xff]  }
 0x26c   : > { %6887 = vmatprep.subr.bf16.mxu0 %v10202_v17  ;;  %7575 = vmatprep.subr.bf16.mxu1 %v10205_v20  ;;  %v10292_v17 = vld [vmem:[%s14143_s1 + $0x1524] ss:$16 sps:$4 sm:$0xff]   ;;  %v10295_v20 = vld [vmem:[%s14143_s1 + $0x152c] ss:$16 sps:$4 sm:$0xff]  }
 0x26f   : > { %6888 = vmatpush1.bf16.msra.mxu0 %v10200_v22  ;;  %7576 = vmatpush1.bf16.msra.mxu1 %v10203_v15  ;;  %v10290_v22 = vld [vmem:[%s14143_s1 + $0x1520] ss:$16 sps:$4 sm:$0xff]   ;;  %v10293_v15 = vld [vmem:[%s14143_s1 + $0x1528] ss:$16 sps:$4 sm:$0xff]  }
 0x270   : > { %6889 = vmatprep.subr.bf16.mxu0 %v10208_v23  ;;  %7577 = vmatprep.subr.bf16.mxu1 %v10211_v24  ;;  %v10298_v23 = vld [vmem:[%s14143_s1 + $0x1544] ss:$16 sps:$4 sm:$0xff]   ;;  %v10301_v24 = vld [vmem:[%s14143_s1 + $0x154c] ss:$16 sps:$4 sm:$0xff]  }
 0x273   : > { %6890 = vmatpush1.bf16.msra.mxu0 %v10206_v25  ;;  %7578 = vmatpush1.bf16.msra.mxu1 %v10209_v26  ;;  %v10296_v25 = vld [vmem:[%s14143_s1 + $0x1540] ss:$16 sps:$4 sm:$0xff]   ;;  %v10299_v26 = vld [vmem:[%s14143_s1 + $0x1548] ss:$16 sps:$4 sm:$0xff]  }
 0x274   : > { %6891 = vmatprep.subr.bf16.mxu0 %v10214_v27  ;;  %7579 = vmatprep.subr.bf16.mxu1 %v10217_v28  ;;  %v10304_v27 = vld [vmem:[%s14143_s1 + $0x1564] ss:$16 sps:$4 sm:$0xff]   ;;  %v10307_v28 = vld [vmem:[%s14143_s1 + $0x156c] ss:$16 sps:$4 sm:$0xff]  }
 0x277   : > { %6892 = vmatpush1.bf16.msra.mxu0 %v10212_v29  ;;  %7580 = vmatpush1.bf16.msra.mxu1 %v10215_v30  ;;  %v10302_v29 = vld [vmem:[%s14143_s1 + $0x1560] ss:$16 sps:$4 sm:$0xff]   ;;  %v10305_v30 = vld [vmem:[%s14143_s1 + $0x1568] ss:$16 sps:$4 sm:$0xff]  }
 0x278   : > { %6893 = vmatprep.subr.bf16.mxu0 %v10220_v31  ;;  %7581 = vmatprep.subr.bf16.mxu1 %v10223_v32  ;;  %v10310_v31 = vld [vmem:[%s14143_s1 + $0x1584] ss:$16 sps:$4 sm:$0xff]   ;;  %v10313_v32 = vld [vmem:[%s14143_s1 + $0x158c] ss:$16 sps:$4 sm:$0xff]  }
 0x27b   : > { %6894 = vmatpush1.bf16.msra.mxu0 %v10218_v33  ;;  %7582 = vmatpush1.bf16.msra.mxu1 %v10221_v34  ;;  %v10308_v33 = vld [vmem:[%s14143_s1 + $0x1580] ss:$16 sps:$4 sm:$0xff]   ;;  %v10311_v34 = vld [vmem:[%s14143_s1 + $0x1588] ss:$16 sps:$4 sm:$0xff]  }
 0x27c   : > { %6895 = vmatprep.subr.bf16.mxu0 %v10226_v35  ;;  %7583 = vmatprep.subr.bf16.mxu1 %v10229_v36  ;;  %v10316_v35 = vld [vmem:[%s14143_s1 + $0x15a4] ss:$16 sps:$4 sm:$0xff]   ;;  %v10319_v36 = vld [vmem:[%s14143_s1 + $0x15ac] ss:$16 sps:$4 sm:$0xff]  }
 0x27f   : > { %6896 = vmatpush1.bf16.msra.mxu0 %v10224_v37  ;;  %7584 = vmatpush1.bf16.msra.mxu1 %v10227_v38  ;;  %v10314_v37 = vld [vmem:[%s14143_s1 + $0x15a0] ss:$16 sps:$4 sm:$0xff]   ;;  %v10317_v38 = vld [vmem:[%s14143_s1 + $0x15a8] ss:$16 sps:$4 sm:$0xff]  }
 0x280   : > { %6897 = vmatprep.subr.bf16.mxu0 %v10232_v39  ;;  %7585 = vmatprep.subr.bf16.mxu1 %v10235_v40  ;;  %v10322_v39 = vld [vmem:[%s14143_s1 + $0x15c4] ss:$16 sps:$4 sm:$0xff]   ;;  %v10325_v40 = vld [vmem:[%s14143_s1 + $0x15cc] ss:$16 sps:$4 sm:$0xff]  }
 0x283   : > { %6898 = vmatpush1.bf16.msra.mxu0 %v10230_v41  ;;  %7586 = vmatpush1.bf16.msra.mxu1 %v10233_v42  ;;  %v10320_v41 = vld [vmem:[%s14143_s1 + $0x15c0] ss:$16 sps:$4 sm:$0xff]   ;;  %v10323_v42 = vld [vmem:[%s14143_s1 + $0x15c8] ss:$16 sps:$4 sm:$0xff]  }
 0x284   : > { %6910 = vmatprep.subr.bf16.mxu0 %v10238_v43  ;;  %7598 = vmatprep.subr.bf16.mxu1 %v10241_v44  ;;  %v10328_v43 = vld [vmem:[%s14143_s1 + $0x15e4] ss:$16 sps:$4 sm:$0xff]   ;;  %v10331_v44 = vld [vmem:[%s14143_s1 + $0x15ec] ss:$16 sps:$4 sm:$0xff]  }
 0x286   : > { %6900 = vmatmul.mubr.bf16.vlgmr.msra.gmra.mrb[0].mxu0 %v8098_v21  ;;  %7588 = vmatmul.mubr.bf16.vlgmr.msra.gmra.mrb[0].mxu1 %v8098_v21  ;;  %v10326_v21 = vld [vmem:[%s14143_s1 + $0x15e0] ss:$16 sps:$4 sm:$0xff]  }
 0x287   : > { %6911 = vmatpush1.bf16.msra.mxu0 %v10236_v46  ;;  %7599 = vmatpush1.bf16.msra.mxu1 %v10239_v47  ;;  %v10329_v46 = vld [vmem:[%s14143_s1 + $0x15e8] ss:$16 sps:$4 sm:$0xff]   ;;  %v10334_v47 = vld [vmem:[%s14143_s1 + $0x1604] ss:$16 sps:$4 sm:$0xff]  }
 0x288   : > { %6912 = vmatprep.subr.bf16.mxu0 %v10244_v18  ;;  %7600 = vmatprep.subr.bf16.mxu1 %v10247_v19  ;;  %v10337_v18 = vld [vmem:[%s14143_s1 + $0x160c] ss:$16 sps:$4 sm:$0xff]   ;;  %v8100_v19 = vcombine.low %v12882_v14, %v12885_v45  ;;  %v10340_v14 = vld [vmem:[%s14143_s1 + $0x1624] ss:$16 sps:$4 sm:$0xff]  }
 0x289   : > { %6942 = vmatprep.mubr.bf16.mxu0 %v8101_v48  ;;  %7630 = vmatprep.mubr.bf16.mxu1 %v8101_v48  ;;  %v13084_v48 = vld [vmem:[%s10993_s24 + $0x58] sm:$0xff] }
 0x28a   : > { %v10343_v45 = vld [vmem:[%s14143_s1 + $0x162c] ss:$16 sps:$4 sm:$0xff]  }
 0x28b   : > { %6913 = vmatpush1.bf16.msra.mxu0 %v10242_v49  ;;  %7601 = vmatpush1.bf16.msra.mxu1 %v10245_v50  ;;  %v13087_v49 = vld [vmem:[%s10993_s24 + $0xd8] sm:$0xff]  ;;  %v10332_v50 = vld [vmem:[%s14143_s1 + $0x1600] ss:$16 sps:$4 sm:$0xff]  }
 0x28c   : > { %6914 = vmatprep.subr.bf16.mxu0 %v10250_v51  ;;  %7602 = vmatprep.subr.bf16.mxu1 %v10253_v52  ;;  %v10335_v51 = vld [vmem:[%s14143_s1 + $0x1608] ss:$16 sps:$4 sm:$0xff]   ;;  %v8103_v52 = vcombine.high %v13084_v48, %v13087_v49 }
 0x28f   : > { %6915 = vmatpush1.bf16.msra.mxu0 %v10248_v53  ;;  %7603 = vmatpush1.bf16.msra.mxu1 %v10251_v54  ;;  %v10338_v53 = vld [vmem:[%s14143_s1 + $0x1620] ss:$16 sps:$4 sm:$0xff]   ;;  %v10341_v54 = vld [vmem:[%s14143_s1 + $0x1628] ss:$16 sps:$4 sm:$0xff]  }
 0x290   : > { %6916 = vmatprep.subr.bf16.mxu0 %v10256_v55  ;;  %7604 = vmatprep.subr.bf16.mxu1 %v10259_v56  ;;  %v10346_v55 = vld [vmem:[%s14143_s1 + $0x1644] ss:$16 sps:$4 sm:$0xff]   ;;  %v10349_v56 = vld [vmem:[%s14143_s1 + $0x164c] ss:$16 sps:$4 sm:$0xff]  }
 0x293   : > { %6917 = vmatpush1.bf16.msra.mxu0 %v10254_v57  ;;  %7605 = vmatpush1.bf16.msra.mxu1 %v10257_v58  ;;  %v10344_v57 = vld [vmem:[%s14143_s1 + $0x1640] ss:$16 sps:$4 sm:$0xff]   ;;  %v10347_v58 = vld [vmem:[%s14143_s1 + $0x1648] ss:$16 sps:$4 sm:$0xff]  }
 0x294   : > { %6918 = vmatprep.subr.bf16.mxu0 %v10262_v59  ;;  %7606 = vmatprep.subr.bf16.mxu1 %v10265_v60  ;;  %v10352_v59 = vld [vmem:[%s14143_s1 + $0x1664] ss:$16 sps:$4 sm:$0xff]   ;;  %v10355_v60 = vld [vmem:[%s14143_s1 + $0x166c] ss:$16 sps:$4 sm:$0xff]  }
 0x297   : > { %6919 = vmatpush1.bf16.msra.mxu0 %v10260_v61  ;;  %7607 = vmatpush1.bf16.msra.mxu1 %v10263_v62  ;;  %v10350_v61 = vld [vmem:[%s14143_s1 + $0x1660] ss:$16 sps:$4 sm:$0xff]   ;;  %v10353_v62 = vld [vmem:[%s14143_s1 + $0x1668] ss:$16 sps:$4 sm:$0xff]  }
 0x298   : > { %6920 = vmatprep.subr.bf16.mxu0 %v10268_v63  ;;  %7608 = vmatprep.subr.bf16.mxu1 %v10271_v0  ;;  %v10358_v63 = vld [vmem:[%s14143_s1 + $0x1684] ss:$16 sps:$4 sm:$0xff]   ;;  %v10361_v0 = vld [vmem:[%s14143_s1 + $0x168c] ss:$16 sps:$4 sm:$0xff]  }
 0x29b   : > { %6921 = vmatpush1.bf16.msra.mxu0 %v10266_v1  ;;  %7609 = vmatpush1.bf16.msra.mxu1 %v10269_v2  ;;  %v10356_v1 = vld [vmem:[%s14143_s1 + $0x1680] ss:$16 sps:$4 sm:$0xff]   ;;  %v10359_v2 = vld [vmem:[%s14143_s1 + $0x1688] ss:$16 sps:$4 sm:$0xff]  }
 0x29c   : > { %6922 = vmatprep.subr.bf16.mxu0 %v10274_v3  ;;  %7610 = vmatprep.subr.bf16.mxu1 %v10277_v4  ;;  %v10364_v3 = vld [vmem:[%s14143_s1 + $0x16a4] ss:$16 sps:$4 sm:$0xff]   ;;  %v10367_v4 = vld [vmem:[%s14143_s1 + $0x16ac] ss:$16 sps:$4 sm:$0xff]  }
 0x29f   : > { %6923 = vmatpush1.bf16.msra.mxu0 %v10272_v5  ;;  %7611 = vmatpush1.bf16.msra.mxu1 %v10275_v6  ;;  %v10362_v5 = vld [vmem:[%s14143_s1 + $0x16a0] ss:$16 sps:$4 sm:$0xff]   ;;  %v10365_v6 = vld [vmem:[%s14143_s1 + $0x16a8] ss:$16 sps:$4 sm:$0xff]  }
 0x2a0   : > { %6924 = vmatprep.subr.bf16.mxu0 %v10280_v7  ;;  %7612 = vmatprep.subr.bf16.mxu1 %v10283_v8  ;;  %v10370_v7 = vld [vmem:[%s14143_s1 + $0x16c4] ss:$16 sps:$4 sm:$0xff]   ;;  %v10373_v8 = vld [vmem:[%s14143_s1 + $0x16cc] ss:$16 sps:$4 sm:$0xff]  }
 0x2a3   : > { %6925 = vmatpush1.bf16.msra.mxu0 %v10278_v9  ;;  %7613 = vmatpush1.bf16.msra.mxu1 %v10281_v10  ;;  %v10368_v9 = vld [vmem:[%s14143_s1 + $0x16c0] ss:$16 sps:$4 sm:$0xff]   ;;  %v10371_v10 = vld [vmem:[%s14143_s1 + $0x16c8] ss:$16 sps:$4 sm:$0xff]  }
 0x2a4   : > { %6926 = vmatprep.subr.bf16.mxu0 %v10286_v11  ;;  %7614 = vmatprep.subr.bf16.mxu1 %v10289_v12  ;;  %v10376_v11 = vld [vmem:[%s14143_s1 + $0x16e4] ss:$16 sps:$4 sm:$0xff]   ;;  %v10379_v12 = vld [vmem:[%s14143_s1 + $0x16ec] ss:$16 sps:$4 sm:$0xff]  }
 0x2a7   : > { %6927 = vmatpush1.bf16.msra.mxu0 %v10284_v13  ;;  %7615 = vmatpush1.bf16.msra.mxu1 %v10287_v16  ;;  %v10374_v13 = vld [vmem:[%s14143_s1 + $0x16e0] ss:$16 sps:$4 sm:$0xff]   ;;  %v10377_v16 = vld [vmem:[%s14143_s1 + $0x16e8] ss:$16 sps:$4 sm:$0xff]  }
 0x2a8   : > { %6928 = vmatprep.subr.bf16.mxu0 %v10292_v17  ;;  %7616 = vmatprep.subr.bf16.mxu1 %v10295_v20  ;;  %v10382_v17 = vld [vmem:[%s14143_s1 + $0x1704] ss:$16 sps:$4 sm:$0xff]   ;;  %v10385_v20 = vld [vmem:[%s14143_s1 + $0x170c] ss:$16 sps:$4 sm:$0xff]  }
 0x2ab   : > { %6929 = vmatpush1.bf16.msra.mxu0 %v10290_v22  ;;  %7617 = vmatpush1.bf16.msra.mxu1 %v10293_v15  ;;  %v10380_v22 = vld [vmem:[%s14143_s1 + $0x1700] ss:$16 sps:$4 sm:$0xff]   ;;  %v10383_v15 = vld [vmem:[%s14143_s1 + $0x1708] ss:$16 sps:$4 sm:$0xff]  }
 0x2ac   : > { %6930 = vmatprep.subr.bf16.mxu0 %v10298_v23  ;;  %7618 = vmatprep.subr.bf16.mxu1 %v10301_v24  ;;  %v10388_v23 = vld [vmem:[%s14143_s1 + $0x1724] ss:$16 sps:$4 sm:$0xff]   ;;  %v10391_v24 = vld [vmem:[%s14143_s1 + $0x172c] ss:$16 sps:$4 sm:$0xff]  }
 0x2af   : > { %6931 = vmatpush1.bf16.msra.mxu0 %v10296_v25  ;;  %7619 = vmatpush1.bf16.msra.mxu1 %v10299_v26  ;;  %v10386_v25 = vld [vmem:[%s14143_s1 + $0x1720] ss:$16 sps:$4 sm:$0xff]   ;;  %v10389_v26 = vld [vmem:[%s14143_s1 + $0x1728] ss:$16 sps:$4 sm:$0xff]  }
 0x2b0   : > { %6932 = vmatprep.subr.bf16.mxu0 %v10304_v27  ;;  %7620 = vmatprep.subr.bf16.mxu1 %v10307_v28  ;;  %v10394_v27 = vld [vmem:[%s14143_s1 + $0x1744] ss:$16 sps:$4 sm:$0xff]   ;;  %v10397_v28 = vld [vmem:[%s14143_s1 + $0x174c] ss:$16 sps:$4 sm:$0xff]  }
 0x2b3   : > { %6933 = vmatpush1.bf16.msra.mxu0 %v10302_v29  ;;  %7621 = vmatpush1.bf16.msra.mxu1 %v10305_v30  ;;  %v10392_v29 = vld [vmem:[%s14143_s1 + $0x1740] ss:$16 sps:$4 sm:$0xff]   ;;  %v10395_v30 = vld [vmem:[%s14143_s1 + $0x1748] ss:$16 sps:$4 sm:$0xff]  }
 0x2b4   : > { %6934 = vmatprep.subr.bf16.mxu0 %v10310_v31  ;;  %7622 = vmatprep.subr.bf16.mxu1 %v10313_v32  ;;  %v10400_v31 = vld [vmem:[%s14143_s1 + $0x1764] ss:$16 sps:$4 sm:$0xff]   ;;  %v10403_v32 = vld [vmem:[%s14143_s1 + $0x176c] ss:$16 sps:$4 sm:$0xff]  }
 0x2b7   : > { %6935 = vmatpush1.bf16.msra.mxu0 %v10308_v33  ;;  %7623 = vmatpush1.bf16.msra.mxu1 %v10311_v34  ;;  %v10398_v33 = vld [vmem:[%s14143_s1 + $0x1760] ss:$16 sps:$4 sm:$0xff]   ;;  %v10401_v34 = vld [vmem:[%s14143_s1 + $0x1768] ss:$16 sps:$4 sm:$0xff]  }
 0x2b8   : > { %6936 = vmatprep.subr.bf16.mxu0 %v10316_v35  ;;  %7624 = vmatprep.subr.bf16.mxu1 %v10319_v36  ;;  %v10406_v35 = vld [vmem:[%s14143_s1 + $0x1784] ss:$16 sps:$4 sm:$0xff]   ;;  %v10409_v36 = vld [vmem:[%s14143_s1 + $0x178c] ss:$16 sps:$4 sm:$0xff]  }
 0x2bb   : > { %6937 = vmatpush1.bf16.msra.mxu0 %v10314_v37  ;;  %7625 = vmatpush1.bf16.msra.mxu1 %v10317_v38  ;;  %v10404_v37 = vld [vmem:[%s14143_s1 + $0x1780] ss:$16 sps:$4 sm:$0xff]   ;;  %v10407_v38 = vld [vmem:[%s14143_s1 + $0x1788] ss:$16 sps:$4 sm:$0xff]  }
 0x2bc   : > { %6938 = vmatprep.subr.bf16.mxu0 %v10322_v39  ;;  %7626 = vmatprep.subr.bf16.mxu1 %v10325_v40  ;;  %v10412_v39 = vld [vmem:[%s14143_s1 + $0x17a4] ss:$16 sps:$4 sm:$0xff]   ;;  %v10415_v40 = vld [vmem:[%s14143_s1 + $0x17ac] ss:$16 sps:$4 sm:$0xff]  }
 0x2bf   : > { %6939 = vmatpush1.bf16.msra.mxu0 %v10320_v41  ;;  %7627 = vmatpush1.bf16.msra.mxu1 %v10323_v42  ;;  %v10410_v41 = vld [vmem:[%s14143_s1 + $0x17a0] ss:$16 sps:$4 sm:$0xff]   ;;  %v10413_v42 = vld [vmem:[%s14143_s1 + $0x17a8] ss:$16 sps:$4 sm:$0xff]  }
 0x2c0   : > { %6940 = vmatprep.subr.bf16.mxu0 %v10328_v43  ;;  %7628 = vmatprep.subr.bf16.mxu1 %v10331_v44  ;;  %v10418_v43 = vld [vmem:[%s14143_s1 + $0x17c4] ss:$16 sps:$4 sm:$0xff]   ;;  %v10421_v44 = vld [vmem:[%s14143_s1 + $0x17cc] ss:$16 sps:$4 sm:$0xff]  }
 0x2c3   : > { %6941 = vmatpush1.bf16.msra.mxu0 %v10326_v21  ;;  %7629 = vmatpush1.bf16.msra.mxu1 %v10329_v46  ;;  %v10416_v21 = vld [vmem:[%s14143_s1 + $0x17c0] ss:$16 sps:$4 sm:$0xff]   ;;  %v10419_v46 = vld [vmem:[%s14143_s1 + $0x17c8] ss:$16 sps:$4 sm:$0xff]  }
 0x2c4   : > { %6953 = vmatprep.subr.bf16.mxu0 %v10334_v47  ;;  %7641 = vmatprep.subr.bf16.mxu1 %v10337_v18  ;;  %v10424_v47 = vld [vmem:[%s14143_s1 + $0x17e4] ss:$16 sps:$4 sm:$0xff]   ;;  %v10427_v18 = vld [vmem:[%s14143_s1 + $0x17ec] ss:$16 sps:$4 sm:$0xff]  }
 0x2c6   : > { %6943 = vmatmul.mubr.bf16.vlgmr.msra.gmra.mrb[0].mxu0 %v8100_v19  ;;  %7631 = vmatmul.mubr.bf16.vlgmr.msra.gmra.mrb[0].mxu1 %v8100_v19  ;;  %v10422_v19 = vld [vmem:[%s14143_s1 + $0x17e0] ss:$16 sps:$4 sm:$0xff]  }
 0x2c7   : > { %6954 = vmatpush1.bf16.msra.mxu0 %v10332_v50  ;;  %7642 = vmatpush1.bf16.msra.mxu1 %v10335_v51  ;;  %v10425_v50 = vld [vmem:[%s14143_s1 + $0x17e8] ss:$16 sps:$4 sm:$0xff]   ;;  %v10430_v51 = vld [vmem:[%s14143_s1 + $0x1804] ss:$16 sps:$4 sm:$0xff]  }
 0x2c8   : > { %6955 = vmatprep.subr.bf16.mxu0 %v10340_v14  ;;  %7643 = vmatprep.subr.bf16.mxu1 %v10343_v45  ;;  %v10433_v14 = vld [vmem:[%s14143_s1 + $0x180c] ss:$16 sps:$4 sm:$0xff]   ;;  %v8102_v45 = vcombine.low %v13084_v48, %v13087_v49  ;;  %v10436_v48 = vld [vmem:[%s14143_s1 + $0x1824] ss:$16 sps:$4 sm:$0xff]  }
 0x2c9   : > { %6985 = vmatprep.mubr.bf16.mxu0 %v8103_v52  ;;  %7673 = vmatprep.mubr.bf16.mxu1 %v8103_v52  ;;  %v13286_v52 = vld [vmem:[%s10993_s24 + $0x60] sm:$0xff]  ;;  %v10439_v49 = vld [vmem:[%s14143_s1 + $0x182c] ss:$16 sps:$4 sm:$0xff]  }
 0x2cb   : > { %6956 = vmatpush1.bf16.msra.mxu0 %v10338_v53  ;;  %7644 = vmatpush1.bf16.msra.mxu1 %v10341_v54  ;;  %v13289_v53 = vld [vmem:[%s10993_s24 + $0xe0] sm:$0xff] }
 0x2cc   : > { %6957 = vmatprep.subr.bf16.mxu0 %v10346_v55  ;;  %7645 = vmatprep.subr.bf16.mxu1 %v10349_v56  ;;  %v10428_v54 = vld [vmem:[%s14143_s1 + $0x1800] ss:$16 sps:$4 sm:$0xff]   ;;  %v10431_v55 = vld [vmem:[%s14143_s1 + $0x1808] ss:$16 sps:$4 sm:$0xff]   ;;  %v8105_v56 = vcombine.high %v13286_v52, %v13289_v53 }
 0x2cf   : > { %6958 = vmatpush1.bf16.msra.mxu0 %v10344_v57  ;;  %7646 = vmatpush1.bf16.msra.mxu1 %v10347_v58  ;;  %v10434_v57 = vld [vmem:[%s14143_s1 + $0x1820] ss:$16 sps:$4 sm:$0xff]   ;;  %v10437_v58 = vld [vmem:[%s14143_s1 + $0x1828] ss:$16 sps:$4 sm:$0xff]  }
 0x2d0   : > { %6959 = vmatprep.subr.bf16.mxu0 %v10352_v59  ;;  %7647 = vmatprep.subr.bf16.mxu1 %v10355_v60  ;;  %v10442_v59 = vld [vmem:[%s14143_s1 + $0x1844] ss:$16 sps:$4 sm:$0xff]   ;;  %v10445_v60 = vld [vmem:[%s14143_s1 + $0x184c] ss:$16 sps:$4 sm:$0xff]  }
 0x2d3   : > { %6960 = vmatpush1.bf16.msra.mxu0 %v10350_v61  ;;  %7648 = vmatpush1.bf16.msra.mxu1 %v10353_v62  ;;  %v10440_v61 = vld [vmem:[%s14143_s1 + $0x1840] ss:$16 sps:$4 sm:$0xff]   ;;  %v10443_v62 = vld [vmem:[%s14143_s1 + $0x1848] ss:$16 sps:$4 sm:$0xff]  }
 0x2d4   : > { %6961 = vmatprep.subr.bf16.mxu0 %v10358_v63  ;;  %7649 = vmatprep.subr.bf16.mxu1 %v10361_v0  ;;  %v10448_v63 = vld [vmem:[%s14143_s1 + $0x1864] ss:$16 sps:$4 sm:$0xff]   ;;  %v10451_v0 = vld [vmem:[%s14143_s1 + $0x186c] ss:$16 sps:$4 sm:$0xff]  }
 0x2d7   : > { %6962 = vmatpush1.bf16.msra.mxu0 %v10356_v1  ;;  %7650 = vmatpush1.bf16.msra.mxu1 %v10359_v2  ;;  %v10446_v1 = vld [vmem:[%s14143_s1 + $0x1860] ss:$16 sps:$4 sm:$0xff]   ;;  %v10449_v2 = vld [vmem:[%s14143_s1 + $0x1868] ss:$16 sps:$4 sm:$0xff]  }
 0x2d8   : > { %6963 = vmatprep.subr.bf16.mxu0 %v10364_v3  ;;  %7651 = vmatprep.subr.bf16.mxu1 %v10367_v4  ;;  %v10454_v3 = vld [vmem:[%s14143_s1 + $0x1884] ss:$16 sps:$4 sm:$0xff]   ;;  %v10457_v4 = vld [vmem:[%s14143_s1 + $0x188c] ss:$16 sps:$4 sm:$0xff]  }
 0x2db   : > { %6964 = vmatpush1.bf16.msra.mxu0 %v10362_v5  ;;  %7652 = vmatpush1.bf16.msra.mxu1 %v10365_v6  ;;  %v10452_v5 = vld [vmem:[%s14143_s1 + $0x1880] ss:$16 sps:$4 sm:$0xff]   ;;  %v10455_v6 = vld [vmem:[%s14143_s1 + $0x1888] ss:$16 sps:$4 sm:$0xff]  }
 0x2dc   : > { %6965 = vmatprep.subr.bf16.mxu0 %v10370_v7  ;;  %7653 = vmatprep.subr.bf16.mxu1 %v10373_v8  ;;  %v10460_v7 = vld [vmem:[%s14143_s1 + $0x18a4] ss:$16 sps:$4 sm:$0xff]   ;;  %v10463_v8 = vld [vmem:[%s14143_s1 + $0x18ac] ss:$16 sps:$4 sm:$0xff]  }
 0x2df   : > { %6966 = vmatpush1.bf16.msra.mxu0 %v10368_v9  ;;  %7654 = vmatpush1.bf16.msra.mxu1 %v10371_v10  ;;  %v10458_v9 = vld [vmem:[%s14143_s1 + $0x18a0] ss:$16 sps:$4 sm:$0xff]   ;;  %v10461_v10 = vld [vmem:[%s14143_s1 + $0x18a8] ss:$16 sps:$4 sm:$0xff]  }
 0x2e0   : > { %6967 = vmatprep.subr.bf16.mxu0 %v10376_v11  ;;  %7655 = vmatprep.subr.bf16.mxu1 %v10379_v12  ;;  %v10466_v11 = vld [vmem:[%s14143_s1 + $0x18c4] ss:$16 sps:$4 sm:$0xff]   ;;  %v10469_v12 = vld [vmem:[%s14143_s1 + $0x18cc] ss:$16 sps:$4 sm:$0xff]  }
 0x2e3   : > { %6968 = vmatpush1.bf16.msra.mxu0 %v10374_v13  ;;  %7656 = vmatpush1.bf16.msra.mxu1 %v10377_v16  ;;  %v10464_v13 = vld [vmem:[%s14143_s1 + $0x18c0] ss:$16 sps:$4 sm:$0xff]   ;;  %v10467_v16 = vld [vmem:[%s14143_s1 + $0x18c8] ss:$16 sps:$4 sm:$0xff]  }
 0x2e4   : > { %6969 = vmatprep.subr.bf16.mxu0 %v10382_v17  ;;  %7657 = vmatprep.subr.bf16.mxu1 %v10385_v20  ;;  %v10472_v17 = vld [vmem:[%s14143_s1 + $0x18e4] ss:$16 sps:$4 sm:$0xff]   ;;  %v10475_v20 = vld [vmem:[%s14143_s1 + $0x18ec] ss:$16 sps:$4 sm:$0xff]  }
 0x2e7   : > { %6970 = vmatpush1.bf16.msra.mxu0 %v10380_v22  ;;  %7658 = vmatpush1.bf16.msra.mxu1 %v10383_v15  ;;  %v10470_v22 = vld [vmem:[%s14143_s1 + $0x18e0] ss:$16 sps:$4 sm:$0xff]   ;;  %v10473_v15 = vld [vmem:[%s14143_s1 + $0x18e8] ss:$16 sps:$4 sm:$0xff]  }
 0x2e8   : > { %6971 = vmatprep.subr.bf16.mxu0 %v10388_v23  ;;  %7659 = vmatprep.subr.bf16.mxu1 %v10391_v24  ;;  %v10478_v23 = vld [vmem:[%s14143_s1 + $0x1904] ss:$16 sps:$4 sm:$0xff]   ;;  %v10481_v24 = vld [vmem:[%s14143_s1 + $0x190c] ss:$16 sps:$4 sm:$0xff]  }
 0x2eb   : > { %6972 = vmatpush1.bf16.msra.mxu0 %v10386_v25  ;;  %7660 = vmatpush1.bf16.msra.mxu1 %v10389_v26  ;;  %v10476_v25 = vld [vmem:[%s14143_s1 + $0x1900] ss:$16 sps:$4 sm:$0xff]   ;;  %v10479_v26 = vld [vmem:[%s14143_s1 + $0x1908] ss:$16 sps:$4 sm:$0xff]  }
 0x2ec   : > { %6973 = vmatprep.subr.bf16.mxu0 %v10394_v27  ;;  %7661 = vmatprep.subr.bf16.mxu1 %v10397_v28  ;;  %v10484_v27 = vld [vmem:[%s14143_s1 + $0x1924] ss:$16 sps:$4 sm:$0xff]   ;;  %v10487_v28 = vld [vmem:[%s14143_s1 + $0x192c] ss:$16 sps:$4 sm:$0xff]  }
 0x2ef   : > { %6974 = vmatpush1.bf16.msra.mxu0 %v10392_v29  ;;  %7662 = vmatpush1.bf16.msra.mxu1 %v10395_v30  ;;  %v10482_v29 = vld [vmem:[%s14143_s1 + $0x1920] ss:$16 sps:$4 sm:$0xff]   ;;  %v10485_v30 = vld [vmem:[%s14143_s1 + $0x1928] ss:$16 sps:$4 sm:$0xff]  }
 0x2f0   : > { %6975 = vmatprep.subr.bf16.mxu0 %v10400_v31  ;;  %7663 = vmatprep.subr.bf16.mxu1 %v10403_v32  ;;  %v10490_v31 = vld [vmem:[%s14143_s1 + $0x1944] ss:$16 sps:$4 sm:$0xff]   ;;  %v10493_v32 = vld [vmem:[%s14143_s1 + $0x194c] ss:$16 sps:$4 sm:$0xff]  }
 0x2f3   : > { %6976 = vmatpush1.bf16.msra.mxu0 %v10398_v33  ;;  %7664 = vmatpush1.bf16.msra.mxu1 %v10401_v34  ;;  %v10488_v33 = vld [vmem:[%s14143_s1 + $0x1940] ss:$16 sps:$4 sm:$0xff]   ;;  %v10491_v34 = vld [vmem:[%s14143_s1 + $0x1948] ss:$16 sps:$4 sm:$0xff]  }
 0x2f4   : > { %6977 = vmatprep.subr.bf16.mxu0 %v10406_v35  ;;  %7665 = vmatprep.subr.bf16.mxu1 %v10409_v36  ;;  %v10496_v35 = vld [vmem:[%s14143_s1 + $0x1964] ss:$16 sps:$4 sm:$0xff]   ;;  %v10499_v36 = vld [vmem:[%s14143_s1 + $0x196c] ss:$16 sps:$4 sm:$0xff]  }
 0x2f7   : > { %6978 = vmatpush1.bf16.msra.mxu0 %v10404_v37  ;;  %7666 = vmatpush1.bf16.msra.mxu1 %v10407_v38  ;;  %v10494_v37 = vld [vmem:[%s14143_s1 + $0x1960] ss:$16 sps:$4 sm:$0xff]   ;;  %v10497_v38 = vld [vmem:[%s14143_s1 + $0x1968] ss:$16 sps:$4 sm:$0xff]  }
 0x2f8   : > { %6979 = vmatprep.subr.bf16.mxu0 %v10412_v39  ;;  %7667 = vmatprep.subr.bf16.mxu1 %v10415_v40  ;;  %v10502_v39 = vld [vmem:[%s14143_s1 + $0x1984] ss:$16 sps:$4 sm:$0xff]   ;;  %v10505_v40 = vld [vmem:[%s14143_s1 + $0x198c] ss:$16 sps:$4 sm:$0xff]  }
 0x2fb   : > { %6980 = vmatpush1.bf16.msra.mxu0 %v10410_v41  ;;  %7668 = vmatpush1.bf16.msra.mxu1 %v10413_v42  ;;  %v10500_v41 = vld [vmem:[%s14143_s1 + $0x1980] ss:$16 sps:$4 sm:$0xff]   ;;  %v10503_v42 = vld [vmem:[%s14143_s1 + $0x1988] ss:$16 sps:$4 sm:$0xff]  }
 0x2fc   : > { %6981 = vmatprep.subr.bf16.mxu0 %v10418_v43  ;;  %7669 = vmatprep.subr.bf16.mxu1 %v10421_v44  ;;  %v10508_v43 = vld [vmem:[%s14143_s1 + $0x19a4] ss:$16 sps:$4 sm:$0xff]   ;;  %v10511_v44 = vld [vmem:[%s14143_s1 + $0x19ac] ss:$16 sps:$4 sm:$0xff]  }
 0x2ff   : > { %6982 = vmatpush1.bf16.msra.mxu0 %v10416_v21  ;;  %7670 = vmatpush1.bf16.msra.mxu1 %v10419_v46  ;;  %v10506_v21 = vld [vmem:[%s14143_s1 + $0x19a0] ss:$16 sps:$4 sm:$0xff]   ;;  %v10509_v46 = vld [vmem:[%s14143_s1 + $0x19a8] ss:$16 sps:$4 sm:$0xff]  }
 0x300   : > { %6983 = vmatprep.subr.bf16.mxu0 %v10424_v47  ;;  %7671 = vmatprep.subr.bf16.mxu1 %v10427_v18  ;;  %v10514_v47 = vld [vmem:[%s14143_s1 + $0x19c4] ss:$16 sps:$4 sm:$0xff]   ;;  %v10517_v18 = vld [vmem:[%s14143_s1 + $0x19cc] ss:$16 sps:$4 sm:$0xff]  }
 0x303   : > { %6984 = vmatpush1.bf16.msra.mxu0 %v10422_v19  ;;  %7672 = vmatpush1.bf16.msra.mxu1 %v10425_v50  ;;  %v10512_v19 = vld [vmem:[%s14143_s1 + $0x19c0] ss:$16 sps:$4 sm:$0xff]   ;;  %v10515_v50 = vld [vmem:[%s14143_s1 + $0x19c8] ss:$16 sps:$4 sm:$0xff]  }
 0x304   : > { %6996 = vmatprep.subr.bf16.mxu0 %v10430_v51  ;;  %7684 = vmatprep.subr.bf16.mxu1 %v10433_v14  ;;  %v10520_v51 = vld [vmem:[%s14143_s1 + $0x19e4] ss:$16 sps:$4 sm:$0xff]   ;;  %v10523_v14 = vld [vmem:[%s14143_s1 + $0x19ec] ss:$16 sps:$4 sm:$0xff]  }
 0x306   : > { %6986 = vmatmul.mubr.bf16.vlgmr.msra.gmra.mrb[0].mxu0 %v8102_v45  ;;  %7674 = vmatmul.mubr.bf16.vlgmr.msra.gmra.mrb[0].mxu1 %v8102_v45  ;;  %v10518_v45 = vld [vmem:[%s14143_s1 + $0x19e0] ss:$16 sps:$4 sm:$0xff]  }
 0x307   : > { %6997 = vmatpush1.bf16.msra.mxu0 %v10428_v54  ;;  %7685 = vmatpush1.bf16.msra.mxu1 %v10431_v55  ;;  %v10521_v54 = vld [vmem:[%s14143_s1 + $0x19e8] ss:$16 sps:$4 sm:$0xff]   ;;  %v10526_v55 = vld [vmem:[%s14143_s1 + $0x1a04] ss:$16 sps:$4 sm:$0xff]  }
 0x308   : > { %6998 = vmatprep.subr.bf16.mxu0 %v10436_v48  ;;  %7686 = vmatprep.subr.bf16.mxu1 %v10439_v49  ;;  %v10529_v48 = vld [vmem:[%s14143_s1 + $0x1a0c] ss:$16 sps:$4 sm:$0xff]   ;;  %v8104_v49 = vcombine.low %v13286_v52, %v13289_v53  ;;  %v10532_v52 = vld [vmem:[%s14143_s1 + $0x1a24] ss:$16 sps:$4 sm:$0xff]  }
 0x309   : > { %7028 = vmatprep.mubr.bf16.mxu0 %v8105_v56  ;;  %7716 = vmatprep.mubr.bf16.mxu1 %v8105_v56  ;;  %v13488_v56 = vld [vmem:[%s10993_s24 + $0x68] sm:$0xff] }
 0x30a   : > { %v10535_v53 = vld [vmem:[%s14143_s1 + $0x1a2c] ss:$16 sps:$4 sm:$0xff]  }
 0x30b   : > { %6999 = vmatpush1.bf16.msra.mxu0 %v10434_v57  ;;  %7687 = vmatpush1.bf16.msra.mxu1 %v10437_v58  ;;  %v13491_v57 = vld [vmem:[%s10993_s24 + $0xe8] sm:$0xff]  ;;  %v10524_v58 = vld [vmem:[%s14143_s1 + $0x1a00] ss:$16 sps:$4 sm:$0xff]  }
 0x30c   : > { %7000 = vmatprep.subr.bf16.mxu0 %v10442_v59  ;;  %7688 = vmatprep.subr.bf16.mxu1 %v10445_v60  ;;  %v10527_v59 = vld [vmem:[%s14143_s1 + $0x1a08] ss:$16 sps:$4 sm:$0xff]   ;;  %v8107_v60 = vcombine.high %v13488_v56, %v13491_v57 }
 0x30f   : > { %7001 = vmatpush1.bf16.msra.mxu0 %v10440_v61  ;;  %7689 = vmatpush1.bf16.msra.mxu1 %v10443_v62  ;;  %v10530_v61 = vld [vmem:[%s14143_s1 + $0x1a20] ss:$16 sps:$4 sm:$0xff]   ;;  %v10533_v62 = vld [vmem:[%s14143_s1 + $0x1a28] ss:$16 sps:$4 sm:$0xff]  }
 0x310   : > { %7002 = vmatprep.subr.bf16.mxu0 %v10448_v63  ;;  %7690 = vmatprep.subr.bf16.mxu1 %v10451_v0  ;;  %v10538_v63 = vld [vmem:[%s14143_s1 + $0x1a44] ss:$16 sps:$4 sm:$0xff]   ;;  %v10541_v0 = vld [vmem:[%s14143_s1 + $0x1a4c] ss:$16 sps:$4 sm:$0xff]  }
 0x313   : > { %7003 = vmatpush1.bf16.msra.mxu0 %v10446_v1  ;;  %7691 = vmatpush1.bf16.msra.mxu1 %v10449_v2  ;;  %v10536_v1 = vld [vmem:[%s14143_s1 + $0x1a40] ss:$16 sps:$4 sm:$0xff]   ;;  %v10539_v2 = vld [vmem:[%s14143_s1 + $0x1a48] ss:$16 sps:$4 sm:$0xff]  }
 0x314   : > { %7004 = vmatprep.subr.bf16.mxu0 %v10454_v3  ;;  %7692 = vmatprep.subr.bf16.mxu1 %v10457_v4  ;;  %v10544_v3 = vld [vmem:[%s14143_s1 + $0x1a64] ss:$16 sps:$4 sm:$0xff]   ;;  %v10547_v4 = vld [vmem:[%s14143_s1 + $0x1a6c] ss:$16 sps:$4 sm:$0xff]  }
 0x317   : > { %7005 = vmatpush1.bf16.msra.mxu0 %v10452_v5  ;;  %7693 = vmatpush1.bf16.msra.mxu1 %v10455_v6  ;;  %v10542_v5 = vld [vmem:[%s14143_s1 + $0x1a60] ss:$16 sps:$4 sm:$0xff]   ;;  %v10545_v6 = vld [vmem:[%s14143_s1 + $0x1a68] ss:$16 sps:$4 sm:$0xff]  }
 0x318   : > { %7006 = vmatprep.subr.bf16.mxu0 %v10460_v7  ;;  %7694 = vmatprep.subr.bf16.mxu1 %v10463_v8  ;;  %v10550_v7 = vld [vmem:[%s14143_s1 + $0x1a84] ss:$16 sps:$4 sm:$0xff]   ;;  %v10553_v8 = vld [vmem:[%s14143_s1 + $0x1a8c] ss:$16 sps:$4 sm:$0xff]  }
 0x31b   : > { %7007 = vmatpush1.bf16.msra.mxu0 %v10458_v9  ;;  %7695 = vmatpush1.bf16.msra.mxu1 %v10461_v10  ;;  %v10548_v9 = vld [vmem:[%s14143_s1 + $0x1a80] ss:$16 sps:$4 sm:$0xff]   ;;  %v10551_v10 = vld [vmem:[%s14143_s1 + $0x1a88] ss:$16 sps:$4 sm:$0xff]  }
 0x31c   : > { %7008 = vmatprep.subr.bf16.mxu0 %v10466_v11  ;;  %7696 = vmatprep.subr.bf16.mxu1 %v10469_v12  ;;  %v10556_v11 = vld [vmem:[%s14143_s1 + $0x1aa4] ss:$16 sps:$4 sm:$0xff]   ;;  %v10559_v12 = vld [vmem:[%s14143_s1 + $0x1aac] ss:$16 sps:$4 sm:$0xff]  }
 0x31f   : > { %7009 = vmatpush1.bf16.msra.mxu0 %v10464_v13  ;;  %7697 = vmatpush1.bf16.msra.mxu1 %v10467_v16  ;;  %v10554_v13 = vld [vmem:[%s14143_s1 + $0x1aa0] ss:$16 sps:$4 sm:$0xff]   ;;  %v10557_v16 = vld [vmem:[%s14143_s1 + $0x1aa8] ss:$16 sps:$4 sm:$0xff]  }
 0x320   : > { %7010 = vmatprep.subr.bf16.mxu0 %v10472_v17  ;;  %7698 = vmatprep.subr.bf16.mxu1 %v10475_v20  ;;  %v10562_v17 = vld [vmem:[%s14143_s1 + $0x1ac4] ss:$16 sps:$4 sm:$0xff]   ;;  %v10565_v20 = vld [vmem:[%s14143_s1 + $0x1acc] ss:$16 sps:$4 sm:$0xff]  }
 0x323   : > { %7011 = vmatpush1.bf16.msra.mxu0 %v10470_v22  ;;  %7699 = vmatpush1.bf16.msra.mxu1 %v10473_v15  ;;  %v10560_v22 = vld [vmem:[%s14143_s1 + $0x1ac0] ss:$16 sps:$4 sm:$0xff]   ;;  %v10563_v15 = vld [vmem:[%s14143_s1 + $0x1ac8] ss:$16 sps:$4 sm:$0xff]  }
 0x324   : > { %7012 = vmatprep.subr.bf16.mxu0 %v10478_v23  ;;  %7700 = vmatprep.subr.bf16.mxu1 %v10481_v24  ;;  %v10568_v23 = vld [vmem:[%s14143_s1 + $0x1ae4] ss:$16 sps:$4 sm:$0xff]   ;;  %v10571_v24 = vld [vmem:[%s14143_s1 + $0x1aec] ss:$16 sps:$4 sm:$0xff]  }
 0x327   : > { %7013 = vmatpush1.bf16.msra.mxu0 %v10476_v25  ;;  %7701 = vmatpush1.bf16.msra.mxu1 %v10479_v26  ;;  %v10566_v25 = vld [vmem:[%s14143_s1 + $0x1ae0] ss:$16 sps:$4 sm:$0xff]   ;;  %v10569_v26 = vld [vmem:[%s14143_s1 + $0x1ae8] ss:$16 sps:$4 sm:$0xff]  }
 0x328   : > { %7014 = vmatprep.subr.bf16.mxu0 %v10484_v27  ;;  %7702 = vmatprep.subr.bf16.mxu1 %v10487_v28  ;;  %v10574_v27 = vld [vmem:[%s14143_s1 + $0x1b04] ss:$16 sps:$4 sm:$0xff]   ;;  %v10577_v28 = vld [vmem:[%s14143_s1 + $0x1b0c] ss:$16 sps:$4 sm:$0xff]  }
 0x32b   : > { %7015 = vmatpush1.bf16.msra.mxu0 %v10482_v29  ;;  %7703 = vmatpush1.bf16.msra.mxu1 %v10485_v30  ;;  %v10572_v29 = vld [vmem:[%s14143_s1 + $0x1b00] ss:$16 sps:$4 sm:$0xff]   ;;  %v10575_v30 = vld [vmem:[%s14143_s1 + $0x1b08] ss:$16 sps:$4 sm:$0xff]  }
 0x32c   : > { %7016 = vmatprep.subr.bf16.mxu0 %v10490_v31  ;;  %7704 = vmatprep.subr.bf16.mxu1 %v10493_v32  ;;  %v10580_v31 = vld [vmem:[%s14143_s1 + $0x1b24] ss:$16 sps:$4 sm:$0xff]   ;;  %v10583_v32 = vld [vmem:[%s14143_s1 + $0x1b2c] ss:$16 sps:$4 sm:$0xff]  }
 0x32f   : > { %7017 = vmatpush1.bf16.msra.mxu0 %v10488_v33  ;;  %7705 = vmatpush1.bf16.msra.mxu1 %v10491_v34  ;;  %v10578_v33 = vld [vmem:[%s14143_s1 + $0x1b20] ss:$16 sps:$4 sm:$0xff]   ;;  %v10581_v34 = vld [vmem:[%s14143_s1 + $0x1b28] ss:$16 sps:$4 sm:$0xff]  }
 0x330   : > { %7018 = vmatprep.subr.bf16.mxu0 %v10496_v35  ;;  %7706 = vmatprep.subr.bf16.mxu1 %v10499_v36  ;;  %v10586_v35 = vld [vmem:[%s14143_s1 + $0x1b44] ss:$16 sps:$4 sm:$0xff]   ;;  %v10589_v36 = vld [vmem:[%s14143_s1 + $0x1b4c] ss:$16 sps:$4 sm:$0xff]  }
 0x333   : > { %7019 = vmatpush1.bf16.msra.mxu0 %v10494_v37  ;;  %7707 = vmatpush1.bf16.msra.mxu1 %v10497_v38  ;;  %v10584_v37 = vld [vmem:[%s14143_s1 + $0x1b40] ss:$16 sps:$4 sm:$0xff]   ;;  %v10587_v38 = vld [vmem:[%s14143_s1 + $0x1b48] ss:$16 sps:$4 sm:$0xff]  }
 0x334   : > { %7020 = vmatprep.subr.bf16.mxu0 %v10502_v39  ;;  %7708 = vmatprep.subr.bf16.mxu1 %v10505_v40  ;;  %v10592_v39 = vld [vmem:[%s14143_s1 + $0x1b64] ss:$16 sps:$4 sm:$0xff]   ;;  %v10595_v40 = vld [vmem:[%s14143_s1 + $0x1b6c] ss:$16 sps:$4 sm:$0xff]  }
 0x337   : > { %7021 = vmatpush1.bf16.msra.mxu0 %v10500_v41  ;;  %7709 = vmatpush1.bf16.msra.mxu1 %v10503_v42  ;;  %v10590_v41 = vld [vmem:[%s14143_s1 + $0x1b60] ss:$16 sps:$4 sm:$0xff]   ;;  %v10593_v42 = vld [vmem:[%s14143_s1 + $0x1b68] ss:$16 sps:$4 sm:$0xff]  }
 0x338   : > { %7022 = vmatprep.subr.bf16.mxu0 %v10508_v43  ;;  %7710 = vmatprep.subr.bf16.mxu1 %v10511_v44  ;;  %v10598_v43 = vld [vmem:[%s14143_s1 + $0x1b84] ss:$16 sps:$4 sm:$0xff]   ;;  %v10601_v44 = vld [vmem:[%s14143_s1 + $0x1b8c] ss:$16 sps:$4 sm:$0xff]  }
 0x33b   : > { %7023 = vmatpush1.bf16.msra.mxu0 %v10506_v21  ;;  %7711 = vmatpush1.bf16.msra.mxu1 %v10509_v46  ;;  %v10596_v21 = vld [vmem:[%s14143_s1 + $0x1b80] ss:$16 sps:$4 sm:$0xff]   ;;  %v10599_v46 = vld [vmem:[%s14143_s1 + $0x1b88] ss:$16 sps:$4 sm:$0xff]  }
 0x33c   : > { %7024 = vmatprep.subr.bf16.mxu0 %v10514_v47  ;;  %7712 = vmatprep.subr.bf16.mxu1 %v10517_v18  ;;  %v10604_v47 = vld [vmem:[%s14143_s1 + $0x1ba4] ss:$16 sps:$4 sm:$0xff]   ;;  %v10607_v18 = vld [vmem:[%s14143_s1 + $0x1bac] ss:$16 sps:$4 sm:$0xff]  }
 0x33f   : > { %7025 = vmatpush1.bf16.msra.mxu0 %v10512_v19  ;;  %7713 = vmatpush1.bf16.msra.mxu1 %v10515_v50  ;;  %v10602_v19 = vld [vmem:[%s14143_s1 + $0x1ba0] ss:$16 sps:$4 sm:$0xff]   ;;  %v10605_v50 = vld [vmem:[%s14143_s1 + $0x1ba8] ss:$16 sps:$4 sm:$0xff]  }
 0x340   : > { %7026 = vmatprep.subr.bf16.mxu0 %v10520_v51  ;;  %7714 = vmatprep.subr.bf16.mxu1 %v10523_v14  ;;  %v10610_v51 = vld [vmem:[%s14143_s1 + $0x1bc4] ss:$16 sps:$4 sm:$0xff]   ;;  %v10613_v14 = vld [vmem:[%s14143_s1 + $0x1bcc] ss:$16 sps:$4 sm:$0xff]  }
 0x343   : > { %7027 = vmatpush1.bf16.msra.mxu0 %v10518_v45  ;;  %7715 = vmatpush1.bf16.msra.mxu1 %v10521_v54  ;;  %v10608_v45 = vld [vmem:[%s14143_s1 + $0x1bc0] ss:$16 sps:$4 sm:$0xff]   ;;  %v10611_v54 = vld [vmem:[%s14143_s1 + $0x1bc8] ss:$16 sps:$4 sm:$0xff]  }
 0x344   : > { %7039 = vmatprep.subr.bf16.mxu0 %v10526_v55  ;;  %7727 = vmatprep.subr.bf16.mxu1 %v10529_v48  ;;  %v10616_v55 = vld [vmem:[%s14143_s1 + $0x1be4] ss:$16 sps:$4 sm:$0xff]   ;;  %v10619_v48 = vld [vmem:[%s14143_s1 + $0x1bec] ss:$16 sps:$4 sm:$0xff]  }
 0x346   : > { %7029 = vmatmul.mubr.bf16.vlgmr.msra.gmra.mrb[0].mxu0 %v8104_v49  ;;  %7717 = vmatmul.mubr.bf16.vlgmr.msra.gmra.mrb[0].mxu1 %v8104_v49  ;;  %v10614_v49 = vld [vmem:[%s14143_s1 + $0x1be0] ss:$16 sps:$4 sm:$0xff]  }
 0x347   : > { %7040 = vmatpush1.bf16.msra.mxu0 %v10524_v58  ;;  %7728 = vmatpush1.bf16.msra.mxu1 %v10527_v59  ;;  %v10617_v58 = vld [vmem:[%s14143_s1 + $0x1be8] ss:$16 sps:$4 sm:$0xff]   ;;  %v10622_v59 = vld [vmem:[%s14143_s1 + $0x1c04] ss:$16 sps:$4 sm:$0xff]  }
 0x348   : > { %7041 = vmatprep.subr.bf16.mxu0 %v10532_v52  ;;  %7729 = vmatprep.subr.bf16.mxu1 %v10535_v53  ;;  %v10625_v52 = vld [vmem:[%s14143_s1 + $0x1c0c] ss:$16 sps:$4 sm:$0xff]   ;;  %v8106_v53 = vcombine.low %v13488_v56, %v13491_v57  ;;  %v10628_v56 = vld [vmem:[%s14143_s1 + $0x1c24] ss:$16 sps:$4 sm:$0xff]  }
 0x349   : > { %7071 = vmatprep.mubr.bf16.mxu0 %v8107_v60  ;;  %7759 = vmatprep.mubr.bf16.mxu1 %v8107_v60  ;;  %v13690_v60 = vld [vmem:[%s10993_s24 + $0x70] sm:$0xff]  ;;  %v10631_v57 = vld [vmem:[%s14143_s1 + $0x1c2c] ss:$16 sps:$4 sm:$0xff]  }
 0x34b   : > { %7042 = vmatpush1.bf16.msra.mxu0 %v10530_v61  ;;  %7730 = vmatpush1.bf16.msra.mxu1 %v10533_v62  ;;  %v13693_v61 = vld [vmem:[%s10993_s24 + $0xf0] sm:$0xff] }
 0x34c   : > { %7043 = vmatprep.subr.bf16.mxu0 %v10538_v63  ;;  %7731 = vmatprep.subr.bf16.mxu1 %v10541_v0  ;;  %v10620_v62 = vld [vmem:[%s14143_s1 + $0x1c00] ss:$16 sps:$4 sm:$0xff]   ;;  %v10623_v63 = vld [vmem:[%s14143_s1 + $0x1c08] ss:$16 sps:$4 sm:$0xff]   ;;  %v8109_v0 = vcombine.high %v13690_v60, %v13693_v61 }
 0x34f   : > { %7044 = vmatpush1.bf16.msra.mxu0 %v10536_v1  ;;  %7732 = vmatpush1.bf16.msra.mxu1 %v10539_v2  ;;  %v10626_v1 = vld [vmem:[%s14143_s1 + $0x1c20] ss:$16 sps:$4 sm:$0xff]   ;;  %v10629_v2 = vld [vmem:[%s14143_s1 + $0x1c28] ss:$16 sps:$4 sm:$0xff]  }
 0x350   : > { %7045 = vmatprep.subr.bf16.mxu0 %v10544_v3  ;;  %7733 = vmatprep.subr.bf16.mxu1 %v10547_v4  ;;  %v10634_v3 = vld [vmem:[%s14143_s1 + $0x1c44] ss:$16 sps:$4 sm:$0xff]   ;;  %v10637_v4 = vld [vmem:[%s14143_s1 + $0x1c4c] ss:$16 sps:$4 sm:$0xff]  }
 0x353   : > { %7046 = vmatpush1.bf16.msra.mxu0 %v10542_v5  ;;  %7734 = vmatpush1.bf16.msra.mxu1 %v10545_v6  ;;  %v10632_v5 = vld [vmem:[%s14143_s1 + $0x1c40] ss:$16 sps:$4 sm:$0xff]   ;;  %v10635_v6 = vld [vmem:[%s14143_s1 + $0x1c48] ss:$16 sps:$4 sm:$0xff]  }
 0x354   : > { %7047 = vmatprep.subr.bf16.mxu0 %v10550_v7  ;;  %7735 = vmatprep.subr.bf16.mxu1 %v10553_v8  ;;  %v10640_v7 = vld [vmem:[%s14143_s1 + $0x1c64] ss:$16 sps:$4 sm:$0xff]   ;;  %v10643_v8 = vld [vmem:[%s14143_s1 + $0x1c6c] ss:$16 sps:$4 sm:$0xff]  }
 0x357   : > { %7048 = vmatpush1.bf16.msra.mxu0 %v10548_v9  ;;  %7736 = vmatpush1.bf16.msra.mxu1 %v10551_v10  ;;  %v10638_v9 = vld [vmem:[%s14143_s1 + $0x1c60] ss:$16 sps:$4 sm:$0xff]   ;;  %v10641_v10 = vld [vmem:[%s14143_s1 + $0x1c68] ss:$16 sps:$4 sm:$0xff]  }
 0x358   : > { %7049 = vmatprep.subr.bf16.mxu0 %v10556_v11  ;;  %7737 = vmatprep.subr.bf16.mxu1 %v10559_v12  ;;  %v10646_v11 = vld [vmem:[%s14143_s1 + $0x1c84] ss:$16 sps:$4 sm:$0xff]   ;;  %v10649_v12 = vld [vmem:[%s14143_s1 + $0x1c8c] ss:$16 sps:$4 sm:$0xff]  }
 0x35b   : > { %7050 = vmatpush1.bf16.msra.mxu0 %v10554_v13  ;;  %7738 = vmatpush1.bf16.msra.mxu1 %v10557_v16  ;;  %v10644_v13 = vld [vmem:[%s14143_s1 + $0x1c80] ss:$16 sps:$4 sm:$0xff]   ;;  %v10647_v16 = vld [vmem:[%s14143_s1 + $0x1c88] ss:$16 sps:$4 sm:$0xff]  }
 0x35c   : > { %7051 = vmatprep.subr.bf16.mxu0 %v10562_v17  ;;  %7739 = vmatprep.subr.bf16.mxu1 %v10565_v20  ;;  %v10652_v17 = vld [vmem:[%s14143_s1 + $0x1ca4] ss:$16 sps:$4 sm:$0xff]   ;;  %v10655_v20 = vld [vmem:[%s14143_s1 + $0x1cac] ss:$16 sps:$4 sm:$0xff]  }
 0x35f   : > { %7052 = vmatpush1.bf16.msra.mxu0 %v10560_v22  ;;  %7740 = vmatpush1.bf16.msra.mxu1 %v10563_v15  ;;  %v10650_v22 = vld [vmem:[%s14143_s1 + $0x1ca0] ss:$16 sps:$4 sm:$0xff]   ;;  %v10653_v15 = vld [vmem:[%s14143_s1 + $0x1ca8] ss:$16 sps:$4 sm:$0xff]  }
 0x360   : > { %7053 = vmatprep.subr.bf16.mxu0 %v10568_v23  ;;  %7741 = vmatprep.subr.bf16.mxu1 %v10571_v24  ;;  %v10658_v23 = vld [vmem:[%s14143_s1 + $0x1cc4] ss:$16 sps:$4 sm:$0xff]   ;;  %v10661_v24 = vld [vmem:[%s14143_s1 + $0x1ccc] ss:$16 sps:$4 sm:$0xff]  }
 0x363   : > { %7054 = vmatpush1.bf16.msra.mxu0 %v10566_v25  ;;  %7742 = vmatpush1.bf16.msra.mxu1 %v10569_v26  ;;  %v10656_v25 = vld [vmem:[%s14143_s1 + $0x1cc0] ss:$16 sps:$4 sm:$0xff]   ;;  %v10659_v26 = vld [vmem:[%s14143_s1 + $0x1cc8] ss:$16 sps:$4 sm:$0xff]  }
 0x364   : > { %7055 = vmatprep.subr.bf16.mxu0 %v10574_v27  ;;  %7743 = vmatprep.subr.bf16.mxu1 %v10577_v28  ;;  %v10664_v27 = vld [vmem:[%s14143_s1 + $0x1ce4] ss:$16 sps:$4 sm:$0xff]   ;;  %v10667_v28 = vld [vmem:[%s14143_s1 + $0x1cec] ss:$16 sps:$4 sm:$0xff]  }
 0x367   : > { %7056 = vmatpush1.bf16.msra.mxu0 %v10572_v29  ;;  %7744 = vmatpush1.bf16.msra.mxu1 %v10575_v30  ;;  %v10662_v29 = vld [vmem:[%s14143_s1 + $0x1ce0] ss:$16 sps:$4 sm:$0xff]   ;;  %v10665_v30 = vld [vmem:[%s14143_s1 + $0x1ce8] ss:$16 sps:$4 sm:$0xff]  }
 0x368   : > { %7057 = vmatprep.subr.bf16.mxu0 %v10580_v31  ;;  %7745 = vmatprep.subr.bf16.mxu1 %v10583_v32  ;;  %v10670_v31 = vld [vmem:[%s14143_s1 + $0x1d04] ss:$16 sps:$4 sm:$0xff]   ;;  %v10673_v32 = vld [vmem:[%s14143_s1 + $0x1d0c] ss:$16 sps:$4 sm:$0xff]  }
 0x36b   : > { %7058 = vmatpush1.bf16.msra.mxu0 %v10578_v33  ;;  %7746 = vmatpush1.bf16.msra.mxu1 %v10581_v34  ;;  %v10668_v33 = vld [vmem:[%s14143_s1 + $0x1d00] ss:$16 sps:$4 sm:$0xff]   ;;  %v10671_v34 = vld [vmem:[%s14143_s1 + $0x1d08] ss:$16 sps:$4 sm:$0xff]  }
 0x36c   : > { %7059 = vmatprep.subr.bf16.mxu0 %v10586_v35  ;;  %7747 = vmatprep.subr.bf16.mxu1 %v10589_v36  ;;  %v10676_v35 = vld [vmem:[%s14143_s1 + $0x1d24] ss:$16 sps:$4 sm:$0xff]   ;;  %v10679_v36 = vld [vmem:[%s14143_s1 + $0x1d2c] ss:$16 sps:$4 sm:$0xff]  }
 0x36f   : > { %7060 = vmatpush1.bf16.msra.mxu0 %v10584_v37  ;;  %7748 = vmatpush1.bf16.msra.mxu1 %v10587_v38  ;;  %v10674_v37 = vld [vmem:[%s14143_s1 + $0x1d20] ss:$16 sps:$4 sm:$0xff]   ;;  %v10677_v38 = vld [vmem:[%s14143_s1 + $0x1d28] ss:$16 sps:$4 sm:$0xff]  }
 0x370   : > { %7061 = vmatprep.subr.bf16.mxu0 %v10592_v39  ;;  %7749 = vmatprep.subr.bf16.mxu1 %v10595_v40  ;;  %v10682_v39 = vld [vmem:[%s14143_s1 + $0x1d44] ss:$16 sps:$4 sm:$0xff]   ;;  %v10685_v40 = vld [vmem:[%s14143_s1 + $0x1d4c] ss:$16 sps:$4 sm:$0xff]  }
 0x373   : > { %7062 = vmatpush1.bf16.msra.mxu0 %v10590_v41  ;;  %7750 = vmatpush1.bf16.msra.mxu1 %v10593_v42  ;;  %v10680_v41 = vld [vmem:[%s14143_s1 + $0x1d40] ss:$16 sps:$4 sm:$0xff]   ;;  %v10683_v42 = vld [vmem:[%s14143_s1 + $0x1d48] ss:$16 sps:$4 sm:$0xff]  }
 0x374   : > { %7063 = vmatprep.subr.bf16.mxu0 %v10598_v43  ;;  %7751 = vmatprep.subr.bf16.mxu1 %v10601_v44  ;;  %v10688_v43 = vld [vmem:[%s14143_s1 + $0x1d64] ss:$16 sps:$4 sm:$0xff]   ;;  %v10691_v44 = vld [vmem:[%s14143_s1 + $0x1d6c] ss:$16 sps:$4 sm:$0xff]  }
 0x377   : > { %7064 = vmatpush1.bf16.msra.mxu0 %v10596_v21  ;;  %7752 = vmatpush1.bf16.msra.mxu1 %v10599_v46  ;;  %v10686_v21 = vld [vmem:[%s14143_s1 + $0x1d60] ss:$16 sps:$4 sm:$0xff]   ;;  %v10689_v46 = vld [vmem:[%s14143_s1 + $0x1d68] ss:$16 sps:$4 sm:$0xff]  }
 0x378   : > { %7065 = vmatprep.subr.bf16.mxu0 %v10604_v47  ;;  %7753 = vmatprep.subr.bf16.mxu1 %v10607_v18  ;;  %v10694_v47 = vld [vmem:[%s14143_s1 + $0x1d84] ss:$16 sps:$4 sm:$0xff]   ;;  %v10697_v18 = vld [vmem:[%s14143_s1 + $0x1d8c] ss:$16 sps:$4 sm:$0xff]  }
 0x37b   : > { %7066 = vmatpush1.bf16.msra.mxu0 %v10602_v19  ;;  %7754 = vmatpush1.bf16.msra.mxu1 %v10605_v50  ;;  %v10692_v19 = vld [vmem:[%s14143_s1 + $0x1d80] ss:$16 sps:$4 sm:$0xff]   ;;  %v10695_v50 = vld [vmem:[%s14143_s1 + $0x1d88] ss:$16 sps:$4 sm:$0xff]  }
 0x37c   : > { %7067 = vmatprep.subr.bf16.mxu0 %v10610_v51  ;;  %7755 = vmatprep.subr.bf16.mxu1 %v10613_v14  ;;  %v10700_v51 = vld [vmem:[%s14143_s1 + $0x1da4] ss:$16 sps:$4 sm:$0xff]   ;;  %v10703_v14 = vld [vmem:[%s14143_s1 + $0x1dac] ss:$16 sps:$4 sm:$0xff]  }
 0x37f   : > { %7068 = vmatpush1.bf16.msra.mxu0 %v10608_v45  ;;  %7756 = vmatpush1.bf16.msra.mxu1 %v10611_v54  ;;  %v10698_v45 = vld [vmem:[%s14143_s1 + $0x1da0] ss:$16 sps:$4 sm:$0xff]   ;;  %v10701_v54 = vld [vmem:[%s14143_s1 + $0x1da8] ss:$16 sps:$4 sm:$0xff]  }
 0x380   : > { %7069 = vmatprep.subr.bf16.mxu0 %v10616_v55  ;;  %7757 = vmatprep.subr.bf16.mxu1 %v10619_v48  ;;  %v10706_v55 = vld [vmem:[%s14143_s1 + $0x1dc4] ss:$16 sps:$4 sm:$0xff]   ;;  %v10709_v48 = vld [vmem:[%s14143_s1 + $0x1dcc] ss:$16 sps:$4 sm:$0xff]  }
 0x383   : > { %7070 = vmatpush1.bf16.msra.mxu0 %v10614_v49  ;;  %7758 = vmatpush1.bf16.msra.mxu1 %v10617_v58  ;;  %v10704_v49 = vld [vmem:[%s14143_s1 + $0x1dc0] ss:$16 sps:$4 sm:$0xff]   ;;  %v10707_v58 = vld [vmem:[%s14143_s1 + $0x1dc8] ss:$16 sps:$4 sm:$0xff]  }
 0x384   : > { %7082 = vmatprep.subr.bf16.mxu0 %v10622_v59  ;;  %7770 = vmatprep.subr.bf16.mxu1 %v10625_v52  ;;  %v10712_v59 = vld [vmem:[%s14143_s1 + $0x1de4] ss:$16 sps:$4 sm:$0xff]   ;;  %v10715_v52 = vld [vmem:[%s14143_s1 + $0x1dec] ss:$16 sps:$4 sm:$0xff]  }
 0x386   : > { %7072 = vmatmul.mubr.bf16.vlgmr.msra.gmra.mrb[0].mxu0 %v8106_v53  ;;  %7760 = vmatmul.mubr.bf16.vlgmr.msra.gmra.mrb[0].mxu1 %v8106_v53  ;;  %v10710_v53 = vld [vmem:[%s14143_s1 + $0x1de0] ss:$16 sps:$4 sm:$0xff]  }
 0x387   : > { %7083 = vmatpush1.bf16.msra.mxu0 %v10620_v62  ;;  %7771 = vmatpush1.bf16.msra.mxu1 %v10623_v63  ;;  %v10713_v62 = vld [vmem:[%s14143_s1 + $0x1de8] ss:$16 sps:$4 sm:$0xff]   ;;  %v10718_v63 = vld [vmem:[%s14143_s1 + $0x1e04] ss:$16 sps:$4 sm:$0xff]  }
 0x388   : > { %7084 = vmatprep.subr.bf16.mxu0 %v10628_v56  ;;  %7772 = vmatprep.subr.bf16.mxu1 %v10631_v57  ;;  %v10721_v56 = vld [vmem:[%s14143_s1 + $0x1e0c] ss:$16 sps:$4 sm:$0xff]   ;;  %v8108_v57 = vcombine.low %v13690_v60, %v13693_v61  ;;  %v10724_v60 = vld [vmem:[%s14143_s1 + $0x1e24] ss:$16 sps:$4 sm:$0xff]  }
 0x389   : > { %7114 = vmatprep.mubr.bf16.mxu0 %v8109_v0  ;;  %7802 = vmatprep.mubr.bf16.mxu1 %v8109_v0  ;;  %v13892_v0 = vld [vmem:[%s10993_s24 + $0x78] sm:$0xff] }
 0x38a   : > { %v10727_v61 = vld [vmem:[%s14143_s1 + $0x1e2c] ss:$16 sps:$4 sm:$0xff]  }
 0x38b   : > { %7085 = vmatpush1.bf16.msra.mxu0 %v10626_v1  ;;  %7773 = vmatpush1.bf16.msra.mxu1 %v10629_v2  ;;  %v13895_v1 = vld [vmem:[%s10993_s24 + $0xf8] sm:$0xff]  ;;  %v10716_v2 = vld [vmem:[%s14143_s1 + $0x1e00] ss:$16 sps:$4 sm:$0xff]  }
 0x38c   : > { %7086 = vmatprep.subr.bf16.mxu0 %v10634_v3  ;;  %7774 = vmatprep.subr.bf16.mxu1 %v10637_v4  ;;  %v10719_v3 = vld [vmem:[%s14143_s1 + $0x1e08] ss:$16 sps:$4 sm:$0xff]   ;;  %v8111_v4 = vcombine.high %v13892_v0, %v13895_v1 }
 0x38f   : > { %7087 = vmatpush1.bf16.msra.mxu0 %v10632_v5  ;;  %7775 = vmatpush1.bf16.msra.mxu1 %v10635_v6  ;;  %v10722_v5 = vld [vmem:[%s14143_s1 + $0x1e20] ss:$16 sps:$4 sm:$0xff]   ;;  %v10725_v6 = vld [vmem:[%s14143_s1 + $0x1e28] ss:$16 sps:$4 sm:$0xff]  }
 0x390   : > { %7088 = vmatprep.subr.bf16.mxu0 %v10640_v7  ;;  %7776 = vmatprep.subr.bf16.mxu1 %v10643_v8  ;;  %v10730_v7 = vld [vmem:[%s14143_s1 + $0x1e44] ss:$16 sps:$4 sm:$0xff]   ;;  %v10733_v8 = vld [vmem:[%s14143_s1 + $0x1e4c] ss:$16 sps:$4 sm:$0xff]  }
 0x393   : > { %7089 = vmatpush1.bf16.msra.mxu0 %v10638_v9  ;;  %7777 = vmatpush1.bf16.msra.mxu1 %v10641_v10  ;;  %v10728_v9 = vld [vmem:[%s14143_s1 + $0x1e40] ss:$16 sps:$4 sm:$0xff]   ;;  %v10731_v10 = vld [vmem:[%s14143_s1 + $0x1e48] ss:$16 sps:$4 sm:$0xff]  }
 0x394   : > { %7090 = vmatprep.subr.bf16.mxu0 %v10646_v11  ;;  %7778 = vmatprep.subr.bf16.mxu1 %v10649_v12  ;;  %v10736_v11 = vld [vmem:[%s14143_s1 + $0x1e64] ss:$16 sps:$4 sm:$0xff]   ;;  %v10739_v12 = vld [vmem:[%s14143_s1 + $0x1e6c] ss:$16 sps:$4 sm:$0xff]  }
 0x397   : > { %7091 = vmatpush1.bf16.msra.mxu0 %v10644_v13  ;;  %7779 = vmatpush1.bf16.msra.mxu1 %v10647_v16  ;;  %v10734_v13 = vld [vmem:[%s14143_s1 + $0x1e60] ss:$16 sps:$4 sm:$0xff]   ;;  %v10737_v16 = vld [vmem:[%s14143_s1 + $0x1e68] ss:$16 sps:$4 sm:$0xff]  }
 0x398   : > { %7092 = vmatprep.subr.bf16.mxu0 %v10652_v17  ;;  %7780 = vmatprep.subr.bf16.mxu1 %v10655_v20  ;;  %v10742_v17 = vld [vmem:[%s14143_s1 + $0x1e84] ss:$16 sps:$4 sm:$0xff]   ;;  %v10745_v20 = vld [vmem:[%s14143_s1 + $0x1e8c] ss:$16 sps:$4 sm:$0xff]  }
 0x39b   : > { %7093 = vmatpush1.bf16.msra.mxu0 %v10650_v22  ;;  %7781 = vmatpush1.bf16.msra.mxu1 %v10653_v15  ;;  %v10740_v22 = vld [vmem:[%s14143_s1 + $0x1e80] ss:$16 sps:$4 sm:$0xff]   ;;  %v10743_v15 = vld [vmem:[%s14143_s1 + $0x1e88] ss:$16 sps:$4 sm:$0xff]  }
 0x39c   : > { %7094 = vmatprep.subr.bf16.mxu0 %v10658_v23  ;;  %7782 = vmatprep.subr.bf16.mxu1 %v10661_v24  ;;  %v10748_v23 = vld [vmem:[%s14143_s1 + $0x1ea4] ss:$16 sps:$4 sm:$0xff]   ;;  %v10751_v24 = vld [vmem:[%s14143_s1 + $0x1eac] ss:$16 sps:$4 sm:$0xff]  }
 0x39f   : > { %7095 = vmatpush1.bf16.msra.mxu0 %v10656_v25  ;;  %7783 = vmatpush1.bf16.msra.mxu1 %v10659_v26  ;;  %v10746_v25 = vld [vmem:[%s14143_s1 + $0x1ea0] ss:$16 sps:$4 sm:$0xff]   ;;  %v10749_v26 = vld [vmem:[%s14143_s1 + $0x1ea8] ss:$16 sps:$4 sm:$0xff]  }
 0x3a0   : > { %7096 = vmatprep.subr.bf16.mxu0 %v10664_v27  ;;  %7784 = vmatprep.subr.bf16.mxu1 %v10667_v28  ;;  %v10754_v27 = vld [vmem:[%s14143_s1 + $0x1ec4] ss:$16 sps:$4 sm:$0xff]   ;;  %v10757_v28 = vld [vmem:[%s14143_s1 + $0x1ecc] ss:$16 sps:$4 sm:$0xff]  }
 0x3a3   : > { %7097 = vmatpush1.bf16.msra.mxu0 %v10662_v29  ;;  %7785 = vmatpush1.bf16.msra.mxu1 %v10665_v30  ;;  %v10752_v29 = vld [vmem:[%s14143_s1 + $0x1ec0] ss:$16 sps:$4 sm:$0xff]   ;;  %v10755_v30 = vld [vmem:[%s14143_s1 + $0x1ec8] ss:$16 sps:$4 sm:$0xff]  }
 0x3a4   : > { %7098 = vmatprep.subr.bf16.mxu0 %v10670_v31  ;;  %7786 = vmatprep.subr.bf16.mxu1 %v10673_v32  ;;  %v10760_v31 = vld [vmem:[%s14143_s1 + $0x1ee4] ss:$16 sps:$4 sm:$0xff]   ;;  %v10763_v32 = vld [vmem:[%s14143_s1 + $0x1eec] ss:$16 sps:$4 sm:$0xff]  }
 0x3a7   : > { %7099 = vmatpush1.bf16.msra.mxu0 %v10668_v33  ;;  %7787 = vmatpush1.bf16.msra.mxu1 %v10671_v34  ;;  %v10758_v33 = vld [vmem:[%s14143_s1 + $0x1ee0] ss:$16 sps:$4 sm:$0xff]   ;;  %v10761_v34 = vld [vmem:[%s14143_s1 + $0x1ee8] ss:$16 sps:$4 sm:$0xff]  }
 0x3a8   : > { %7100 = vmatprep.subr.bf16.mxu0 %v10676_v35  ;;  %7788 = vmatprep.subr.bf16.mxu1 %v10679_v36  ;;  %v10766_v35 = vld [vmem:[%s14143_s1 + $0x1f04] ss:$16 sps:$4 sm:$0xff]   ;;  %v10769_v36 = vld [vmem:[%s14143_s1 + $0x1f0c] ss:$16 sps:$4 sm:$0xff]  }
 0x3ab   : > { %7101 = vmatpush1.bf16.msra.mxu0 %v10674_v37  ;;  %7789 = vmatpush1.bf16.msra.mxu1 %v10677_v38  ;;  %v10764_v37 = vld [vmem:[%s14143_s1 + $0x1f00] ss:$16 sps:$4 sm:$0xff]   ;;  %v10767_v38 = vld [vmem:[%s14143_s1 + $0x1f08] ss:$16 sps:$4 sm:$0xff]  }
 0x3ac   : > { %7102 = vmatprep.subr.bf16.mxu0 %v10682_v39  ;;  %7790 = vmatprep.subr.bf16.mxu1 %v10685_v40  ;;  %v10772_v39 = vld [vmem:[%s14143_s1 + $0x1f24] ss:$16 sps:$4 sm:$0xff]   ;;  %v10775_v40 = vld [vmem:[%s14143_s1 + $0x1f2c] ss:$16 sps:$4 sm:$0xff]  }
 0x3af   : > { %7103 = vmatpush1.bf16.msra.mxu0 %v10680_v41  ;;  %7791 = vmatpush1.bf16.msra.mxu1 %v10683_v42  ;;  %v10770_v41 = vld [vmem:[%s14143_s1 + $0x1f20] ss:$16 sps:$4 sm:$0xff]   ;;  %v10773_v42 = vld [vmem:[%s14143_s1 + $0x1f28] ss:$16 sps:$4 sm:$0xff]  }
 0x3b0   : > { %7104 = vmatprep.subr.bf16.mxu0 %v10688_v43  ;;  %7792 = vmatprep.subr.bf16.mxu1 %v10691_v44  ;;  %v10778_v43 = vld [vmem:[%s14143_s1 + $0x1f44] ss:$16 sps:$4 sm:$0xff]   ;;  %v10781_v44 = vld [vmem:[%s14143_s1 + $0x1f4c] ss:$16 sps:$4 sm:$0xff]  }
 0x3b3   : > { %7105 = vmatpush1.bf16.msra.mxu0 %v10686_v21  ;;  %7793 = vmatpush1.bf16.msra.mxu1 %v10689_v46  ;;  %v10776_v21 = vld [vmem:[%s14143_s1 + $0x1f40] ss:$16 sps:$4 sm:$0xff]   ;;  %v10779_v46 = vld [vmem:[%s14143_s1 + $0x1f48] ss:$16 sps:$4 sm:$0xff]  }
 0x3b4   : > { %7106 = vmatprep.subr.bf16.mxu0 %v10694_v47  ;;  %7794 = vmatprep.subr.bf16.mxu1 %v10697_v18  ;;  %v10784_v47 = vld [vmem:[%s14143_s1 + $0x1f64] ss:$16 sps:$4 sm:$0xff]   ;;  %v10787_v18 = vld [vmem:[%s14143_s1 + $0x1f6c] ss:$16 sps:$4 sm:$0xff]  }
 0x3b7   : > { %7107 = vmatpush1.bf16.msra.mxu0 %v10692_v19  ;;  %7795 = vmatpush1.bf16.msra.mxu1 %v10695_v50  ;;  %v10782_v19 = vld [vmem:[%s14143_s1 + $0x1f60] ss:$16 sps:$4 sm:$0xff]   ;;  %v10785_v50 = vld [vmem:[%s14143_s1 + $0x1f68] ss:$16 sps:$4 sm:$0xff]  }
 0x3b8   : > { %7108 = vmatprep.subr.bf16.mxu0 %v10700_v51  ;;  %7796 = vmatprep.subr.bf16.mxu1 %v10703_v14  ;;  %v10790_v51 = vld [vmem:[%s14143_s1 + $0x1f84] ss:$16 sps:$4 sm:$0xff]   ;;  %v10793_v14 = vld [vmem:[%s14143_s1 + $0x1f8c] ss:$16 sps:$4 sm:$0xff]  }
 0x3bb   : > { %7109 = vmatpush1.bf16.msra.mxu0 %v10698_v45  ;;  %7797 = vmatpush1.bf16.msra.mxu1 %v10701_v54  ;;  %v10788_v45 = vld [vmem:[%s14143_s1 + $0x1f80] ss:$16 sps:$4 sm:$0xff]   ;;  %v10791_v54 = vld [vmem:[%s14143_s1 + $0x1f88] ss:$16 sps:$4 sm:$0xff]  }
 0x3bc   : > { %7110 = vmatprep.subr.bf16.mxu0 %v10706_v55  ;;  %7798 = vmatprep.subr.bf16.mxu1 %v10709_v48  ;;  %v10796_v55 = vld [vmem:[%s14143_s1 + $0x1fa4] ss:$16 sps:$4 sm:$0xff]   ;;  %v10799_v48 = vld [vmem:[%s14143_s1 + $0x1fac] ss:$16 sps:$4 sm:$0xff]  }
 0x3bf   : > { %7111 = vmatpush1.bf16.msra.mxu0 %v10704_v49  ;;  %7799 = vmatpush1.bf16.msra.mxu1 %v10707_v58  ;;  %v10794_v49 = vld [vmem:[%s14143_s1 + $0x1fa0] ss:$16 sps:$4 sm:$0xff]   ;;  %v10797_v58 = vld [vmem:[%s14143_s1 + $0x1fa8] ss:$16 sps:$4 sm:$0xff]  }
 0x3c0   : > { %7112 = vmatprep.subr.bf16.mxu0 %v10712_v59  ;;  %7800 = vmatprep.subr.bf16.mxu1 %v10715_v52  ;;  %v10802_v59 = vld [vmem:[%s14143_s1 + $0x1fc4] ss:$16 sps:$4 sm:$0xff]   ;;  %v10805_v52 = vld [vmem:[%s14143_s1 + $0x1fcc] ss:$16 sps:$4 sm:$0xff]  }
 0x3c3   : > { %7113 = vmatpush1.bf16.msra.mxu0 %v10710_v53  ;;  %7801 = vmatpush1.bf16.msra.mxu1 %v10713_v62  ;;  %v10800_v53 = vld [vmem:[%s14143_s1 + $0x1fc0] ss:$16 sps:$4 sm:$0xff]   ;;  %v10803_v62 = vld [vmem:[%s14143_s1 + $0x1fc8] ss:$16 sps:$4 sm:$0xff]  }
 0x3c4   : > { %7125 = vmatprep.subr.bf16.mxu0 %v10718_v63  ;;  %7813 = vmatprep.subr.bf16.mxu1 %v10721_v56  ;;  %v10808_v63 = vld [vmem:[%s14143_s1 + $0x1fe4] ss:$16 sps:$4 sm:$0xff]   ;;  %v10811_v56 = vld [vmem:[%s14143_s1 + $0x1fec] ss:$16 sps:$4 sm:$0xff]  }
 0x3c6   : > { %7115 = vmatmul.mubr.bf16.vlgmr.msra.gmra.mrb[0].mxu0 %v8108_v57  ;;  %7803 = vmatmul.mubr.bf16.vlgmr.msra.gmra.mrb[0].mxu1 %v8108_v57  ;;  %v10806_v57 = vld [vmem:[%s14143_s1 + $0x1fe0] ss:$16 sps:$4 sm:$0xff]  }
 0x3c7   : > { %7126 = vmatpush1.bf16.msra.mxu0 %v10716_v2  ;;  %7814 = vmatpush1.bf16.msra.mxu1 %v10719_v3  ;;  %v10809_v2 = vld [vmem:[%s14143_s1 + $0x1fe8] ss:$16 sps:$4 sm:$0xff]   ;;  %v8110_v3 = vcombine.low %v13892_v0, %v13895_v1 }
 0x3c8   : > { %7127 = vmatprep.subr.bf16.mxu0 %v10724_v60  ;;  %7815 = vmatprep.subr.bf16.mxu1 %v10727_v61 }
 0x3c9   : > { %7157 = vmatprep.mubr.bf16.mxu0 %v8111_v4  ;;  %7845 = vmatprep.mubr.bf16.mxu1 %v8111_v4 }
 0x3cb   : > { %7128 = vmatpush1.bf16.msra.mxu0 %v10722_v5  ;;  %7816 = vmatpush1.bf16.msra.mxu1 %v10725_v6 }
 0x3cc   : > { %7129 = vmatprep.subr.bf16.mxu0 %v10730_v7  ;;  %7817 = vmatprep.subr.bf16.mxu1 %v10733_v8 }
 0x3cf   : > { %7130 = vmatpush1.bf16.msra.mxu0 %v10728_v9  ;;  %7818 = vmatpush1.bf16.msra.mxu1 %v10731_v10 }
 0x3d0   : > { %7131 = vmatprep.subr.bf16.mxu0 %v10736_v11  ;;  %7819 = vmatprep.subr.bf16.mxu1 %v10739_v12 }
 0x3d3   : > { %7132 = vmatpush1.bf16.msra.mxu0 %v10734_v13  ;;  %7820 = vmatpush1.bf16.msra.mxu1 %v10737_v16 }
 0x3d4   : > { %7133 = vmatprep.subr.bf16.mxu0 %v10742_v17  ;;  %7821 = vmatprep.subr.bf16.mxu1 %v10745_v20 }
 0x3d7   : > { %7134 = vmatpush1.bf16.msra.mxu0 %v10740_v22  ;;  %7822 = vmatpush1.bf16.msra.mxu1 %v10743_v15 }
 0x3d8   : > { %7135 = vmatprep.subr.bf16.mxu0 %v10748_v23  ;;  %7823 = vmatprep.subr.bf16.mxu1 %v10751_v24 }
 0x3db   : > { %7136 = vmatpush1.bf16.msra.mxu0 %v10746_v25  ;;  %7824 = vmatpush1.bf16.msra.mxu1 %v10749_v26 }
 0x3dc   : > { %7137 = vmatprep.subr.bf16.mxu0 %v10754_v27  ;;  %7825 = vmatprep.subr.bf16.mxu1 %v10757_v28 }
 0x3df   : > { %7138 = vmatpush1.bf16.msra.mxu0 %v10752_v29  ;;  %7826 = vmatpush1.bf16.msra.mxu1 %v10755_v30 }
 0x3e0   : > { %7139 = vmatprep.subr.bf16.mxu0 %v10760_v31  ;;  %7827 = vmatprep.subr.bf16.mxu1 %v10763_v32 }
 0x3e3   : > { %7140 = vmatpush1.bf16.msra.mxu0 %v10758_v33  ;;  %7828 = vmatpush1.bf16.msra.mxu1 %v10761_v34 }
 0x3e4   : > { %7141 = vmatprep.subr.bf16.mxu0 %v10766_v35  ;;  %7829 = vmatprep.subr.bf16.mxu1 %v10769_v36 }
 0x3e7   : > { %7142 = vmatpush1.bf16.msra.mxu0 %v10764_v37  ;;  %7830 = vmatpush1.bf16.msra.mxu1 %v10767_v38 }
 0x3e8   : > { %7143 = vmatprep.subr.bf16.mxu0 %v10772_v39  ;;  %7831 = vmatprep.subr.bf16.mxu1 %v10775_v40 }
 0x3eb   : > { %7144 = vmatpush1.bf16.msra.mxu0 %v10770_v41  ;;  %7832 = vmatpush1.bf16.msra.mxu1 %v10773_v42 }
 0x3ec   : > { %7145 = vmatprep.subr.bf16.mxu0 %v10778_v43  ;;  %7833 = vmatprep.subr.bf16.mxu1 %v10781_v44 }
 0x3ef   : > { %7146 = vmatpush1.bf16.msra.mxu0 %v10776_v21  ;;  %7834 = vmatpush1.bf16.msra.mxu1 %v10779_v46 }
 0x3f0   : > { %7147 = vmatprep.subr.bf16.mxu0 %v10784_v47  ;;  %7835 = vmatprep.subr.bf16.mxu1 %v10787_v18 }
 0x3f3   : > { %7148 = vmatpush1.bf16.msra.mxu0 %v10782_v19  ;;  %7836 = vmatpush1.bf16.msra.mxu1 %v10785_v50 }
 0x3f4   : > { %7149 = vmatprep.subr.bf16.mxu0 %v10790_v51  ;;  %7837 = vmatprep.subr.bf16.mxu1 %v10793_v14 }
 0x3f7   : > { %7150 = vmatpush1.bf16.msra.mxu0 %v10788_v45  ;;  %7838 = vmatpush1.bf16.msra.mxu1 %v10791_v54 }
 0x3f8   : > { %7151 = vmatprep.subr.bf16.mxu0 %v10796_v55  ;;  %7839 = vmatprep.subr.bf16.mxu1 %v10799_v48 }
 0x3fb   : > { %7152 = vmatpush1.bf16.msra.mxu0 %v10794_v49  ;;  %7840 = vmatpush1.bf16.msra.mxu1 %v10797_v58 }
 0x3fc   : > { %7153 = vmatprep.subr.bf16.mxu0 %v10802_v59  ;;  %7841 = vmatprep.subr.bf16.mxu1 %v10805_v52 }
 0x3ff   : > { %7154 = vmatpush1.bf16.msra.mxu0 %v10800_v53  ;;  %7842 = vmatpush1.bf16.msra.mxu1 %v10803_v62 }
 0x400   : > { %7155 = vmatprep.subr.bf16.mxu0 %v10808_v63  ;;  %7843 = vmatprep.subr.bf16.mxu1 %v10811_v56 }
 0x403   : > { %7156 = vmatpush1.bf16.msra.mxu0 %v10806_v57  ;;  %7844 = vmatpush1.bf16.msra.mxu1 %v10809_v2 }
 0x406   : > { %7158 = vmatmul.mubr.bf16.vlgmr.msra.gmra.mrb[0].mxu0 %v8110_v3  ;;  %7846 = vmatmul.mubr.bf16.vlgmr.msra.gmra.mrb[0].mxu1 %v8110_v3 }
 0x4d9   : > { %v14087_v60 = vpop.f32.mrb[0].mxu0  ;;  %v14089_v61 = vpop.f32.mrb[0].mxu1 }
 0x4da   : > { %v14091_v4 = vpop.f32.mrb[1].mxu0  ;;  %v14093_v5 = vpop.f32.mrb[1].mxu1  ;;  %v7884_v6 = vmul.f32 %v14087_v60, %v14087_v60  ;;  %v7886_v7 = vmul.f32 %v14089_v61, %v14089_v61 }
 0x4db   : > { %v7885_v0 = vmul.f32 %v14091_v4, %v14091_v4  ;;  %v7887_v1 = vmul.f32 %v14093_v5, %v14093_v5  ;;  %v14103_v8 = vpop.f32.mrb[2].mxu0  ;;  %v14105_v9 = vpop.f32.mrb[2].mxu1 }
 0x4dc   : > { %v7856_v10 = vadd.f32 %v14103_v8, %v14087_v60  ;;  %v7888_v11 = vmul.f32 %v14103_v8, %v14103_v8  ;;  %v7870_v12 = vadd.f32 %v14105_v9, %v14089_v61  ;;  %v7890_v13 = vmul.f32 %v14105_v9, %v14105_v9  ;;  %v14115_v16 = vpop.f32.mrb[3].mxu0  ;;  %v14117_v17 = vpop.f32.mrb[3].mxu1 }
 0x4dd   : > { %v7863_v20 = vadd.f32 %v14115_v16, %v14091_v4  ;;  %v7889_v22 = vmul.f32 %v14115_v16, %v14115_v16  ;;  %v7877_v15 = vadd.f32 %v14117_v17, %v14093_v5  ;;  %v7891_v23 = vmul.f32 %v14117_v17, %v14117_v17 }
 0x4de   : > { %v7857_v24 = vrot.slane %v7856_v10, 4  ;;  %v7892_v25 = vadd.f32 %v7888_v11, %v7884_v6  ;;  %v7871_v26 = vrot.slane %v7870_v12, 4  ;;  %v7906_v27 = vadd.f32 %v7890_v13, %v7886_v7 }
 0x4df   : > { %v7864_v28 = vrot.slane %v7863_v20, 4  ;;  %v7899_v29 = vadd.f32 %v7889_v22, %v7885_v0  ;;  %v7878_v30 = vrot.slane %v7877_v15, 4  ;;  %v7913_v31 = vadd.f32 %v7891_v23, %v7887_v1 }
 0x4e0   : > { %v7858_v32 = vadd.f32 %v7857_v24, %v7856_v10  ;;  %v7893_v33 = vrot.slane %v7892_v25, 4  ;;  %v7872_v34 = vadd.f32 %v7871_v26, %v7870_v12  ;;  %v7907_v35 = vrot.slane %v7906_v27, 4 }
 0x4e1   : > { %v7865_v36 = vadd.f32 %v7864_v28, %v7863_v20  ;;  %v7900_v37 = vrot.slane %v7899_v29, 4  ;;  %v7879_v38 = vadd.f32 %v7878_v30, %v7877_v15  ;;  %v7914_v39 = vrot.slane %v7913_v31, 4 }
 0x4e2   : > { %v7859_v40 = vrot.slane %v7858_v32, 2  ;;  %v7894_v41 = vadd.f32 %v7893_v33, %v7892_v25  ;;  %v7873_v42 = vrot.slane %v7872_v34, 2  ;;  %v7908_v43 = vadd.f32 %v7907_v35, %v7906_v27 }
 0x4e3   : > { %v7866_v44 = vrot.slane %v7865_v36, 2  ;;  %v7901_v21 = vadd.f32 %v7900_v37, %v7899_v29  ;;  %v7880_v46 = vrot.slane %v7879_v38, 2  ;;  %v7915_v47 = vadd.f32 %v7914_v39, %v7913_v31 }
 0x4e4   : > { %v7860_v18 = vadd.f32 %v7859_v40, %v7858_v32  ;;  %v7895_v19 = vrot.slane %v7894_v41, 2  ;;  %v7874_v50 = vadd.f32 %v7873_v42, %v7872_v34  ;;  %v7909_v51 = vrot.slane %v7908_v43, 2 }
 0x4e5   : > { %v7867_v14 = vadd.f32 %v7866_v44, %v7865_v36  ;;  %v7902_v45 = vrot.slane %v7901_v21, 2  ;;  %v7881_v54 = vadd.f32 %v7880_v46, %v7879_v38  ;;  %v7916_v55 = vrot.slane %v7915_v47, 2 }
 0x4e6   : > { %v7861_v48 = vrot.slane %v7860_v18, 1  ;;  %v7896_v49 = vadd.f32 %v7895_v19, %v7894_v41  ;;  %v7875_v58 = vrot.slane %v7874_v50, 1  ;;  %v7910_v59 = vadd.f32 %v7909_v51, %v7908_v43 }
 0x4e7   : > { %v7868_v52 = vrot.slane %v7867_v14, 1  ;;  %v7903_v53 = vadd.f32 %v7902_v45, %v7901_v21  ;;  %v7882_v62 = vrot.slane %v7881_v54, 1  ;;  %v7917_v63 = vadd.f32 %v7916_v55, %v7915_v47 }
 0x4e8   : > { %v7862_v56 = vadd.f32 %v7861_v48, %v7860_v18  ;;  %v7897_v57 = vrot.slane %v7896_v49, 1  ;;  %v7876_v2 = vadd.f32 %v7875_v58, %v7874_v50  ;;  %v7911_v3 = vrot.slane %v7910_v59, 1 }
 0x4e9   : > { %v7869_v6 = vadd.f32 %v7868_v52, %v7867_v14  ;;  %v7904_v7 = vrot.slane %v7903_v53, 1  ;;  %v7883_v0 = vadd.f32 %v7882_v62, %v7881_v54  ;;  %v7918_v1 = vrot.slane %v7917_v63, 1 }
 0x4ea   : > { %v7898_v10 = vadd.f32 %v7897_v57, %v7896_v49  ;;  %v7920_v11 = vmul.f32 0.25, %v7862_v56  ;;  %v7912_v12 = vadd.f32 %v7911_v3, %v7910_v59  ;;  %v7922_v13 = vmul.f32 0.25, %v7876_v2 }
 0x4eb   : > { %v7905_v20 = vadd.f32 %v7904_v7, %v7903_v53  ;;  %v7921_v22 = vmul.f32 0.25, %v7869_v6  ;;  %v7919_v15 = vadd.f32 %v7918_v1, %v7917_v63  ;;  %v7923_v23 = vmul.f32 0.25, %v7883_v0 }
 0x4ec   : > { %v7924_v24 = vmul.f32 0.25, %v7898_v10  ;;  %v7928_v25 = vmul.f32 %v7920_v11, %v7920_v11  ;;  %v7940_v26 = vsub.f32 %v14087_v60, %v7920_v11  ;;  %v7944_v27 = vsub.f32 %v14103_v8, %v7920_v11 }
 0x4ed   : > { %v7926_v28 = vmul.f32 0.25, %v7912_v12  ;;  %v7930_v29 = vmul.f32 %v7922_v13, %v7922_v13  ;;  %v7942_v30 = vsub.f32 %v14089_v61, %v7922_v13  ;;  %v7946_v31 = vsub.f32 %v14105_v9, %v7922_v13 }
 0x4ee   : > { %v7932_v32 = vsub.f32 %v7924_v24, %v7928_v25  ;;  %v7925_v33 = vmul.f32 0.25, %v7905_v20  ;;  %v7929_v34 = vmul.f32 %v7921_v22, %v7921_v22  ;;  %v7941_v35 = vsub.f32 %v14091_v4, %v7921_v22 }
 0x4ef   : > { %v7934_v36 = vsub.f32 %v7926_v28, %v7930_v29  ;;  %v7945_v37 = vsub.f32 %v14115_v16, %v7921_v22  ;;  %v7927_v38 = vmul.f32 0.25, %v7919_v15  ;;  %v7931_v39 = vmul.f32 %v7923_v23, %v7923_v23 }
 0x4f0   : > { %v7936_v40 = vmax.f32 %v7932_v32, 0.0  ;;  %v7933_v60 = vsub.f32 %v7925_v33, %v7929_v34  ;;  %v7943_v8 = vsub.f32 %v14093_v5, %v7923_v23  ;;  %v7947_v41 = vsub.f32 %v14117_v17, %v7923_v23 }
 0x4f1   : > { %v7938_v42 = vmax.f32 %v7934_v36, 0.0  ;;  %v7935_v61 = vsub.f32 %v7927_v38, %v7931_v39 }
 0x4f2   : > { %v7948_v43 = vadd.f32 1e-05, %v7936_v40  ;;  %v7937_v9 = vmax.f32 %v7933_v60, 0.0 }
 0x4f3   : > { %v7950_v44 = vadd.f32 1e-05, %v7938_v42  ;;  %v7939_v21 = vmax.f32 %v7935_v61, 0.0 }
 0x4f4   : > { %10812 = vrsqrt.f32 %v7948_v43  ;;  %v7949_v46 = vadd.f32 1e-05, %v7937_v9 }
 0x4f5   : > { %10814 = vrsqrt.f32 %v7950_v44  ;;  %v7951_v4 = vadd.f32 1e-05, %v7939_v21 }
 0x4f6   : > { %10816 = vrsqrt.f32 %v7949_v46 }
 0x4f7   : > { %10818 = vrsqrt.f32 %v7951_v4 }
 0x4fe   : > { %v10813_v16 = vpop.eup %10812 }
 0x4ff   : > { %v10815_v47 = vpop.eup %10814  ;;  %v7956_v18 = vmul.f32 %v10813_v16, %v7940_v26  ;;  %v7960_v19 = vmul.f32 %v10813_v16, %v7944_v27 }
 0x500   : > { %v10817_v50 = vpop.eup %10816  ;;  %v7958_v5 = vmul.f32 %v10815_v47, %v7942_v30  ;;  %v7962_v51 = vmul.f32 %v10815_v47, %v7946_v31 }
 0x501   : > { %v10819_v17 = vpop.eup %10818  ;;  %vm7964_vm0 = vcmp.gt.f32.partialorder %v7956_v18, 0.0  ;;  %vm7968_vm1 = vcmp.gt.f32.partialorder %v7960_v19, 0.0  ;;  %v7972_v14 = vmul.f32 0.01, %v7956_v18  ;;  %v7976_v45 = vmul.f32 0.01, %v7960_v19 }
 0x502   : > { %vm7966_vm2 = vcmp.gt.f32.partialorder %v7958_v5, 0.0  ;;  %vm7970_vm3 = vcmp.gt.f32.partialorder %v7962_v51, 0.0  ;;  %v7974_v54 = vmul.f32 0.01, %v7958_v5  ;;  %v7978_v55 = vmul.f32 0.01, %v7962_v51 }
 0x503   : > { %v7980_v48 = vsel %vm7964_vm0, %v7956_v18, %v7972_v14  ;;  %v7984_v49 = vsel %vm7968_vm1, %v7960_v19, %v7976_v45  ;;  %v7957_v58 = vmul.f32 %v10817_v50, %v7941_v35  ;;  %v7961_v59 = vmul.f32 %v10817_v50, %v7945_v37 }
 0x504   : > { %v7982_v52 = vsel %vm7966_vm2, %v7958_v5, %v7974_v54  ;;  %v7986_v53 = vsel %vm7970_vm3, %v7962_v51, %v7978_v55  ;;  %v7959_v62 = vmul.f32 %v10819_v17, %v7943_v8  ;;  %v7963_v63 = vmul.f32 %v10819_v17, %v7947_v41 }
 0x505   : > { %vm7965_vm4 = vcmp.gt.f32.partialorder %v7957_v58, 0.0  ;;  %vm7969_vm5 = vcmp.gt.f32.partialorder %v7961_v59, 0.0  ;;  %v7973_v56 = vmul.f32 0.01, %v7957_v58  ;;  %v7977_v57 = vmul.f32 0.01, %v7961_v59 }
 0x506   : > { %vm7967_vm6 = vcmp.gt.f32.partialorder %v7959_v62, 0.0  ;;  %vm7971_vm7 = vcmp.gt.f32.partialorder %v7963_v63, 0.0  ;;  %v7975_v2 = vmul.f32 0.01, %v7959_v62  ;;  %v7979_v3 = vmul.f32 0.01, %v7963_v63 }
 0x507   : > { %v7981_v6 = vsel %vm7965_vm4, %v7957_v58, %v7973_v56  ;;  %v7985_v7 = vsel %vm7969_vm5, %v7961_v59, %v7977_v57 }
 0x508   : > { %v9144_v0 = vpack.c.bf16 %v7981_v6, %v7980_v48  ;;  %v9146_v1 = vpack.c.bf16 %v7985_v7, %v7984_v49  ;;  %v7983_v10 = vsel %vm7967_vm6, %v7959_v62, %v7975_v2  ;;  %v7987_v11 = vsel %vm7971_vm7, %v7963_v63, %v7979_v3 }
 0x509   : > { %v9145_v12 = vpack.c.bf16 %v7983_v10, %v7982_v52  ;;  %v9147_v13 = vpack.c.bf16 %v7987_v11, %v7986_v53 }
 0x50a   : > { %8012 = vst [vmem:[%s143_s5] sm:$0xff] %v9144_v0  ;;  %8014 = vst [vmem:[%s143_s5 + $0x10] sm:$0xff] %v9146_v1 }
 0x50b   : > { %8013 = vst [vmem:[%s143_s5 + $0x8] sm:$0xff] %v9145_v12  ;;  %8015 = vst [vmem:[%s143_s5 + $0x18] sm:$0xff] %v9147_v13 }
 0x50c PF: > { %s12_s9 = sadd.s32 1, %s10826_s9  }
 0x50d   : > { %p9_p4 = scmp.ge.s32.totalorder %s12_s9, 4  }
 0x50f   :  { %11 = sbr.rel (!%p9_p4) target bundleno = 1 (0x1), region = 58 }

// kernel: discriminator_forward.9
= control target key start
LH: loop header
LB: loop body
LE: loop exit
PB: predicated region body
PF: predicated region fallthrough
CT: control target
= control target key end

     0   :  { %s9418_s1 = inlined_call_operand.vmem [shape: bf16[8192,128], index: 1, kind: input, shape index: {}]   ;;  %s9419_s0 = inlined_call_operand.vmem [shape: bf16[16,8192], index: 0, kind: input, shape index: {}]   ;;  %s9420_s2 = inlined_call_operand.vmem [shape: f32[1,128], index: 2, kind: input, shape index: {}]   ;;  %s9421_s3 = inlined_call_operand.vmem [shape: f32[16,128], index: 3, kind: output, shape index: {}]  }
   0x1   :  { %v7101_v0 = vld [vmem:[%s9418_s1 + $0x40] sm:$0xff]   ;;  %v7105_v4 = vld [vmem:[%s9418_s1 + $0x48] sm:$0xff]   ;;  %v7109_v8 = vld [vmem:[%s9418_s1 + $0x50] sm:$0xff]  }
   0x2   :  { %v7102_v1 = vld [vmem:[%s9418_s1 + $0xc0] sm:$0xff]   ;;  %6397 = vmatprep.subr.bf16.mxu0 %v7101_v0  ;;  %v7106_v5 = vld [vmem:[%s9418_s1 + $0xc8] sm:$0xff]   ;;  %v7110_v9 = vld [vmem:[%s9418_s1 + $0xd0] sm:$0xff]  }
   0x3   :  { %v7103_v2 = vld [vmem:[%s9418_s1] sm:$0xff]   ;;  %6419 = vmatprep.subr.bf16.mxu1 %v7102_v1  ;;  %v7107_v6 = vld [vmem:[%s9418_s1 + $0x8] sm:$0xff]   ;;  %v7111_v10 = vld [vmem:[%s9418_s1 + $0x10] sm:$0xff]  }
   0x4   :  { %v7104_v3 = vld [vmem:[%s9418_s1 + $0x80] sm:$0xff]   ;;  %6398 = vmatpush3.bf16.msra.mxu0 %v7103_v2  ;;  %v7108_v7 = vld [vmem:[%s9418_s1 + $0x88] sm:$0xff]   ;;  %v7112_v11 = vld [vmem:[%s9418_s1 + $0x90] sm:$0xff]  }
   0x5   :  { %6420 = vmatpush3.bf16.msra.mxu1 %v7104_v3  ;;  %6399 = vmatprep.subr.bf16.mxu0 %v7105_v4  ;;  %v7113_v12 = vld [vmem:[%s9418_s1 + $0x58] sm:$0xff]   ;;  %v7117_v16 = vld [vmem:[%s9418_s1 + $0x60] sm:$0xff]   ;;  %v7121_v20 = vld [vmem:[%s9418_s1 + $0x68] sm:$0xff]  }
   0x6   :  { %6421 = vmatprep.subr.bf16.mxu1 %v7106_v5  ;;  %v7114_v13 = vld [vmem:[%s9418_s1 + $0xd8] sm:$0xff]   ;;  %v7118_v17 = vld [vmem:[%s9418_s1 + $0xe0] sm:$0xff]   ;;  %v7122_v21 = vld [vmem:[%s9418_s1 + $0xe8] sm:$0xff]  }
   0x7   :  { %v7115_v14 = vld [vmem:[%s9418_s1 + $0x18] sm:$0xff]   ;;  %v7119_v18 = vld [vmem:[%s9418_s1 + $0x20] sm:$0xff]   ;;  %v7123_v22 = vld [vmem:[%s9418_s1 + $0x28] sm:$0xff]  }
   0x8   :  { %6400 = vmatpush3.bf16.msra.mxu0 %v7107_v6  ;;  %v7116_v15 = vld [vmem:[%s9418_s1 + $0x98] sm:$0xff]   ;;  %v7120_v19 = vld [vmem:[%s9418_s1 + $0xa0] sm:$0xff]   ;;  %v7124_v23 = vld [vmem:[%s9418_s1 + $0xa8] sm:$0xff]  }
   0x9   :  { %6422 = vmatpush3.bf16.msra.mxu1 %v7108_v7  ;;  %6401 = vmatprep.subr.bf16.mxu0 %v7109_v8  ;;  %v7125_v24 = vld [vmem:[%s9418_s1 + $0x70] sm:$0xff]   ;;  %v7129_v28 = vld [vmem:[%s9418_s1 + $0x78] sm:$0xff]   ;;  %v15_v32 = vld [vmem:[%s9419_s0] sm:$0xff] }
   0xa   :  { %6423 = vmatprep.subr.bf16.mxu1 %v7110_v9  ;;  %v7126_v25 = vld [vmem:[%s9418_s1 + $0xf0] sm:$0xff]   ;;  %v7130_v29 = vld [vmem:[%s9418_s1 + $0xf8] sm:$0xff]   ;;  %v47_v33 = vld [vmem:[%s9419_s0 + $0x100] sm:$0xff] }
   0xb   :  { %v7127_v26 = vld [vmem:[%s9418_s1 + $0x30] sm:$0xff]   ;;  %v7131_v30 = vld [vmem:[%s9418_s1 + $0x38] sm:$0xff]   ;;  %v16_v34 = vld [vmem:[%s9419_s0 + $0x8] sm:$0xff]  ;;  %v5821_v35 = vcombine.low %v15_v32, %v47_v33  ;;  %v5822_v36 = vcombine.high %v15_v32, %v47_v33 }
   0xc   :  { %6402 = vmatpush3.bf16.msra.mxu0 %v7111_v10  ;;  %v7128_v27 = vld [vmem:[%s9418_s1 + $0xb0] sm:$0xff]   ;;  %v7132_v31 = vld [vmem:[%s9418_s1 + $0xb8] sm:$0xff]   ;;  %v48_v37 = vld [vmem:[%s9419_s0 + $0x108] sm:$0xff] }
   0xd   :  { %6424 = vmatpush3.bf16.msra.mxu1 %v7112_v11  ;;  %6403 = vmatprep.subr.bf16.mxu0 %v7113_v12  ;;  %v5823_v38 = vcombine.low %v16_v34, %v48_v37  ;;  %v5824_v39 = vcombine.high %v16_v34, %v48_v37  ;;  %v7133_v40 = vld [vmem:[%s9418_s1 + $0x140] sm:$0xff]   ;;  %v7137_v44 = vld [vmem:[%s9418_s1 + $0x148] sm:$0xff]   ;;  %v7141_v48 = vld [vmem:[%s9418_s1 + $0x150] sm:$0xff]  }
   0xe   :  { %6425 = vmatprep.subr.bf16.mxu1 %v7114_v13  ;;  %4534 = vmatprep.mubr.bf16.mxu0 %v5822_v36  ;;  %v7134_v41 = vld [vmem:[%s9418_s1 + $0x1c0] sm:$0xff]   ;;  %v7138_v45 = vld [vmem:[%s9418_s1 + $0x1c8] sm:$0xff]   ;;  %v7142_v49 = vld [vmem:[%s9418_s1 + $0x1d0] sm:$0xff]  }
   0xf   :  { %4575 = vmatprep.mubr.bf16.mxu1 %v5824_v39  ;;  %v7135_v42 = vld [vmem:[%s9418_s1 + $0x100] sm:$0xff]   ;;  %v7139_v46 = vld [vmem:[%s9418_s1 + $0x108] sm:$0xff]   ;;  %v7143_v50 = vld [vmem:[%s9418_s1 + $0x110] sm:$0xff]  }
  0x10   :  { %6404 = vmatpush3.bf16.msra.mxu0 %v7115_v14  ;;  %v7136_v43 = vld [vmem:[%s9418_s1 + $0x180] sm:$0xff]   ;;  %v7140_v47 = vld [vmem:[%s9418_s1 + $0x188] sm:$0xff]   ;;  %v7144_v51 = vld [vmem:[%s9418_s1 + $0x190] sm:$0xff]  }
  0x11   :  { %6426 = vmatpush3.bf16.msra.mxu1 %v7116_v15  ;;  %6405 = vmatprep.subr.bf16.mxu0 %v7117_v16  ;;  %v7145_v52 = vld [vmem:[%s9418_s1 + $0x158] sm:$0xff]   ;;  %v7149_v56 = vld [vmem:[%s9418_s1 + $0x160] sm:$0xff]   ;;  %v7153_v60 = vld [vmem:[%s9418_s1 + $0x168] sm:$0xff]  }
  0x12   :  { %6427 = vmatprep.subr.bf16.mxu1 %v7118_v17  ;;  %v7146_v53 = vld [vmem:[%s9418_s1 + $0x1d8] sm:$0xff]   ;;  %v7150_v57 = vld [vmem:[%s9418_s1 + $0x1e0] sm:$0xff]   ;;  %v7154_v61 = vld [vmem:[%s9418_s1 + $0x1e8] sm:$0xff]  }
  0x13   :  { %v7147_v54 = vld [vmem:[%s9418_s1 + $0x118] sm:$0xff]   ;;  %v7151_v58 = vld [vmem:[%s9418_s1 + $0x120] sm:$0xff]   ;;  %v7155_v62 = vld [vmem:[%s9418_s1 + $0x128] sm:$0xff]  }
  0x14   :  { %6406 = vmatpush3.bf16.msra.mxu0 %v7119_v18  ;;  %v7148_v55 = vld [vmem:[%s9418_s1 + $0x198] sm:$0xff]   ;;  %v7152_v59 = vld [vmem:[%s9418_s1 + $0x1a0] sm:$0xff]   ;;  %v7156_v63 = vld [vmem:[%s9418_s1 + $0x1a8] sm:$0xff]  }
  0x15   :  { %6428 = vmatpush3.bf16.msra.mxu1 %v7120_v19  ;;  %6407 = vmatprep.subr.bf16.mxu0 %v7121_v20  ;;  %v7157_v0 = vld [vmem:[%s9418_s1 + $0x170] sm:$0xff]   ;;  %v7161_v4 = vld [vmem:[%s9418_s1 + $0x178] sm:$0xff]   ;;  %v7165_v16 = vld [vmem:[%s9418_s1 + $0x240] sm:$0xff]  }
  0x16   :  { %6429 = vmatprep.subr.bf16.mxu1 %v7122_v21  ;;  %v7158_v1 = vld [vmem:[%s9418_s1 + $0x1f0] sm:$0xff]   ;;  %v7162_v5 = vld [vmem:[%s9418_s1 + $0x1f8] sm:$0xff]   ;;  %v7166_v17 = vld [vmem:[%s9418_s1 + $0x2c0] sm:$0xff]  }
  0x17   :  { %v7159_v2 = vld [vmem:[%s9418_s1 + $0x130] sm:$0xff]   ;;  %v7163_v6 = vld [vmem:[%s9418_s1 + $0x138] sm:$0xff]   ;;  %v7167_v18 = vld [vmem:[%s9418_s1 + $0x200] sm:$0xff]  }
  0x18   :  { %6408 = vmatpush3.bf16.msra.mxu0 %v7123_v22  ;;  %v7160_v3 = vld [vmem:[%s9418_s1 + $0x1b0] sm:$0xff]   ;;  %v7164_v7 = vld [vmem:[%s9418_s1 + $0x1b8] sm:$0xff]   ;;  %v7168_v19 = vld [vmem:[%s9418_s1 + $0x280] sm:$0xff]  }
  0x19   :  { %6430 = vmatpush3.bf16.msra.mxu1 %v7124_v23  ;;  %6409 = vmatprep.subr.bf16.mxu0 %v7125_v24  ;;  %v17_v8 = vld [vmem:[%s9419_s0 + $0x10] sm:$0xff]  ;;  %v18_v12 = vld [vmem:[%s9419_s0 + $0x18] sm:$0xff]  ;;  %v7169_v20 = vld [vmem:[%s9418_s1 + $0x248] sm:$0xff]  }
  0x1a   :  { %6431 = vmatprep.subr.bf16.mxu1 %v7126_v25  ;;  %v49_v9 = vld [vmem:[%s9419_s0 + $0x110] sm:$0xff]  ;;  %v50_v13 = vld [vmem:[%s9419_s0 + $0x118] sm:$0xff]  ;;  %v7170_v21 = vld [vmem:[%s9418_s1 + $0x2c8] sm:$0xff]  }
  0x1b   :  { %v5825_v10 = vcombine.low %v17_v8, %v49_v9  ;;  %v5826_v11 = vcombine.high %v17_v8, %v49_v9  ;;  %v5827_v14 = vcombine.low %v18_v12, %v50_v13  ;;  %v5828_v15 = vcombine.high %v18_v12, %v50_v13  ;;  %v7171_v22 = vld [vmem:[%s9418_s1 + $0x208] sm:$0xff]   ;;  %v7173_v24 = vld [vmem:[%s9418_s1 + $0x250] sm:$0xff]   ;;  %v7181_v32 = vld [vmem:[%s9418_s1 + $0x260] sm:$0xff]  }
  0x1c   :  { %6410 = vmatpush3.bf16.msra.mxu0 %v7127_v26  ;;  %v7172_v23 = vld [vmem:[%s9418_s1 + $0x288] sm:$0xff]   ;;  %v7174_v25 = vld [vmem:[%s9418_s1 + $0x2d0] sm:$0xff]   ;;  %v7182_v33 = vld [vmem:[%s9418_s1 + $0x2e0] sm:$0xff]  }
  0x1d   :  { %6432 = vmatpush3.bf16.msra.mxu1 %v7128_v27  ;;  %6411 = vmatprep.subr.bf16.mxu0 %v7129_v28  ;;  %v7175_v26 = vld [vmem:[%s9418_s1 + $0x210] sm:$0xff]   ;;  %v7177_v28 = vld [vmem:[%s9418_s1 + $0x258] sm:$0xff]   ;;  %v7183_v34 = vld [vmem:[%s9418_s1 + $0x220] sm:$0xff]  }
  0x1e   :  { %6433 = vmatprep.subr.bf16.mxu1 %v7130_v29  ;;  %v7176_v27 = vld [vmem:[%s9418_s1 + $0x290] sm:$0xff]   ;;  %v7178_v29 = vld [vmem:[%s9418_s1 + $0x2d8] sm:$0xff]   ;;  %v7185_v36 = vld [vmem:[%s9418_s1 + $0x268] sm:$0xff]  }
  0x1f   :  { %v7186_v37 = vld [vmem:[%s9418_s1 + $0x2e8] sm:$0xff]   ;;  %v7213_v8 = vld [vmem:[%s9418_s1 + $0x360] sm:$0xff]  }
  0x20   :  { %6412 = vmatpush3.bf16.msra.mxu0 %v7131_v30  ;;  %v7179_v30 = vld [vmem:[%s9418_s1 + $0x218] sm:$0xff]   ;;  %v7188_v39 = vld [vmem:[%s9418_s1 + $0x2a8] sm:$0xff]   ;;  %v7214_v9 = vld [vmem:[%s9418_s1 + $0x3e0] sm:$0xff]  }
  0x21   :  { %6434 = vmatpush3.bf16.msra.mxu1 %v7132_v31  ;;  %6441 = vmatprep.subr.bf16.mxu0 %v7133_v40  ;;  %v7180_v31 = vld [vmem:[%s9418_s1 + $0x298] sm:$0xff]   ;;  %v7189_v40 = vld [vmem:[%s9418_s1 + $0x270] sm:$0xff]   ;;  %v7217_v12 = vld [vmem:[%s9418_s1 + $0x368] sm:$0xff]  }
  0x22   :  { %6463 = vmatprep.subr.bf16.mxu1 %v7134_v41  ;;  %v7190_v41 = vld [vmem:[%s9418_s1 + $0x2f0] sm:$0xff]   ;;  %v7218_v13 = vld [vmem:[%s9418_s1 + $0x3e8] sm:$0xff]  }
  0x23   :  { %4535 = vmatmul.mubr.bf16.vlgmr.msra.gmra.mrb[0].mxu0 %v5821_v35  ;;  %v7184_v35 = vld [vmem:[%s9418_s1 + $0x2a0] sm:$0xff]  }
  0x24   :  { %4576 = vmatmul.mubr.bf16.vlgmr.msra.gmra.mrb[0].mxu1 %v5823_v38  ;;  %6442 = vmatpush3.bf16.msra.mxu0 %v7135_v42  ;;  %v7187_v38 = vld [vmem:[%s9418_s1 + $0x228] sm:$0xff]   ;;  %v7191_v42 = vld [vmem:[%s9418_s1 + $0x230] sm:$0xff]  }
  0x25   :  { %6464 = vmatpush3.bf16.msra.mxu1 %v7136_v43  ;;  %6443 = vmatprep.subr.bf16.mxu0 %v7137_v44  ;;  %v7192_v43 = vld [vmem:[%s9418_s1 + $0x2b0] sm:$0xff]   ;;  %v7193_v44 = vld [vmem:[%s9418_s1 + $0x278] sm:$0xff]  }
  0x26   :  { %6465 = vmatprep.subr.bf16.mxu1 %v7138_v45  ;;  %4616 = vmatprep.mubr.bf16.mxu0 %v5826_v11  ;;  %v7194_v45 = vld [vmem:[%s9418_s1 + $0x2f8] sm:$0xff]   ;;  %v7216_v11 = vld [vmem:[%s9418_s1 + $0x3a0] sm:$0xff]  }
  0x27   :  { %4657 = vmatprep.mubr.bf16.mxu1 %v5828_v15  ;;  %v7220_v15 = vld [vmem:[%s9418_s1 + $0x3a8] sm:$0xff]  }
  0x28   :  { %6444 = vmatpush3.bf16.msra.mxu0 %v7139_v46  ;;  %v7195_v46 = vld [vmem:[%s9418_s1 + $0x238] sm:$0xff]  }
  0x29   :  { %6466 = vmatpush3.bf16.msra.mxu1 %v7140_v47  ;;  %6445 = vmatprep.subr.bf16.mxu0 %v7141_v48  ;;  %v7196_v47 = vld [vmem:[%s9418_s1 + $0x2b8] sm:$0xff]   ;;  %v19_v48 = vld [vmem:[%s9419_s0 + $0x20] sm:$0xff] }
  0x2a   :  { %6467 = vmatprep.subr.bf16.mxu1 %v7142_v49  ;;  %v51_v49 = vld [vmem:[%s9419_s0 + $0x120] sm:$0xff] }
  0x2c   :  { %6446 = vmatpush3.bf16.msra.mxu0 %v7143_v50  ;;  %v20_v50 = vld [vmem:[%s9419_s0 + $0x28] sm:$0xff] }
  0x2d   :  { %6468 = vmatpush3.bf16.msra.mxu1 %v7144_v51  ;;  %6447 = vmatprep.subr.bf16.mxu0 %v7145_v52  ;;  %v52_v51 = vld [vmem:[%s9419_s0 + $0x128] sm:$0xff]  ;;  %v5829_v52 = vcombine.low %v19_v48, %v51_v49 }
  0x2e   :  { %6469 = vmatprep.subr.bf16.mxu1 %v7146_v53  ;;  %v5830_v53 = vcombine.high %v19_v48, %v51_v49  ;;  %v7245_v48 = vld [vmem:[%s9418_s1 + $0x460] sm:$0xff]  }
  0x2f   :  { %v7246_v49 = vld [vmem:[%s9418_s1 + $0x4e0] sm:$0xff]  }
  0x30   :  { %6448 = vmatpush3.bf16.msra.mxu0 %v7147_v54  ;;  %v5831_v54 = vcombine.low %v20_v50, %v52_v51 }
  0x31   :  { %6470 = vmatpush3.bf16.msra.mxu1 %v7148_v55  ;;  %6449 = vmatprep.subr.bf16.mxu0 %v7149_v56  ;;  %v5832_v55 = vcombine.high %v20_v50, %v52_v51  ;;  %v7197_v56 = vld [vmem:[%s9418_s1 + $0x340] sm:$0xff]  }
  0x32   :  { %6471 = vmatprep.subr.bf16.mxu1 %v7150_v57  ;;  %v7198_v57 = vld [vmem:[%s9418_s1 + $0x3c0] sm:$0xff]  }
  0x33   :  { %v7247_v50 = vld [vmem:[%s9418_s1 + $0x420] sm:$0xff]  }
  0x34   :  { %6450 = vmatpush3.bf16.msra.mxu0 %v7151_v58  ;;  %v7199_v58 = vld [vmem:[%s9418_s1 + $0x300] sm:$0xff]  }
  0x35   :  { %6472 = vmatpush3.bf16.msra.mxu1 %v7152_v59  ;;  %6451 = vmatprep.subr.bf16.mxu0 %v7153_v60  ;;  %v7200_v59 = vld [vmem:[%s9418_s1 + $0x380] sm:$0xff]   ;;  %v7201_v60 = vld [vmem:[%s9418_s1 + $0x348] sm:$0xff]  }
  0x36   :  { %6473 = vmatprep.subr.bf16.mxu1 %v7154_v61  ;;  %v7202_v61 = vld [vmem:[%s9418_s1 + $0x3c8] sm:$0xff]   ;;  %v7248_v51 = vld [vmem:[%s9418_s1 + $0x4a0] sm:$0xff]  }
  0x38   :  { %6452 = vmatpush3.bf16.msra.mxu0 %v7155_v62  ;;  %v7203_v62 = vld [vmem:[%s9418_s1 + $0x308] sm:$0xff]  }
  0x39   :  { %6474 = vmatpush3.bf16.msra.mxu1 %v7156_v63  ;;  %6453 = vmatprep.subr.bf16.mxu0 %v7157_v0  ;;  %v7204_v63 = vld [vmem:[%s9418_s1 + $0x388] sm:$0xff]   ;;  %v7205_v0 = vld [vmem:[%s9418_s1 + $0x350] sm:$0xff]  }
  0x3a   :  { %6475 = vmatprep.subr.bf16.mxu1 %v7158_v1  ;;  %v7206_v1 = vld [vmem:[%s9418_s1 + $0x3d0] sm:$0xff]  }
  0x3c   :  { %6454 = vmatpush3.bf16.msra.mxu0 %v7159_v2  ;;  %v7207_v2 = vld [vmem:[%s9418_s1 + $0x310] sm:$0xff]  }
  0x3d   :  { %6476 = vmatpush3.bf16.msra.mxu1 %v7160_v3  ;;  %6455 = vmatprep.subr.bf16.mxu0 %v7161_v4  ;;  %v7208_v3 = vld [vmem:[%s9418_s1 + $0x390] sm:$0xff]   ;;  %v7209_v4 = vld [vmem:[%s9418_s1 + $0x358] sm:$0xff]  }
  0x3e   :  { %6477 = vmatprep.subr.bf16.mxu1 %v7162_v5  ;;  %v7210_v5 = vld [vmem:[%s9418_s1 + $0x3d8] sm:$0xff]  }
  0x40   :  { %6456 = vmatpush3.bf16.msra.mxu0 %v7163_v6  ;;  %v7211_v6 = vld [vmem:[%s9418_s1 + $0x318] sm:$0xff]  }
  0x41   :  { %6478 = vmatpush3.bf16.msra.mxu1 %v7164_v7  ;;  %6485 = vmatprep.subr.bf16.mxu0 %v7165_v16  ;;  %v7212_v7 = vld [vmem:[%s9418_s1 + $0x398] sm:$0xff]   ;;  %v7221_v16 = vld [vmem:[%s9418_s1 + $0x370] sm:$0xff]  }
  0x42   :  { %6507 = vmatprep.subr.bf16.mxu1 %v7166_v17  ;;  %v7222_v17 = vld [vmem:[%s9418_s1 + $0x3f0] sm:$0xff]  }
  0x43   :  { %4617 = vmatmul.mubr.bf16.vlgmr.msra.gmra.mrb[4].mxu0 %v5825_v10  ;;  %v7215_v10 = vld [vmem:[%s9418_s1 + $0x320] sm:$0xff]  }
  0x44   :  { %4658 = vmatmul.mubr.bf16.vlgmr.msra.gmra.mrb[4].mxu1 %v5827_v14  ;;  %6486 = vmatpush3.bf16.msra.mxu0 %v7167_v18  ;;  %v7219_v14 = vld [vmem:[%s9418_s1 + $0x328] sm:$0xff]   ;;  %v7223_v18 = vld [vmem:[%s9418_s1 + $0x330] sm:$0xff]  }
  0x45   :  { %6508 = vmatpush3.bf16.msra.mxu1 %v7168_v19  ;;  %6487 = vmatprep.subr.bf16.mxu0 %v7169_v20  ;;  %v7224_v19 = vld [vmem:[%s9418_s1 + $0x3b0] sm:$0xff]   ;;  %v7225_v20 = vld [vmem:[%s9418_s1 + $0x378] sm:$0xff]  }
  0x46   :  { %6509 = vmatprep.subr.bf16.mxu1 %v7170_v21  ;;  %4698 = vmatprep.mubr.bf16.mxu0 %v5830_v53  ;;  %v7226_v21 = vld [vmem:[%s9418_s1 + $0x3f8] sm:$0xff]   ;;  %v7250_v53 = vld [vmem:[%s9418_s1 + $0x4e8] sm:$0xff]  }
  0x47   :  { %4739 = vmatprep.mubr.bf16.mxu1 %v5832_v55  ;;  %v7252_v55 = vld [vmem:[%s9418_s1 + $0x4a8] sm:$0xff]  }
  0x48   :  { %6488 = vmatpush3.bf16.msra.mxu0 %v7171_v22  ;;  %v7227_v22 = vld [vmem:[%s9418_s1 + $0x338] sm:$0xff]  }
  0x49   :  { %6510 = vmatpush3.bf16.msra.mxu1 %v7172_v23  ;;  %6489 = vmatprep.subr.bf16.mxu0 %v7173_v24  ;;  %v7228_v23 = vld [vmem:[%s9418_s1 + $0x3b8] sm:$0xff]   ;;  %v21_v24 = vld [vmem:[%s9419_s0 + $0x30] sm:$0xff] }
  0x4a   :  { %6511 = vmatprep.subr.bf16.mxu1 %v7174_v25  ;;  %v53_v25 = vld [vmem:[%s9419_s0 + $0x130] sm:$0xff] }
  0x4c   :  { %6490 = vmatpush3.bf16.msra.mxu0 %v7175_v26  ;;  %v22_v26 = vld [vmem:[%s9419_s0 + $0x38] sm:$0xff] }
  0x4d   :  { %6512 = vmatpush3.bf16.msra.mxu1 %v7176_v27  ;;  %6491 = vmatprep.subr.bf16.mxu0 %v7177_v28  ;;  %v5833_v27 = vcombine.low %v21_v24, %v53_v25  ;;  %v5834_v28 = vcombine.high %v21_v24, %v53_v25  ;;  %v7277_v24 = vld [vmem:[%s9418_s1 + $0x560] sm:$0xff]  }
  0x4e   :  { %6513 = vmatprep.subr.bf16.mxu1 %v7178_v29  ;;  %v54_v29 = vld [vmem:[%s9419_s0 + $0x138] sm:$0xff]  ;;  %v7278_v25 = vld [vmem:[%s9418_s1 + $0x5e0] sm:$0xff]  }
  0x50   :  { %6492 = vmatpush3.bf16.msra.mxu0 %v7179_v30  ;;  %v5835_v30 = vcombine.low %v22_v26, %v54_v29 }
  0x51   :  { %6514 = vmatpush3.bf16.msra.mxu1 %v7180_v31  ;;  %6493 = vmatprep.subr.bf16.mxu0 %v7181_v32  ;;  %v5836_v31 = vcombine.high %v22_v26, %v54_v29  ;;  %v7229_v32 = vld [vmem:[%s9418_s1 + $0x440] sm:$0xff]   ;;  %v7282_v29 = vld [vmem:[%s9418_s1 + $0x5e8] sm:$0xff]  }
  0x52   :  { %6515 = vmatprep.subr.bf16.mxu1 %v7182_v33  ;;  %v7230_v33 = vld [vmem:[%s9418_s1 + $0x4c0] sm:$0xff]  }
  0x53   :  { %v7279_v26 = vld [vmem:[%s9418_s1 + $0x520] sm:$0xff]  }
  0x54   :  { %6494 = vmatpush3.bf16.msra.mxu0 %v7183_v34  ;;  %v7231_v34 = vld [vmem:[%s9418_s1 + $0x400] sm:$0xff]  }
  0x55   :  { %6516 = vmatpush3.bf16.msra.mxu1 %v7184_v35  ;;  %6495 = vmatprep.subr.bf16.mxu0 %v7185_v36  ;;  %v7232_v35 = vld [vmem:[%s9418_s1 + $0x480] sm:$0xff]   ;;  %v7233_v36 = vld [vmem:[%s9418_s1 + $0x448] sm:$0xff]  }
  0x56   :  { %6517 = vmatprep.subr.bf16.mxu1 %v7186_v37  ;;  %v7234_v37 = vld [vmem:[%s9418_s1 + $0x4c8] sm:$0xff]  }
  0x58   :  { %6496 = vmatpush3.bf16.msra.mxu0 %v7187_v38  ;;  %v7235_v38 = vld [vmem:[%s9418_s1 + $0x408] sm:$0xff]  }
  0x59   :  { %6518 = vmatpush3.bf16.msra.mxu1 %v7188_v39  ;;  %6497 = vmatprep.subr.bf16.mxu0 %v7189_v40  ;;  %v7236_v39 = vld [vmem:[%s9418_s1 + $0x488] sm:$0xff]   ;;  %v7237_v40 = vld [vmem:[%s9418_s1 + $0x450] sm:$0xff]  }
  0x5a   :  { %6519 = vmatprep.subr.bf16.mxu1 %v7190_v41  ;;  %v7238_v41 = vld [vmem:[%s9418_s1 + $0x4d0] sm:$0xff]  }
  0x5c   :  { %6498 = vmatpush3.bf16.msra.mxu0 %v7191_v42  ;;  %v7239_v42 = vld [vmem:[%s9418_s1 + $0x410] sm:$0xff]  }
  0x5d   :  { %6520 = vmatpush3.bf16.msra.mxu1 %v7192_v43  ;;  %6499 = vmatprep.subr.bf16.mxu0 %v7193_v44  ;;  %v7240_v43 = vld [vmem:[%s9418_s1 + $0x490] sm:$0xff]   ;;  %v7241_v44 = vld [vmem:[%s9418_s1 + $0x458] sm:$0xff]  }
  0x5e   :  { %6521 = vmatprep.subr.bf16.mxu1 %v7194_v45  ;;  %v7242_v45 = vld [vmem:[%s9418_s1 + $0x4d8] sm:$0xff]  }
  0x60   :  { %6500 = vmatpush3.bf16.msra.mxu0 %v7195_v46  ;;  %v7243_v46 = vld [vmem:[%s9418_s1 + $0x418] sm:$0xff]  }
  0x61   :  { %6522 = vmatpush3.bf16.msra.mxu1 %v7196_v47  ;;  %6529 = vmatprep.subr.bf16.mxu0 %v7197_v56  ;;  %v7244_v47 = vld [vmem:[%s9418_s1 + $0x498] sm:$0xff]   ;;  %v7253_v56 = vld [vmem:[%s9418_s1 + $0x470] sm:$0xff]  }
  0x62   :  { %6551 = vmatprep.subr.bf16.mxu1 %v7198_v57  ;;  %v7254_v57 = vld [vmem:[%s9418_s1 + $0x4f0] sm:$0xff]  }
  0x63   :  { %4699 = vmatmul.mubr.bf16.vlgmr.msra.gmra.mrb[8].mxu0 %v5829_v52  ;;  %v7249_v52 = vld [vmem:[%s9418_s1 + $0x468] sm:$0xff]  }
  0x64   :  { %4740 = vmatmul.mubr.bf16.vlgmr.msra.gmra.mrb[8].mxu1 %v5831_v54  ;;  %6530 = vmatpush3.bf16.msra.mxu0 %v7199_v58  ;;  %v7251_v54 = vld [vmem:[%s9418_s1 + $0x428] sm:$0xff]   ;;  %v7255_v58 = vld [vmem:[%s9418_s1 + $0x430] sm:$0xff]  }
  0x65   :  { %6552 = vmatpush3.bf16.msra.mxu1 %v7200_v59  ;;  %6531 = vmatprep.subr.bf16.mxu0 %v7201_v60  ;;  %v7256_v59 = vld [vmem:[%s9418_s1 + $0x4b0] sm:$0xff]   ;;  %v7257_v60 = vld [vmem:[%s9418_s1 + $0x478] sm:$0xff]  }
  0x66   :  { %6553 = vmatprep.subr.bf16.mxu1 %v7202_v61  ;;  %4780 = vmatprep.mubr.bf16.mxu0 %v5834_v28  ;;  %v7258_v61 = vld [vmem:[%s9418_s1 + $0x4f8] sm:$0xff]   ;;  %v7281_v28 = vld [vmem:[%s9418_s1 + $0x568] sm:$0xff]  }
  0x67   :  { %4821 = vmatprep.mubr.bf16.mxu1 %v5836_v31  ;;  %v7284_v31 = vld [vmem:[%s9418_s1 + $0x5a8] sm:$0xff]  }
  0x68   :  { %6532 = vmatpush3.bf16.msra.mxu0 %v7203_v62  ;;  %v7259_v62 = vld [vmem:[%s9418_s1 + $0x438] sm:$0xff]  }
  0x69   :  { %6554 = vmatpush3.bf16.msra.mxu1 %v7204_v63  ;;  %6533 = vmatprep.subr.bf16.mxu0 %v7205_v0  ;;  %v7260_v63 = vld [vmem:[%s9418_s1 + $0x4b8] sm:$0xff]   ;;  %v23_v0 = vld [vmem:[%s9419_s0 + $0x40] sm:$0xff] }
  0x6a   :  { %6555 = vmatprep.subr.bf16.mxu1 %v7206_v1  ;;  %v55_v1 = vld [vmem:[%s9419_s0 + $0x140] sm:$0xff] }
  0x6c   :  { %6534 = vmatpush3.bf16.msra.mxu0 %v7207_v2  ;;  %v5837_v2 = vcombine.low %v23_v0, %v55_v1 }
  0x6d   :  { %6556 = vmatpush3.bf16.msra.mxu1 %v7208_v3  ;;  %6535 = vmatprep.subr.bf16.mxu0 %v7209_v4  ;;  %v5838_v3 = vcombine.high %v23_v0, %v55_v1  ;;  %v24_v4 = vld [vmem:[%s9419_s0 + $0x48] sm:$0xff]  ;;  %v7309_v0 = vld [vmem:[%s9418_s1 + $0x660] sm:$0xff]  }
  0x6e   :  { %6557 = vmatprep.subr.bf16.mxu1 %v7210_v5  ;;  %v56_v5 = vld [vmem:[%s9419_s0 + $0x148] sm:$0xff]  ;;  %v7310_v1 = vld [vmem:[%s9418_s1 + $0x6e0] sm:$0xff]  }
  0x70   :  { %6536 = vmatpush3.bf16.msra.mxu0 %v7211_v6  ;;  %v5839_v6 = vcombine.low %v24_v4, %v56_v5 }
  0x71   :  { %6558 = vmatpush3.bf16.msra.mxu1 %v7212_v7  ;;  %6537 = vmatprep.subr.bf16.mxu0 %v7213_v8  ;;  %v5840_v7 = vcombine.high %v24_v4, %v56_v5  ;;  %v7261_v8 = vld [vmem:[%s9418_s1 + $0x540] sm:$0xff]   ;;  %v7313_v4 = vld [vmem:[%s9418_s1 + $0x668] sm:$0xff]  }
  0x72   :  { %6559 = vmatprep.subr.bf16.mxu1 %v7214_v9  ;;  %v7262_v9 = vld [vmem:[%s9418_s1 + $0x5c0] sm:$0xff]   ;;  %v7314_v5 = vld [vmem:[%s9418_s1 + $0x6e8] sm:$0xff]  }
  0x74   :  { %6538 = vmatpush3.bf16.msra.mxu0 %v7215_v10  ;;  %v7263_v10 = vld [vmem:[%s9418_s1 + $0x500] sm:$0xff]  }
  0x75   :  { %6560 = vmatpush3.bf16.msra.mxu1 %v7216_v11  ;;  %6539 = vmatprep.subr.bf16.mxu0 %v7217_v12  ;;  %v7264_v11 = vld [vmem:[%s9418_s1 + $0x580] sm:$0xff]   ;;  %v7265_v12 = vld [vmem:[%s9418_s1 + $0x548] sm:$0xff]  }
  0x76   :  { %6561 = vmatprep.subr.bf16.mxu1 %v7218_v13  ;;  %v7266_v13 = vld [vmem:[%s9418_s1 + $0x5c8] sm:$0xff]  }
  0x78   :  { %6540 = vmatpush3.bf16.msra.mxu0 %v7219_v14  ;;  %v7267_v14 = vld [vmem:[%s9418_s1 + $0x508] sm:$0xff]  }
  0x79   :  { %6562 = vmatpush3.bf16.msra.mxu1 %v7220_v15  ;;  %6541 = vmatprep.subr.bf16.mxu0 %v7221_v16  ;;  %v7268_v15 = vld [vmem:[%s9418_s1 + $0x588] sm:$0xff]   ;;  %v7269_v16 = vld [vmem:[%s9418_s1 + $0x550] sm:$0xff]  }
  0x7a   :  { %6563 = vmatprep.subr.bf16.mxu1 %v7222_v17  ;;  %v7270_v17 = vld [vmem:[%s9418_s1 + $0x5d0] sm:$0xff]  }
  0x7c   :  { %6542 = vmatpush3.bf16.msra.mxu0 %v7223_v18  ;;  %v7271_v18 = vld [vmem:[%s9418_s1 + $0x510] sm:$0xff]  }
  0x7d   :  { %6564 = vmatpush3.bf16.msra.mxu1 %v7224_v19  ;;  %6543 = vmatprep.subr.bf16.mxu0 %v7225_v20  ;;  %v7272_v19 = vld [vmem:[%s9418_s1 + $0x590] sm:$0xff]   ;;  %v7273_v20 = vld [vmem:[%s9418_s1 + $0x558] sm:$0xff]  }
  0x7e   :  { %6565 = vmatprep.subr.bf16.mxu1 %v7226_v21  ;;  %v7274_v21 = vld [vmem:[%s9418_s1 + $0x5d8] sm:$0xff]  }
  0x80   :  { %6544 = vmatpush3.bf16.msra.mxu0 %v7227_v22  ;;  %v7275_v22 = vld [vmem:[%s9418_s1 + $0x518] sm:$0xff]  }
  0x81   :  { %6566 = vmatpush3.bf16.msra.mxu1 %v7228_v23  ;;  %6573 = vmatprep.subr.bf16.mxu0 %v7229_v32  ;;  %v7276_v23 = vld [vmem:[%s9418_s1 + $0x598] sm:$0xff]   ;;  %v7285_v32 = vld [vmem:[%s9418_s1 + $0x570] sm:$0xff]  }
  0x82   :  { %6595 = vmatprep.subr.bf16.mxu1 %v7230_v33  ;;  %v7286_v33 = vld [vmem:[%s9418_s1 + $0x5f0] sm:$0xff]  }
  0x83   :  { %4781 = vmatmul.mubr.bf16.vlgmr.msra.gmra.mrb[12].mxu0 %v5833_v27  ;;  %v7280_v27 = vld [vmem:[%s9418_s1 + $0x5a0] sm:$0xff]  }
  0x84   :  { %4822 = vmatmul.mubr.bf16.vlgmr.msra.gmra.mrb[12].mxu1 %v5835_v30  ;;  %6574 = vmatpush3.bf16.msra.mxu0 %v7231_v34  ;;  %v7283_v30 = vld [vmem:[%s9418_s1 + $0x528] sm:$0xff]   ;;  %v7287_v34 = vld [vmem:[%s9418_s1 + $0x530] sm:$0xff]  }
  0x85   :  { %6596 = vmatpush3.bf16.msra.mxu1 %v7232_v35  ;;  %6575 = vmatprep.subr.bf16.mxu0 %v7233_v36  ;;  %v7288_v35 = vld [vmem:[%s9418_s1 + $0x5b0] sm:$0xff]   ;;  %v7289_v36 = vld [vmem:[%s9418_s1 + $0x578] sm:$0xff]  }
  0x86   :  { %6597 = vmatprep.subr.bf16.mxu1 %v7234_v37  ;;  %4862 = vmatprep.mubr.bf16.mxu0 %v5838_v3  ;;  %v7290_v37 = vld [vmem:[%s9418_s1 + $0x5f8] sm:$0xff]   ;;  %v7312_v3 = vld [vmem:[%s9418_s1 + $0x6a0] sm:$0xff]  }
  0x87   :  { %4903 = vmatprep.mubr.bf16.mxu1 %v5840_v7  ;;  %v7316_v7 = vld [vmem:[%s9418_s1 + $0x6a8] sm:$0xff]  }
  0x88   :  { %6576 = vmatpush3.bf16.msra.mxu0 %v7235_v38  ;;  %v7291_v38 = vld [vmem:[%s9418_s1 + $0x538] sm:$0xff]  }
  0x89   :  { %6598 = vmatpush3.bf16.msra.mxu1 %v7236_v39  ;;  %6577 = vmatprep.subr.bf16.mxu0 %v7237_v40  ;;  %v7292_v39 = vld [vmem:[%s9418_s1 + $0x5b8] sm:$0xff]   ;;  %v25_v40 = vld [vmem:[%s9419_s0 + $0x50] sm:$0xff] }
  0x8a   :  { %6599 = vmatprep.subr.bf16.mxu1 %v7238_v41  ;;  %v57_v41 = vld [vmem:[%s9419_s0 + $0x150] sm:$0xff] }
  0x8c   :  { %6578 = vmatpush3.bf16.msra.mxu0 %v7239_v42  ;;  %v26_v42 = vld [vmem:[%s9419_s0 + $0x58] sm:$0xff] }
  0x8d   :  { %6600 = vmatpush3.bf16.msra.mxu1 %v7240_v43  ;;  %6579 = vmatprep.subr.bf16.mxu0 %v7241_v44  ;;  %v58_v43 = vld [vmem:[%s9419_s0 + $0x158] sm:$0xff]  ;;  %v5841_v44 = vcombine.low %v25_v40, %v57_v41 }
  0x8e   :  { %6601 = vmatprep.subr.bf16.mxu1 %v7242_v45  ;;  %v5842_v45 = vcombine.high %v25_v40, %v57_v41  ;;  %v7340_v41 = vld [vmem:[%s9418_s1 + $0x798] sm:$0xff]  }
  0x90   :  { %6580 = vmatpush3.bf16.msra.mxu0 %v7243_v46  ;;  %v5843_v46 = vcombine.low %v26_v42, %v58_v43 }
  0x91   :  { %6602 = vmatpush3.bf16.msra.mxu1 %v7244_v47  ;;  %6581 = vmatprep.subr.bf16.mxu0 %v7245_v48  ;;  %v5844_v47 = vcombine.high %v26_v42, %v58_v43  ;;  %v7293_v48 = vld [vmem:[%s9418_s1 + $0x640] sm:$0xff]  }
  0x92   :  { %6603 = vmatprep.subr.bf16.mxu1 %v7246_v49  ;;  %v7294_v49 = vld [vmem:[%s9418_s1 + $0x6c0] sm:$0xff]  }
  0x93   :  { %v7341_v43 = vld [vmem:[%s9418_s1 + $0x760] sm:$0xff]  }
  0x94   :  { %6582 = vmatpush3.bf16.msra.mxu0 %v7247_v50  ;;  %v7295_v50 = vld [vmem:[%s9418_s1 + $0x600] sm:$0xff]  }
  0x95   :  { %6604 = vmatpush3.bf16.msra.mxu1 %v7248_v51  ;;  %6583 = vmatprep.subr.bf16.mxu0 %v7249_v52  ;;  %v7296_v51 = vld [vmem:[%s9418_s1 + $0x680] sm:$0xff]   ;;  %v7297_v52 = vld [vmem:[%s9418_s1 + $0x648] sm:$0xff]  }
  0x96   :  { %6605 = vmatprep.subr.bf16.mxu1 %v7250_v53  ;;  %v7298_v53 = vld [vmem:[%s9418_s1 + $0x6c8] sm:$0xff]  }
  0x98   :  { %6584 = vmatpush3.bf16.msra.mxu0 %v7251_v54  ;;  %v7299_v54 = vld [vmem:[%s9418_s1 + $0x608] sm:$0xff]  }
  0x99   :  { %6606 = vmatpush3.bf16.msra.mxu1 %v7252_v55  ;;  %6585 = vmatprep.subr.bf16.mxu0 %v7253_v56  ;;  %v7300_v55 = vld [vmem:[%s9418_s1 + $0x688] sm:$0xff]   ;;  %v7301_v56 = vld [vmem:[%s9418_s1 + $0x650] sm:$0xff]  }
  0x9a   :  { %6607 = vmatprep.subr.bf16.mxu1 %v7254_v57  ;;  %v7302_v57 = vld [vmem:[%s9418_s1 + $0x6d0] sm:$0xff]  }
  0x9c   :  { %6586 = vmatpush3.bf16.msra.mxu0 %v7255_v58  ;;  %v7303_v58 = vld [vmem:[%s9418_s1 + $0x610] sm:$0xff]  }
  0x9d   :  { %6608 = vmatpush3.bf16.msra.mxu1 %v7256_v59  ;;  %6587 = vmatprep.subr.bf16.mxu0 %v7257_v60  ;;  %v7304_v59 = vld [vmem:[%s9418_s1 + $0x690] sm:$0xff]   ;;  %v7305_v60 = vld [vmem:[%s9418_s1 + $0x658] sm:$0xff]  }
  0x9e   :  { %6609 = vmatprep.subr.bf16.mxu1 %v7258_v61  ;;  %v7306_v61 = vld [vmem:[%s9418_s1 + $0x6d8] sm:$0xff]  }
  0xa0   :  { %6588 = vmatpush3.bf16.msra.mxu0 %v7259_v62  ;;  %v7307_v62 = vld [vmem:[%s9418_s1 + $0x618] sm:$0xff]  }
  0xa1   :  { %6610 = vmatpush3.bf16.msra.mxu1 %v7260_v63  ;;  %6617 = vmatprep.subr.bf16.mxu0 %v7261_v8  ;;  %v7308_v63 = vld [vmem:[%s9418_s1 + $0x698] sm:$0xff]   ;;  %v7317_v8 = vld [vmem:[%s9418_s1 + $0x670] sm:$0xff]  }
  0xa2   :  { %6639 = vmatprep.subr.bf16.mxu1 %v7262_v9  ;;  %v7318_v9 = vld [vmem:[%s9418_s1 + $0x6f0] sm:$0xff]  }
  0xa3   :  { %4863 = vmatmul.mubr.bf16.vlgmr.msra.gmra.mrb[16].mxu0 %v5837_v2  ;;  %v7311_v2 = vld [vmem:[%s9418_s1 + $0x620] sm:$0xff]  }
  0xa4   :  { %4904 = vmatmul.mubr.bf16.vlgmr.msra.gmra.mrb[16].mxu1 %v5839_v6  ;;  %6618 = vmatpush3.bf16.msra.mxu0 %v7263_v10  ;;  %v7315_v6 = vld [vmem:[%s9418_s1 + $0x628] sm:$0xff]   ;;  %v7319_v10 = vld [vmem:[%s9418_s1 + $0x630] sm:$0xff]  }
  0xa5   :  { %6640 = vmatpush3.bf16.msra.mxu1 %v7264_v11  ;;  %6619 = vmatprep.subr.bf16.mxu0 %v7265_v12  ;;  %v7320_v11 = vld [vmem:[%s9418_s1 + $0x6b0] sm:$0xff]   ;;  %v7321_v12 = vld [vmem:[%s9418_s1 + $0x678] sm:$0xff]  }
  0xa6   :  { %6641 = vmatprep.subr.bf16.mxu1 %v7266_v13  ;;  %4944 = vmatprep.mubr.bf16.mxu0 %v5842_v45  ;;  %v7322_v13 = vld [vmem:[%s9418_s1 + $0x6f8] sm:$0xff]  }
  0xa7   :  { %4985 = vmatprep.mubr.bf16.mxu1 %v5844_v47 }
  0xa8   :  { %6620 = vmatpush3.bf16.msra.mxu0 %v7267_v14  ;;  %v7323_v14 = vld [vmem:[%s9418_s1 + $0x638] sm:$0xff]  }
  0xa9   :  { %6642 = vmatpush3.bf16.msra.mxu1 %v7268_v15  ;;  %6621 = vmatprep.subr.bf16.mxu0 %v7269_v16  ;;  %v7324_v15 = vld [vmem:[%s9418_s1 + $0x6b8] sm:$0xff]   ;;  %v27_v16 = vld [vmem:[%s9419_s0 + $0x60] sm:$0xff] }
  0xaa   :  { %6643 = vmatprep.subr.bf16.mxu1 %v7270_v17  ;;  %v59_v17 = vld [vmem:[%s9419_s0 + $0x160] sm:$0xff] }
  0xac   :  { %6622 = vmatpush3.bf16.msra.mxu0 %v7271_v18  ;;  %v28_v18 = vld [vmem:[%s9419_s0 + $0x68] sm:$0xff] }
  0xad   :  { %6644 = vmatpush3.bf16.msra.mxu1 %v7272_v19  ;;  %6623 = vmatprep.subr.bf16.mxu0 %v7273_v20  ;;  %v5845_v19 = vcombine.low %v27_v16, %v59_v17  ;;  %v5846_v20 = vcombine.high %v27_v16, %v59_v17  ;;  %v7357_v17 = vld [vmem:[%s9418_s1 + $0x840] sm:$0xff]  }
  0xae   :  { %6645 = vmatprep.subr.bf16.mxu1 %v7274_v21  ;;  %v60_v21 = vld [vmem:[%s9419_s0 + $0x168] sm:$0xff] }
  0xb0   :  { %6624 = vmatpush3.bf16.msra.mxu0 %v7275_v22  ;;  %v5847_v22 = vcombine.low %v28_v18, %v60_v21 }
  0xb1   :  { %6646 = vmatpush3.bf16.msra.mxu1 %v7276_v23  ;;  %6625 = vmatprep.subr.bf16.mxu0 %v7277_v24  ;;  %v5848_v23 = vcombine.high %v28_v18, %v60_v21  ;;  %v7325_v24 = vld [vmem:[%s9418_s1 + $0x740] sm:$0xff]   ;;  %v7361_v21 = vld [vmem:[%s9418_s1 + $0x848] sm:$0xff]  }
  0xb2   :  { %6647 = vmatprep.subr.bf16.mxu1 %v7278_v25  ;;  %v7326_v25 = vld [vmem:[%s9418_s1 + $0x7c0] sm:$0xff]  }
  0xb3   :  { %v7358_v18 = vld [vmem:[%s9418_s1 + $0x8c0] sm:$0xff]  }
  0xb4   :  { %6626 = vmatpush3.bf16.msra.mxu0 %v7279_v26  ;;  %v7327_v26 = vld [vmem:[%s9418_s1 + $0x700] sm:$0xff]  }
  0xb5   :  { %6648 = vmatpush3.bf16.msra.mxu1 %v7280_v27  ;;  %6627 = vmatprep.subr.bf16.mxu0 %v7281_v28  ;;  %v7328_v27 = vld [vmem:[%s9418_s1 + $0x780] sm:$0xff]   ;;  %v7329_v28 = vld [vmem:[%s9418_s1 + $0x748] sm:$0xff]  }
  0xb6   :  { %6649 = vmatprep.subr.bf16.mxu1 %v7282_v29  ;;  %v7330_v29 = vld [vmem:[%s9418_s1 + $0x7c8] sm:$0xff]  }
  0xb8   :  { %6628 = vmatpush3.bf16.msra.mxu0 %v7283_v30  ;;  %v7331_v30 = vld [vmem:[%s9418_s1 + $0x708] sm:$0xff]  }
  0xb9   :  { %6650 = vmatpush3.bf16.msra.mxu1 %v7284_v31  ;;  %6629 = vmatprep.subr.bf16.mxu0 %v7285_v32  ;;  %v7332_v31 = vld [vmem:[%s9418_s1 + $0x788] sm:$0xff]   ;;  %v7333_v32 = vld [vmem:[%s9418_s1 + $0x750] sm:$0xff]  }
  0xba   :  { %6651 = vmatprep.subr.bf16.mxu1 %v7286_v33  ;;  %v7334_v33 = vld [vmem:[%s9418_s1 + $0x7d0] sm:$0xff]  }
  0xbc   :  { %6630 = vmatpush3.bf16.msra.mxu0 %v7287_v34  ;;  %v7335_v34 = vld [vmem:[%s9418_s1 + $0x710] sm:$0xff]  }
  0xbd   :  { %6652 = vmatpush3.bf16.msra.mxu1 %v7288_v35  ;;  %6631 = vmatprep.subr.bf16.mxu0 %v7289_v36  ;;  %v7336_v35 = vld [vmem:[%s9418_s1 + $0x790] sm:$0xff]   ;;  %v7337_v36 = vld [vmem:[%s9418_s1 + $0x758] sm:$0xff]  }
  0xbe   :  { %6653 = vmatprep.subr.bf16.mxu1 %v7290_v37  ;;  %v7338_v37 = vld [vmem:[%s9418_s1 + $0x7d8] sm:$0xff]  }
  0xc0   :  { %6632 = vmatpush3.bf16.msra.mxu0 %v7291_v38 }
  0xc1   :  { %6654 = vmatpush3.bf16.msra.mxu1 %v7292_v39  ;;  %6661 = vmatprep.subr.bf16.mxu0 %v7293_v48  ;;  %v7339_v39 = vld [vmem:[%s9418_s1 + $0x718] sm:$0xff]  }
  0xc2   :  { %6683 = vmatprep.subr.bf16.mxu1 %v7294_v49  ;;  %v7343_v49 = vld [vmem:[%s9418_s1 + $0x720] sm:$0xff]  }
  0xc3   :  { %4945 = vmatmul.mubr.bf16.vlgmr.msra.gmra.mrb[20].mxu0 %v5841_v44 }
  0xc4   :  { %4986 = vmatmul.mubr.bf16.vlgmr.msra.gmra.mrb[20].mxu1 %v5843_v46  ;;  %6662 = vmatpush3.bf16.msra.mxu0 %v7295_v50  ;;  %v7342_v46 = vld [vmem:[%s9418_s1 + $0x7e0] sm:$0xff]  }
  0xc5   :  { %6684 = vmatpush3.bf16.msra.mxu1 %v7296_v51  ;;  %6663 = vmatprep.subr.bf16.mxu0 %v7297_v52  ;;  %v7344_v51 = vld [vmem:[%s9418_s1 + $0x7a0] sm:$0xff]  }
  0xc6   :  { %6685 = vmatprep.subr.bf16.mxu1 %v7298_v53  ;;  %5026 = vmatprep.mubr.bf16.mxu0 %v5846_v20  ;;  %v5820_v52 = vld [vmem:[%s9420_s2] ss:$0 sm:$0xff] }
  0xc7   :  { %5067 = vmatprep.mubr.bf16.mxu1 %v5848_v23  ;;  %v7360_v20 = vld [vmem:[%s9418_s1 + $0x880] sm:$0xff]   ;;  %v7363_v23 = vld [vmem:[%s9418_s1 + $0x808] sm:$0xff]  }
  0xc8   :  { %6664 = vmatpush3.bf16.msra.mxu0 %v7299_v54 }
  0xc9   :  { %6686 = vmatpush3.bf16.msra.mxu1 %v7300_v55  ;;  %6665 = vmatprep.subr.bf16.mxu0 %v7301_v56  ;;  %v7345_v55 = vld [vmem:[%s9418_s1 + $0x768] sm:$0xff]  }
  0xca   :  { %6687 = vmatprep.subr.bf16.mxu1 %v7302_v57 }
  0xcc   :  { %6666 = vmatpush3.bf16.msra.mxu0 %v7303_v58  ;;  %v7346_v58 = vld [vmem:[%s9418_s1 + $0x7e8] sm:$0xff]  }
  0xcd   :  { %6688 = vmatpush3.bf16.msra.mxu1 %v7304_v59  ;;  %6667 = vmatprep.subr.bf16.mxu0 %v7305_v60 }
  0xce   :  { %6689 = vmatprep.subr.bf16.mxu1 %v7306_v61  ;;  %v7347_v61 = vld [vmem:[%s9418_s1 + $0x728] sm:$0xff]  }
  0xd0   :  { %6668 = vmatpush3.bf16.msra.mxu0 %v7307_v62 }
  0xd1   :  { %6690 = vmatpush3.bf16.msra.mxu1 %v7308_v63  ;;  %6669 = vmatprep.subr.bf16.mxu0 %v7309_v0  ;;  %v7348_v63 = vld [vmem:[%s9418_s1 + $0x7a8] sm:$0xff]  }
  0xd2   :  { %6691 = vmatprep.subr.bf16.mxu1 %v7310_v1  ;;  %v7349_v1 = vld [vmem:[%s9418_s1 + $0x770] sm:$0xff]  }
  0xd4   :  { %6670 = vmatpush3.bf16.msra.mxu0 %v7311_v2  ;;  %v7350_v2 = vld [vmem:[%s9418_s1 + $0x7f0] sm:$0xff]  }
  0xd5   :  { %6692 = vmatpush3.bf16.msra.mxu1 %v7312_v3  ;;  %6671 = vmatprep.subr.bf16.mxu0 %v7313_v4  ;;  %v7351_v3 = vld [vmem:[%s9418_s1 + $0x730] sm:$0xff]  }
  0xd6   :  { %6693 = vmatprep.subr.bf16.mxu1 %v7314_v5  ;;  %v7352_v4 = vld [vmem:[%s9418_s1 + $0x7b0] sm:$0xff]   ;;  %v7353_v5 = vld [vmem:[%s9418_s1 + $0x778] sm:$0xff]  }
  0xd8   :  { %6672 = vmatpush3.bf16.msra.mxu0 %v7315_v6  ;;  %v7354_v6 = vld [vmem:[%s9418_s1 + $0x7f8] sm:$0xff]  }
  0xd9   :  { %6694 = vmatpush3.bf16.msra.mxu1 %v7316_v7  ;;  %6673 = vmatprep.subr.bf16.mxu0 %v7317_v8  ;;  %v7355_v7 = vld [vmem:[%s9418_s1 + $0x738] sm:$0xff]  }
  0xda   :  { %6695 = vmatprep.subr.bf16.mxu1 %v7318_v9  ;;  %v7356_v8 = vld [vmem:[%s9418_s1 + $0x7b8] sm:$0xff]   ;;  %v29_v9 = vld [vmem:[%s9419_s0 + $0x70] sm:$0xff] }
  0xdc   :  { %6674 = vmatpush3.bf16.msra.mxu0 %v7319_v10  ;;  %v61_v10 = vld [vmem:[%s9419_s0 + $0x170] sm:$0xff] }
  0xdd   :  { %6696 = vmatpush3.bf16.msra.mxu1 %v7320_v11  ;;  %6675 = vmatprep.subr.bf16.mxu0 %v7321_v12  ;;  %v30_v11 = vld [vmem:[%s9419_s0 + $0x78] sm:$0xff] }
  0xde   :  { %6697 = vmatprep.subr.bf16.mxu1 %v7322_v13  ;;  %v62_v12 = vld [vmem:[%s9419_s0 + $0x178] sm:$0xff]  ;;  %v5849_v13 = vcombine.low %v29_v9, %v61_v10 }
  0xdf   :  { %v5852_v16 = vcombine.high %v30_v11, %v62_v12 }
  0xe0   :  { %6676 = vmatpush3.bf16.msra.mxu0 %v7323_v14  ;;  %v5850_v14 = vcombine.high %v29_v9, %v61_v10  ;;  %v7389_v9 = vld [vmem:[%s9418_s1 + $0x940] sm:$0xff]  }
  0xe1   :  { %6698 = vmatpush3.bf16.msra.mxu1 %v7324_v15  ;;  %6705 = vmatprep.subr.bf16.mxu0 %v7325_v24  ;;  %v5851_v15 = vcombine.low %v30_v11, %v62_v12  ;;  %v7364_v24 = vld [vmem:[%s9418_s1 + $0x888] sm:$0xff]   ;;  %v7390_v10 = vld [vmem:[%s9418_s1 + $0x9c0] sm:$0xff]  }
  0xe2   :  { %6727 = vmatprep.subr.bf16.mxu1 %v7326_v25  ;;  %v7365_v25 = vld [vmem:[%s9418_s1 + $0x850] sm:$0xff]   ;;  %v7391_v11 = vld [vmem:[%s9418_s1 + $0x900] sm:$0xff]  }
  0xe3   :  { %5027 = vmatmul.mubr.bf16.vlgmr.msra.gmra.mrb[24].mxu0 %v5845_v19  ;;  %v7359_v19 = vld [vmem:[%s9418_s1 + $0x800] sm:$0xff]  }
  0xe4   :  { %5068 = vmatmul.mubr.bf16.vlgmr.msra.gmra.mrb[24].mxu1 %v5847_v22  ;;  %6706 = vmatpush3.bf16.msra.mxu0 %v7327_v26  ;;  %v7362_v22 = vld [vmem:[%s9418_s1 + $0x8c8] sm:$0xff]   ;;  %v7366_v26 = vld [vmem:[%s9418_s1 + $0x8d0] sm:$0xff]   ;;  %v7392_v12 = vld [vmem:[%s9418_s1 + $0x980] sm:$0xff]  }
  0xe5   :  { %6728 = vmatpush3.bf16.msra.mxu1 %v7328_v27  ;;  %6707 = vmatprep.subr.bf16.mxu0 %v7329_v28  ;;  %v7367_v27 = vld [vmem:[%s9418_s1 + $0x810] sm:$0xff]  }
  0xe6   :  { %6729 = vmatprep.subr.bf16.mxu1 %v7330_v29  ;;  %5108 = vmatprep.mubr.bf16.mxu0 %v5850_v14  ;;  %v7368_v28 = vld [vmem:[%s9418_s1 + $0x890] sm:$0xff]   ;;  %v7369_v29 = vld [vmem:[%s9418_s1 + $0x858] sm:$0xff]   ;;  %v7394_v14 = vld [vmem:[%s9418_s1 + $0x9c8] sm:$0xff]  }
  0xe7   :  { %5149 = vmatprep.mubr.bf16.mxu1 %v5852_v16  ;;  %v7396_v16 = vld [vmem:[%s9418_s1 + $0x988] sm:$0xff]  }
  0xe8   :  { %6708 = vmatpush3.bf16.msra.mxu0 %v7331_v30  ;;  %v7370_v30 = vld [vmem:[%s9418_s1 + $0x8d8] sm:$0xff]  }
  0xe9   :  { %6730 = vmatpush3.bf16.msra.mxu1 %v7332_v31  ;;  %6709 = vmatprep.subr.bf16.mxu0 %v7333_v32  ;;  %v7371_v32 = vld [vmem:[%s9418_s1 + $0x818] sm:$0xff]  }
  0xea   :  { %6731 = vmatprep.subr.bf16.mxu1 %v7334_v33 }
  0xec   :  { %6710 = vmatpush3.bf16.msra.mxu0 %v7335_v34  ;;  %v7372_v34 = vld [vmem:[%s9418_s1 + $0x898] sm:$0xff]  }
  0xed   :  { %6732 = vmatpush3.bf16.msra.mxu1 %v7336_v35  ;;  %6711 = vmatprep.subr.bf16.mxu0 %v7337_v36  ;;  %v7373_v36 = vld [vmem:[%s9418_s1 + $0x860] sm:$0xff]  }
  0xee   :  { %6733 = vmatprep.subr.bf16.mxu1 %v7338_v37 }
  0xf0   :  { %6712 = vmatpush3.bf16.msra.mxu0 %v7339_v39  ;;  %v7374_v39 = vld [vmem:[%s9418_s1 + $0x8e0] sm:$0xff]  }
  0xf1   :  { %6734 = vmatpush3.bf16.msra.mxu1 %v7340_v41  ;;  %6713 = vmatprep.subr.bf16.mxu0 %v7341_v43 }
  0xf2   :  { %6735 = vmatprep.subr.bf16.mxu1 %v7342_v46 }
  0xf4   :  { %6714 = vmatpush3.bf16.msra.mxu0 %v7343_v49 }
  0xf5   :  { %6736 = vmatpush3.bf16.msra.mxu1 %v7344_v51  ;;  %6715 = vmatprep.subr.bf16.mxu0 %v7345_v55  ;;  %v7378_v51 = vld [vmem:[%s9418_s1 + $0x8e8] sm:$0xff]  }
  0xf6   :  { %v6413_v38 = vpop.f32.mrb[0].mxu0  ;;  %6737 = vmatprep.subr.bf16.mxu1 %v7346_v58  ;;  %v7380_v55 = vld [vmem:[%s9418_s1 + $0x8a8] sm:$0xff]   ;;  %v7382_v58 = vld [vmem:[%s9418_s1 + $0x8f0] sm:$0xff]  }
  0xf7   :  { %v6435_v40 = vpop.f32.mrb[0].mxu1  ;;  %v6414_v42 = vpop.f32.mrb[1].mxu0 }
  0xf8   :  { %v6415_v44 = vadd.f32 %v6414_v42, %v6413_v38  ;;  %v6436_v45 = vpop.f32.mrb[1].mxu1  ;;  %v6416_v48 = vpop.f32.mrb[2].mxu0  ;;  %6716 = vmatpush3.bf16.msra.mxu0 %v7347_v61  ;;  %v7375_v42 = vld [vmem:[%s9418_s1 + $0x820] sm:$0xff]   ;;  %v7385_v61 = vld [vmem:[%s9418_s1 + $0x878] sm:$0xff]  }
  0xf9   :  { %v6437_v47 = vadd.f32 %v6436_v45, %v6435_v40  ;;  %v6438_v50 = vpop.f32.mrb[2].mxu1  ;;  %v6417_v53 = vpop.f32.mrb[3].mxu0  ;;  %6738 = vmatpush3.bf16.msra.mxu1 %v7348_v63  ;;  %6717 = vmatprep.subr.bf16.mxu0 %v7349_v1  ;;  %v7376_v45 = vld [vmem:[%s9418_s1 + $0x8a0] sm:$0xff]   ;;  %v7387_v63 = vld [vmem:[%s9418_s1 + $0x838] sm:$0xff]  }
  0xfa   :  { %v4537_v54 = vadd.f32 %v6415_v44, %v5820_v52  ;;  %v6418_v56 = vadd.f32 %v6417_v53, %v6416_v48  ;;  %v6439_v57 = vpop.f32.mrb[3].mxu1  ;;  %6739 = vmatprep.subr.bf16.mxu1 %v7350_v2  ;;  %v7377_v48 = vld [vmem:[%s9418_s1 + $0x868] sm:$0xff]   ;;  %v31_v1 = vld [vmem:[%s9419_s0 + $0x80] sm:$0xff] }
  0xfb   :  { %v6440_v59 = vadd.f32 %v6439_v57, %v6438_v50  ;;  %v7379_v53 = vld [vmem:[%s9418_s1 + $0x828] sm:$0xff]   ;;  %v7381_v57 = vld [vmem:[%s9418_s1 + $0x870] sm:$0xff]   ;;  %v63_v2 = vld [vmem:[%s9419_s0 + $0x180] sm:$0xff] }
  0xfc   :  { %v8458_v60 = vadd.f32 %v6437_v47, %v4537_v54  ;;  %v4540_v62 = vadd.f32 %v6418_v56, %v5820_v52  ;;  %6718 = vmatpush3.bf16.msra.mxu0 %v7351_v3  ;;  %v32_v3 = vld [vmem:[%s9419_s0 + $0x88] sm:$0xff] }
  0xfd   :  { %6740 = vmatpush3.bf16.msra.mxu1 %v7352_v4  ;;  %6719 = vmatprep.subr.bf16.mxu0 %v7353_v5  ;;  %v5853_v4 = vcombine.low %v31_v1, %v63_v2  ;;  %v5854_v5 = vcombine.high %v31_v1, %v63_v2  ;;  %v7421_v1 = vld [vmem:[%s9418_s1 + $0xa40] sm:$0xff]  }
  0xfe   :  { %v8466_v0 = vadd.f32 %v6440_v59, %v4540_v62  ;;  %6741 = vmatprep.subr.bf16.mxu1 %v7354_v6  ;;  %v7383_v59 = vld [vmem:[%s9418_s1 + $0x830] sm:$0xff]   ;;  %v7386_v62 = vld [vmem:[%s9418_s1 + $0x8f8] sm:$0xff]   ;;  %v64_v6 = vld [vmem:[%s9419_s0 + $0x188] sm:$0xff] }
  0xff   :  { %v7422_v2 = vld [vmem:[%s9418_s1 + $0xac0] sm:$0xff]  }
 0x100   :  { %6720 = vmatpush3.bf16.msra.mxu0 %v7355_v7  ;;  %v5855_v7 = vcombine.low %v32_v3, %v64_v6 }
 0x101   :  { %6742 = vmatpush3.bf16.msra.mxu1 %v7356_v8  ;;  %6749 = vmatprep.subr.bf16.mxu0 %v7357_v17  ;;  %v5856_v8 = vcombine.high %v32_v3, %v64_v6  ;;  %v7397_v17 = vld [vmem:[%s9418_s1 + $0x950] sm:$0xff]   ;;  %v7423_v3 = vld [vmem:[%s9418_s1 + $0xa00] sm:$0xff]   ;;  %v7426_v6 = vld [vmem:[%s9418_s1 + $0xac8] sm:$0xff]  }
 0x102   :  { %6771 = vmatprep.subr.bf16.mxu1 %v7358_v18  ;;  %v7398_v18 = vld [vmem:[%s9418_s1 + $0x9d0] sm:$0xff]  }
 0x103   :  { %5109 = vmatmul.mubr.bf16.vlgmr.msra.gmra.mrb[28].mxu0 %v5849_v13  ;;  %v7393_v13 = vld [vmem:[%s9418_s1 + $0x948] sm:$0xff]  }
 0x104   :  { %5150 = vmatmul.mubr.bf16.vlgmr.msra.gmra.mrb[28].mxu1 %v5851_v15  ;;  %6750 = vmatpush3.bf16.msra.mxu0 %v7359_v19  ;;  %v7395_v15 = vld [vmem:[%s9418_s1 + $0x908] sm:$0xff]   ;;  %v7399_v19 = vld [vmem:[%s9418_s1 + $0x910] sm:$0xff]  }
 0x105   :  { %6772 = vmatpush3.bf16.msra.mxu1 %v7360_v20  ;;  %6751 = vmatprep.subr.bf16.mxu0 %v7361_v21  ;;  %v7400_v20 = vld [vmem:[%s9418_s1 + $0x990] sm:$0xff]   ;;  %v7401_v21 = vld [vmem:[%s9418_s1 + $0x958] sm:$0xff]  }
 0x106   :  { %6773 = vmatprep.subr.bf16.mxu1 %v7362_v22  ;;  %5190 = vmatprep.mubr.bf16.mxu0 %v5854_v5  ;;  %v7402_v22 = vld [vmem:[%s9418_s1 + $0x9d8] sm:$0xff]   ;;  %v7425_v5 = vld [vmem:[%s9418_s1 + $0xa48] sm:$0xff]  }
 0x107   :  { %5231 = vmatprep.mubr.bf16.mxu1 %v5856_v8  ;;  %v7428_v8 = vld [vmem:[%s9418_s1 + $0xa88] sm:$0xff]  }
 0x108   :  { %6752 = vmatpush3.bf16.msra.mxu0 %v7363_v23 }
 0x109   :  { %6774 = vmatpush3.bf16.msra.mxu1 %v7364_v24  ;;  %6753 = vmatprep.subr.bf16.mxu0 %v7365_v25  ;;  %v7403_v24 = vld [vmem:[%s9418_s1 + $0x918] sm:$0xff]  }
 0x10a   :  { %6775 = vmatprep.subr.bf16.mxu1 %v7366_v26  ;;  %v7404_v26 = vld [vmem:[%s9418_s1 + $0x998] sm:$0xff]  }
 0x10c   :  { %6754 = vmatpush3.bf16.msra.mxu0 %v7367_v27 }
 0x10d   :  { %6776 = vmatpush3.bf16.msra.mxu1 %v7368_v28  ;;  %6755 = vmatprep.subr.bf16.mxu0 %v7369_v29  ;;  %v7405_v28 = vld [vmem:[%s9418_s1 + $0x960] sm:$0xff]  }
 0x10e   :  { %6777 = vmatprep.subr.bf16.mxu1 %v7370_v30 }
 0x110   :  { %6756 = vmatpush3.bf16.msra.mxu0 %v7371_v32 }
 0x111   :  { %6778 = vmatpush3.bf16.msra.mxu1 %v7372_v34  ;;  %6757 = vmatprep.subr.bf16.mxu0 %v7373_v36  ;;  %v7407_v34 = vld [vmem:[%s9418_s1 + $0x920] sm:$0xff]  }
 0x112   :  { %6779 = vmatprep.subr.bf16.mxu1 %v7374_v39 }
 0x114   :  { %6758 = vmatpush3.bf16.msra.mxu0 %v7375_v42 }
 0x115   :  { %6780 = vmatpush3.bf16.msra.mxu1 %v7376_v45  ;;  %6759 = vmatprep.subr.bf16.mxu0 %v7377_v48  ;;  %v7411_v45 = vld [vmem:[%s9418_s1 + $0x928] sm:$0xff]  }
 0x116   :  { %v6457_v31 = vpop.f32.mrb[4].mxu0  ;;  %6781 = vmatprep.subr.bf16.mxu1 %v7378_v51  ;;  %v7415_v51 = vld [vmem:[%s9418_s1 + $0x930] sm:$0xff]  }
 0x117   :  { %v6479_v33 = vpop.f32.mrb[4].mxu1  ;;  %v6458_v35 = vpop.f32.mrb[5].mxu0 }
 0x118   :  { %v6459_v37 = vadd.f32 %v6458_v35, %v6457_v31  ;;  %v6480_v38 = vpop.f32.mrb[5].mxu1  ;;  %v6460_v41 = vpop.f32.mrb[6].mxu0  ;;  %6760 = vmatpush3.bf16.msra.mxu0 %v7379_v53  ;;  %v7406_v31 = vld [vmem:[%s9418_s1 + $0x9e0] sm:$0xff]   ;;  %v7417_v53 = vld [vmem:[%s9418_s1 + $0x978] sm:$0xff]  }
 0x119   :  { %v6481_v40 = vadd.f32 %v6480_v38, %v6479_v33  ;;  %v6482_v44 = vpop.f32.mrb[6].mxu1  ;;  %v6461_v46 = vpop.f32.mrb[7].mxu0  ;;  %6782 = vmatpush3.bf16.msra.mxu1 %v7380_v55  ;;  %6761 = vmatprep.subr.bf16.mxu0 %v7381_v57  ;;  %v7419_v55 = vld [vmem:[%s9418_s1 + $0x938] sm:$0xff]   ;;  %v33_v57 = vld [vmem:[%s9419_s0 + $0x90] sm:$0xff] }
 0x11a   :  { %v4619_v43 = vadd.f32 %v6459_v37, %v8458_v60  ;;  %v6462_v49 = vadd.f32 %v6461_v46, %v6460_v41  ;;  %v6483_v50 = vpop.f32.mrb[7].mxu1  ;;  %6783 = vmatprep.subr.bf16.mxu1 %v7382_v58  ;;  %v7384_v60 = vld [vmem:[%s9418_s1 + $0x8b0] sm:$0xff]   ;;  %v7408_v37 = vld [vmem:[%s9418_s1 + $0x9a0] sm:$0xff]  }
 0x11b   :  { %v6484_v52 = vadd.f32 %v6483_v50, %v6482_v44  ;;  %v7414_v50 = vld [vmem:[%s9418_s1 + $0x9f0] sm:$0xff]  }
 0x11c   :  { %v8565_v47 = vadd.f32 %v6481_v40, %v4619_v43  ;;  %v4622_v54 = vadd.f32 %v6462_v49, %v8466_v0  ;;  %6762 = vmatpush3.bf16.msra.mxu0 %v7383_v59  ;;  %v7388_v0 = vld [vmem:[%s9418_s1 + $0x8b8] sm:$0xff]   ;;  %v7409_v40 = vld [vmem:[%s9418_s1 + $0x968] sm:$0xff]   ;;  %v7413_v49 = vld [vmem:[%s9418_s1 + $0x970] sm:$0xff]  }
 0x11d   :  { %6784 = vmatpush3.bf16.msra.mxu1 %v7384_v60  ;;  %6763 = vmatprep.subr.bf16.mxu0 %v7385_v61  ;;  %v7410_v43 = vld [vmem:[%s9418_s1 + $0x9e8] sm:$0xff]   ;;  %v65_v58 = vld [vmem:[%s9419_s0 + $0x190] sm:$0xff]  ;;  %v34_v61 = vld [vmem:[%s9419_s0 + $0x98] sm:$0xff] }
 0x11e   :  { %v8580_v56 = vadd.f32 %v6484_v52, %v4622_v54  ;;  %6785 = vmatprep.subr.bf16.mxu1 %v7386_v62  ;;  %v7416_v52 = vld [vmem:[%s9418_s1 + $0x9b0] sm:$0xff]   ;;  %v7418_v54 = vld [vmem:[%s9418_s1 + $0x9f8] sm:$0xff]   ;;  %v5857_v59 = vcombine.low %v33_v57, %v65_v58  ;;  %v5858_v60 = vcombine.high %v33_v57, %v65_v58  ;;  %v7453_v57 = vld [vmem:[%s9418_s1 + $0xb40] sm:$0xff]  }
 0x11f   :  { %v66_v62 = vld [vmem:[%s9419_s0 + $0x198] sm:$0xff]  ;;  %v7454_v58 = vld [vmem:[%s9418_s1 + $0xbc0] sm:$0xff]  }
 0x120   :  { %6764 = vmatpush3.bf16.msra.mxu0 %v7387_v63  ;;  %v5859_v63 = vcombine.low %v34_v61, %v66_v62 }
 0x121   :  { %6786 = vmatpush3.bf16.msra.mxu1 %v7388_v0  ;;  %6793 = vmatprep.subr.bf16.mxu0 %v7389_v9  ;;  %v5860_v0 = vcombine.high %v34_v61, %v66_v62  ;;  %v7429_v9 = vld [vmem:[%s9418_s1 + $0xa50] sm:$0xff]   ;;  %v7457_v61 = vld [vmem:[%s9418_s1 + $0xb48] sm:$0xff]  }
 0x122   :  { %6815 = vmatprep.subr.bf16.mxu1 %v7390_v10  ;;  %v7430_v10 = vld [vmem:[%s9418_s1 + $0xad0] sm:$0xff]   ;;  %v7458_v62 = vld [vmem:[%s9418_s1 + $0xbc8] sm:$0xff]  }
 0x123   :  { %5191 = vmatmul.mubr.bf16.vlgmr.msra.gmra.mrb[32].mxu0 %v5853_v4  ;;  %v7424_v4 = vld [vmem:[%s9418_s1 + $0xa80] sm:$0xff]  }
 0x124   :  { %5232 = vmatmul.mubr.bf16.vlgmr.msra.gmra.mrb[32].mxu1 %v5855_v7  ;;  %6794 = vmatpush3.bf16.msra.mxu0 %v7391_v11  ;;  %v7427_v7 = vld [vmem:[%s9418_s1 + $0xa08] sm:$0xff]   ;;  %v7431_v11 = vld [vmem:[%s9418_s1 + $0xa10] sm:$0xff]  }
 0x125   :  { %6816 = vmatpush3.bf16.msra.mxu1 %v7392_v12  ;;  %6795 = vmatprep.subr.bf16.mxu0 %v7393_v13  ;;  %v7432_v12 = vld [vmem:[%s9418_s1 + $0xa90] sm:$0xff]   ;;  %v7433_v13 = vld [vmem:[%s9418_s1 + $0xa58] sm:$0xff]  }
 0x126   :  { %6817 = vmatprep.subr.bf16.mxu1 %v7394_v14  ;;  %5272 = vmatprep.mubr.bf16.mxu0 %v5858_v60  ;;  %v7434_v14 = vld [vmem:[%s9418_s1 + $0xad8] sm:$0xff]   ;;  %v7456_v60 = vld [vmem:[%s9418_s1 + $0xb80] sm:$0xff]  }
 0x127   :  { %5313 = vmatprep.mubr.bf16.mxu1 %v5860_v0  ;;  %v7460_v0 = vld [vmem:[%s9418_s1 + $0xb88] sm:$0xff]  }
 0x128   :  { %6796 = vmatpush3.bf16.msra.mxu0 %v7395_v15 }
 0x129   :  { %6818 = vmatpush3.bf16.msra.mxu1 %v7396_v16  ;;  %6797 = vmatprep.subr.bf16.mxu0 %v7397_v17  ;;  %v7435_v16 = vld [vmem:[%s9418_s1 + $0xa18] sm:$0xff]  }
 0x12a   :  { %6819 = vmatprep.subr.bf16.mxu1 %v7398_v18  ;;  %v7436_v18 = vld [vmem:[%s9418_s1 + $0xa98] sm:$0xff]  }
 0x12c   :  { %6798 = vmatpush3.bf16.msra.mxu0 %v7399_v19 }
 0x12d   :  { %6820 = vmatpush3.bf16.msra.mxu1 %v7400_v20  ;;  %6799 = vmatprep.subr.bf16.mxu0 %v7401_v21  ;;  %v7437_v20 = vld [vmem:[%s9418_s1 + $0xa60] sm:$0xff]  }
 0x12e   :  { %6821 = vmatprep.subr.bf16.mxu1 %v7402_v22 }
 0x130   :  { %6800 = vmatpush3.bf16.msra.mxu0 %v7403_v24 }
 0x131   :  { %6822 = vmatpush3.bf16.msra.mxu1 %v7404_v26  ;;  %6801 = vmatprep.subr.bf16.mxu0 %v7405_v28  ;;  %v7439_v26 = vld [vmem:[%s9418_s1 + $0xa20] sm:$0xff]  }
 0x132   :  { %6823 = vmatprep.subr.bf16.mxu1 %v7406_v31 }
 0x134   :  { %6802 = vmatpush3.bf16.msra.mxu0 %v7407_v34 }
 0x135   :  { %6824 = vmatpush3.bf16.msra.mxu1 %v7408_v37  ;;  %6803 = vmatprep.subr.bf16.mxu0 %v7409_v40  ;;  %v7443_v37 = vld [vmem:[%s9418_s1 + $0xa28] sm:$0xff]  }
 0x136   :  { %v6501_v23 = vpop.f32.mrb[8].mxu0  ;;  %6825 = vmatprep.subr.bf16.mxu1 %v7410_v43  ;;  %v7447_v43 = vld [vmem:[%s9418_s1 + $0xa30] sm:$0xff]  }
 0x137   :  { %v6523_v25 = vpop.f32.mrb[8].mxu1  ;;  %v6502_v27 = vpop.f32.mrb[9].mxu0 }
 0x138   :  { %v6503_v29 = vadd.f32 %v6502_v27, %v6501_v23  ;;  %v6524_v30 = vpop.f32.mrb[9].mxu1  ;;  %v6504_v33 = vpop.f32.mrb[10].mxu0  ;;  %6804 = vmatpush3.bf16.msra.mxu0 %v7411_v45  ;;  %v7438_v23 = vld [vmem:[%s9418_s1 + $0xae0] sm:$0xff]   ;;  %v7449_v45 = vld [vmem:[%s9418_s1 + $0xa78] sm:$0xff]  }
 0x139   :  { %v6525_v32 = vadd.f32 %v6524_v30, %v6523_v25  ;;  %v6526_v36 = vpop.f32.mrb[10].mxu1  ;;  %v6505_v38 = vpop.f32.mrb[11].mxu0  ;;  %6805 = vmatprep.subr.bf16.mxu0 %v7413_v49  ;;  %v35_v49 = vld [vmem:[%s9419_s0 + $0xa0] sm:$0xff] }
 0x13a   :  { %v4701_v35 = vadd.f32 %v6503_v29, %v8565_v47  ;;  %v6506_v41 = vadd.f32 %v6505_v38, %v6504_v33  ;;  %v6527_v42 = vpop.f32.mrb[11].mxu1  ;;  %v7412_v47 = vld [vmem:[%s9418_s1 + $0x9a8] sm:$0xff]   ;;  %v7440_v29 = vld [vmem:[%s9418_s1 + $0xaa0] sm:$0xff]  }
 0x13b   :  { %v6528_v44 = vadd.f32 %v6527_v42, %v6526_v36  ;;  %6826 = vmatpush3.bf16.msra.mxu1 %v7412_v47  ;;  %v7446_v42 = vld [vmem:[%s9418_s1 + $0xaf0] sm:$0xff]   ;;  %v7451_v47 = vld [vmem:[%s9418_s1 + $0xa38] sm:$0xff]  }
 0x13c   :  { %v8679_v39 = vadd.f32 %v6525_v32, %v4701_v35  ;;  %v4704_v46 = vadd.f32 %v6506_v41, %v8580_v56  ;;  %6827 = vmatprep.subr.bf16.mxu1 %v7414_v50  ;;  %6806 = vmatpush3.bf16.msra.mxu0 %v7415_v51  ;;  %v7420_v56 = vld [vmem:[%s9418_s1 + $0x9b8] sm:$0xff]   ;;  %v7441_v32 = vld [vmem:[%s9418_s1 + $0xa68] sm:$0xff]   ;;  %v7445_v41 = vld [vmem:[%s9418_s1 + $0xa70] sm:$0xff]  }
 0x13d   :  { %6807 = vmatprep.subr.bf16.mxu0 %v7417_v53  ;;  %v7442_v35 = vld [vmem:[%s9418_s1 + $0xae8] sm:$0xff]   ;;  %v67_v50 = vld [vmem:[%s9419_s0 + $0x1a0] sm:$0xff] }
 0x13e   :  { %v8694_v48 = vadd.f32 %v6528_v44, %v4704_v46  ;;  %v7448_v44 = vld [vmem:[%s9418_s1 + $0xab0] sm:$0xff]   ;;  %v7450_v46 = vld [vmem:[%s9418_s1 + $0xaf8] sm:$0xff]   ;;  %v36_v51 = vld [vmem:[%s9419_s0 + $0xa8] sm:$0xff]  ;;  %v5861_v53 = vcombine.low %v35_v49, %v67_v50 }
 0x13f   :  { %6828 = vmatpush3.bf16.msra.mxu1 %v7416_v52  ;;  %v68_v52 = vld [vmem:[%s9419_s0 + $0x1a8] sm:$0xff] }
 0x140   :  { %6829 = vmatprep.subr.bf16.mxu1 %v7418_v54  ;;  %6808 = vmatpush3.bf16.msra.mxu0 %v7419_v55  ;;  %v5862_v54 = vcombine.high %v35_v49, %v67_v50  ;;  %v5863_v55 = vcombine.low %v36_v51, %v68_v52  ;;  %v7485_v49 = vld [vmem:[%s9418_s1 + $0xc40] sm:$0xff]  }
 0x141   :  { %6837 = vmatprep.subr.bf16.mxu0 %v7421_v1  ;;  %v7461_v1 = vld [vmem:[%s9418_s1 + $0xb50] sm:$0xff]   ;;  %v7486_v50 = vld [vmem:[%s9418_s1 + $0xcc0] sm:$0xff]  }
 0x143   :  { %6830 = vmatpush3.bf16.msra.mxu1 %v7420_v56  ;;  %5273 = vmatmul.mubr.bf16.vlgmr.msra.gmra.mrb[36].mxu0 %v5857_v59  ;;  %v5864_v56 = vcombine.high %v36_v51, %v68_v52  ;;  %v7455_v59 = vld [vmem:[%s9418_s1 + $0xb00] sm:$0xff]  }
 0x144   :  { %6859 = vmatprep.subr.bf16.mxu1 %v7422_v2  ;;  %6838 = vmatpush3.bf16.msra.mxu0 %v7423_v3  ;;  %v7462_v2 = vld [vmem:[%s9418_s1 + $0xbd0] sm:$0xff]   ;;  %v7487_v51 = vld [vmem:[%s9418_s1 + $0xc00] sm:$0xff]  }
 0x145   :  { %6839 = vmatprep.subr.bf16.mxu0 %v7425_v5  ;;  %5354 = vmatprep.mubr.bf16.mxu0 %v5862_v54  ;;  %v7463_v3 = vld [vmem:[%s9418_s1 + $0xb10] sm:$0xff]   ;;  %v7465_v5 = vld [vmem:[%s9418_s1 + $0xb58] sm:$0xff]   ;;  %v7488_v52 = vld [vmem:[%s9418_s1 + $0xc80] sm:$0xff]  }
 0x146   :  { %5314 = vmatmul.mubr.bf16.vlgmr.msra.gmra.mrb[36].mxu1 %v5859_v63  ;;  %v7459_v63 = vld [vmem:[%s9418_s1 + $0xb08] sm:$0xff]  }
 0x147   :  { %6860 = vmatpush3.bf16.msra.mxu1 %v7424_v4  ;;  %5395 = vmatprep.mubr.bf16.mxu1 %v5864_v56  ;;  %v7464_v4 = vld [vmem:[%s9418_s1 + $0xb90] sm:$0xff]   ;;  %v7490_v54 = vld [vmem:[%s9418_s1 + $0xcc8] sm:$0xff]  }
 0x148   :  { %6861 = vmatprep.subr.bf16.mxu1 %v7426_v6  ;;  %6840 = vmatpush3.bf16.msra.mxu0 %v7427_v7  ;;  %v7466_v6 = vld [vmem:[%s9418_s1 + $0xbd8] sm:$0xff]   ;;  %v7492_v56 = vld [vmem:[%s9418_s1 + $0xc88] sm:$0xff]  }
 0x149   :  { %6841 = vmatprep.subr.bf16.mxu0 %v7429_v9 }
 0x14b   :  { %6862 = vmatpush3.bf16.msra.mxu1 %v7428_v8  ;;  %v7467_v8 = vld [vmem:[%s9418_s1 + $0xb18] sm:$0xff]  }
 0x14c   :  { %6863 = vmatprep.subr.bf16.mxu1 %v7430_v10  ;;  %6842 = vmatpush3.bf16.msra.mxu0 %v7431_v11  ;;  %v7468_v10 = vld [vmem:[%s9418_s1 + $0xb98] sm:$0xff]  }
 0x14d   :  { %6843 = vmatprep.subr.bf16.mxu0 %v7433_v13 }
 0x14f   :  { %6864 = vmatpush3.bf16.msra.mxu1 %v7432_v12  ;;  %v7469_v12 = vld [vmem:[%s9418_s1 + $0xb60] sm:$0xff]  }
 0x150   :  { %6865 = vmatprep.subr.bf16.mxu1 %v7434_v14  ;;  %6844 = vmatpush3.bf16.msra.mxu0 %v7435_v16 }
 0x151   :  { %6845 = vmatprep.subr.bf16.mxu0 %v7437_v20 }
 0x153   :  { %6866 = vmatpush3.bf16.msra.mxu1 %v7436_v18  ;;  %v7471_v18 = vld [vmem:[%s9418_s1 + $0xb20] sm:$0xff]  }
 0x154   :  { %6867 = vmatprep.subr.bf16.mxu1 %v7438_v23  ;;  %6846 = vmatpush3.bf16.msra.mxu0 %v7439_v26 }
 0x155   :  { %6847 = vmatprep.subr.bf16.mxu0 %v7441_v32 }
 0x156   :  { %v6545_v15 = vpop.f32.mrb[12].mxu0 }
 0x157   :  { %v6567_v17 = vpop.f32.mrb[12].mxu1  ;;  %v6546_v19 = vpop.f32.mrb[13].mxu0  ;;  %6868 = vmatpush3.bf16.msra.mxu1 %v7440_v29  ;;  %v7475_v29 = vld [vmem:[%s9418_s1 + $0xb28] sm:$0xff]  }
 0x158   :  { %v6547_v21 = vadd.f32 %v6546_v19, %v6545_v15  ;;  %v6568_v22 = vpop.f32.mrb[13].mxu1  ;;  %v6548_v25 = vpop.f32.mrb[14].mxu0  ;;  %6869 = vmatprep.subr.bf16.mxu1 %v7442_v35  ;;  %6848 = vmatpush3.bf16.msra.mxu0 %v7443_v37  ;;  %v7470_v15 = vld [vmem:[%s9418_s1 + $0xbe0] sm:$0xff]   ;;  %v7479_v35 = vld [vmem:[%s9418_s1 + $0xb30] sm:$0xff]   ;;  %v7481_v37 = vld [vmem:[%s9418_s1 + $0xb78] sm:$0xff]  }
 0x159   :  { %v6569_v24 = vadd.f32 %v6568_v22, %v6567_v17  ;;  %v6570_v28 = vpop.f32.mrb[14].mxu1  ;;  %v6549_v30 = vpop.f32.mrb[15].mxu0  ;;  %6849 = vmatprep.subr.bf16.mxu0 %v7445_v41  ;;  %v37_v41 = vld [vmem:[%s9419_s0 + $0xb0] sm:$0xff] }
 0x15a   :  { %v4783_v27 = vadd.f32 %v6547_v21, %v8679_v39  ;;  %v6550_v33 = vadd.f32 %v6549_v30, %v6548_v25  ;;  %v6571_v34 = vpop.f32.mrb[15].mxu1  ;;  %v7444_v39 = vld [vmem:[%s9418_s1 + $0xaa8] sm:$0xff]   ;;  %v7472_v21 = vld [vmem:[%s9418_s1 + $0xba0] sm:$0xff]  }
 0x15b   :  { %v6572_v36 = vadd.f32 %v6571_v34, %v6570_v28  ;;  %6870 = vmatpush3.bf16.msra.mxu1 %v7444_v39  ;;  %v7478_v34 = vld [vmem:[%s9418_s1 + $0xbf0] sm:$0xff]   ;;  %v7483_v39 = vld [vmem:[%s9418_s1 + $0xb38] sm:$0xff]  }
 0x15c   :  { %v8793_v31 = vadd.f32 %v6569_v24, %v4783_v27  ;;  %v4786_v38 = vadd.f32 %v6550_v33, %v8694_v48  ;;  %6871 = vmatprep.subr.bf16.mxu1 %v7446_v42  ;;  %6850 = vmatpush3.bf16.msra.mxu0 %v7447_v43  ;;  %v7452_v48 = vld [vmem:[%s9418_s1 + $0xab8] sm:$0xff]   ;;  %v7473_v24 = vld [vmem:[%s9418_s1 + $0xb68] sm:$0xff]   ;;  %v7477_v33 = vld [vmem:[%s9418_s1 + $0xb70] sm:$0xff]  }
 0x15d   :  { %6851 = vmatprep.subr.bf16.mxu0 %v7449_v45  ;;  %v7474_v27 = vld [vmem:[%s9418_s1 + $0xbe8] sm:$0xff]   ;;  %v69_v42 = vld [vmem:[%s9419_s0 + $0x1b0] sm:$0xff]  ;;  %v38_v43 = vld [vmem:[%s9419_s0 + $0xb8] sm:$0xff] }
 0x15e   :  { %v8808_v40 = vadd.f32 %v6572_v36, %v4786_v38  ;;  %v7480_v36 = vld [vmem:[%s9418_s1 + $0xbb0] sm:$0xff]   ;;  %v7482_v38 = vld [vmem:[%s9418_s1 + $0xbf8] sm:$0xff]   ;;  %v5866_v45 = vcombine.high %v37_v41, %v69_v42 }
 0x15f   :  { %6872 = vmatpush3.bf16.msra.mxu1 %v7448_v44  ;;  %v5865_v44 = vcombine.low %v37_v41, %v69_v42  ;;  %v7517_v41 = vld [vmem:[%s9418_s1 + $0xd40] sm:$0xff]  }
 0x160   :  { %6873 = vmatprep.subr.bf16.mxu1 %v7450_v46  ;;  %6852 = vmatpush3.bf16.msra.mxu0 %v7451_v47  ;;  %v70_v46 = vld [vmem:[%s9419_s0 + $0x1b8] sm:$0xff]  ;;  %v7518_v42 = vld [vmem:[%s9418_s1 + $0xdc0] sm:$0xff]  }
 0x161   :  { %6881 = vmatprep.subr.bf16.mxu0 %v7453_v57  ;;  %v5867_v47 = vcombine.low %v38_v43, %v70_v46  ;;  %v7493_v57 = vld [vmem:[%s9418_s1 + $0xc50] sm:$0xff]  }
 0x163   :  { %6874 = vmatpush3.bf16.msra.mxu1 %v7452_v48  ;;  %5355 = vmatmul.mubr.bf16.vlgmr.msra.gmra.mrb[40].mxu0 %v5861_v53  ;;  %v5868_v48 = vcombine.high %v38_v43, %v70_v46  ;;  %v7489_v53 = vld [vmem:[%s9418_s1 + $0xc48] sm:$0xff]   ;;  %v7519_v43 = vld [vmem:[%s9418_s1 + $0xd00] sm:$0xff]  }
 0x164   :  { %6903 = vmatprep.subr.bf16.mxu1 %v7454_v58  ;;  %6882 = vmatpush3.bf16.msra.mxu0 %v7455_v59  ;;  %v7494_v58 = vld [vmem:[%s9418_s1 + $0xcd0] sm:$0xff]   ;;  %v7522_v46 = vld [vmem:[%s9418_s1 + $0xdc8] sm:$0xff]  }
 0x165   :  { %6883 = vmatprep.subr.bf16.mxu0 %v7457_v61  ;;  %5436 = vmatprep.mubr.bf16.mxu0 %v5866_v45  ;;  %v7495_v59 = vld [vmem:[%s9418_s1 + $0xc10] sm:$0xff]   ;;  %v7497_v61 = vld [vmem:[%s9418_s1 + $0xc58] sm:$0xff]   ;;  %v7521_v45 = vld [vmem:[%s9418_s1 + $0xd48] sm:$0xff]  }
 0x166   :  { %5396 = vmatmul.mubr.bf16.vlgmr.msra.gmra.mrb[40].mxu1 %v5863_v55  ;;  %v7491_v55 = vld [vmem:[%s9418_s1 + $0xc08] sm:$0xff]  }
 0x167   :  { %6904 = vmatpush3.bf16.msra.mxu1 %v7456_v60  ;;  %5477 = vmatprep.mubr.bf16.mxu1 %v5868_v48  ;;  %v7496_v60 = vld [vmem:[%s9418_s1 + $0xc90] sm:$0xff]   ;;  %v7524_v48 = vld [vmem:[%s9418_s1 + $0xd88] sm:$0xff]  }
 0x168   :  { %6905 = vmatprep.subr.bf16.mxu1 %v7458_v62  ;;  %6884 = vmatpush3.bf16.msra.mxu0 %v7459_v63  ;;  %v7498_v62 = vld [vmem:[%s9418_s1 + $0xcd8] sm:$0xff]  }
 0x169   :  { %6885 = vmatprep.subr.bf16.mxu0 %v7461_v1 }
 0x16b   :  { %6906 = vmatpush3.bf16.msra.mxu1 %v7460_v0  ;;  %v7499_v0 = vld [vmem:[%s9418_s1 + $0xc18] sm:$0xff]  }
 0x16c   :  { %6907 = vmatprep.subr.bf16.mxu1 %v7462_v2  ;;  %6886 = vmatpush3.bf16.msra.mxu0 %v7463_v3  ;;  %v7500_v2 = vld [vmem:[%s9418_s1 + $0xc98] sm:$0xff]  }
 0x16d   :  { %6887 = vmatprep.subr.bf16.mxu0 %v7465_v5 }
 0x16f   :  { %6908 = vmatpush3.bf16.msra.mxu1 %v7464_v4  ;;  %v7501_v4 = vld [vmem:[%s9418_s1 + $0xc60] sm:$0xff]  }
 0x170   :  { %6909 = vmatprep.subr.bf16.mxu1 %v7466_v6  ;;  %6888 = vmatpush3.bf16.msra.mxu0 %v7467_v8 }
 0x171   :  { %6889 = vmatprep.subr.bf16.mxu0 %v7469_v12 }
 0x173   :  { %6910 = vmatpush3.bf16.msra.mxu1 %v7468_v10  ;;  %v7503_v10 = vld [vmem:[%s9418_s1 + $0xc20] sm:$0xff]  }
 0x174   :  { %6911 = vmatprep.subr.bf16.mxu1 %v7470_v15  ;;  %6890 = vmatpush3.bf16.msra.mxu0 %v7471_v18 }
 0x175   :  { %6891 = vmatprep.subr.bf16.mxu0 %v7473_v24 }
 0x176   :  { %v6589_v7 = vpop.f32.mrb[16].mxu0 }
 0x177   :  { %v6611_v9 = vpop.f32.mrb[16].mxu1  ;;  %v6590_v11 = vpop.f32.mrb[17].mxu0  ;;  %6912 = vmatpush3.bf16.msra.mxu1 %v7472_v21  ;;  %v7507_v21 = vld [vmem:[%s9418_s1 + $0xc28] sm:$0xff]  }
 0x178   :  { %v6591_v13 = vadd.f32 %v6590_v11, %v6589_v7  ;;  %v6612_v14 = vpop.f32.mrb[17].mxu1  ;;  %v6592_v17 = vpop.f32.mrb[18].mxu0  ;;  %6913 = vmatprep.subr.bf16.mxu1 %v7474_v27  ;;  %6892 = vmatpush3.bf16.msra.mxu0 %v7475_v29  ;;  %v7502_v7 = vld [vmem:[%s9418_s1 + $0xce0] sm:$0xff]   ;;  %v7511_v27 = vld [vmem:[%s9418_s1 + $0xc30] sm:$0xff]   ;;  %v7513_v29 = vld [vmem:[%s9418_s1 + $0xc78] sm:$0xff]  }
 0x179   :  { %v6613_v16 = vadd.f32 %v6612_v14, %v6611_v9  ;;  %v6614_v20 = vpop.f32.mrb[18].mxu1  ;;  %v6593_v22 = vpop.f32.mrb[19].mxu0  ;;  %6893 = vmatprep.subr.bf16.mxu0 %v7477_v33  ;;  %v39_v33 = vld [vmem:[%s9419_s0 + $0xc0] sm:$0xff] }
 0x17a   :  { %v4865_v19 = vadd.f32 %v6591_v13, %v8793_v31  ;;  %v6594_v25 = vadd.f32 %v6593_v22, %v6592_v17  ;;  %v6615_v26 = vpop.f32.mrb[19].mxu1  ;;  %v7476_v31 = vld [vmem:[%s9418_s1 + $0xba8] sm:$0xff]   ;;  %v7504_v13 = vld [vmem:[%s9418_s1 + $0xca0] sm:$0xff]  }
 0x17b   :  { %v6616_v28 = vadd.f32 %v6615_v26, %v6614_v20  ;;  %6914 = vmatpush3.bf16.msra.mxu1 %v7476_v31  ;;  %v7510_v26 = vld [vmem:[%s9418_s1 + $0xcf0] sm:$0xff]   ;;  %v7515_v31 = vld [vmem:[%s9418_s1 + $0xc38] sm:$0xff]  }
 0x17c   :  { %v8907_v23 = vadd.f32 %v6613_v16, %v4865_v19  ;;  %v4868_v30 = vadd.f32 %v6594_v25, %v8808_v40  ;;  %6915 = vmatprep.subr.bf16.mxu1 %v7478_v34  ;;  %6894 = vmatpush3.bf16.msra.mxu0 %v7479_v35  ;;  %v7484_v40 = vld [vmem:[%s9418_s1 + $0xbb8] sm:$0xff]   ;;  %v7505_v16 = vld [vmem:[%s9418_s1 + $0xc68] sm:$0xff]   ;;  %v7509_v25 = vld [vmem:[%s9418_s1 + $0xc70] sm:$0xff]  }
 0x17d   :  { %6895 = vmatprep.subr.bf16.mxu0 %v7481_v37  ;;  %v7506_v19 = vld [vmem:[%s9418_s1 + $0xce8] sm:$0xff]   ;;  %v71_v34 = vld [vmem:[%s9419_s0 + $0x1c0] sm:$0xff] }
 0x17e   :  { %v8922_v32 = vadd.f32 %v6616_v28, %v4868_v30  ;;  %v7512_v28 = vld [vmem:[%s9418_s1 + $0xcb0] sm:$0xff]   ;;  %v7514_v30 = vld [vmem:[%s9418_s1 + $0xcf8] sm:$0xff]   ;;  %v5869_v35 = vcombine.low %v39_v33, %v71_v34  ;;  %v40_v37 = vld [vmem:[%s9419_s0 + $0xc8] sm:$0xff] }
 0x17f   :  { %6916 = vmatpush3.bf16.msra.mxu1 %v7480_v36  ;;  %v5870_v36 = vcombine.high %v39_v33, %v71_v34  ;;  %v7549_v33 = vld [vmem:[%s9418_s1 + $0xe40] sm:$0xff]  }
 0x180   :  { %6917 = vmatprep.subr.bf16.mxu1 %v7482_v38  ;;  %6896 = vmatpush3.bf16.msra.mxu0 %v7483_v39  ;;  %v72_v38 = vld [vmem:[%s9419_s0 + $0x1c8] sm:$0xff]  ;;  %v7550_v34 = vld [vmem:[%s9418_s1 + $0xec0] sm:$0xff]  }
 0x181   :  { %6925 = vmatprep.subr.bf16.mxu0 %v7485_v49  ;;  %v5871_v39 = vcombine.low %v40_v37, %v72_v38  ;;  %v7525_v49 = vld [vmem:[%s9418_s1 + $0xd50] sm:$0xff]  }
 0x183   :  { %6918 = vmatpush3.bf16.msra.mxu1 %v7484_v40  ;;  %5437 = vmatmul.mubr.bf16.vlgmr.msra.gmra.mrb[44].mxu0 %v5865_v44  ;;  %v5872_v40 = vcombine.high %v40_v37, %v72_v38  ;;  %v7520_v44 = vld [vmem:[%s9418_s1 + $0xd80] sm:$0xff]   ;;  %v7553_v37 = vld [vmem:[%s9418_s1 + $0xe48] sm:$0xff]  }
 0x184   :  { %6947 = vmatprep.subr.bf16.mxu1 %v7486_v50  ;;  %6926 = vmatpush3.bf16.msra.mxu0 %v7487_v51  ;;  %v7526_v50 = vld [vmem:[%s9418_s1 + $0xdd0] sm:$0xff]   ;;  %v7554_v38 = vld [vmem:[%s9418_s1 + $0xec8] sm:$0xff]  }
 0x185   :  { %6927 = vmatprep.subr.bf16.mxu0 %v7489_v53  ;;  %5518 = vmatprep.mubr.bf16.mxu0 %v5870_v36  ;;  %v7527_v51 = vld [vmem:[%s9418_s1 + $0xd10] sm:$0xff]   ;;  %v7529_v53 = vld [vmem:[%s9418_s1 + $0xd58] sm:$0xff]   ;;  %v7552_v36 = vld [vmem:[%s9418_s1 + $0xe80] sm:$0xff]  }
 0x186   :  { %5478 = vmatmul.mubr.bf16.vlgmr.msra.gmra.mrb[44].mxu1 %v5867_v47  ;;  %v7523_v47 = vld [vmem:[%s9418_s1 + $0xd08] sm:$0xff]  }
 0x187   :  { %6948 = vmatpush3.bf16.msra.mxu1 %v7488_v52  ;;  %5559 = vmatprep.mubr.bf16.mxu1 %v5872_v40  ;;  %v7528_v52 = vld [vmem:[%s9418_s1 + $0xd90] sm:$0xff]   ;;  %v7556_v40 = vld [vmem:[%s9418_s1 + $0xe88] sm:$0xff]  }
 0x188   :  { %6949 = vmatprep.subr.bf16.mxu1 %v7490_v54  ;;  %6928 = vmatpush3.bf16.msra.mxu0 %v7491_v55  ;;  %v7530_v54 = vld [vmem:[%s9418_s1 + $0xdd8] sm:$0xff]  }
 0x189   :  { %6929 = vmatprep.subr.bf16.mxu0 %v7493_v57 }
 0x18b   :  { %6950 = vmatpush3.bf16.msra.mxu1 %v7492_v56  ;;  %v7531_v56 = vld [vmem:[%s9418_s1 + $0xd18] sm:$0xff]  }
 0x18c   :  { %6951 = vmatprep.subr.bf16.mxu1 %v7494_v58  ;;  %6930 = vmatpush3.bf16.msra.mxu0 %v7495_v59  ;;  %v7532_v58 = vld [vmem:[%s9418_s1 + $0xd98] sm:$0xff]  }
 0x18d   :  { %6931 = vmatprep.subr.bf16.mxu0 %v7497_v61 }
 0x18f   :  { %6952 = vmatpush3.bf16.msra.mxu1 %v7496_v60  ;;  %v7533_v60 = vld [vmem:[%s9418_s1 + $0xd60] sm:$0xff]  }
 0x190   :  { %6953 = vmatprep.subr.bf16.mxu1 %v7498_v62  ;;  %6932 = vmatpush3.bf16.msra.mxu0 %v7499_v0 }
 0x191   :  { %6933 = vmatprep.subr.bf16.mxu0 %v7501_v4 }
 0x193   :  { %6954 = vmatpush3.bf16.msra.mxu1 %v7500_v2  ;;  %v7535_v2 = vld [vmem:[%s9418_s1 + $0xd20] sm:$0xff]  }
 0x194   :  { %6955 = vmatprep.subr.bf16.mxu1 %v7502_v7  ;;  %6934 = vmatpush3.bf16.msra.mxu0 %v7503_v10 }
 0x195   :  { %6935 = vmatprep.subr.bf16.mxu0 %v7505_v16 }
 0x196   :  { %v6633_v63 = vpop.f32.mrb[20].mxu0 }
 0x197   :  { %v6655_v1 = vpop.f32.mrb[20].mxu1  ;;  %v6634_v3 = vpop.f32.mrb[21].mxu0  ;;  %6956 = vmatpush3.bf16.msra.mxu1 %v7504_v13  ;;  %v7539_v13 = vld [vmem:[%s9418_s1 + $0xd28] sm:$0xff]  }
 0x198   :  { %v6635_v5 = vadd.f32 %v6634_v3, %v6633_v63  ;;  %v6656_v6 = vpop.f32.mrb[21].mxu1  ;;  %v6636_v9 = vpop.f32.mrb[22].mxu0  ;;  %6957 = vmatprep.subr.bf16.mxu1 %v7506_v19  ;;  %6936 = vmatpush3.bf16.msra.mxu0 %v7507_v21  ;;  %v7534_v63 = vld [vmem:[%s9418_s1 + $0xde0] sm:$0xff]   ;;  %v7543_v19 = vld [vmem:[%s9418_s1 + $0xd30] sm:$0xff]   ;;  %v7545_v21 = vld [vmem:[%s9418_s1 + $0xd78] sm:$0xff]  }
 0x199   :  { %v6657_v8 = vadd.f32 %v6656_v6, %v6655_v1  ;;  %v6658_v12 = vpop.f32.mrb[22].mxu1  ;;  %v6637_v14 = vpop.f32.mrb[23].mxu0  ;;  %6937 = vmatprep.subr.bf16.mxu0 %v7509_v25  ;;  %v41_v25 = vld [vmem:[%s9419_s0 + $0xd0] sm:$0xff] }
 0x19a   :  { %v4947_v11 = vadd.f32 %v6635_v5, %v8907_v23  ;;  %v6638_v17 = vadd.f32 %v6637_v14, %v6636_v9  ;;  %v6659_v18 = vpop.f32.mrb[23].mxu1  ;;  %v7508_v23 = vld [vmem:[%s9418_s1 + $0xca8] sm:$0xff]   ;;  %v7536_v5 = vld [vmem:[%s9418_s1 + $0xda0] sm:$0xff]  }
 0x19b   :  { %v6660_v20 = vadd.f32 %v6659_v18, %v6658_v12  ;;  %6958 = vmatpush3.bf16.msra.mxu1 %v7508_v23  ;;  %v7542_v18 = vld [vmem:[%s9418_s1 + $0xdf0] sm:$0xff]   ;;  %v7547_v23 = vld [vmem:[%s9418_s1 + $0xd38] sm:$0xff]  }
 0x19c   :  { %v9021_v15 = vadd.f32 %v6657_v8, %v4947_v11  ;;  %v4950_v22 = vadd.f32 %v6638_v17, %v8922_v32  ;;  %6959 = vmatprep.subr.bf16.mxu1 %v7510_v26  ;;  %6938 = vmatpush3.bf16.msra.mxu0 %v7511_v27  ;;  %v7516_v32 = vld [vmem:[%s9418_s1 + $0xcb8] sm:$0xff]   ;;  %v7537_v8 = vld [vmem:[%s9418_s1 + $0xd68] sm:$0xff]   ;;  %v7541_v17 = vld [vmem:[%s9418_s1 + $0xd70] sm:$0xff]  }
 0x19d   :  { %6939 = vmatprep.subr.bf16.mxu0 %v7513_v29  ;;  %v7538_v11 = vld [vmem:[%s9418_s1 + $0xde8] sm:$0xff]   ;;  %v73_v26 = vld [vmem:[%s9419_s0 + $0x1d0] sm:$0xff]  ;;  %v42_v27 = vld [vmem:[%s9419_s0 + $0xd8] sm:$0xff] }
 0x19e   :  { %v9036_v24 = vadd.f32 %v6660_v20, %v4950_v22  ;;  %v7544_v20 = vld [vmem:[%s9418_s1 + $0xdb0] sm:$0xff]   ;;  %v7546_v22 = vld [vmem:[%s9418_s1 + $0xdf8] sm:$0xff]   ;;  %v5873_v29 = vcombine.low %v41_v25, %v73_v26 }
 0x19f   :  { %6960 = vmatpush3.bf16.msra.mxu1 %v7512_v28  ;;  %v74_v28 = vld [vmem:[%s9419_s0 + $0x1d8] sm:$0xff] }
 0x1a0   :  { %6961 = vmatprep.subr.bf16.mxu1 %v7514_v30  ;;  %6940 = vmatpush3.bf16.msra.mxu0 %v7515_v31  ;;  %v5874_v30 = vcombine.high %v41_v25, %v73_v26  ;;  %v5875_v31 = vcombine.low %v42_v27, %v74_v28  ;;  %v7581_v25 = vld [vmem:[%s9418_s1 + $0xf40] sm:$0xff]  }
 0x1a1   :  { %6969 = vmatprep.subr.bf16.mxu0 %v7517_v41  ;;  %v7557_v41 = vld [vmem:[%s9418_s1 + $0xe50] sm:$0xff]   ;;  %v7582_v26 = vld [vmem:[%s9418_s1 + $0xfc0] sm:$0xff]  }
 0x1a3   :  { %6962 = vmatpush3.bf16.msra.mxu1 %v7516_v32  ;;  %5519 = vmatmul.mubr.bf16.vlgmr.msra.gmra.mrb[48].mxu0 %v5869_v35  ;;  %v5876_v32 = vcombine.high %v42_v27, %v74_v28  ;;  %v7551_v35 = vld [vmem:[%s9418_s1 + $0xe00] sm:$0xff]  }
 0x1a4   :  { %6991 = vmatprep.subr.bf16.mxu1 %v7518_v42  ;;  %6970 = vmatpush3.bf16.msra.mxu0 %v7519_v43  ;;  %v7558_v42 = vld [vmem:[%s9418_s1 + $0xed0] sm:$0xff]   ;;  %v7583_v27 = vld [vmem:[%s9418_s1 + $0xf00] sm:$0xff]  }
 0x1a5   :  { %6971 = vmatprep.subr.bf16.mxu0 %v7521_v45  ;;  %5600 = vmatprep.mubr.bf16.mxu0 %v5874_v30  ;;  %v7559_v43 = vld [vmem:[%s9418_s1 + $0xe10] sm:$0xff]   ;;  %v7561_v45 = vld [vmem:[%s9418_s1 + $0xe58] sm:$0xff]   ;;  %v7584_v28 = vld [vmem:[%s9418_s1 + $0xf80] sm:$0xff]  }
 0x1a6   :  { %5560 = vmatmul.mubr.bf16.vlgmr.msra.gmra.mrb[48].mxu1 %v5871_v39  ;;  %v7555_v39 = vld [vmem:[%s9418_s1 + $0xe08] sm:$0xff]  }
 0x1a7   :  { %6992 = vmatpush3.bf16.msra.mxu1 %v7520_v44  ;;  %5641 = vmatprep.mubr.bf16.mxu1 %v5876_v32  ;;  %v7560_v44 = vld [vmem:[%s9418_s1 + $0xe90] sm:$0xff]   ;;  %v7586_v30 = vld [vmem:[%s9418_s1 + $0xfc8] sm:$0xff]  }
 0x1a8   :  { %6993 = vmatprep.subr.bf16.mxu1 %v7522_v46  ;;  %6972 = vmatpush3.bf16.msra.mxu0 %v7523_v47  ;;  %v7562_v46 = vld [vmem:[%s9418_s1 + $0xed8] sm:$0xff]   ;;  %v7588_v32 = vld [vmem:[%s9418_s1 + $0xf88] sm:$0xff]  }
 0x1a9   :  { %6973 = vmatprep.subr.bf16.mxu0 %v7525_v49  ;;  %v7563_v47 = vld [vmem:[%s9418_s1 + $0xe18] sm:$0xff]  }
 0x1aa   :  { %v7564_v49 = vld [vmem:[%s9418_s1 + $0xe98] sm:$0xff]  }
 0x1ab   :  { %6994 = vmatpush3.bf16.msra.mxu1 %v7524_v48 }
 0x1ac   :  { %6995 = vmatprep.subr.bf16.mxu1 %v7526_v50  ;;  %6974 = vmatpush3.bf16.msra.mxu0 %v7527_v51  ;;  %v7565_v51 = vld [vmem:[%s9418_s1 + $0xe60] sm:$0xff]  }
 0x1ad   :  { %6975 = vmatprep.subr.bf16.mxu0 %v7529_v53  ;;  %v7566_v53 = vld [vmem:[%s9418_s1 + $0xee0] sm:$0xff]  }
 0x1af   :  { %6996 = vmatpush3.bf16.msra.mxu1 %v7528_v52 }
 0x1b0   :  { %6997 = vmatprep.subr.bf16.mxu1 %v7530_v54  ;;  %6976 = vmatpush3.bf16.msra.mxu0 %v7531_v56  ;;  %v7567_v56 = vld [vmem:[%s9418_s1 + $0xe20] sm:$0xff]  }
 0x1b1   :  { %6977 = vmatprep.subr.bf16.mxu0 %v7533_v60 }
 0x1b3   :  { %6998 = vmatpush3.bf16.msra.mxu1 %v7532_v58 }
 0x1b4   :  { %6999 = vmatprep.subr.bf16.mxu1 %v7534_v63  ;;  %6978 = vmatpush3.bf16.msra.mxu0 %v7535_v2 }
 0x1b5   :  { %6979 = vmatprep.subr.bf16.mxu0 %v7537_v8  ;;  %v7573_v8 = vld [vmem:[%s9418_s1 + $0xe70] sm:$0xff]  }
 0x1b6   :  { %v6677_v55 = vpop.f32.mrb[24].mxu0 }
 0x1b7   :  { %v6699_v57 = vpop.f32.mrb[24].mxu1  ;;  %v6678_v59 = vpop.f32.mrb[25].mxu0  ;;  %7000 = vmatpush3.bf16.msra.mxu1 %v7536_v5 }
 0x1b8   :  { %v6679_v61 = vadd.f32 %v6678_v59, %v6677_v55  ;;  %v6700_v62 = vpop.f32.mrb[25].mxu1  ;;  %v6680_v1 = vpop.f32.mrb[26].mxu0  ;;  %7001 = vmatprep.subr.bf16.mxu1 %v7538_v11  ;;  %6980 = vmatpush3.bf16.msra.mxu0 %v7539_v13  ;;  %v7568_v59 = vld [vmem:[%s9418_s1 + $0xea0] sm:$0xff]   ;;  %v7575_v11 = vld [vmem:[%s9418_s1 + $0xe30] sm:$0xff]   ;;  %v7577_v13 = vld [vmem:[%s9418_s1 + $0xe78] sm:$0xff]  }
 0x1b9   :  { %v6701_v0 = vadd.f32 %v6700_v62, %v6699_v57  ;;  %v6702_v4 = vpop.f32.mrb[26].mxu1  ;;  %v6681_v6 = vpop.f32.mrb[27].mxu0  ;;  %6981 = vmatprep.subr.bf16.mxu0 %v7541_v17  ;;  %v7569_v62 = vld [vmem:[%s9418_s1 + $0xe68] sm:$0xff]   ;;  %v43_v17 = vld [vmem:[%s9419_s0 + $0xe0] sm:$0xff] }
 0x1ba   :  { %v5029_v3 = vadd.f32 %v6679_v61, %v9021_v15  ;;  %v6682_v9 = vadd.f32 %v6681_v6, %v6680_v1  ;;  %v6703_v10 = vpop.f32.mrb[27].mxu1  ;;  %v7540_v15 = vld [vmem:[%s9418_s1 + $0xda8] sm:$0xff]  }
 0x1bb   :  { %v6704_v12 = vadd.f32 %v6703_v10, %v6702_v4  ;;  %7002 = vmatpush3.bf16.msra.mxu1 %v7540_v15  ;;  %v7570_v1 = vld [vmem:[%s9418_s1 + $0xee8] sm:$0xff]   ;;  %v7574_v10 = vld [vmem:[%s9418_s1 + $0xef0] sm:$0xff]   ;;  %v7579_v15 = vld [vmem:[%s9418_s1 + $0xe38] sm:$0xff]  }
 0x1bc   :  { %v9135_v7 = vadd.f32 %v6701_v0, %v5029_v3  ;;  %v5032_v14 = vadd.f32 %v6682_v9, %v9036_v24  ;;  %7003 = vmatprep.subr.bf16.mxu1 %v7542_v18  ;;  %6982 = vmatpush3.bf16.msra.mxu0 %v7543_v19  ;;  %v7548_v24 = vld [vmem:[%s9418_s1 + $0xdb8] sm:$0xff]   ;;  %v7571_v4 = vld [vmem:[%s9418_s1 + $0xe28] sm:$0xff]   ;;  %v75_v18 = vld [vmem:[%s9419_s0 + $0x1e0] sm:$0xff] }
 0x1bd   :  { %6983 = vmatprep.subr.bf16.mxu0 %v7545_v21  ;;  %v7572_v6 = vld [vmem:[%s9418_s1 + $0xea8] sm:$0xff]   ;;  %v5878_v21 = vcombine.high %v43_v17, %v75_v18 }
 0x1be   :  { %v9150_v16 = vadd.f32 %v6704_v12, %v5032_v14  ;;  %v7576_v12 = vld [vmem:[%s9418_s1 + $0xeb0] sm:$0xff]   ;;  %v7578_v14 = vld [vmem:[%s9418_s1 + $0xef8] sm:$0xff]   ;;  %v44_v19 = vld [vmem:[%s9419_s0 + $0xe8] sm:$0xff] }
 0x1bf   :  { %7004 = vmatpush3.bf16.msra.mxu1 %v7544_v20  ;;  %v5877_v20 = vcombine.low %v43_v17, %v75_v18 }
 0x1c0   :  { %7005 = vmatprep.subr.bf16.mxu1 %v7546_v22  ;;  %6984 = vmatpush3.bf16.msra.mxu0 %v7547_v23  ;;  %v76_v22 = vld [vmem:[%s9419_s0 + $0x1e8] sm:$0xff] }
 0x1c1   :  { %7013 = vmatprep.subr.bf16.mxu0 %v7549_v33  ;;  %v5879_v23 = vcombine.low %v44_v19, %v76_v22  ;;  %v7589_v33 = vld [vmem:[%s9418_s1 + $0xf50] sm:$0xff]  }
 0x1c3   :  { %7006 = vmatpush3.bf16.msra.mxu1 %v7548_v24  ;;  %5601 = vmatmul.mubr.bf16.vlgmr.msra.gmra.mrb[52].mxu0 %v5873_v29  ;;  %v5880_v24 = vcombine.high %v44_v19, %v76_v22  ;;  %v7585_v29 = vld [vmem:[%s9418_s1 + $0xf48] sm:$0xff]  }
 0x1c4   :  { %7035 = vmatprep.subr.bf16.mxu1 %v7550_v34  ;;  %7014 = vmatpush3.bf16.msra.mxu0 %v7551_v35  ;;  %v7590_v34 = vld [vmem:[%s9418_s1 + $0xfd0] sm:$0xff]  }
 0x1c5   :  { %7015 = vmatprep.subr.bf16.mxu0 %v7553_v37  ;;  %5682 = vmatprep.mubr.bf16.mxu0 %v5878_v21  ;;  %v7591_v35 = vld [vmem:[%s9418_s1 + $0xf10] sm:$0xff]   ;;  %v7593_v37 = vld [vmem:[%s9418_s1 + $0xf58] sm:$0xff]  }
 0x1c6   :  { %5642 = vmatmul.mubr.bf16.vlgmr.msra.gmra.mrb[52].mxu1 %v5875_v31  ;;  %v7587_v31 = vld [vmem:[%s9418_s1 + $0xf08] sm:$0xff]  }
 0x1c7   :  { %7036 = vmatpush3.bf16.msra.mxu1 %v7552_v36  ;;  %5723 = vmatprep.mubr.bf16.mxu1 %v5880_v24  ;;  %v7592_v36 = vld [vmem:[%s9418_s1 + $0xf90] sm:$0xff]  }
 0x1c8   :  { %7037 = vmatprep.subr.bf16.mxu1 %v7554_v38  ;;  %7016 = vmatpush3.bf16.msra.mxu0 %v7555_v39  ;;  %v7594_v38 = vld [vmem:[%s9418_s1 + $0xfd8] sm:$0xff]  }
 0x1c9   :  { %7017 = vmatprep.subr.bf16.mxu0 %v7557_v41 }
 0x1cb   :  { %7038 = vmatpush3.bf16.msra.mxu1 %v7556_v40  ;;  %v7595_v40 = vld [vmem:[%s9418_s1 + $0xf18] sm:$0xff]  }
 0x1cc   :  { %7039 = vmatprep.subr.bf16.mxu1 %v7558_v42  ;;  %7018 = vmatpush3.bf16.msra.mxu0 %v7559_v43  ;;  %v7596_v42 = vld [vmem:[%s9418_s1 + $0xf98] sm:$0xff]  }
 0x1cd   :  { %7019 = vmatprep.subr.bf16.mxu0 %v7561_v45 }
 0x1cf   :  { %7040 = vmatpush3.bf16.msra.mxu1 %v7560_v44  ;;  %v7597_v44 = vld [vmem:[%s9418_s1 + $0xf60] sm:$0xff]  }
 0x1d0   :  { %7041 = vmatprep.subr.bf16.mxu1 %v7562_v46  ;;  %7020 = vmatpush3.bf16.msra.mxu0 %v7563_v47  ;;  %v7598_v47 = vld [vmem:[%s9418_s1 + $0xfe0] sm:$0xff]  }
 0x1d1   :  { %7021 = vmatprep.subr.bf16.mxu0 %v7565_v51 }
 0x1d3   :  { %7042 = vmatpush3.bf16.msra.mxu1 %v7564_v49 }
 0x1d4   :  { %7043 = vmatprep.subr.bf16.mxu1 %v7566_v53  ;;  %7022 = vmatpush3.bf16.msra.mxu0 %v7567_v56  ;;  %v7600_v53 = vld [vmem:[%s9418_s1 + $0xfa0] sm:$0xff]   ;;  %v7601_v56 = vld [vmem:[%s9418_s1 + $0xf68] sm:$0xff]  }
 0x1d5   :  { %7023 = vmatprep.subr.bf16.mxu0 %v7569_v62 }
 0x1d6   :  { %v6721_v48 = vpop.f32.mrb[28].mxu0 }
 0x1d7   :  { %v6743_v50 = vpop.f32.mrb[28].mxu1  ;;  %v6722_v52 = vpop.f32.mrb[29].mxu0  ;;  %7044 = vmatpush3.bf16.msra.mxu1 %v7568_v59  ;;  %v7602_v59 = vld [vmem:[%s9418_s1 + $0xfe8] sm:$0xff]  }
 0x1d8   :  { %v6723_v54 = vadd.f32 %v6722_v52, %v6721_v48  ;;  %v6744_v55 = vpop.f32.mrb[29].mxu1  ;;  %v6724_v58 = vpop.f32.mrb[30].mxu0  ;;  %7045 = vmatprep.subr.bf16.mxu1 %v7570_v1  ;;  %7024 = vmatpush3.bf16.msra.mxu0 %v7571_v4  ;;  %v7605_v1 = vld [vmem:[%s9418_s1 + $0xf70] sm:$0xff]  }
 0x1d9   :  { %v6745_v57 = vadd.f32 %v6744_v55, %v6743_v50  ;;  %v6746_v61 = vpop.f32.mrb[30].mxu1  ;;  %v6725_v63 = vpop.f32.mrb[31].mxu0  ;;  %7025 = vmatprep.subr.bf16.mxu0 %v7573_v8  ;;  %v7599_v50 = vld [vmem:[%s9418_s1 + $0xf20] sm:$0xff]   ;;  %v7608_v4 = vld [vmem:[%s9418_s1 + $0xfb0] sm:$0xff]   ;;  %v7612_v8 = vld [vmem:[%s9418_s1 + $0xfb8] sm:$0xff]  }
 0x1da   :  { %v5111_v60 = vadd.f32 %v6723_v54, %v9135_v7  ;;  %v6726_v2 = vadd.f32 %v6725_v63, %v6724_v58  ;;  %v6747_v3 = vpop.f32.mrb[31].mxu1  ;;  %v7604_v63 = vld [vmem:[%s9418_s1 + $0xfa8] sm:$0xff]  }
 0x1db   :  { %v6748_v5 = vadd.f32 %v6747_v3, %v6746_v61  ;;  %7046 = vmatpush3.bf16.msra.mxu1 %v7572_v6  ;;  %v7603_v61 = vld [vmem:[%s9418_s1 + $0xf28] sm:$0xff]   ;;  %v7607_v3 = vld [vmem:[%s9418_s1 + $0xf30] sm:$0xff]   ;;  %v7610_v6 = vld [vmem:[%s9418_s1 + $0xff8] sm:$0xff]  }
 0x1dc   :  { %v9252_v0 = vadd.f32 %v6745_v57, %v5111_v60  ;;  %v5114_v7 = vadd.f32 %v6726_v2, %v9150_v16  ;;  %7047 = vmatprep.subr.bf16.mxu1 %v7574_v10  ;;  %7026 = vmatpush3.bf16.msra.mxu0 %v7575_v11  ;;  %v7580_v16 = vld [vmem:[%s9418_s1 + $0xeb8] sm:$0xff]   ;;  %v7606_v2 = vld [vmem:[%s9418_s1 + $0xff0] sm:$0xff]  }
 0x1dd   :  { %7027 = vmatprep.subr.bf16.mxu0 %v7577_v13  ;;  %v77_v10 = vld [vmem:[%s9419_s0 + $0x1f0] sm:$0xff]  ;;  %v46_v13 = vld [vmem:[%s9419_s0 + $0xf8] sm:$0xff] }
 0x1de   :  { %v9267_v9 = vadd.f32 %v6748_v5, %v5114_v7  ;;  %v7609_v5 = vld [vmem:[%s9418_s1 + $0xf78] sm:$0xff]  }
 0x1df   :  { %7048 = vmatpush3.bf16.msra.mxu1 %v7576_v12  ;;  %v7611_v7 = vld [vmem:[%s9418_s1 + $0xf38] sm:$0xff]  }
 0x1e0   :  { %7049 = vmatprep.subr.bf16.mxu1 %v7578_v14  ;;  %7028 = vmatpush3.bf16.msra.mxu0 %v7579_v15  ;;  %v78_v14 = vld [vmem:[%s9419_s0 + $0x1f8] sm:$0xff] }
 0x1e1   :  { %7057 = vmatprep.subr.bf16.mxu0 %v7581_v25  ;;  %v5883_v15 = vcombine.low %v46_v13, %v78_v14 }
 0x1e3   :  { %7050 = vmatpush3.bf16.msra.mxu1 %v7580_v16  ;;  %5683 = vmatmul.mubr.bf16.vlgmr.msra.gmra.mrb[56].mxu0 %v5877_v20  ;;  %v5884_v16 = vcombine.high %v46_v13, %v78_v14 }
 0x1e4   :  { %7079 = vmatprep.subr.bf16.mxu1 %v7582_v26  ;;  %7058 = vmatpush3.bf16.msra.mxu0 %v7583_v27 }
 0x1e5   :  { %7059 = vmatprep.subr.bf16.mxu0 %v7585_v29 }
 0x1e6   :  { %5724 = vmatmul.mubr.bf16.vlgmr.msra.gmra.mrb[56].mxu1 %v5879_v23 }
 0x1e7   :  { %7080 = vmatpush3.bf16.msra.mxu1 %v7584_v28  ;;  %5805 = vmatprep.mubr.bf16.mxu1 %v5884_v16 }
 0x1e8   :  { %7081 = vmatprep.subr.bf16.mxu1 %v7586_v30  ;;  %7060 = vmatpush3.bf16.msra.mxu0 %v7587_v31 }
 0x1e9   :  { %7061 = vmatprep.subr.bf16.mxu0 %v7589_v33 }
 0x1eb   :  { %7082 = vmatpush3.bf16.msra.mxu1 %v7588_v32 }
 0x1ec   :  { %7083 = vmatprep.subr.bf16.mxu1 %v7590_v34  ;;  %7062 = vmatpush3.bf16.msra.mxu0 %v7591_v35 }
 0x1ed   :  { %7063 = vmatprep.subr.bf16.mxu0 %v7593_v37 }
 0x1ef   :  { %7084 = vmatpush3.bf16.msra.mxu1 %v7592_v36 }
 0x1f0   :  { %7085 = vmatprep.subr.bf16.mxu1 %v7594_v38  ;;  %7064 = vmatpush3.bf16.msra.mxu0 %v7595_v40 }
 0x1f1   :  { %7065 = vmatprep.subr.bf16.mxu0 %v7597_v44 }
 0x1f3   :  { %7086 = vmatpush3.bf16.msra.mxu1 %v7596_v42 }
 0x1f4   :  { %7087 = vmatprep.subr.bf16.mxu1 %v7598_v47  ;;  %7066 = vmatpush3.bf16.msra.mxu0 %v7599_v50 }
 0x1f5   :  { %7067 = vmatprep.subr.bf16.mxu0 %v7601_v56 }
 0x1f6   :  { %v6765_v39 = vpop.f32.mrb[32].mxu0 }
 0x1f7   :  { %v6787_v41 = vpop.f32.mrb[32].mxu1  ;;  %v6766_v43 = vpop.f32.mrb[33].mxu0  ;;  %7088 = vmatpush3.bf16.msra.mxu1 %v7600_v53 }
 0x1f8   :  { %v6767_v45 = vadd.f32 %v6766_v43, %v6765_v39  ;;  %v6788_v46 = vpop.f32.mrb[33].mxu1  ;;  %v6768_v49 = vpop.f32.mrb[34].mxu0  ;;  %7089 = vmatprep.subr.bf16.mxu1 %v7602_v59  ;;  %7068 = vmatpush3.bf16.msra.mxu0 %v7603_v61 }
 0x1f9   :  { %v6789_v48 = vadd.f32 %v6788_v46, %v6787_v41  ;;  %v6790_v52 = vpop.f32.mrb[34].mxu1  ;;  %v6769_v54 = vpop.f32.mrb[35].mxu0  ;;  %7069 = vmatprep.subr.bf16.mxu0 %v7605_v1 }
 0x1fa   :  { %v5193_v51 = vadd.f32 %v6767_v45, %v9252_v0  ;;  %v6770_v57 = vadd.f32 %v6769_v54, %v6768_v49  ;;  %v6791_v58 = vpop.f32.mrb[35].mxu1 }
 0x1fb   :  { %v6792_v60 = vadd.f32 %v6791_v58, %v6790_v52  ;;  %7090 = vmatpush3.bf16.msra.mxu1 %v7604_v63 }
 0x1fc   :  { %v5234_v55 = vadd.f32 %v6789_v48, %v5193_v51  ;;  %v5196_v62 = vadd.f32 %v6770_v57, %v9267_v9  ;;  %7091 = vmatprep.subr.bf16.mxu1 %v7606_v2  ;;  %7070 = vmatpush3.bf16.msra.mxu0 %v7607_v3  ;;  %v45_v9 = vld [vmem:[%s9419_s0 + $0xf0] sm:$0xff] }
 0x1fd   :  { %7071 = vmatprep.subr.bf16.mxu0 %v7609_v5  ;;  %v5881_v11 = vcombine.low %v45_v9, %v77_v10  ;;  %v5882_v12 = vcombine.high %v45_v9, %v77_v10 }
 0x1fe   :  { %v5237_v0 = vadd.f32 %v6792_v60, %v5196_v62 }
 0x1ff   :  { %7092 = vmatpush3.bf16.msra.mxu1 %v7608_v4  ;;  %5764 = vmatprep.mubr.bf16.mxu0 %v5882_v12 }
 0x200   :  { %7093 = vmatprep.subr.bf16.mxu1 %v7610_v6  ;;  %7072 = vmatpush3.bf16.msra.mxu0 %v7611_v7 }
 0x203   :  { %7094 = vmatpush3.bf16.msra.mxu1 %v7612_v8  ;;  %5765 = vmatmul.mubr.bf16.vlgmr.msra.gmra.mrb[60].mxu0 %v5881_v11 }
 0x206   :  { %5806 = vmatmul.mubr.bf16.vlgmr.msra.gmra.mrb[60].mxu1 %v5883_v15 }
 0x216   :  { %v6809_v17 = vpop.f32.mrb[36].mxu0 }
 0x217   :  { %v6810_v19 = vpop.f32.mrb[37].mxu0 }
 0x218   :  { %v6811_v20 = vadd.f32 %v6810_v19, %v6809_v17  ;;  %v6812_v22 = vpop.f32.mrb[38].mxu0 }
 0x219   :  { %v6831_v18 = vpop.f32.mrb[36].mxu1  ;;  %v6813_v25 = vpop.f32.mrb[39].mxu0 }
 0x21a   :  { %v6832_v21 = vpop.f32.mrb[37].mxu1  ;;  %v5275_v26 = vadd.f32 %v6811_v20, %v5234_v55  ;;  %v6814_v27 = vadd.f32 %v6813_v25, %v6812_v22 }
 0x21b   :  { %v6833_v23 = vadd.f32 %v6832_v21, %v6831_v18  ;;  %v6834_v24 = vpop.f32.mrb[38].mxu1 }
 0x21c   :  { %v6835_v28 = vpop.f32.mrb[39].mxu1  ;;  %v5278_v31 = vadd.f32 %v6814_v27, %v5237_v0 }
 0x21d   :  { %v6836_v29 = vadd.f32 %v6835_v28, %v6834_v24  ;;  %v5316_v30 = vadd.f32 %v6833_v23, %v5275_v26 }
 0x21f   :  { %v5319_v32 = vadd.f32 %v6836_v29, %v5278_v31 }
 0x236   :  { %v6853_v33 = vpop.f32.mrb[40].mxu0 }
 0x237   :  { %v6854_v35 = vpop.f32.mrb[41].mxu0 }
 0x238   :  { %v6855_v37 = vadd.f32 %v6854_v35, %v6853_v33  ;;  %v6856_v39 = vpop.f32.mrb[42].mxu0 }
 0x239   :  { %v6875_v34 = vpop.f32.mrb[40].mxu1  ;;  %v6857_v41 = vpop.f32.mrb[43].mxu0 }
 0x23a   :  { %v6876_v36 = vpop.f32.mrb[41].mxu1  ;;  %v5357_v43 = vadd.f32 %v6855_v37, %v5316_v30  ;;  %v6858_v44 = vadd.f32 %v6857_v41, %v6856_v39 }
 0x23b   :  { %v6877_v38 = vadd.f32 %v6876_v36, %v6875_v34  ;;  %v6878_v40 = vpop.f32.mrb[42].mxu1 }
 0x23c   :  { %v6879_v42 = vpop.f32.mrb[43].mxu1  ;;  %v5360_v47 = vadd.f32 %v6858_v44, %v5319_v32 }
 0x23d   :  { %v6880_v45 = vadd.f32 %v6879_v42, %v6878_v40  ;;  %v5398_v46 = vadd.f32 %v6877_v38, %v5357_v43 }
 0x23f   :  { %v5401_v48 = vadd.f32 %v6880_v45, %v5360_v47 }
 0x256   :  { %v6897_v49 = vpop.f32.mrb[44].mxu0 }
 0x257   :  { %v6898_v51 = vpop.f32.mrb[45].mxu0 }
 0x258   :  { %v6899_v52 = vadd.f32 %v6898_v51, %v6897_v49  ;;  %v6900_v54 = vpop.f32.mrb[46].mxu0 }
 0x259   :  { %v6919_v50 = vpop.f32.mrb[44].mxu1  ;;  %v6901_v57 = vpop.f32.mrb[47].mxu0 }
 0x25a   :  { %v6920_v53 = vpop.f32.mrb[45].mxu1  ;;  %v5439_v58 = vadd.f32 %v6899_v52, %v5398_v46  ;;  %v6902_v59 = vadd.f32 %v6901_v57, %v6900_v54 }
 0x25b   :  { %v6921_v55 = vadd.f32 %v6920_v53, %v6919_v50  ;;  %v6922_v56 = vpop.f32.mrb[46].mxu1 }
 0x25c   :  { %v6923_v60 = vpop.f32.mrb[47].mxu1  ;;  %v5442_v63 = vadd.f32 %v6902_v59, %v5401_v48 }
 0x25d   :  { %v6924_v61 = vadd.f32 %v6923_v60, %v6922_v56  ;;  %v5480_v62 = vadd.f32 %v6921_v55, %v5439_v58 }
 0x25f   :  { %v5483_v0 = vadd.f32 %v6924_v61, %v5442_v63 }
 0x276   :  { %v6941_v1 = vpop.f32.mrb[48].mxu0 }
 0x277   :  { %v6942_v3 = vpop.f32.mrb[49].mxu0 }
 0x278   :  { %v6943_v4 = vadd.f32 %v6942_v3, %v6941_v1  ;;  %v6944_v6 = vpop.f32.mrb[50].mxu0 }
 0x279   :  { %v6963_v2 = vpop.f32.mrb[48].mxu1  ;;  %v6945_v9 = vpop.f32.mrb[51].mxu0 }
 0x27a   :  { %v6964_v5 = vpop.f32.mrb[49].mxu1  ;;  %v5521_v10 = vadd.f32 %v6943_v4, %v5480_v62  ;;  %v6946_v11 = vadd.f32 %v6945_v9, %v6944_v6 }
 0x27b   :  { %v6965_v7 = vadd.f32 %v6964_v5, %v6963_v2  ;;  %v6966_v8 = vpop.f32.mrb[50].mxu1 }
 0x27c   :  { %v6967_v12 = vpop.f32.mrb[51].mxu1  ;;  %v5524_v15 = vadd.f32 %v6946_v11, %v5483_v0 }
 0x27d   :  { %v6968_v13 = vadd.f32 %v6967_v12, %v6966_v8  ;;  %v5562_v14 = vadd.f32 %v6965_v7, %v5521_v10 }
 0x27f   :  { %v5565_v16 = vadd.f32 %v6968_v13, %v5524_v15 }
 0x296   :  { %v6985_v17 = vpop.f32.mrb[52].mxu0 }
 0x297   :  { %v6986_v19 = vpop.f32.mrb[53].mxu0 }
 0x298   :  { %v6987_v21 = vadd.f32 %v6986_v19, %v6985_v17  ;;  %v6988_v23 = vpop.f32.mrb[54].mxu0 }
 0x299   :  { %v7007_v18 = vpop.f32.mrb[52].mxu1  ;;  %v6989_v25 = vpop.f32.mrb[55].mxu0 }
 0x29a   :  { %v7008_v20 = vpop.f32.mrb[53].mxu1  ;;  %v5603_v27 = vadd.f32 %v6987_v21, %v5562_v14  ;;  %v6990_v28 = vadd.f32 %v6989_v25, %v6988_v23 }
 0x29b   :  { %v7009_v22 = vadd.f32 %v7008_v20, %v7007_v18  ;;  %v7010_v24 = vpop.f32.mrb[54].mxu1 }
 0x29c   :  { %v7011_v26 = vpop.f32.mrb[55].mxu1  ;;  %v5606_v31 = vadd.f32 %v6990_v28, %v5565_v16 }
 0x29d   :  { %v7012_v29 = vadd.f32 %v7011_v26, %v7010_v24  ;;  %v5644_v30 = vadd.f32 %v7009_v22, %v5603_v27 }
 0x29f   :  { %v5647_v32 = vadd.f32 %v7012_v29, %v5606_v31 }
 0x2b6   :  { %v7029_v33 = vpop.f32.mrb[56].mxu0 }
 0x2b7   :  { %v7030_v35 = vpop.f32.mrb[57].mxu0 }
 0x2b8   :  { %v7031_v36 = vadd.f32 %v7030_v35, %v7029_v33  ;;  %v7032_v38 = vpop.f32.mrb[58].mxu0 }
 0x2b9   :  { %v7051_v34 = vpop.f32.mrb[56].mxu1  ;;  %v7033_v41 = vpop.f32.mrb[59].mxu0 }
 0x2ba   :  { %v7052_v37 = vpop.f32.mrb[57].mxu1  ;;  %v5685_v42 = vadd.f32 %v7031_v36, %v5644_v30  ;;  %v7034_v43 = vadd.f32 %v7033_v41, %v7032_v38 }
 0x2bb   :  { %v7053_v39 = vadd.f32 %v7052_v37, %v7051_v34  ;;  %v7054_v40 = vpop.f32.mrb[58].mxu1 }
 0x2bc   :  { %v7055_v44 = vpop.f32.mrb[59].mxu1  ;;  %v5688_v47 = vadd.f32 %v7034_v43, %v5647_v32 }
 0x2bd   :  { %v7056_v45 = vadd.f32 %v7055_v44, %v7054_v40  ;;  %v5726_v46 = vadd.f32 %v7053_v39, %v5685_v42 }
 0x2bf   :  { %v5729_v48 = vadd.f32 %v7056_v45, %v5688_v47 }
 0x2d6   :  { %v7073_v49 = vpop.f32.mrb[60].mxu0 }
 0x2d7   :  { %v7074_v51 = vpop.f32.mrb[61].mxu0 }
 0x2d8   :  { %v7075_v52 = vadd.f32 %v7074_v51, %v7073_v49  ;;  %v7076_v54 = vpop.f32.mrb[62].mxu0 }
 0x2d9   :  { %v7095_v50 = vpop.f32.mrb[60].mxu1  ;;  %v7077_v57 = vpop.f32.mrb[63].mxu0 }
 0x2da   :  { %v7096_v53 = vpop.f32.mrb[61].mxu1  ;;  %v5767_v58 = vadd.f32 %v7075_v52, %v5726_v46  ;;  %v7078_v59 = vadd.f32 %v7077_v57, %v7076_v54 }
 0x2db   :  { %v7097_v55 = vadd.f32 %v7096_v53, %v7095_v50  ;;  %v7098_v56 = vpop.f32.mrb[62].mxu1 }
 0x2dc   :  { %v7099_v60 = vpop.f32.mrb[63].mxu1  ;;  %v5770_v63 = vadd.f32 %v7078_v59, %v5729_v48 }
 0x2dd   :  { %v7100_v61 = vadd.f32 %v7099_v60, %v7098_v56  ;;  %v5808_v62 = vadd.f32 %v7097_v55, %v5767_v58 }
 0x2df   :  { %5814 = vst [vmem:[%s9421_s3] sm:$0xff] %v5808_v62  ;;  %v5811_v0 = vadd.f32 %v7100_v61, %v5770_v63 }
 0x2e1   :  { %5815 = vst [vmem:[%s9421_s3 + $0x8] sm:$0xff] %v5811_v0 }

</bundles_post_ra>
